<compile_context>
chip_gen: v5e
topology: v5e:2x2
jax: 0.10.0
libtpu: 0.0.40
codegen_flags: <defaults>
</compile_context>

<pallas_src>
import jax
import jax.numpy as jnp
import numpy as np
from jax import lax
from jax.experimental import pallas as pl
from jax.experimental.pallas import tpu as pltpu


# ----------------------------------------------------------------------------
# Static problem geometry (LeNet on 32x32 RGB, batch 2)
# ----------------------------------------------------------------------------
B = 2
C0, H0, W0 = 3, 32, 32
KS = 5                        # conv kernel size
C1, C2 = 6, 16                # conv output channels
HP1 = WP1 = 14                # pooled-conv1 grid (also conv2's output grid)
PITCH1 = 16                   # padded row pitch of the 14-wide grid (aligned)
IMG1 = HP1 * PITCH1           # 224 rows per image on the pitch-16 grid
M1 = B * IMG1                 # 448 rows total
HP2 = WP2 = 5                 # pooled-conv2 grid
NPOS = HP2 * WP2              # 25 spatial positions feeding fc1
CP = 128                      # lane-padded channel width (lane-dense)
K1 = 6 * 6 * C0               # 108: 6x6 (pool-window extended) conv1 patch

P1_ROWS = M1 + 8              # pooled conv1 + kx-shift read padding
P1U_ROWS = M1 + 5 * PITCH1    # kx-unfolded conv1 + ky-shift read padding


# ----------------------------------------------------------------------------
# The fused Pallas kernel: whole forward pass, activations resident in VMEM
# ----------------------------------------------------------------------------
def lenet_kernel(a0_ref, w1_ref, b1_ref, w2_ref, b2_ref,
                 f1w_ref, f1b_ref, f2w_ref, f2b_ref, f3w_ref, f3b_ref,
                 out_ref, p1_ref, p1u_ref, o2_ref):
    f32 = jnp.float32
    bf16 = jnp.bfloat16

    # ---- conv1 (5x5, 3->6) + maxpool1, fused: one dot, pool via lane groups.
    # a0 row (b,i,j) holds the 6x6x3 input patch at (2i,2j); w1's output lane
    # group q in {0..3} (lanes q*32..) holds filter responses for window tap q.
    o1 = jnp.dot(a0_ref[...], w1_ref[...], preferred_element_type=f32)   # (M1,128)
    m = jnp.maximum(o1, pltpu.roll(o1, 64, 1))
    m = jnp.maximum(m, pltpu.roll(m, 32, 1))             # lanes 0:6 = pooled conv1
    lane = lax.broadcasted_iota(jnp.int32, (M1, CP), 1)
    p1v = jnp.where(lane < C1, m + b1_ref[...], 0.0)
    p1_ref[0:M1, :] = p1v
    p1_ref[M1:P1_ROWS, :] = jnp.zeros((P1_ROWS - M1, CP), f32)

    # ---- kx-unfold the pooled activation: lane group kx*8 holds p1[., w+kx, :]
    u = p1v
    for dx in range(1, 6):
        u = u + pltpu.roll(p1_ref[dx:dx + M1, :], dx * 8, 1)
    p1u_ref[0:M1, :] = u.astype(bf16)
    p1u_ref[M1:P1U_ROWS, :] = jnp.zeros((P1U_ROWS - M1, CP), bf16)

    # ---- conv2 (5x5, 6->16) + maxpool2, fused: 6 ky-shifted dots (K=48 live
    # lanes each) accumulated in a register-resident value, pool via lane groups.
    acc = jnp.dot(p1u_ref[0:M1, :], w2_ref[0], preferred_element_type=f32)
    for dy in range(1, 6):
        acc = acc + jnp.dot(p1u_ref[dy * PITCH1: dy * PITCH1 + M1, :],
                            w2_ref[dy], preferred_element_type=f32)
    m2 = jnp.maximum(acc, pltpu.roll(acc, 64, 1))
    m2 = jnp.maximum(m2, pltpu.roll(m2, 32, 1))          # lanes 0:16 = pooled conv2
    o2_ref[...] = m2 + b2_ref[...]

    # ---- MLP head: 25 per-position K=16 dots (PyTorch (C,H,W) flatten order
    # is folded into f1w), then two small dense layers.
    acc1 = jnp.zeros((B, CP), f32)
    for pos in range(NPOS):
        i, j = pos // WP2, pos % WP2
        rows = o2_ref[pl.ds(2 * i * PITCH1 + 2 * j, B, stride=IMG1), :]
        acc1 = acc1 + jnp.dot(rows[:, :C2].astype(bf16), f1w_ref[pos],
                              preferred_element_type=f32)
    h = jnp.maximum(acc1 + f1b_ref[...], 0.0)
    h = jnp.maximum(jnp.dot(h.astype(bf16), f2w_ref[...],
                            preferred_element_type=f32) + f2b_ref[...], 0.0)
    out_ref[...] = jnp.dot(h.astype(bf16), f3w_ref[...],
                           preferred_element_type=f32) + f3b_ref[...]


def _full_spec(shape):
    nd = len(shape)
    return pl.BlockSpec(shape, lambda i, _nd=nd: (0,) * _nd)


# ----------------------------------------------------------------------------
# Forward pass wrapper (single pallas_call)
# ----------------------------------------------------------------------------
@jax.jit
def net_forward(x, kp):
    # Wrapper-side im2col: 6x6 (pool-window extended) patches at stride 2, row
    # pitch padded 14->16 so every in-kernel slab is sublane aligned.  ~110 KB.
    xt = jnp.transpose(x, (0, 2, 3, 1)).astype(jnp.float32)        # (B,32,32,3)
    pats = [xt[:, dy:dy + 27:2, dx:dx + 27:2, :]
            for dy in range(6) for dx in range(6)]
    a0 = jnp.concatenate(pats, axis=-1)                            # (B,14,14,108)
    a0 = jnp.pad(a0, ((0, 0), (0, 0), (0, PITCH1 - WP1), (0, CP - K1)))
    a0 = a0.reshape(M1, CP).astype(jnp.bfloat16)

    args = (a0, kp["w1"], kp["b1"], kp["w2"], kp["b2"],
            kp["f1w"], kp["f1b"], kp["f2w"], kp["f2b"],
            kp["f3w"], kp["f3b"])

    out = pl.pallas_call(
        lenet_kernel,
        out_shape=jax.ShapeDtypeStruct((B, CP), jnp.float32),
        grid=(1,),
        in_specs=[_full_spec(a.shape) for a in args],
        out_specs=_full_spec((B, CP)),
        scratch_shapes=[
            pltpu.VMEM((P1_ROWS, CP), jnp.float32),     # pooled conv1
            pltpu.VMEM((P1U_ROWS, CP), jnp.bfloat16),   # kx-unfolded pooled conv1
            pltpu.VMEM((M1, CP), jnp.float32),          # pooled conv2
        ],
        compiler_params=pltpu.CompilerParams(
            dimension_semantics=("arbitrary",)),
    )(*args)
    return out[:, :10]


# ----------------------------------------------------------------------------
# Parameters (PyTorch-default-style init) + one-time kernel-layout prep
# ----------------------------------------------------------------------------
def make_params(key):
    ks = jax.random.split(key, 10)

    def u(k, shape, fan_in):
        bound = 1.0 / (fan_in ** 0.5)
        return jax.random.uniform(k, shape, jnp.float32, -bound, bound)

    return dict(
        conv1_w=u(ks[0], (6, 3, 5, 5), 3 * 25),
        conv1_b=u(ks[1], (6,), 3 * 25),
        conv2_w=u(ks[2], (16, 6, 5, 5), 6 * 25),
        conv2_b=u(ks[3], (16,), 6 * 25),
        fc1_w=u(ks[4], (120, 400), 400),
        fc1_b=u(ks[5], (120,), 400),
        fc2_w=u(ks[6], (84, 120), 120),
        fc2_b=u(ks[7], (84,), 120),
        fc3_w=u(ks[8], (10, 84), 84),
        fc3_b=u(ks[9], (10,), 84),
    )


def prepare_kernel_params(p):
    """One-time host-side re-layout (outside the jitted forward)."""
    cw1 = np.asarray(p["conv1_w"], np.float32)   # (6,3,5,5)
    cw2 = np.asarray(p["conv2_w"], np.float32)   # (16,6,5,5)

    # conv1+pool1 fused weight: K index = dy*18 + dx*3 + ci over the 6x6x3
    # patch; output lane group q=(qy,qx) holds the conv for window tap q.
    w1 = np.zeros((CP, CP), np.float32)
    for q in range(4):
        qy, qx = q // 2, q % 2
        for dy in range(6):
            for dx in range(6):
                ky, kx = dy - qy, dx - qx
                if 0 <= ky < KS and 0 <= kx < KS:
                    for ci in range(C0):
                        w1[dy * 18 + dx * 3 + ci,
                           q * 32: q * 32 + C1] = cw1[:, ci, ky, kx]

    # conv2+pool2 fused weights, one per dy tap: K lane = dx*8 + ci of the
    # kx-unfolded pooled-conv1 activation; output lane group q*32 + co.
    w2 = np.zeros((6, CP, CP), np.float32)
    for dy in range(6):
        for q in range(4):
            qy, qx = q // 2, q % 2
            ky = dy - qy
            if not (0 <= ky < KS):
                continue
            for dx in range(6):
                kx = dx - qx
                if not (0 <= kx < KS):
                    continue
                for ci in range(C1):
                    w2[dy, dx * 8 + ci,
                       q * 32: q * 32 + C2] = cw2[:, ci, ky, kx]

    # fc1 per-spatial-position K=16 slices; PyTorch (C,H,W) flatten absorbed.
    f1 = np.transpose(np.asarray(p["fc1_w"], np.float32).reshape(120, C2, NPOS),
                      (2, 1, 0))                                    # (25,16,120)

    def padded(a, shape):
        out = np.zeros(shape, np.float32)
        out[tuple(slice(0, d) for d in a.shape)] = np.asarray(a, np.float32)
        return out

    bf16, f32 = jnp.bfloat16, jnp.float32
    return dict(
        w1=jnp.asarray(w1, bf16),
        b1=jnp.asarray(padded(np.asarray(p["conv1_b"]).reshape(1, C1), (1, CP)), f32),
        w2=jnp.asarray(w2, bf16),
        b2=jnp.asarray(padded(np.asarray(p["conv2_b"]).reshape(1, C2), (1, CP)), f32),
        f1w=jnp.asarray(padded(f1, (NPOS, C2, CP)), bf16),
        f1b=jnp.asarray(padded(np.asarray(p["fc1_b"]).reshape(1, 120), (1, CP)), f32),
        f2w=jnp.asarray(padded(np.asarray(p["fc2_w"]).T, (CP, CP)), bf16),
        f2b=jnp.asarray(padded(np.asarray(p["fc2_b"]).reshape(1, 84), (1, CP)), f32),
        f3w=jnp.asarray(padded(np.asarray(p["fc3_w"]).T, (CP, CP)), bf16),
        f3b=jnp.asarray(padded(np.asarray(p["fc3_b"]).reshape(1, 10), (1, CP)), f32),
    )


# ----------------------------------------------------------------------------
# Pure-JAX reference (correctness check)
# ----------------------------------------------------------------------------
def reference_forward(x, params):
    dn = ("NCHW", "OIHW", "NCHW")
    y = lax.conv_general_dilated(x, params["conv1_w"], (1, 1), "VALID",
                                 dimension_numbers=dn)
    y = y + params["conv1_b"][None, :, None, None]
    y = lax.reduce_window(y, -jnp.inf, lax.max, (1, 1, 2, 2), (1, 1, 2, 2), "VALID")
    y = lax.conv_general_dilated(y, params["conv2_w"], (1, 1), "VALID",
                                 dimension_numbers=dn)
    y = y + params["conv2_b"][None, :, None, None]
    y = lax.reduce_window(y, -jnp.inf, lax.max, (1, 1, 2, 2), (1, 1, 2, 2), "VALID")
    y = y.reshape(x.shape[0], -1)
    y = jnp.maximum(y @ params["fc1_w"].T + params["fc1_b"], 0.0)
    y = jnp.maximum(y @ params["fc2_w"].T + params["fc2_b"], 0.0)
    return y @ params["fc3_w"].T + params["fc3_b"]


if __name__ == "__main__":
    x = jax.random.normal(jax.random.PRNGKey(0), (B, C0, H0, W0), jnp.float32)
    params = make_params(jax.random.PRNGKey(42))
    kparams = prepare_kernel_params(params)        # one-time, outside the jit

    out = jax.block_until_ready(net_forward(x, kparams))
    assert out.shape == (B, 10), out.shape

    ref = reference_forward(x, params)
    err = float(jnp.max(jnp.abs(out - ref)))
    # bf16 operands with f32 accumulation; tolerance covers the bf16 rounding.
    assert err < 2e-2, f"max abs err {err}"
    print("KERNEL_OK")
</pallas_src>

<mosaic_0001>
module attributes {stable_mosaic.version = 11 : i64} {
  func.func @lenet_kernel(%arg0: i32, %arg1: memref<448x128xbf16, #tpu.memory_space<vmem>>, %arg2: memref<128x128xbf16, #tpu.memory_space<vmem>>, %arg3: memref<1x128xf32, #tpu.memory_space<vmem>>, %arg4: memref<6x128x128xbf16, #tpu.memory_space<vmem>>, %arg5: memref<1x128xf32, #tpu.memory_space<vmem>>, %arg6: memref<25x16x128xbf16, #tpu.memory_space<vmem>>, %arg7: memref<1x128xf32, #tpu.memory_space<vmem>>, %arg8: memref<128x128xbf16, #tpu.memory_space<vmem>>, %arg9: memref<1x128xf32, #tpu.memory_space<vmem>>, %arg10: memref<128x128xbf16, #tpu.memory_space<vmem>>, %arg11: memref<1x128xf32, #tpu.memory_space<vmem>>, %arg12: memref<2x128xf32, #tpu.memory_space<vmem>>, %arg13: memref<456x128xf32, #tpu.memory_space<vmem>>, %arg14: memref<528x128xbf16, #tpu.memory_space<vmem>>, %arg15: memref<448x128xf32, #tpu.memory_space<vmem>>) attributes {dimension_semantics = [#tpu.dimension_semantics<arbitrary>], iteration_bounds = array<i64: 1>, scalar_prefetch = 0 : i64, scratch_operands = 3 : i64, tpu.core_type = #tpu.core_type<tc>, window_params = [{pipeline_mode = #tpu.pipeline_mode<synchronous>, transform_indices = @transform_0, window_bounds = array<i64: 448, 128>}, {pipeline_mode = #tpu.pipeline_mode<synchronous>, transform_indices = @transform_1, window_bounds = array<i64: 128, 128>}, {pipeline_mode = #tpu.pipeline_mode<synchronous>, transform_indices = @transform_2, window_bounds = array<i64: 1, 128>}, {pipeline_mode = #tpu.pipeline_mode<synchronous>, transform_indices = @transform_3, window_bounds = array<i64: 6, 128, 128>}, {pipeline_mode = #tpu.pipeline_mode<synchronous>, transform_indices = @transform_4, window_bounds = array<i64: 1, 128>}, {pipeline_mode = #tpu.pipeline_mode<synchronous>, transform_indices = @transform_5, window_bounds = array<i64: 25, 16, 128>}, {pipeline_mode = #tpu.pipeline_mode<synchronous>, transform_indices = @transform_6, window_bounds = array<i64: 1, 128>}, {pipeline_mode = #tpu.pipeline_mode<synchronous>, transform_indices = @transform_7, window_bounds = array<i64: 128, 128>}, {pipeline_mode = #tpu.pipeline_mode<synchronous>, transform_indices = @transform_8, window_bounds = array<i64: 1, 128>}, {pipeline_mode = #tpu.pipeline_mode<synchronous>, transform_indices = @transform_9, window_bounds = array<i64: 128, 128>}, {pipeline_mode = #tpu.pipeline_mode<synchronous>, transform_indices = @transform_10, window_bounds = array<i64: 1, 128>}, {pipeline_mode = #tpu.pipeline_mode<synchronous>, transform_indices = @transform_11, window_bounds = array<i64: 2, 128>}]} {
    %c0 = arith.constant 0 : index
    %c0_0 = arith.constant 0 : index
    %0 = vector.load %arg1[%c0, %c0_0] : memref<448x128xbf16, #tpu.memory_space<vmem>>, vector<448x128xbf16>
    %c0_1 = arith.constant 0 : index
    %c0_2 = arith.constant 0 : index
    %1 = vector.load %arg2[%c0_1, %c0_2] : memref<128x128xbf16, #tpu.memory_space<vmem>>, vector<128x128xbf16>
    %cst = arith.constant dense<0.000000e+00> : vector<448x128xf32>
    %2 = tpu.matmul %0, %1, %cst {dimension_numbers = #tpu.dot_dimension_numbers<[1], [0], [0], [1], [0, 0, 1, 1], [], []>} : vector<448x128xbf16>, vector<128x128xbf16>, vector<448x128xf32> -> vector<448x128xf32>
    %c64_i32 = arith.constant 64 : i32
    %3 = tpu.dynamic_rotate %2 by %c64_i32 dim 1 : vector<448x128xf32>, i32 -> vector<448x128xf32>
    %4 = arith.maximumf %2, %3 : vector<448x128xf32>
    %c32_i32 = arith.constant 32 : i32
    %5 = tpu.dynamic_rotate %4 by %c32_i32 dim 1 : vector<448x128xf32>, i32 -> vector<448x128xf32>
    %6 = arith.maximumf %4, %5 : vector<448x128xf32>
    %7 = tpu.iota {dimensions = array<i32: 1>} : vector<448x128xi32>
    %c6_i32 = arith.constant 6 : i32
    %8 = vector.broadcast %c6_i32 : i32 to vector<448x128xi32>
    %9 = arith.cmpi slt, %7, %8 : vector<448x128xi32>
    %c0_3 = arith.constant 0 : index
    %c0_4 = arith.constant 0 : index
    %10 = vector.load %arg3[%c0_3, %c0_4] : memref<1x128xf32, #tpu.memory_space<vmem>>, vector<1x128xf32>
    %11 = vector.broadcast %10 : vector<1x128xf32> to vector<448x128xf32>
    %12 = arith.addf %6, %11 : vector<448x128xf32>
    %cst_5 = arith.constant 0.000000e+00 : f32
    %13 = vector.broadcast %cst_5 : f32 to vector<448x128xf32>
    %14 = arith.select %9, %12, %13 : vector<448x128xi1>, vector<448x128xf32>
    %c0_6 = arith.constant 0 : index
    %c0_7 = arith.constant 0 : index
    %15 = vector.load %arg13[%c0_6, %c0_7] : memref<456x128xf32, #tpu.memory_space<vmem>>, vector<448x128xf32>
    tpu.vector_store %arg13[%c0_6, %c0_7], %14 {strides = array<i32>} : memref<456x128xf32, #tpu.memory_space<vmem>>, vector<448x128xf32>,
    %cst_8 = arith.constant 0.000000e+00 : f32
    %16 = vector.broadcast %cst_8 : f32 to vector<8x128xf32>
    %c448 = arith.constant 448 : index
    %c0_9 = arith.constant 0 : index
    %17 = vector.load %arg13[%c448, %c0_9] : memref<456x128xf32, #tpu.memory_space<vmem>>, vector<8x128xf32>
    tpu.vector_store %arg13[%c448, %c0_9], %16 {strides = array<i32>} : memref<456x128xf32, #tpu.memory_space<vmem>>, vector<8x128xf32>,
    %c1 = arith.constant 1 : index
    %c0_10 = arith.constant 0 : index
    %18 = vector.load %arg13[%c1, %c0_10] : memref<456x128xf32, #tpu.memory_space<vmem>>, vector<448x128xf32>
    %c8_i32 = arith.constant 8 : i32
    %19 = tpu.dynamic_rotate %18 by %c8_i32 dim 1 : vector<448x128xf32>, i32 -> vector<448x128xf32>
    %20 = arith.addf %14, %19 : vector<448x128xf32>
    %c2 = arith.constant 2 : index
    %c0_11 = arith.constant 0 : index
    %21 = vector.load %arg13[%c2, %c0_11] : memref<456x128xf32, #tpu.memory_space<vmem>>, vector<448x128xf32>
    %c16_i32 = arith.constant 16 : i32
    %22 = tpu.dynamic_rotate %21 by %c16_i32 dim 1 : vector<448x128xf32>, i32 -> vector<448x128xf32>
    %23 = arith.addf %20, %22 : vector<448x128xf32>
    %c3 = arith.constant 3 : index
    %c0_12 = arith.constant 0 : index
    %24 = vector.load %arg13[%c3, %c0_12] : memref<456x128xf32, #tpu.memory_space<vmem>>, vector<448x128xf32>
    %c24_i32 = arith.constant 24 : i32
    %25 = tpu.dynamic_rotate %24 by %c24_i32 dim 1 : vector<448x128xf32>, i32 -> vector<448x128xf32>
    %26 = arith.addf %23, %25 : vector<448x128xf32>
    %c4 = arith.constant 4 : index
    %c0_13 = arith.constant 0 : index
    %27 = vector.load %arg13[%c4, %c0_13] : memref<456x128xf32, #tpu.memory_space<vmem>>, vector<448x128xf32>
    %c32_i32_14 = arith.constant 32 : i32
    %28 = tpu.dynamic_rotate %27 by %c32_i32_14 dim 1 : vector<448x128xf32>, i32 -> vector<448x128xf32>
    %29 = arith.addf %26, %28 : vector<448x128xf32>
    %c5 = arith.constant 5 : index
    %c0_15 = arith.constant 0 : index
    %30 = vector.load %arg13[%c5, %c0_15] : memref<456x128xf32, #tpu.memory_space<vmem>>, vector<448x128xf32>
    %c40_i32 = arith.constant 40 : i32
    %31 = tpu.dynamic_rotate %30 by %c40_i32 dim 1 : vector<448x128xf32>, i32 -> vector<448x128xf32>
    %32 = arith.addf %29, %31 : vector<448x128xf32>
    %33 = arith.truncf %32 : vector<448x128xf32> to vector<448x128xbf16>
    %c0_16 = arith.constant 0 : index
    %c0_17 = arith.constant 0 : index
    %34 = vector.load %arg14[%c0_16, %c0_17] : memref<528x128xbf16, #tpu.memory_space<vmem>>, vector<448x128xbf16>
    tpu.vector_store %arg14[%c0_16, %c0_17], %33 {strides = array<i32>} : memref<528x128xbf16, #tpu.memory_space<vmem>>, vector<448x128xbf16>,
    %cst_18 = arith.constant 0.000000e+00 : bf16
    %35 = vector.broadcast %cst_18 : bf16 to vector<80x128xbf16>
    %c448_19 = arith.constant 448 : index
    %c0_20 = arith.constant 0 : index
    %36 = vector.load %arg14[%c448_19, %c0_20] : memref<528x128xbf16, #tpu.memory_space<vmem>>, vector<80x128xbf16>
    tpu.vector_store %arg14[%c448_19, %c0_20], %35 {strides = array<i32>} : memref<528x128xbf16, #tpu.memory_space<vmem>>, vector<80x128xbf16>,
    %c0_21 = arith.constant 0 : index
    %c0_22 = arith.constant 0 : index
    %37 = vector.load %arg14[%c0_21, %c0_22] : memref<528x128xbf16, #tpu.memory_space<vmem>>, vector<448x128xbf16>
    %c0_23 = arith.constant 0 : index
    %c0_24 = arith.constant 0 : index
    %c0_25 = arith.constant 0 : index
    %38 = vector.load %arg4[%c0_23, %c0_24, %c0_25] : memref<6x128x128xbf16, #tpu.memory_space<vmem>>, vector<1x128x128xbf16>
    %39 = vector.shape_cast %38 : vector<1x128x128xbf16> to vector<128x128xbf16>
    %cst_26 = arith.constant dense<0.000000e+00> : vector<448x128xf32>
    %40 = tpu.matmul %37, %39, %cst_26 {dimension_numbers = #tpu.dot_dimension_numbers<[1], [0], [0], [1], [0, 0, 1, 1], [], []>} : vector<448x128xbf16>, vector<128x128xbf16>, vector<448x128xf32> -> vector<448x128xf32>
    %c16 = arith.constant 16 : index
    %c0_27 = arith.constant 0 : index
    %41 = vector.load %arg14[%c16, %c0_27] : memref<528x128xbf16, #tpu.memory_space<vmem>>, vector<448x128xbf16>
    %c1_28 = arith.constant 1 : index
    %c0_29 = arith.constant 0 : index
    %c0_30 = arith.constant 0 : index
    %42 = vector.load %arg4[%c1_28, %c0_29, %c0_30] : memref<6x128x128xbf16, #tpu.memory_space<vmem>>, vector<1x128x128xbf16>
    %43 = vector.shape_cast %42 : vector<1x128x128xbf16> to vector<128x128xbf16>
    %cst_31 = arith.constant dense<0.000000e+00> : vector<448x128xf32>
    %44 = tpu.matmul %41, %43, %cst_31 {dimension_numbers = #tpu.dot_dimension_numbers<[1], [0], [0], [1], [0, 0, 1, 1], [], []>} : vector<448x128xbf16>, vector<128x128xbf16>, vector<448x128xf32> -> vector<448x128xf32>
    %45 = arith.addf %40, %44 : vector<448x128xf32>
    %c32 = arith.constant 32 : index
    %c0_32 = arith.constant 0 : index
    %46 = vector.load %arg14[%c32, %c0_32] : memref<528x128xbf16, #tpu.memory_space<vmem>>, vector<448x128xbf16>
    %c2_33 = arith.constant 2 : index
    %c0_34 = arith.constant 0 : index
    %c0_35 = arith.constant 0 : index
    %47 = vector.load %arg4[%c2_33, %c0_34, %c0_35] : memref<6x128x128xbf16, #tpu.memory_space<vmem>>, vector<1x128x128xbf16>
    %48 = vector.shape_cast %47 : vector<1x128x128xbf16> to vector<128x128xbf16>
    %cst_36 = arith.constant dense<0.000000e+00> : vector<448x128xf32>
    %49 = tpu.matmul %46, %48, %cst_36 {dimension_numbers = #tpu.dot_dimension_numbers<[1], [0], [0], [1], [0, 0, 1, 1], [], []>} : vector<448x128xbf16>, vector<128x128xbf16>, vector<448x128xf32> -> vector<448x128xf32>
    %50 = arith.addf %45, %49 : vector<448x128xf32>
    %c48 = arith.constant 48 : index
    %c0_37 = arith.constant 0 : index
    %51 = vector.load %arg14[%c48, %c0_37] : memref<528x128xbf16, #tpu.memory_space<vmem>>, vector<448x128xbf16>
    %c3_38 = arith.constant 3 : index
    %c0_39 = arith.constant 0 : index
    %c0_40 = arith.constant 0 : index
    %52 = vector.load %arg4[%c3_38, %c0_39, %c0_40] : memref<6x128x128xbf16, #tpu.memory_space<vmem>>, vector<1x128x128xbf16>
    %53 = vector.shape_cast %52 : vector<1x128x128xbf16> to vector<128x128xbf16>
    %cst_41 = arith.constant dense<0.000000e+00> : vector<448x128xf32>
    %54 = tpu.matmul %51, %53, %cst_41 {dimension_numbers = #tpu.dot_dimension_numbers<[1], [0], [0], [1], [0, 0, 1, 1], [], []>} : vector<448x128xbf16>, vector<128x128xbf16>, vector<448x128xf32> -> vector<448x128xf32>
    %55 = arith.addf %50, %54 : vector<448x128xf32>
    %c64 = arith.constant 64 : index
    %c0_42 = arith.constant 0 : index
    %56 = vector.load %arg14[%c64, %c0_42] : memref<528x128xbf16, #tpu.memory_space<vmem>>, vector<448x128xbf16>
    %c4_43 = arith.constant 4 : index
    %c0_44 = arith.constant 0 : index
    %c0_45 = arith.constant 0 : index
    %57 = vector.load %arg4[%c4_43, %c0_44, %c0_45] : memref<6x128x128xbf16, #tpu.memory_space<vmem>>, vector<1x128x128xbf16>
    %58 = vector.shape_cast %57 : vector<1x128x128xbf16> to vector<128x128xbf16>
    %cst_46 = arith.constant dense<0.000000e+00> : vector<448x128xf32>
    %59 = tpu.matmul %56, %58, %cst_46 {dimension_numbers = #tpu.dot_dimension_numbers<[1], [0], [0], [1], [0, 0, 1, 1], [], []>} : vector<448x128xbf16>, vector<128x128xbf16>, vector<448x128xf32> -> vector<448x128xf32>
    %60 = arith.addf %55, %59 : vector<448x128xf32>
    %c80 = arith.constant 80 : index
    %c0_47 = arith.constant 0 : index
    %61 = vector.load %arg14[%c80, %c0_47] : memref<528x128xbf16, #tpu.memory_space<vmem>>, vector<448x128xbf16>
    %c5_48 = arith.constant 5 : index
    %c0_49 = arith.constant 0 : index
    %c0_50 = arith.constant 0 : index
    %62 = vector.load %arg4[%c5_48, %c0_49, %c0_50] : memref<6x128x128xbf16, #tpu.memory_space<vmem>>, vector<1x128x128xbf16>
    %63 = vector.shape_cast %62 : vector<1x128x128xbf16> to vector<128x128xbf16>
    %cst_51 = arith.constant dense<0.000000e+00> : vector<448x128xf32>
    %64 = tpu.matmul %61, %63, %cst_51 {dimension_numbers = #tpu.dot_dimension_numbers<[1], [0], [0], [1], [0, 0, 1, 1], [], []>} : vector<448x128xbf16>, vector<128x128xbf16>, vector<448x128xf32> -> vector<448x128xf32>
    %65 = arith.addf %60, %64 : vector<448x128xf32>
    %c64_i32_52 = arith.constant 64 : i32
    %66 = tpu.dynamic_rotate %65 by %c64_i32_52 dim 1 : vector<448x128xf32>, i32 -> vector<448x128xf32>
    %67 = arith.maximumf %65, %66 : vector<448x128xf32>
    %c32_i32_53 = arith.constant 32 : i32
    %68 = tpu.dynamic_rotate %67 by %c32_i32_53 dim 1 : vector<448x128xf32>, i32 -> vector<448x128xf32>
    %69 = arith.maximumf %67, %68 : vector<448x128xf32>
    %c0_54 = arith.constant 0 : index
    %c0_55 = arith.constant 0 : index
    %70 = vector.load %arg5[%c0_54, %c0_55] : memref<1x128xf32, #tpu.memory_space<vmem>>, vector<1x128xf32>
    %71 = vector.broadcast %70 : vector<1x128xf32> to vector<448x128xf32>
    %72 = arith.addf %69, %71 : vector<448x128xf32>
    %c0_56 = arith.constant 0 : index
    %c0_57 = arith.constant 0 : index
    %73 = vector.load %arg15[%c0_56, %c0_57] : memref<448x128xf32, #tpu.memory_space<vmem>>, vector<448x128xf32>
    tpu.vector_store %arg15[%c0_56, %c0_57], %72 {strides = array<i32>} : memref<448x128xf32, #tpu.memory_space<vmem>>, vector<448x128xf32>,
    %cst_58 = arith.constant 0.000000e+00 : f32
    %74 = vector.broadcast %cst_58 : f32 to vector<2x128xf32>
    %c0_59 = arith.constant 0 : index
    %c0_60 = arith.constant 0 : index
    %75 = tpu.strided_load %arg15[%c0_59, %c0_60] {strides = array<i32: 224, 1>} : memref<448x128xf32, #tpu.memory_space<vmem>>, vector<2x128xf32>
    %76 = vector.extract_strided_slice %75 {offsets = [0, 0], sizes = [2, 16], strides = [1, 1]} : vector<2x128xf32> to vector<2x16xf32>
    %77 = arith.truncf %76 : vector<2x16xf32> to vector<2x16xbf16>
    %c0_61 = arith.constant 0 : index
    %c0_62 = arith.constant 0 : index
    %c0_63 = arith.constant 0 : index
    %78 = vector.load %arg6[%c0_61, %c0_62, %c0_63] : memref<25x16x128xbf16, #tpu.memory_space<vmem>>, vector<1x16x128xbf16>
    %79 = vector.shape_cast %78 : vector<1x16x128xbf16> to vector<16x128xbf16>
    %cst_64 = arith.constant dense<0.000000e+00> : vector<2x128xf32>
    %80 = tpu.matmul %77, %79, %cst_64 {dimension_numbers = #tpu.dot_dimension_numbers<[1], [0], [0], [1], [0, 0, 1, 1], [], []>} : vector<2x16xbf16>, vector<16x128xbf16>, vector<2x128xf32> -> vector<2x128xf32>
    %81 = arith.addf %74, %80 : vector<2x128xf32>
    %c2_65 = arith.constant 2 : index
    %c0_66 = arith.constant 0 : index
    %82 = tpu.strided_load %arg15[%c2_65, %c0_66] {strides = array<i32: 224, 1>} : memref<448x128xf32, #tpu.memory_space<vmem>>, vector<2x128xf32>
    %83 = vector.extract_strided_slice %82 {offsets = [0, 0], sizes = [2, 16], strides = [1, 1]} : vector<2x128xf32> to vector<2x16xf32>
    %84 = arith.truncf %83 : vector<2x16xf32> to vector<2x16xbf16>
    %c1_67 = arith.constant 1 : index
    %c0_68 = arith.constant 0 : index
    %c0_69 = arith.constant 0 : index
    %85 = vector.load %arg6[%c1_67, %c0_68, %c0_69] : memref<25x16x128xbf16, #tpu.memory_space<vmem>>, vector<1x16x128xbf16>
    %86 = vector.shape_cast %85 : vector<1x16x128xbf16> to vector<16x128xbf16>
    %cst_70 = arith.constant dense<0.000000e+00> : vector<2x128xf32>
    %87 = tpu.matmul %84, %86, %cst_70 {dimension_numbers = #tpu.dot_dimension_numbers<[1], [0], [0], [1], [0, 0, 1, 1], [], []>} : vector<2x16xbf16>, vector<16x128xbf16>, vector<2x128xf32> -> vector<2x128xf32>
    %88 = arith.addf %81, %87 : vector<2x128xf32>
    %c4_71 = arith.constant 4 : index
    %c0_72 = arith.constant 0 : index
    %89 = tpu.strided_load %arg15[%c4_71, %c0_72] {strides = array<i32: 224, 1>} : memref<448x128xf32, #tpu.memory_space<vmem>>, vector<2x128xf32>
    %90 = vector.extract_strided_slice %89 {offsets = [0, 0], sizes = [2, 16], strides = [1, 1]} : vector<2x128xf32> to vector<2x16xf32>
    %91 = arith.truncf %90 : vector<2x16xf32> to vector<2x16xbf16>
    %c2_73 = arith.constant 2 : index
    %c0_74 = arith.constant 0 : index
    %c0_75 = arith.constant 0 : index
    %92 = vector.load %arg6[%c2_73, %c0_74, %c0_75] : memref<25x16x128xbf16, #tpu.memory_space<vmem>>, vector<1x16x128xbf16>
    %93 = vector.shape_cast %92 : vector<1x16x128xbf16> to vector<16x128xbf16>
    %cst_76 = arith.constant dense<0.000000e+00> : vector<2x128xf32>
    %94 = tpu.matmul %91, %93, %cst_76 {dimension_numbers = #tpu.dot_dimension_numbers<[1], [0], [0], [1], [0, 0, 1, 1], [], []>} : vector<2x16xbf16>, vector<16x128xbf16>, vector<2x128xf32> -> vector<2x128xf32>
    %95 = arith.addf %88, %94 : vector<2x128xf32>
    %c6 = arith.constant 6 : index
    %c0_77 = arith.constant 0 : index
    %96 = tpu.strided_load %arg15[%c6, %c0_77] {strides = array<i32: 224, 1>} : memref<448x128xf32, #tpu.memory_space<vmem>>, vector<2x128xf32>
    %97 = vector.extract_strided_slice %96 {offsets = [0, 0], sizes = [2, 16], strides = [1, 1]} : vector<2x128xf32> to vector<2x16xf32>
    %98 = arith.truncf %97 : vector<2x16xf32> to vector<2x16xbf16>
    %c3_78 = arith.constant 3 : index
    %c0_79 = arith.constant 0 : index
    %c0_80 = arith.constant 0 : index
    %99 = vector.load %arg6[%c3_78, %c0_79, %c0_80] : memref<25x16x128xbf16, #tpu.memory_space<vmem>>, vector<1x16x128xbf16>
    %100 = vector.shape_cast %99 : vector<1x16x128xbf16> to vector<16x128xbf16>
    %cst_81 = arith.constant dense<0.000000e+00> : vector<2x128xf32>
    %101 = tpu.matmul %98, %100, %cst_81 {dimension_numbers = #tpu.dot_dimension_numbers<[1], [0], [0], [1], [0, 0, 1, 1], [], []>} : vector<2x16xbf16>, vector<16x128xbf16>, vector<2x128xf32> -> vector<2x128xf32>
    %102 = arith.addf %95, %101 : vector<2x128xf32>
    %c8 = arith.constant 8 : index
    %c0_82 = arith.constant 0 : index
    %103 = tpu.strided_load %arg15[%c8, %c0_82] {strides = array<i32: 224, 1>} : memref<448x128xf32, #tpu.memory_space<vmem>>, vector<2x128xf32>
    %104 = vector.extract_strided_slice %103 {offsets = [0, 0], sizes = [2, 16], strides = [1, 1]} : vector<2x128xf32> to vector<2x16xf32>
    %105 = arith.truncf %104 : vector<2x16xf32> to vector<2x16xbf16>
    %c4_83 = arith.constant 4 : index
    %c0_84 = arith.constant 0 : index
    %c0_85 = arith.constant 0 : index
    %106 = vector.load %arg6[%c4_83, %c0_84, %c0_85] : memref<25x16x128xbf16, #tpu.memory_space<vmem>>, vector<1x16x128xbf16>
    %107 = vector.shape_cast %106 : vector<1x16x128xbf16> to vector<16x128xbf16>
    %cst_86 = arith.constant dense<0.000000e+00> : vector<2x128xf32>
    %108 = tpu.matmul %105, %107, %cst_86 {dimension_numbers = #tpu.dot_dimension_numbers<[1], [0], [0], [1], [0, 0, 1, 1], [], []>} : vector<2x16xbf16>, vector<16x128xbf16>, vector<2x128xf32> -> vector<2x128xf32>
    %109 = arith.addf %102, %108 : vector<2x128xf32>
    %c32_87 = arith.constant 32 : index
    %c0_88 = arith.constant 0 : index
    %110 = tpu.strided_load %arg15[%c32_87, %c0_88] {strides = array<i32: 224, 1>} : memref<448x128xf32, #tpu.memory_space<vmem>>, vector<2x128xf32>
    %111 = vector.extract_strided_slice %110 {offsets = [0, 0], sizes = [2, 16], strides = [1, 1]} : vector<2x128xf32> to vector<2x16xf32>
    %112 = arith.truncf %111 : vector<2x16xf32> to vector<2x16xbf16>
    %c5_89 = arith.constant 5 : index
    %c0_90 = arith.constant 0 : index
    %c0_91 = arith.constant 0 : index
    %113 = vector.load %arg6[%c5_89, %c0_90, %c0_91] : memref<25x16x128xbf16, #tpu.memory_space<vmem>>, vector<1x16x128xbf16>
    %114 = vector.shape_cast %113 : vector<1x16x128xbf16> to vector<16x128xbf16>
    %cst_92 = arith.constant dense<0.000000e+00> : vector<2x128xf32>
    %115 = tpu.matmul %112, %114, %cst_92 {dimension_numbers = #tpu.dot_dimension_numbers<[1], [0], [0], [1], [0, 0, 1, 1], [], []>} : vector<2x16xbf16>, vector<16x128xbf16>, vector<2x128xf32> -> vector<2x128xf32>
    %116 = arith.addf %109, %115 : vector<2x128xf32>
    %c34 = arith.constant 34 : index
    %c0_93 = arith.constant 0 : index
    %117 = tpu.strided_load %arg15[%c34, %c0_93] {strides = array<i32: 224, 1>} : memref<448x128xf32, #tpu.memory_space<vmem>>, vector<2x128xf32>
    %118 = vector.extract_strided_slice %117 {offsets = [0, 0], sizes = [2, 16], strides = [1, 1]} : vector<2x128xf32> to vector<2x16xf32>
    %119 = arith.truncf %118 : vector<2x16xf32> to vector<2x16xbf16>
    %c6_94 = arith.constant 6 : index
    %c0_95 = arith.constant 0 : index
    %c0_96 = arith.constant 0 : index
    %120 = vector.load %arg6[%c6_94, %c0_95, %c0_96] : memref<25x16x128xbf16, #tpu.memory_space<vmem>>, vector<1x16x128xbf16>
    %121 = vector.shape_cast %120 : vector<1x16x128xbf16> to vector<16x128xbf16>
    %cst_97 = arith.constant dense<0.000000e+00> : vector<2x128xf32>
    %122 = tpu.matmul %119, %121, %cst_97 {dimension_numbers = #tpu.dot_dimension_numbers<[1], [0], [0], [1], [0, 0, 1, 1], [], []>} : vector<2x16xbf16>, vector<16x128xbf16>, vector<2x128xf32> -> vector<2x128xf32>
    %123 = arith.addf %116, %122 : vector<2x128xf32>
    %c36 = arith.constant 36 : index
    %c0_98 = arith.constant 0 : index
    %124 = tpu.strided_load %arg15[%c36, %c0_98] {strides = array<i32: 224, 1>} : memref<448x128xf32, #tpu.memory_space<vmem>>, vector<2x128xf32>
    %125 = vector.extract_strided_slice %124 {offsets = [0, 0], sizes = [2, 16], strides = [1, 1]} : vector<2x128xf32> to vector<2x16xf32>
    %126 = arith.truncf %125 : vector<2x16xf32> to vector<2x16xbf16>
    %c7 = arith.constant 7 : index
    %c0_99 = arith.constant 0 : index
    %c0_100 = arith.constant 0 : index
    %127 = vector.load %arg6[%c7, %c0_99, %c0_100] : memref<25x16x128xbf16, #tpu.memory_space<vmem>>, vector<1x16x128xbf16>
    %128 = vector.shape_cast %127 : vector<1x16x128xbf16> to vector<16x128xbf16>
    %cst_101 = arith.constant dense<0.000000e+00> : vector<2x128xf32>
    %129 = tpu.matmul %126, %128, %cst_101 {dimension_numbers = #tpu.dot_dimension_numbers<[1], [0], [0], [1], [0, 0, 1, 1], [], []>} : vector<2x16xbf16>, vector<16x128xbf16>, vector<2x128xf32> -> vector<2x128xf32>
    %130 = arith.addf %123, %129 : vector<2x128xf32>
    %c38 = arith.constant 38 : index
    %c0_102 = arith.constant 0 : index
    %131 = tpu.strided_load %arg15[%c38, %c0_102] {strides = array<i32: 224, 1>} : memref<448x128xf32, #tpu.memory_space<vmem>>, vector<2x128xf32>
    %132 = vector.extract_strided_slice %131 {offsets = [0, 0], sizes = [2, 16], strides = [1, 1]} : vector<2x128xf32> to vector<2x16xf32>
    %133 = arith.truncf %132 : vector<2x16xf32> to vector<2x16xbf16>
    %c8_103 = arith.constant 8 : index
    %c0_104 = arith.constant 0 : index
    %c0_105 = arith.constant 0 : index
    %134 = vector.load %arg6[%c8_103, %c0_104, %c0_105] : memref<25x16x128xbf16, #tpu.memory_space<vmem>>, vector<1x16x128xbf16>
    %135 = vector.shape_cast %134 : vector<1x16x128xbf16> to vector<16x128xbf16>
    %cst_106 = arith.constant dense<0.000000e+00> : vector<2x128xf32>
    %136 = tpu.matmul %133, %135, %cst_106 {dimension_numbers = #tpu.dot_dimension_numbers<[1], [0], [0], [1], [0, 0, 1, 1], [], []>} : vector<2x16xbf16>, vector<16x128xbf16>, vector<2x128xf32> -> vector<2x128xf32>
    %137 = arith.addf %130, %136 : vector<2x128xf32>
    %c40 = arith.constant 40 : index
    %c0_107 = arith.constant 0 : index
    %138 = tpu.strided_load %arg15[%c40, %c0_107] {strides = array<i32: 224, 1>} : memref<448x128xf32, #tpu.memory_space<vmem>>, vector<2x128xf32>
    %139 = vector.extract_strided_slice %138 {offsets = [0, 0], sizes = [2, 16], strides = [1, 1]} : vector<2x128xf32> to vector<2x16xf32>
    %140 = arith.truncf %139 : vector<2x16xf32> to vector<2x16xbf16>
    %c9 = arith.constant 9 : index
    %c0_108 = arith.constant 0 : index
    %c0_109 = arith.constant 0 : index
    %141 = vector.load %arg6[%c9, %c0_108, %c0_109] : memref<25x16x128xbf16, #tpu.memory_space<vmem>>, vector<1x16x128xbf16>
    %142 = vector.shape_cast %141 : vector<1x16x128xbf16> to vector<16x128xbf16>
    %cst_110 = arith.constant dense<0.000000e+00> : vector<2x128xf32>
    %143 = tpu.matmul %140, %142, %cst_110 {dimension_numbers = #tpu.dot_dimension_numbers<[1], [0], [0], [1], [0, 0, 1, 1], [], []>} : vector<2x16xbf16>, vector<16x128xbf16>, vector<2x128xf32> -> vector<2x128xf32>
    %144 = arith.addf %137, %143 : vector<2x128xf32>
    %c64_111 = arith.constant 64 : index
    %c0_112 = arith.constant 0 : index
    %145 = tpu.strided_load %arg15[%c64_111, %c0_112] {strides = array<i32: 224, 1>} : memref<448x128xf32, #tpu.memory_space<vmem>>, vector<2x128xf32>
    %146 = vector.extract_strided_slice %145 {offsets = [0, 0], sizes = [2, 16], strides = [1, 1]} : vector<2x128xf32> to vector<2x16xf32>
    %147 = arith.truncf %146 : vector<2x16xf32> to vector<2x16xbf16>
    %c10 = arith.constant 10 : index
    %c0_113 = arith.constant 0 : index
    %c0_114 = arith.constant 0 : index
    %148 = vector.load %arg6[%c10, %c0_113, %c0_114] : memref<25x16x128xbf16, #tpu.memory_space<vmem>>, vector<1x16x128xbf16>
    %149 = vector.shape_cast %148 : vector<1x16x128xbf16> to vector<16x128xbf16>
    %cst_115 = arith.constant dense<0.000000e+00> : vector<2x128xf32>
    %150 = tpu.matmul %147, %149, %cst_115 {dimension_numbers = #tpu.dot_dimension_numbers<[1], [0], [0], [1], [0, 0, 1, 1], [], []>} : vector<2x16xbf16>, vector<16x128xbf16>, vector<2x128xf32> -> vector<2x128xf32>
    %151 = arith.addf %144, %150 : vector<2x128xf32>
    %c66 = arith.constant 66 : index
    %c0_116 = arith.constant 0 : index
    %152 = tpu.strided_load %arg15[%c66, %c0_116] {strides = array<i32: 224, 1>} : memref<448x128xf32, #tpu.memory_space<vmem>>, vector<2x128xf32>
    %153 = vector.extract_strided_slice %152 {offsets = [0, 0], sizes = [2, 16], strides = [1, 1]} : vector<2x128xf32> to vector<2x16xf32>
    %154 = arith.truncf %153 : vector<2x16xf32> to vector<2x16xbf16>
    %c11 = arith.constant 11 : index
    %c0_117 = arith.constant 0 : index
    %c0_118 = arith.constant 0 : index
    %155 = vector.load %arg6[%c11, %c0_117, %c0_118] : memref<25x16x128xbf16, #tpu.memory_space<vmem>>, vector<1x16x128xbf16>
    %156 = vector.shape_cast %155 : vector<1x16x128xbf16> to vector<16x128xbf16>
    %cst_119 = arith.constant dense<0.000000e+00> : vector<2x128xf32>
    %157 = tpu.matmul %154, %156, %cst_119 {dimension_numbers = #tpu.dot_dimension_numbers<[1], [0], [0], [1], [0, 0, 1, 1], [], []>} : vector<2x16xbf16>, vector<16x128xbf16>, vector<2x128xf32> -> vector<2x128xf32>
    %158 = arith.addf %151, %157 : vector<2x128xf32>
    %c68 = arith.constant 68 : index
    %c0_120 = arith.constant 0 : index
    %159 = tpu.strided_load %arg15[%c68, %c0_120] {strides = array<i32: 224, 1>} : memref<448x128xf32, #tpu.memory_space<vmem>>, vector<2x128xf32>
    %160 = vector.extract_strided_slice %159 {offsets = [0, 0], sizes = [2, 16], strides = [1, 1]} : vector<2x128xf32> to vector<2x16xf32>
    %161 = arith.truncf %160 : vector<2x16xf32> to vector<2x16xbf16>
    %c12 = arith.constant 12 : index
    %c0_121 = arith.constant 0 : index
    %c0_122 = arith.constant 0 : index
    %162 = vector.load %arg6[%c12, %c0_121, %c0_122] : memref<25x16x128xbf16, #tpu.memory_space<vmem>>, vector<1x16x128xbf16>
    %163 = vector.shape_cast %162 : vector<1x16x128xbf16> to vector<16x128xbf16>
    %cst_123 = arith.constant dense<0.000000e+00> : vector<2x128xf32>
    %164 = tpu.matmul %161, %163, %cst_123 {dimension_numbers = #tpu.dot_dimension_numbers<[1], [0], [0], [1], [0, 0, 1, 1], [], []>} : vector<2x16xbf16>, vector<16x128xbf16>, vector<2x128xf32> -> vector<2x128xf32>
    %165 = arith.addf %158, %164 : vector<2x128xf32>
    %c70 = arith.constant 70 : index
    %c0_124 = arith.constant 0 : index
    %166 = tpu.strided_load %arg15[%c70, %c0_124] {strides = array<i32: 224, 1>} : memref<448x128xf32, #tpu.memory_space<vmem>>, vector<2x128xf32>
    %167 = vector.extract_strided_slice %166 {offsets = [0, 0], sizes = [2, 16], strides = [1, 1]} : vector<2x128xf32> to vector<2x16xf32>
    %168 = arith.truncf %167 : vector<2x16xf32> to vector<2x16xbf16>
    %c13 = arith.constant 13 : index
    %c0_125 = arith.constant 0 : index
    %c0_126 = arith.constant 0 : index
    %169 = vector.load %arg6[%c13, %c0_125, %c0_126] : memref<25x16x128xbf16, #tpu.memory_space<vmem>>, vector<1x16x128xbf16>
    %170 = vector.shape_cast %169 : vector<1x16x128xbf16> to vector<16x128xbf16>
    %cst_127 = arith.constant dense<0.000000e+00> : vector<2x128xf32>
    %171 = tpu.matmul %168, %170, %cst_127 {dimension_numbers = #tpu.dot_dimension_numbers<[1], [0], [0], [1], [0, 0, 1, 1], [], []>} : vector<2x16xbf16>, vector<16x128xbf16>, vector<2x128xf32> -> vector<2x128xf32>
    %172 = arith.addf %165, %171 : vector<2x128xf32>
    %c72 = arith.constant 72 : index
    %c0_128 = arith.constant 0 : index
    %173 = tpu.strided_load %arg15[%c72, %c0_128] {strides = array<i32: 224, 1>} : memref<448x128xf32, #tpu.memory_space<vmem>>, vector<2x128xf32>
    %174 = vector.extract_strided_slice %173 {offsets = [0, 0], sizes = [2, 16], strides = [1, 1]} : vector<2x128xf32> to vector<2x16xf32>
    %175 = arith.truncf %174 : vector<2x16xf32> to vector<2x16xbf16>
    %c14 = arith.constant 14 : index
    %c0_129 = arith.constant 0 : index
    %c0_130 = arith.constant 0 : index
    %176 = vector.load %arg6[%c14, %c0_129, %c0_130] : memref<25x16x128xbf16, #tpu.memory_space<vmem>>, vector<1x16x128xbf16>
    %177 = vector.shape_cast %176 : vector<1x16x128xbf16> to vector<16x128xbf16>
    %cst_131 = arith.constant dense<0.000000e+00> : vector<2x128xf32>
    %178 = tpu.matmul %175, %177, %cst_131 {dimension_numbers = #tpu.dot_dimension_numbers<[1], [0], [0], [1], [0, 0, 1, 1], [], []>} : vector<2x16xbf16>, vector<16x128xbf16>, vector<2x128xf32> -> vector<2x128xf32>
    %179 = arith.addf %172, %178 : vector<2x128xf32>
    %c96 = arith.constant 96 : index
    %c0_132 = arith.constant 0 : index
    %180 = tpu.strided_load %arg15[%c96, %c0_132] {strides = array<i32: 224, 1>} : memref<448x128xf32, #tpu.memory_space<vmem>>, vector<2x128xf32>
    %181 = vector.extract_strided_slice %180 {offsets = [0, 0], sizes = [2, 16], strides = [1, 1]} : vector<2x128xf32> to vector<2x16xf32>
    %182 = arith.truncf %181 : vector<2x16xf32> to vector<2x16xbf16>
    %c15 = arith.constant 15 : index
    %c0_133 = arith.constant 0 : index
    %c0_134 = arith.constant 0 : index
    %183 = vector.load %arg6[%c15, %c0_133, %c0_134] : memref<25x16x128xbf16, #tpu.memory_space<vmem>>, vector<1x16x128xbf16>
    %184 = vector.shape_cast %183 : vector<1x16x128xbf16> to vector<16x128xbf16>
    %cst_135 = arith.constant dense<0.000000e+00> : vector<2x128xf32>
    %185 = tpu.matmul %182, %184, %cst_135 {dimension_numbers = #tpu.dot_dimension_numbers<[1], [0], [0], [1], [0, 0, 1, 1], [], []>} : vector<2x16xbf16>, vector<16x128xbf16>, vector<2x128xf32> -> vector<2x128xf32>
    %186 = arith.addf %179, %185 : vector<2x128xf32>
    %c98 = arith.constant 98 : index
    %c0_136 = arith.constant 0 : index
    %187 = tpu.strided_load %arg15[%c98, %c0_136] {strides = array<i32: 224, 1>} : memref<448x128xf32, #tpu.memory_space<vmem>>, vector<2x128xf32>
    %188 = vector.extract_strided_slice %187 {offsets = [0, 0], sizes = [2, 16], strides = [1, 1]} : vector<2x128xf32> to vector<2x16xf32>
    %189 = arith.truncf %188 : vector<2x16xf32> to vector<2x16xbf16>
    %c16_137 = arith.constant 16 : index
    %c0_138 = arith.constant 0 : index
    %c0_139 = arith.constant 0 : index
    %190 = vector.load %arg6[%c16_137, %c0_138, %c0_139] : memref<25x16x128xbf16, #tpu.memory_space<vmem>>, vector<1x16x128xbf16>
    %191 = vector.shape_cast %190 : vector<1x16x128xbf16> to vector<16x128xbf16>
    %cst_140 = arith.constant dense<0.000000e+00> : vector<2x128xf32>
    %192 = tpu.matmul %189, %191, %cst_140 {dimension_numbers = #tpu.dot_dimension_numbers<[1], [0], [0], [1], [0, 0, 1, 1], [], []>} : vector<2x16xbf16>, vector<16x128xbf16>, vector<2x128xf32> -> vector<2x128xf32>
    %193 = arith.addf %186, %192 : vector<2x128xf32>
    %c100 = arith.constant 100 : index
    %c0_141 = arith.constant 0 : index
    %194 = tpu.strided_load %arg15[%c100, %c0_141] {strides = array<i32: 224, 1>} : memref<448x128xf32, #tpu.memory_space<vmem>>, vector<2x128xf32>
    %195 = vector.extract_strided_slice %194 {offsets = [0, 0], sizes = [2, 16], strides = [1, 1]} : vector<2x128xf32> to vector<2x16xf32>
    %196 = arith.truncf %195 : vector<2x16xf32> to vector<2x16xbf16>
    %c17 = arith.constant 17 : index
    %c0_142 = arith.constant 0 : index
    %c0_143 = arith.constant 0 : index
    %197 = vector.load %arg6[%c17, %c0_142, %c0_143] : memref<25x16x128xbf16, #tpu.memory_space<vmem>>, vector<1x16x128xbf16>
    %198 = vector.shape_cast %197 : vector<1x16x128xbf16> to vector<16x128xbf16>
    %cst_144 = arith.constant dense<0.000000e+00> : vector<2x128xf32>
    %199 = tpu.matmul %196, %198, %cst_144 {dimension_numbers = #tpu.dot_dimension_numbers<[1], [0], [0], [1], [0, 0, 1, 1], [], []>} : vector<2x16xbf16>, vector<16x128xbf16>, vector<2x128xf32> -> vector<2x128xf32>
    %200 = arith.addf %193, %199 : vector<2x128xf32>
    %c102 = arith.constant 102 : index
    %c0_145 = arith.constant 0 : index
    %201 = tpu.strided_load %arg15[%c102, %c0_145] {strides = array<i32: 224, 1>} : memref<448x128xf32, #tpu.memory_space<vmem>>, vector<2x128xf32>
    %202 = vector.extract_strided_slice %201 {offsets = [0, 0], sizes = [2, 16], strides = [1, 1]} : vector<2x128xf32> to vector<2x16xf32>
    %203 = arith.truncf %202 : vector<2x16xf32> to vector<2x16xbf16>
    %c18 = arith.constant 18 : index
    %c0_146 = arith.constant 0 : index
    %c0_147 = arith.constant 0 : index
    %204 = vector.load %arg6[%c18, %c0_146, %c0_147] : memref<25x16x128xbf16, #tpu.memory_space<vmem>>, vector<1x16x128xbf16>
    %205 = vector.shape_cast %204 : vector<1x16x128xbf16> to vector<16x128xbf16>
    %cst_148 = arith.constant dense<0.000000e+00> : vector<2x128xf32>
    %206 = tpu.matmul %203, %205, %cst_148 {dimension_numbers = #tpu.dot_dimension_numbers<[1], [0], [0], [1], [0, 0, 1, 1], [], []>} : vector<2x16xbf16>, vector<16x128xbf16>, vector<2x128xf32> -> vector<2x128xf32>
    %207 = arith.addf %200, %206 : vector<2x128xf32>
    %c104 = arith.constant 104 : index
    %c0_149 = arith.constant 0 : index
    %208 = tpu.strided_load %arg15[%c104, %c0_149] {strides = array<i32: 224, 1>} : memref<448x128xf32, #tpu.memory_space<vmem>>, vector<2x128xf32>
    %209 = vector.extract_strided_slice %208 {offsets = [0, 0], sizes = [2, 16], strides = [1, 1]} : vector<2x128xf32> to vector<2x16xf32>
    %210 = arith.truncf %209 : vector<2x16xf32> to vector<2x16xbf16>
    %c19 = arith.constant 19 : index
    %c0_150 = arith.constant 0 : index
    %c0_151 = arith.constant 0 : index
    %211 = vector.load %arg6[%c19, %c0_150, %c0_151] : memref<25x16x128xbf16, #tpu.memory_space<vmem>>, vector<1x16x128xbf16>
    %212 = vector.shape_cast %211 : vector<1x16x128xbf16> to vector<16x128xbf16>
    %cst_152 = arith.constant dense<0.000000e+00> : vector<2x128xf32>
    %213 = tpu.matmul %210, %212, %cst_152 {dimension_numbers = #tpu.dot_dimension_numbers<[1], [0], [0], [1], [0, 0, 1, 1], [], []>} : vector<2x16xbf16>, vector<16x128xbf16>, vector<2x128xf32> -> vector<2x128xf32>
    %214 = arith.addf %207, %213 : vector<2x128xf32>
    %c128 = arith.constant 128 : index
    %c0_153 = arith.constant 0 : index
    %215 = tpu.strided_load %arg15[%c128, %c0_153] {strides = array<i32: 224, 1>} : memref<448x128xf32, #tpu.memory_space<vmem>>, vector<2x128xf32>
    %216 = vector.extract_strided_slice %215 {offsets = [0, 0], sizes = [2, 16], strides = [1, 1]} : vector<2x128xf32> to vector<2x16xf32>
    %217 = arith.truncf %216 : vector<2x16xf32> to vector<2x16xbf16>
    %c20 = arith.constant 20 : index
    %c0_154 = arith.constant 0 : index
    %c0_155 = arith.constant 0 : index
    %218 = vector.load %arg6[%c20, %c0_154, %c0_155] : memref<25x16x128xbf16, #tpu.memory_space<vmem>>, vector<1x16x128xbf16>
    %219 = vector.shape_cast %218 : vector<1x16x128xbf16> to vector<16x128xbf16>
    %cst_156 = arith.constant dense<0.000000e+00> : vector<2x128xf32>
    %220 = tpu.matmul %217, %219, %cst_156 {dimension_numbers = #tpu.dot_dimension_numbers<[1], [0], [0], [1], [0, 0, 1, 1], [], []>} : vector<2x16xbf16>, vector<16x128xbf16>, vector<2x128xf32> -> vector<2x128xf32>
    %221 = arith.addf %214, %220 : vector<2x128xf32>
    %c130 = arith.constant 130 : index
    %c0_157 = arith.constant 0 : index
    %222 = tpu.strided_load %arg15[%c130, %c0_157] {strides = array<i32: 224, 1>} : memref<448x128xf32, #tpu.memory_space<vmem>>, vector<2x128xf32>
    %223 = vector.extract_strided_slice %222 {offsets = [0, 0], sizes = [2, 16], strides = [1, 1]} : vector<2x128xf32> to vector<2x16xf32>
    %224 = arith.truncf %223 : vector<2x16xf32> to vector<2x16xbf16>
    %c21 = arith.constant 21 : index
    %c0_158 = arith.constant 0 : index
    %c0_159 = arith.constant 0 : index
    %225 = vector.load %arg6[%c21, %c0_158, %c0_159] : memref<25x16x128xbf16, #tpu.memory_space<vmem>>, vector<1x16x128xbf16>
    %226 = vector.shape_cast %225 : vector<1x16x128xbf16> to vector<16x128xbf16>
    %cst_160 = arith.constant dense<0.000000e+00> : vector<2x128xf32>
    %227 = tpu.matmul %224, %226, %cst_160 {dimension_numbers = #tpu.dot_dimension_numbers<[1], [0], [0], [1], [0, 0, 1, 1], [], []>} : vector<2x16xbf16>, vector<16x128xbf16>, vector<2x128xf32> -> vector<2x128xf32>
    %228 = arith.addf %221, %227 : vector<2x128xf32>
    %c132 = arith.constant 132 : index
    %c0_161 = arith.constant 0 : index
    %229 = tpu.strided_load %arg15[%c132, %c0_161] {strides = array<i32: 224, 1>} : memref<448x128xf32, #tpu.memory_space<vmem>>, vector<2x128xf32>
    %230 = vector.extract_strided_slice %229 {offsets = [0, 0], sizes = [2, 16], strides = [1, 1]} : vector<2x128xf32> to vector<2x16xf32>
    %231 = arith.truncf %230 : vector<2x16xf32> to vector<2x16xbf16>
    %c22 = arith.constant 22 : index
    %c0_162 = arith.constant 0 : index
    %c0_163 = arith.constant 0 : index
    %232 = vector.load %arg6[%c22, %c0_162, %c0_163] : memref<25x16x128xbf16, #tpu.memory_space<vmem>>, vector<1x16x128xbf16>
    %233 = vector.shape_cast %232 : vector<1x16x128xbf16> to vector<16x128xbf16>
    %cst_164 = arith.constant dense<0.000000e+00> : vector<2x128xf32>
    %234 = tpu.matmul %231, %233, %cst_164 {dimension_numbers = #tpu.dot_dimension_numbers<[1], [0], [0], [1], [0, 0, 1, 1], [], []>} : vector<2x16xbf16>, vector<16x128xbf16>, vector<2x128xf32> -> vector<2x128xf32>
    %235 = arith.addf %228, %234 : vector<2x128xf32>
    %c134 = arith.constant 134 : index
    %c0_165 = arith.constant 0 : index
    %236 = tpu.strided_load %arg15[%c134, %c0_165] {strides = array<i32: 224, 1>} : memref<448x128xf32, #tpu.memory_space<vmem>>, vector<2x128xf32>
    %237 = vector.extract_strided_slice %236 {offsets = [0, 0], sizes = [2, 16], strides = [1, 1]} : vector<2x128xf32> to vector<2x16xf32>
    %238 = arith.truncf %237 : vector<2x16xf32> to vector<2x16xbf16>
    %c23 = arith.constant 23 : index
    %c0_166 = arith.constant 0 : index
    %c0_167 = arith.constant 0 : index
    %239 = vector.load %arg6[%c23, %c0_166, %c0_167] : memref<25x16x128xbf16, #tpu.memory_space<vmem>>, vector<1x16x128xbf16>
    %240 = vector.shape_cast %239 : vector<1x16x128xbf16> to vector<16x128xbf16>
    %cst_168 = arith.constant dense<0.000000e+00> : vector<2x128xf32>
    %241 = tpu.matmul %238, %240, %cst_168 {dimension_numbers = #tpu.dot_dimension_numbers<[1], [0], [0], [1], [0, 0, 1, 1], [], []>} : vector<2x16xbf16>, vector<16x128xbf16>, vector<2x128xf32> -> vector<2x128xf32>
    %242 = arith.addf %235, %241 : vector<2x128xf32>
    %c136 = arith.constant 136 : index
    %c0_169 = arith.constant 0 : index
    %243 = tpu.strided_load %arg15[%c136, %c0_169] {strides = array<i32: 224, 1>} : memref<448x128xf32, #tpu.memory_space<vmem>>, vector<2x128xf32>
    %244 = vector.extract_strided_slice %243 {offsets = [0, 0], sizes = [2, 16], strides = [1, 1]} : vector<2x128xf32> to vector<2x16xf32>
    %245 = arith.truncf %244 : vector<2x16xf32> to vector<2x16xbf16>
    %c24 = arith.constant 24 : index
    %c0_170 = arith.constant 0 : index
    %c0_171 = arith.constant 0 : index
    %246 = vector.load %arg6[%c24, %c0_170, %c0_171] : memref<25x16x128xbf16, #tpu.memory_space<vmem>>, vector<1x16x128xbf16>
    %247 = vector.shape_cast %246 : vector<1x16x128xbf16> to vector<16x128xbf16>
    %cst_172 = arith.constant dense<0.000000e+00> : vector<2x128xf32>
    %248 = tpu.matmul %245, %247, %cst_172 {dimension_numbers = #tpu.dot_dimension_numbers<[1], [0], [0], [1], [0, 0, 1, 1], [], []>} : vector<2x16xbf16>, vector<16x128xbf16>, vector<2x128xf32> -> vector<2x128xf32>
    %249 = arith.addf %242, %248 : vector<2x128xf32>
    %c0_173 = arith.constant 0 : index
    %c0_174 = arith.constant 0 : index
    %250 = vector.load %arg7[%c0_173, %c0_174] : memref<1x128xf32, #tpu.memory_space<vmem>>, vector<1x128xf32>
    %251 = vector.broadcast %250 : vector<1x128xf32> to vector<2x128xf32>
    %252 = arith.addf %249, %251 : vector<2x128xf32>
    %cst_175 = arith.constant 0.000000e+00 : f32
    %253 = vector.broadcast %cst_175 : f32 to vector<2x128xf32>
    %254 = arith.maximumf %252, %253 : vector<2x128xf32>
    %255 = arith.truncf %254 : vector<2x128xf32> to vector<2x128xbf16>
    %c0_176 = arith.constant 0 : index
    %c0_177 = arith.constant 0 : index
    %256 = vector.load %arg8[%c0_176, %c0_177] : memref<128x128xbf16, #tpu.memory_space<vmem>>, vector<128x128xbf16>
    %cst_178 = arith.constant dense<0.000000e+00> : vector<2x128xf32>
    %257 = tpu.matmul %255, %256, %cst_178 {dimension_numbers = #tpu.dot_dimension_numbers<[1], [0], [0], [1], [0, 0, 1, 1], [], []>} : vector<2x128xbf16>, vector<128x128xbf16>, vector<2x128xf32> -> vector<2x128xf32>
    %c0_179 = arith.constant 0 : index
    %c0_180 = arith.constant 0 : index
    %258 = vector.load %arg9[%c0_179, %c0_180] : memref<1x128xf32, #tpu.memory_space<vmem>>, vector<1x128xf32>
    %259 = vector.broadcast %258 : vector<1x128xf32> to vector<2x128xf32>
    %260 = arith.addf %257, %259 : vector<2x128xf32>
    %cst_181 = arith.constant 0.000000e+00 : f32
    %261 = vector.broadcast %cst_181 : f32 to vector<2x128xf32>
    %262 = arith.maximumf %260, %261 : vector<2x128xf32>
    %263 = arith.truncf %262 : vector<2x128xf32> to vector<2x128xbf16>
    %c0_182 = arith.constant 0 : index
    %c0_183 = arith.constant 0 : index
    %264 = vector.load %arg10[%c0_182, %c0_183] : memref<128x128xbf16, #tpu.memory_space<vmem>>, vector<128x128xbf16>
    %cst_184 = arith.constant dense<0.000000e+00> : vector<2x128xf32>
    %265 = tpu.matmul %263, %264, %cst_184 {dimension_numbers = #tpu.dot_dimension_numbers<[1], [0], [0], [1], [0, 0, 1, 1], [], []>} : vector<2x128xbf16>, vector<128x128xbf16>, vector<2x128xf32> -> vector<2x128xf32>
    %c0_185 = arith.constant 0 : index
    %c0_186 = arith.constant 0 : index
    %266 = vector.load %arg11[%c0_185, %c0_186] : memref<1x128xf32, #tpu.memory_space<vmem>>, vector<1x128xf32>
    %267 = vector.broadcast %266 : vector<1x128xf32> to vector<2x128xf32>
    %268 = arith.addf %265, %267 : vector<2x128xf32>
    %c0_187 = arith.constant 0 : index
    %c0_188 = arith.constant 0 : index
    %269 = vector.load %arg12[%c0_187, %c0_188] : memref<2x128xf32, #tpu.memory_space<vmem>>, vector<2x128xf32>
    tpu.vector_store %arg12[%c0_187, %c0_188], %268 {strides = array<i32>} : memref<2x128xf32, #tpu.memory_space<vmem>>, vector<2x128xf32>,
    return
  }
  func.func @transform_0(%arg0: i32) -> (i32, i32) {
    %c0_i32 = arith.constant 0 : i32
    %c0_i32_0 = arith.constant 0 : i32
    %c0_i32_1 = arith.constant 0 : i32
    return %c0_i32, %c0_i32_0 : i32, i32
  }
  func.func @transform_1(%arg0: i32) -> (i32, i32) {
    %c0_i32 = arith.constant 0 : i32
    %c0_i32_0 = arith.constant 0 : i32
    %c0_i32_1 = arith.constant 0 : i32
    return %c0_i32, %c0_i32_0 : i32, i32
  }
  func.func @transform_2(%arg0: i32) -> (i32, i32) {
    %c0_i32 = arith.constant 0 : i32
    %c0_i32_0 = arith.constant 0 : i32
    %c0_i32_1 = arith.constant 0 : i32
    return %c0_i32, %c0_i32_0 : i32, i32
  }
  func.func @transform_3(%arg0: i32) -> (i32, i32, i32) {
    %c0_i32 = arith.constant 0 : i32
    %c0_i32_0 = arith.constant 0 : i32
    %c0_i32_1 = arith.constant 0 : i32
    %c0_i32_2 = arith.constant 0 : i32
    return %c0_i32, %c0_i32_0, %c0_i32_1 : i32, i32, i32
  }
  func.func @transform_4(%arg0: i32) -> (i32, i32) {
    %c0_i32 = arith.constant 0 : i32
    %c0_i32_0 = arith.constant 0 : i32
    %c0_i32_1 = arith.constant 0 : i32
    return %c0_i32, %c0_i32_0 : i32, i32
  }
  func.func @transform_5(%arg0: i32) -> (i32, i32, i32) {
    %c0_i32 = arith.constant 0 : i32
    %c0_i32_0 = arith.constant 0 : i32
    %c0_i32_1 = arith.constant 0 : i32
    %c0_i32_2 = arith.constant 0 : i32
    return %c0_i32, %c0_i32_0, %c0_i32_1 : i32, i32, i32
  }
  func.func @transform_6(%arg0: i32) -> (i32, i32) {
    %c0_i32 = arith.constant 0 : i32
    %c0_i32_0 = arith.constant 0 : i32
    %c0_i32_1 = arith.constant 0 : i32
    return %c0_i32, %c0_i32_0 : i32, i32
  }
  func.func @transform_7(%arg0: i32) -> (i32, i32) {
    %c0_i32 = arith.constant 0 : i32
    %c0_i32_0 = arith.constant 0 : i32
    %c0_i32_1 = arith.constant 0 : i32
    return %c0_i32, %c0_i32_0 : i32, i32
  }
  func.func @transform_8(%arg0: i32) -> (i32, i32) {
    %c0_i32 = arith.constant 0 : i32
    %c0_i32_0 = arith.constant 0 : i32
    %c0_i32_1 = arith.constant 0 : i32
    return %c0_i32, %c0_i32_0 : i32, i32
  }
  func.func @transform_9(%arg0: i32) -> (i32, i32) {
    %c0_i32 = arith.constant 0 : i32
    %c0_i32_0 = arith.constant 0 : i32
    %c0_i32_1 = arith.constant 0 : i32
    return %c0_i32, %c0_i32_0 : i32, i32
  }
  func.func @transform_10(%arg0: i32) -> (i32, i32) {
    %c0_i32 = arith.constant 0 : i32
    %c0_i32_0 = arith.constant 0 : i32
    %c0_i32_1 = arith.constant 0 : i32
    return %c0_i32, %c0_i32_0 : i32, i32
  }
  func.func @transform_11(%arg0: i32) -> (i32, i32) {
    %c0_i32 = arith.constant 0 : i32
    %c0_i32_0 = arith.constant 0 : i32
    %c0_i32_1 = arith.constant 0 : i32
    return %c0_i32, %c0_i32_0 : i32, i32
  }
}

</mosaic_0001>

<bundles_post_ra>
// kernel: net_forward.1
= control target key start
LH: loop header
LB: loop body
LE: loop exit
PB: predicated region body
PF: predicated region fallthrough
CT: control target
= control target key end

     0   :  { %s10784_s0 = inlined_call_operand.vmem [shape: bf16[448,128], index: 0, kind: input, shape index: {}]   ;;  %s10785_s1 = inlined_call_operand.vmem [shape: bf16[128,128], index: 1, kind: input, shape index: {}]   ;;  %s10786_s2 = inlined_call_operand.vmem [shape: f32[1,128], index: 2, kind: input, shape index: {}]   ;;  %s10787_s3 = inlined_call_operand.vmem [shape: bf16[6,128,128], index: 3, kind: input, shape index: {}]   ;;  %s10788_s4 = inlined_call_operand.vmem [shape: f32[1,128], index: 4, kind: input, shape index: {}]   ;;  %s10789_s5 = inlined_call_operand.vmem [shape: bf16[25,16,128], index: 5, kind: input, shape index: {}]   ;;  %s10790_s6 = inlined_call_operand.vmem [shape: f32[1,128], index: 6, kind: input, shape index: {}]   ;;  %s10791_s7 = inlined_call_operand.vmem [shape: bf16[128,128], index: 7, kind: input, shape index: {}]   ;;  %s10792_s8 = inlined_call_operand.vmem [shape: f32[1,128], index: 8, kind: input, shape index: {}]   ;;  %s10793_s9 = inlined_call_operand.vmem [shape: bf16[128,128], index: 9, kind: input, shape index: {}]   ;;  %s10794_s10 = inlined_call_operand.vmem [shape: f32[1,128], index: 10, kind: input, shape index: {}]   ;;  %s10795_s11 = inlined_call_operand.hbm [shape: f32[2,128], index: 11, kind: output, shape index: {}]  }
   0x1   :  { %v7530_v0 = vld [vmem:[%s10785_s1 + $0x38] sm:$0xff]  ;;  %v7529_v1 = vld [vmem:[%s10785_s1 + $0x30] sm:$0xff] }
   0x2   :  { %328 = vmatpush.bf16.msra.mxu0 %v7530_v0 }
   0x3   :  { %16 = vsyncpa [#allocation6], 0  ;;  %v7528_v2 = vld [vmem:[%s10785_s1 + $0x28] sm:$0xff]  ;;  %v7527_v3 = vld [vmem:[%s10785_s1 + $0x20] sm:$0xff]  ;;  %s8008_s12 = smov 64   ;;  %s8009_s26 = smov 32  }
   0x4   :  { %v7526_v4 = vld [vmem:[%s10785_s1 + $0x18] sm:$0xff]  ;;  %v7525_v5 = vld [vmem:[%s10785_s1 + $0x10] sm:$0xff]  ;;  %v7524_v6 = vld [vmem:[%s10785_s1 + $0x8] sm:$0xff]  ;;  %s8010_s19 = smov 16   ;;  %s8011_s20 = smov 40   ;;  %vm5338_vm1 = vcmask 130048  }
   0x5   :  { %v7523_v7 = vld [vmem:[%s10785_s1] sm:$0xff]  ;;  %v7496_v9 = vld [vmem:[%s10784_s0 + $0x8] sm:$0xff]  ;;  %v7497_v10 = vld [vmem:[%s10784_s0 + $0x10] sm:$0xff]  ;;  %s8012_s21 = smov 8   ;;  %s8013_s23 = smov 24  }
   0x6   :  { %329 = vmatpush.bf16.msra.mxu0 %v7529_v1  ;;  %v7495_v8 = vld [vmem:[%s10784_s0] sm:$0xff]  ;;  %v7498_v11 = vld [vmem:[%s10784_s0 + $0x18] sm:$0xff]  ;;  %v7500_v13 = vld [vmem:[%s10784_s0 + $0x28] sm:$0xff]  ;;  %s6269_s17 = sshll.u32 %s10795_s11, 4  ;;  %s6270_s17 = int_to_ptr.hbm [resolvable:$true] %s6269_s17 }
   0x7   :  { %v7499_v12 = vld [vmem:[%s10784_s0 + $0x20] sm:$0xff]  ;;  %v7501_v14 = vld [vmem:[%s10784_s0 + $0x30] sm:$0xff]  ;;  %v7502_v15 = vld [vmem:[%s10784_s0 + $0x38] sm:$0xff] }
   0x8   :  { %v7503_v16 = vld [vmem:[%s10784_s0 + $0x40] sm:$0xff]  ;;  %v7504_v19 = vld [vmem:[%s10784_s0 + $0x48] sm:$0xff]  ;;  %v7505_v22 = vld [vmem:[%s10784_s0 + $0x50] sm:$0xff] }
   0x9   :  { %v7506_v25 = vld [vmem:[%s10784_s0 + $0x58] sm:$0xff]  ;;  %v7507_v28 = vld [vmem:[%s10784_s0 + $0x60] sm:$0xff]  ;;  %v7508_v31 = vld [vmem:[%s10784_s0 + $0x68] sm:$0xff] }
   0xa   :  { %330 = vmatpush.bf16.msra.mxu0 %v7528_v2  ;;  %v7509_v34 = vld [vmem:[%s10784_s0 + $0x70] sm:$0xff]  ;;  %v7510_v37 = vld [vmem:[%s10784_s0 + $0x78] sm:$0xff]  ;;  %v7511_v44 = vld [vmem:[%s10784_s0 + $0x80] sm:$0xff] }
   0xb   :  { %v7512_v51 = vld [vmem:[%s10784_s0 + $0x88] sm:$0xff] }
   0xe   :  { %331 = vmatpush.bf16.msra.mxu0 %v7527_v3  ;;  %v7513_v3 = vld [vmem:[%s10784_s0 + $0x90] sm:$0xff] }
  0x12   :  { %332 = vmatpush.bf16.msra.mxu0 %v7526_v4 }
  0x16   :  { %333 = vmatpush.bf16.msra.mxu0 %v7525_v5 }
  0x1a   :  { %334 = vmatpush.bf16.msra.mxu0 %v7524_v6 }
  0x1e   :  { %335 = vmatpush.bf16.msra.mxu0 %v7523_v7 }
  0x21   :  { %336 = vmatmul.bf16.vlgmr.msra.gmra.mxu0 %v7495_v8 }
  0x31   :  { %341 = vmatmul.bf16.gmra.mxu0 %v7496_v9 }
  0x41   :  { %346 = vmatmul.bf16.gmra.mxu0 %v7497_v10 }
  0x51   :  { %351 = vmatmul.bf16.gmra.mxu0 %v7498_v11 }
  0x61   :  { %356 = vmatmul.bf16.gmra.mxu0 %v7499_v12 }
  0x71   :  { %361 = vmatmul.bf16.gmra.mxu0 %v7500_v13 }
  0x81   :  { %366 = vmatmul.bf16.gmra.mxu0 %v7501_v14 }
  0x91   :  { %371 = vmatmul.bf16.gmra.mxu0 %v7502_v15 }
  0x9e   :  { %v337_v17 = vpop.f32.mrf.mxu0 }
  0x9f   :  { %477 = vrot.lane.b32.xlu0 %v337_v17, %s8008_s12 }
  0xa1   :  { %376 = vmatmul.bf16.gmra.mxu0 %v7503_v16 }
  0xa6   :  { %v339_v18 = vpop.f32.mrf.mxu0 }
  0xa7   :  { %479 = vrot.lane.b32.xlu0 %v339_v18, %s8008_s12 }
  0xae   :  { %v342_v20 = vpop.f32.mrf.mxu0 }
  0xaf   :  { %481 = vrot.lane.b32.xlu1 %v342_v20, %s8008_s12 }
  0xb1   :  { %381 = vmatmul.bf16.gmra.mxu0 %v7504_v19 }
  0xb6   :  { %v344_v21 = vpop.f32.mrf.mxu0 }
  0xb7   :  { %483 = vrot.lane.b32.xlu1 %v344_v21, %s8008_s12 }
  0xbe   :  { %v347_v23 = vpop.f32.mrf.mxu0 }
  0xbf   :  { %485 = vrot.lane.b32.xlu2 %v347_v23, %s8008_s12 }
  0xc1   :  { %386 = vmatmul.bf16.gmra.mxu0 %v7505_v22 }
  0xc6   :  { %v349_v24 = vpop.f32.mrf.mxu0 }
  0xc7   :  { %487 = vrot.lane.b32.xlu2 %v349_v24, %s8008_s12 }
  0xce   :  { %v8143_v26 = vpop.f32.mrf.mxu0 }
  0xcf   :  { %489 = vrot.lane.b32.xlu0 %v8143_v26, %s8008_s12 }
  0xd1   :  { %391 = vmatmul.bf16.gmra.mxu0 %v7506_v25  ;;  %v8325_v25 = vld [vmem:[%s10786_s2] ss:$0 sm:$0xff] }
  0xd6   :  { %v8147_v27 = vpop.f32.mrf.mxu0 }
  0xd7   :  { %491 = vrot.lane.b32.xlu1 %v8147_v27, %s8008_s12 }
  0xde   :  { %v357_v29 = vpop.f32.mrf.mxu0 }
  0xdf   :  { %493 = vrot.lane.b32.xlu2 %v357_v29, %s8008_s12 }
  0xe1   :  { %396 = vmatmul.bf16.gmra.mxu0 %v7507_v28 }
  0xe6   :  { %v8155_v30 = vpop.f32.mrf.mxu0 }
  0xe7   :  { %495 = vrot.lane.b32.xlu2 %v8155_v30, %s8008_s12 }
  0xee   :  { %v8162_v32 = vpop.f32.mrf.mxu0 }
  0xef   :  { %497 = vrot.lane.b32.xlu0 %v8162_v32, %s8008_s12 }
  0xf1   :  { %401 = vmatmul.bf16.gmra.mxu0 %v7508_v31 }
  0xf6   :  { %v8166_v33 = vpop.f32.mrf.mxu0 }
  0xf7   :  { %499 = vrot.lane.b32.xlu0 %v8166_v33, %s8008_s12 }
  0xfe   :  { %v8173_v35 = vpop.f32.mrf.mxu0 }
  0xff   :  { %501 = vrot.lane.b32.xlu1 %v8173_v35, %s8008_s12 }
 0x101   :  { %406 = vmatmul.bf16.gmra.mxu0 %v7509_v34 }
 0x106   :  { %v8177_v36 = vpop.f32.mrf.mxu0 }
 0x107   :  { %503 = vrot.lane.b32.xlu1 %v8177_v36, %s8008_s12 }
 0x10e   :  { %v8184_v38 = vpop.f32.mrf.mxu0 }
 0x10f   :  { %505 = vrot.lane.b32.xlu2 %v8184_v38, %s8008_s12 }
 0x111   :  { %v478_v39 = vpop.permute.xlu0 %477  ;;  %411 = vmatmul.bf16.gmra.mxu0 %v7510_v37 }
 0x112   :  { %v8188_v40 = vmax.f32 %v337_v17, %v478_v39  ;;  %v7514_v17 = vld [vmem:[%s10784_s0 + $0x98] sm:$0xff] }
 0x114   :  { %645 = vrot.lane.b32.xlu0 %v8188_v40, %s8009_s26 }
 0x116   :  { %v8192_v41 = vpop.f32.mrf.mxu0 }
 0x117   :  { %507 = vrot.lane.b32.xlu2 %v8192_v41, %s8008_s12 }
 0x119   :  { %v480_v42 = vpop.permute.xlu0 %479  ;;  %v486_v53 = vpop.permute.xlu2 %485 }
 0x11a   :  { %v8196_v43 = vmax.f32 %v339_v18, %v480_v42  ;;  %v8226_v54 = vmax.f32 %v347_v23, %v486_v53 }
 0x11c   :  { %647 = vrot.lane.b32.xlu1 %v8196_v43, %s8009_s26 }
 0x11e   :  { %v8203_v45 = vpop.f32.mrf.mxu0 }
 0x11f   :  { %509 = vrot.lane.b32.xlu0 %v8203_v45, %s8008_s12 }
 0x121   :  { %v482_v46 = vpop.permute.xlu1 %481  ;;  %416 = vmatmul.bf16.gmra.mxu0 %v7511_v44  ;;  %v488_v56 = vpop.permute.xlu2 %487 }
 0x122   :  { %v8207_v47 = vmax.f32 %v342_v20, %v482_v46  ;;  %v8234_v57 = vmax.f32 %v349_v24, %v488_v56  ;;  %v813_v20 = vlaneseq }
 0x124   :  { %649 = vrot.lane.b32.xlu2 %v8207_v47, %s8009_s26  ;;  %v8318_v24 = vand.u32 127, %v813_v20 }
 0x126   :  { %v8211_v48 = vpop.f32.mrf.mxu0  ;;  %vm815_vm0 = vcmp.lt.s32.totalorder %v8318_v24, 6 }
 0x127   :  { %511 = vrot.lane.b32.xlu0 %v8211_v48, %s8008_s12 }
 0x129   :  { %v484_v49 = vpop.permute.xlu1 %483 }
 0x12a   :  { %v8215_v50 = vmax.f32 %v344_v21, %v484_v49 }
 0x12e   :  { %v8220_v52 = vpop.f32.mrf.mxu0 }
 0x12f   :  { %651 = vrot.lane.b32.xlu0 %v8215_v50, %s8009_s26  ;;  %513 = vrot.lane.b32.xlu1 %v8220_v52, %s8008_s12 }
 0x131   :  { %421 = vmatmul.bf16.gmra.mxu0 %v7512_v51 }
 0x136   :  { %v8228_v55 = vpop.f32.mrf.mxu0 }
 0x137   :  { %653 = vrot.lane.b32.xlu1 %v8226_v54, %s8009_s26  ;;  %515 = vrot.lane.b32.xlu2 %v8228_v55, %s8008_s12 }
 0x139   :  { %v494_v60 = vpop.permute.xlu2 %493 }
 0x13a   :  { %v8247_v62 = vmax.f32 %v357_v29, %v494_v60 }
 0x13e   :  { %v8236_v58 = vpop.f32.mrf.mxu0 }
 0x13f   :  { %655 = vrot.lane.b32.xlu1 %v8234_v57, %s8009_s26  ;;  %517 = vrot.lane.b32.xlu0 %v8236_v58, %s8008_s12 }
 0x141   :  { %v490_v59 = vpop.permute.xlu0 %489  ;;  %426 = vmatmul.bf16.gmra.mxu0 %v7513_v3  ;;  %v496_v5 = vpop.permute.xlu2 %495 }
 0x142   :  { %v8243_v61 = vmax.f32 %v8143_v26, %v490_v59  ;;  %v8272_v6 = vmax.f32 %v8155_v30, %v496_v5 }
 0x144   :  { %657 = vrot.lane.b32.xlu2 %v8243_v61, %s8009_s26 }
 0x146   :  { %v8249_v63 = vpop.f32.mrf.mxu0 }
 0x147   :  { %661 = vrot.lane.b32.xlu0 %v8247_v62, %s8009_s26  ;;  %519 = vrot.lane.b32.xlu1 %v8249_v63, %s8008_s12 }
 0x149   :  { %v492_v0 = vpop.permute.xlu1 %491 }
 0x14a   :  { %v8256_v1 = vmax.f32 %v8147_v27, %v492_v0 }
 0x14c   :  { %659 = vrot.lane.b32.xlu2 %v8256_v1, %s8009_s26 }
 0x14e   :  { %v8260_v2 = vpop.f32.mrf.mxu0 }
 0x151   :  { %431 = vmatmul.bf16.gmra.mxu0 %v7514_v17 }
 0x154   :  { %521 = vrot.lane.b32.xlu2 %v8260_v2, %s8008_s12 }
 0x156   :  { %v8267_v4 = vpop.f32.mrf.mxu0 }
 0x157   :  { %523 = vrot.lane.b32.xlu0 %v8267_v4, %s8008_s12 }
 0x15e   :  { %v8274_v7 = vpop.f32.mrf.mxu0 }
 0x15f   :  { %663 = vrot.lane.b32.xlu0 %v8272_v6, %s8009_s26  ;;  %525 = vrot.lane.b32.xlu1 %v8274_v7, %s8008_s12 }
 0x161   :  { %v498_v8 = vpop.permute.xlu0 %497 }
 0x162   :  { %v8281_v9 = vmax.f32 %v8162_v32, %v498_v8 }
 0x166   :  { %v8283_v10 = vpop.f32.mrf.mxu0 }
 0x167   :  { %665 = vrot.lane.b32.xlu1 %v8281_v9, %s8009_s26  ;;  %527 = vrot.lane.b32.xlu2 %v8283_v10, %s8008_s12 }
 0x169   :  { %v500_v11 = vpop.permute.xlu0 %499  ;;  %v506_v13 = vpop.permute.xlu2 %505 }
 0x16a   :  { %v8290_v12 = vmax.f32 %v8166_v33, %v500_v11  ;;  %v8309_v22 = vmax.f32 %v8184_v38, %v506_v13 }
 0x16c   :  { %667 = vrot.lane.b32.xlu0 %v8290_v12, %s8009_s26 }
 0x16e   :  { %v8294_v14 = vpop.f32.mrf.mxu0 }
 0x171   :  { %v502_v15 = vpop.permute.xlu1 %501  ;;  %v508_v18 = vpop.permute.xlu2 %507 }
 0x172   :  { %v8297_v16 = vmax.f32 %v8173_v35, %v502_v15  ;;  %v8333_v30 = vmax.f32 %v8192_v41, %v508_v18 }
 0x174   :  { %669 = vrot.lane.b32.xlu1 %v8297_v16, %s8009_s26  ;;  %529 = vrot.lane.b32.xlu0 %v8294_v14, %s8008_s12 }
 0x176   :  { %v8306_v19 = vpop.f32.mrf.mxu0 }
 0x179   :  { %v504_v21 = vpop.permute.xlu1 %503 }
 0x17a   :  { %v8312_v23 = vmax.f32 %v8177_v36, %v504_v21 }
 0x17c   :  { %671 = vrot.lane.b32.xlu2 %v8312_v23, %s8009_s26  ;;  %673 = vrot.lane.b32.xlu0 %v8309_v22, %s8009_s26 }
 0x17d   :  { %531 = vrot.lane.b32.xlu1 %v8306_v19, %s8008_s12 }
 0x17e   :  { %v650_v26 = vpop.permute.xlu2 %649  ;;  %v8327_v27 = vpop.f32.mrf.mxu0 }
 0x17f   :  { %v759_v28 = vmax.f32 %v8207_v47, %v650_v26 }
 0x181   :  { %v822_v29 = vadd.f32 %v8325_v25, %v759_v28 }
 0x183   :  { %v8337_v31 = vsel %vm815_vm0, %v822_v29, 0.0 }
 0x184   :  { %934 = vst [vmem:[#allocation2 + $0x10] sm:$0xff] %v8337_v31  ;;  %533 = vrot.lane.b32.xlu2 %v8327_v27, %s8008_s12 }
 0x185   :  { %675 = vrot.lane.b32.xlu1 %v8333_v30, %s8009_s26 }
 0x186   :  { %v646_v32 = vpop.permute.xlu0 %645  ;;  %v8344_v33 = vpop.f32.mrf.mxu0 }
 0x187   :  { %v757_v34 = vmax.f32 %v8188_v40, %v646_v32  ;;  %535 = vrot.lane.b32.xlu0 %v8344_v33, %s8008_s12 }
 0x189   :  { %v820_v35 = vadd.f32 %v8325_v25, %v757_v34 }
 0x18b   :  { %v8352_v36 = vsel %vm815_vm0, %v820_v35, 0.0 }
 0x18c   :  { %932 = vst [vmem:[#allocation2] sm:$0xff] %v8352_v36 }
 0x18e   :  { %v648_v37 = vpop.permute.xlu1 %647  ;;  %v8355_v38 = vpop.f32.mrf.mxu0 }
 0x18f   :  { %v758_v39 = vmax.f32 %v8196_v43, %v648_v37  ;;  %537 = vrot.lane.b32.xlu1 %v8355_v38, %s8008_s12 }
 0x191   :  { %v821_v40 = vadd.f32 %v8325_v25, %v758_v39  ;;  %v510_v41 = vpop.permute.xlu0 %509  ;;  %v8371_v46 = vpop.permute.xlu2 %515 }
 0x192   :  { %v8362_v42 = vmax.f32 %v8203_v45, %v510_v41 }
 0x193   :  { %v8366_v44 = vsel %vm815_vm0, %v821_v40, 0.0 }
 0x194   :  { %933 = vst [vmem:[#allocation2 + $0x8] sm:$0xff] %v8366_v44  ;;  %677 = vrot.lane.b32.xlu2 %v8362_v42, %s8009_s26 }
 0x196   :  { %v8373_v51 = vpop.f32.mrf.mxu0 }
 0x199   :  { %v512_v43 = vpop.permute.xlu0 %511 }
 0x19a   :  { %v8402_v21 = vmax.f32 %v8211_v48, %v512_v43 }
 0x19b   :  { %v1661_v47 = vld [vmem:[#allocation2 + $0x4] sm:$0xff]  ;;  %v1662_v8 = vld [vmem:[#allocation2 + $0xc] sm:$0xff] }
 0x19c   :  { %v1213_v49 = vld [vmem:[#allocation2 + $0x2] sm:$0xff]  ;;  %1717 = vrot.lane.b32.xlu0 %v1661_v47, %s8009_s26  ;;  %539 = vrot.lane.b32.xlu2 %v8373_v51, %s8008_s12  ;;  %v1886_v29 = vld [vmem:[#allocation2 + $0xd] sm:$0xff] }
 0x19d   :  { %1269 = vrot.lane.b32.xlu1 %v1213_v49, %s8010_s19  ;;  %v1885_v5 = vld [vmem:[#allocation2 + $0x5] sm:$0xff] }
 0x19e   :  { %v658_v45 = vpop.permute.xlu2 %657  ;;  %v1214_v41 = vld [vmem:[#allocation2 + $0xa] sm:$0xff] }
 0x19f   :  { %v763_v53 = vmax.f32 %v8243_v61, %v658_v45  ;;  %v989_v61 = vld [vmem:[#allocation2 + $0x1] sm:$0xff]  ;;  %v990_v49 = vld [vmem:[#allocation2 + $0x9] sm:$0xff] }
 0x1a1   :  { %v826_v56 = vadd.f32 %v8325_v25, %v763_v53  ;;  %v652_v59 = vpop.permute.xlu0 %651  ;;  %v514_v60 = vpop.permute.xlu1 %513 }
 0x1a2   :  { %v760_v0 = vmax.f32 %v8215_v50, %v652_v59  ;;  %v7515_v50 = vld [vmem:[%s10784_s0 + $0xa0] sm:$0xff]  ;;  %v8423_v37 = vmax.f32 %v8220_v52, %v514_v60  ;;  %v1438_v59 = vld [vmem:[#allocation2 + $0xb] sm:$0xff] }
 0x1a3   :  { %v8384_v3 = vsel %vm815_vm0, %v826_v56, 0.0  ;;  %436 = vmatmul.bf16.gmra.mxu0 %v7515_v50 }
 0x1a4   :  { %938 = vst [vmem:[#allocation2 + $0x30] sm:$0xff] %v8384_v3  ;;  %v823_v11 = vadd.f32 %v8325_v25, %v760_v0  ;;  %1941 = vrot.lane.b32.xlu0 %v1885_v5, %s8011_s20  ;;  %1045 = vrot.lane.b32.xlu2 %v989_v61, %s8012_s21  ;;  %v7516_v0 = vld [vmem:[%s10784_s0 + $0xa8] sm:$0xff] }
 0x1a5   :  { %1719 = vrot.lane.b32.xlu1 %v1662_v8, %s8009_s26 }
 0x1a6   :  { %v8396_v13 = vsel %vm815_vm0, %v823_v11, 0.0  ;;  %v660_v15 = vpop.permute.xlu2 %659 }
 0x1a7   :  { %935 = vst [vmem:[#allocation2 + $0x18] sm:$0xff] %v8396_v13  ;;  %v764_v17 = vmax.f32 %v8256_v1, %v660_v15  ;;  %v1437_v1 = vld [vmem:[#allocation2 + $0x3] sm:$0xff] }
 0x1a9   :  { %v827_v18 = vadd.f32 %v8325_v25, %v764_v17  ;;  %v654_v20 = vpop.permute.xlu1 %653 }
 0x1aa   :  { %v761_v26 = vmax.f32 %v8226_v54, %v654_v20  ;;  %v8420_v54 = vpop.f32.mrf.mxu0 }
 0x1ab   :  { %v8407_v28 = vsel %vm815_vm0, %v827_v18, 0.0 }
 0x1ac   :  { %939 = vst [vmem:[#allocation2 + $0x38] sm:$0xff] %v8407_v28  ;;  %v824_v32 = vadd.f32 %v8325_v25, %v761_v26  ;;  %679 = vrot.lane.b32.xlu0 %v8402_v21, %s8009_s26  ;;  %1493 = vrot.lane.b32.xlu2 %v1437_v1, %s8013_s23 }
 0x1ad   :  { %1943 = vrot.lane.b32.xlu1 %v1886_v29, %s8011_s20 }
 0x1ae   :  { %v8417_v48 = vsel %vm815_vm0, %v824_v32, 0.0  ;;  %v1663_v53 = vld [vmem:[#allocation2 + $0x14] sm:$0xff]  ;;  %v8461_v5 = vpop.permute.xlu2 %521 }
 0x1af   :  { %936 = vst [vmem:[#allocation2 + $0x20] sm:$0xff] %v8417_v48  ;;  %v1215_v60 = vld [vmem:[#allocation2 + $0x12] sm:$0xff] }
 0x1b0   :  { %v991_v11 = vld [vmem:[#allocation2 + $0x11] sm:$0xff] }
 0x1b1   :  { %v656_v34 = vpop.permute.xlu1 %655  ;;  %v518_v35 = vpop.permute.xlu0 %517  ;;  %v1439_v61 = vld [vmem:[#allocation2 + $0x13] sm:$0xff] }
 0x1b2   :  { %v762_v39 = vmax.f32 %v8234_v57, %v656_v34  ;;  %v8438_v47 = vpop.f32.mrf.mxu0  ;;  %v1887_v26 = vld [vmem:[#allocation2 + $0x15] sm:$0xff] }
 0x1b3   :  { %441 = vmatmul.bf16.gmra.mxu0 %v7516_v0 }
 0x1b4   :  { %v825_v40 = vadd.f32 %v8325_v25, %v762_v39  ;;  %541 = vrot.lane.b32.xlu0 %v8420_v54, %s8008_s12  ;;  %1271 = vrot.lane.b32.xlu2 %v1214_v41, %s8010_s19  ;;  %v8490_v41 = vmax.f32 %v8236_v58, %v518_v35 }
 0x1b5   :  { %681 = vrot.lane.b32.xlu1 %v8423_v37, %s8009_s26 }
 0x1b6   :  { %v8434_v43 = vsel %vm815_vm0, %v825_v40, 0.0  ;;  %v1664_v20 = vld [vmem:[#allocation2 + $0x1c] sm:$0xff] }
 0x1b7   :  { %937 = vst [vmem:[#allocation2 + $0x28] sm:$0xff] %v8434_v43  ;;  %v1216_v32 = vld [vmem:[#allocation2 + $0x1a] sm:$0xff] }
 0x1b9   :  { %v662_v52 = vpop.permute.xlu0 %661  ;;  %v8463_v8 = vpop.permute.xlu1 %519 }
 0x1ba   :  { %v765_v57 = vmax.f32 %v8247_v62, %v662_v52  ;;  %v8452_v62 = vmax.f32 %v8228_v55, %v8371_v46  ;;  %v8467_v46 = vpop.f32.mrf.mxu0 }
 0x1bc   :  { %v828_v45 = vadd.f32 %v8325_v25, %v765_v57  ;;  %1047 = vrot.lane.b32.xlu0 %v990_v49, %s8012_s21  ;;  %1721 = vrot.lane.b32.xlu2 %v1663_v53, %s8009_s26  ;;  %v992_v49 = vld [vmem:[#allocation2 + $0x19] sm:$0xff] }
 0x1bd   :  { %543 = vrot.lane.b32.xlu1 %v8438_v47, %s8008_s12 }
 0x1be   :  { %v8447_v56 = vsel %vm815_vm0, %v828_v45, 0.0  ;;  %v1217_v0 = vld [vmem:[#allocation2 + $0x22] sm:$0xff] }
 0x1bf   :  { %940 = vst [vmem:[#allocation2 + $0x40] sm:$0xff] %v8447_v56 }
 0x1c1   :  { %v8473_v50 = vpop.permute.xlu2 %527 }
 0x1c4   :  { %1495 = vrot.lane.b32.xlu0 %v1438_v59, %s8013_s23  ;;  %683 = vrot.lane.b32.xlu2 %v8452_v62, %s8009_s26  ;;  %v8507_v59 = vpop.f32.mrf.mxu0 }
 0x1c5   :  { %1273 = vrot.lane.b32.xlu1 %v1215_v60, %s8010_s19 }
 0x1c9   :  { %v8465_v55 = vpop.permute.xlu0 %523 }
 0x1cc   :  { %1049 = vrot.lane.b32.xlu0 %v991_v11, %s8012_s21  ;;  %545 = vrot.lane.b32.xlu2 %v8467_v46, %s8008_s12  ;;  %v1888_v11 = vld [vmem:[#allocation2 + $0x1d] sm:$0xff] }
 0x1cd   :  { %1497 = vrot.lane.b32.xlu1 %v1439_v61, %s8013_s23 }
 0x1d1   :  { %v664_v15 = vpop.permute.xlu0 %663  ;;  %v8475_v17 = vpop.permute.xlu1 %525 }
 0x1d2   :  { %v766_v18 = vmax.f32 %v8272_v6, %v664_v15 }
 0x1d4   :  { %v829_v29 = vadd.f32 %v8325_v25, %v766_v18  ;;  %1723 = vrot.lane.b32.xlu0 %v1664_v20, %s8009_s26  ;;  %1275 = vrot.lane.b32.xlu2 %v1216_v32, %s8010_s19  ;;  %v1665_v32 = vld [vmem:[#allocation2 + $0x24] sm:$0xff] }
 0x1d5   :  { %1945 = vrot.lane.b32.xlu1 %v1887_v26, %s8011_s20 }
 0x1d6   :  { %v8484_v1 = vsel %vm815_vm0, %v829_v29, 0.0  ;;  %v672_v34 = vpop.permute.xlu2 %671 }
 0x1d7   :  { %941 = vst [vmem:[#allocation2 + $0x48] sm:$0xff] %v8484_v1  ;;  %v770_v6 = vmax.f32 %v8312_v23, %v672_v34  ;;  %v1440_v23 = vld [vmem:[#allocation2 + $0x1b] sm:$0xff]  ;;  %v1889_v34 = vld [vmem:[#allocation2 + $0x25] sm:$0xff] }
 0x1d9   :  { %v833_v39 = vadd.f32 %v8325_v25, %v770_v6  ;;  %v666_v40 = vpop.permute.xlu1 %665  ;;  %v993_v6 = vld [vmem:[#allocation2 + $0x21] sm:$0xff] }
 0x1da   :  { %v767_v52 = vmax.f32 %v8281_v9, %v666_v40 }
 0x1db   :  { %v889_v57 = vsel %vm815_vm0, %v833_v39, 0.0 }
 0x1dc   :  { %945 = vst [vmem:[#allocation2 + $0x68] sm:$0xff] %v889_v57  ;;  %v830_v45 = vadd.f32 %v8325_v25, %v767_v52  ;;  %685 = vrot.lane.b32.xlu0 %v8490_v41, %s8009_s26  ;;  %1499 = vrot.lane.b32.xlu2 %v1440_v23, %s8013_s23  ;;  %v8540_v23 = vmax.f32 %v8249_v63, %v8463_v8 }
 0x1dd   :  { %1051 = vrot.lane.b32.xlu1 %v992_v49, %s8012_s21 }
 0x1de   :  { %v8502_v58 = vsel %vm815_vm0, %v830_v45, 0.0  ;;  %v668_v9 = vpop.permute.xlu0 %667  ;;  %v8517_v61 = vpop.permute.xlu2 %533 }
 0x1df   :  { %942 = vst [vmem:[#allocation2 + $0x50] sm:$0xff] %v8502_v58  ;;  %v768_v35 = vmax.f32 %v8290_v12, %v668_v9  ;;  %v7517_v12 = vld [vmem:[%s10784_s0 + $0xb0] sm:$0xff] }
 0x1e0   :  { %446 = vmatmul.bf16.gmra.mxu0 %v7517_v12  ;;  %v1442_v12 = vld [vmem:[#allocation2 + $0x2b] sm:$0xff] }
 0x1e1   :  { %v831_v53 = vadd.f32 %v8325_v25, %v768_v35 }
 0x1e3   :  { %v8511_v60 = vsel %vm815_vm0, %v831_v53, 0.0  ;;  %v994_v53 = vld [vmem:[#allocation2 + $0x29] sm:$0xff] }
 0x1e4   :  { %943 = vst [vmem:[#allocation2 + $0x58] sm:$0xff] %v8511_v60  ;;  %547 = vrot.lane.b32.xlu0 %v8507_v59, %s8008_s12  ;;  %1947 = vrot.lane.b32.xlu2 %v1888_v11, %s8011_s20  ;;  %v8554_v11 = vpop.f32.mrf.mxu0 }
 0x1e5   :  { %1277 = vrot.lane.b32.xlu1 %v1217_v0, %s8010_s19 }
 0x1e6   :  { %v670_v15 = vpop.permute.xlu1 %669  ;;  %v8523_v18 = vpop.permute.xlu0 %529 }
 0x1e7   :  { %v769_v20 = vmax.f32 %v8297_v16, %v670_v15 }
 0x1e9   :  { %v832_v26 = vadd.f32 %v8325_v25, %v769_v20  ;;  %v1218_v20 = vld [vmem:[#allocation2 + $0x2a] sm:$0xff] }
 0x1eb   :  { %v888_v29 = vsel %vm815_vm0, %v832_v26, 0.0 }
 0x1ec   :  { %944 = vst [vmem:[#allocation2 + $0x60] sm:$0xff] %v888_v29  ;;  %1949 = vrot.lane.b32.xlu0 %v1889_v34, %s8011_s20  ;;  %1053 = vrot.lane.b32.xlu2 %v993_v6, %s8012_s21  ;;  %v1890_v29 = vld [vmem:[#allocation2 + $0x2d] sm:$0xff] }
 0x1ed   :  { %1725 = vrot.lane.b32.xlu1 %v1665_v32, %s8009_s26  ;;  %v1666_v32 = vld [vmem:[#allocation2 + $0x2c] sm:$0xff] }
 0x1ee   :  { %v674_v39 = vpop.permute.xlu0 %673  ;;  %v678_v40 = vpop.permute.xlu2 %677 }
 0x1ef   :  { %v771_v16 = vmax.f32 %v8309_v22, %v674_v39  ;;  %v8533_v52 = vpop.permute.xlu1 %531  ;;  %v773_v57 = vmax.f32 %v8362_v42, %v678_v40  ;;  %v1441_v22 = vld [vmem:[#allocation2 + $0x23] sm:$0xff]  ;;  %v7566_v40 = vld [vmem:[%s10787_s3 + $0x38] sm:$0xff] }
 0x1f0   :  { %2741 = vmatpush.bf16.msra.mxu2 %v7566_v40  ;;  %v7561_v40 = vld [vmem:[%s10787_s3 + $0x10] sm:$0xff] }
 0x1f1   :  { %v834_v49 = vadd.f32 %v8325_v25, %v771_v16  ;;  %v836_v45 = vadd.f32 %v8325_v25, %v773_v57  ;;  %v8578_v16 = vmax.f32 %v8260_v2, %v8461_v5  ;;  %v1667_v57 = vld [vmem:[#allocation2 + $0x34] sm:$0xff]  ;;  %v7564_v5 = vld [vmem:[%s10787_s3 + $0x28] sm:$0xff] }
 0x1f3   :  { %v890_v9 = vsel %vm815_vm0, %v834_v49, 0.0  ;;  %v892_v35 = vsel %vm815_vm0, %v836_v45, 0.0  ;;  %v995_v49 = vld [vmem:[#allocation2 + $0x31] sm:$0xff] }
 0x1f4   :  { %946 = vst [vmem:[#allocation2 + $0x70] sm:$0xff] %v890_v9  ;;  %1055 = vrot.lane.b32.xlu0 %v994_v53, %s8012_s21  ;;  %1501 = vrot.lane.b32.xlu2 %v1441_v22, %s8013_s23  ;;  %v7565_v45 = vld [vmem:[%s10787_s3 + $0x30] sm:$0xff]  ;;  %v8598_v53 = vmax.f32 %v8267_v4, %v8465_v55  ;;  %v8600_v22 = vpop.f32.mrf.mxu0 }
 0x1f5   :  { %687 = vrot.lane.b32.xlu1 %v8540_v23, %s8009_s26  ;;  %948 = vst [vmem:[#allocation2 + $0x80] sm:$0xff] %v892_v35  ;;  %2742 = vmatpush.bf16.msra.mxu2 %v7565_v45  ;;  %v7518_v45 = vld [vmem:[%s10784_s0 + $0xb8] sm:$0xff] }
 0x1f6   :  { %v8550_v63 = vpop.permute.xlu2 %539  ;;  %451 = vmatmul.bf16.gmra.mxu0 %v7518_v45 }
 0x1f7   :  { %v676_v42 = vpop.permute.xlu1 %675 }
 0x1f8   :  { %v772_v8 = vmax.f32 %v8333_v30, %v676_v42  ;;  %v1219_v30 = vld [vmem:[#allocation2 + $0x32] sm:$0xff] }
 0x1f9   :  { %v8567_v34 = vpop.permute.xlu0 %535  ;;  %v1443_v42 = vld [vmem:[#allocation2 + $0x33] sm:$0xff]  ;;  %2743 = vmatpush.bf16.msra.mxu2 %v7564_v5 }
 0x1fa   :  { %v835_v0 = vadd.f32 %v8325_v25, %v772_v8  ;;  %v7563_v8 = vld [vmem:[%s10787_s3 + $0x20] sm:$0xff] }
 0x1fc   :  { %v891_v15 = vsel %vm815_vm0, %v835_v0, 0.0  ;;  %1503 = vrot.lane.b32.xlu0 %v1442_v12, %s8013_s23  ;;  %1279 = vrot.lane.b32.xlu2 %v1218_v20, %s8010_s19  ;;  %v7562_v12 = vld [vmem:[%s10787_s3 + $0x18] sm:$0xff] }
 0x1fd   :  { %549 = vrot.lane.b32.xlu1 %v8554_v11, %s8008_s12  ;;  %947 = vst [vmem:[#allocation2 + $0x78] sm:$0xff] %v891_v15  ;;  %2744 = vmatpush.bf16.msra.mxu2 %v7563_v8  ;;  %v8619_v15 = vpop.f32.mrf.mxu0  ;;  %v1220_v20 = vld [vmem:[#allocation2 + $0x3a] sm:$0xff] }
 0x1fe   :  { %v8562_v26 = vpop.permute.xlu2 %1045 }
 0x201   :  { %v8569_v6 = vpop.permute.xlu1 %537  ;;  %2745 = vmatpush.bf16.msra.mxu2 %v7562_v12  ;;  %v7560_v12 = vld [vmem:[%s10787_s3 + $0x8] sm:$0xff] }
 0x204   :  { %1281 = vrot.lane.b32.xlu0 %v1219_v30, %s8010_s19  ;;  %1727 = vrot.lane.b32.xlu2 %v1666_v32, %s8009_s26  ;;  %v1891_v30 = vld [vmem:[#allocation2 + $0x35] sm:$0xff] }
 0x205   :  { %1951 = vrot.lane.b32.xlu1 %v1890_v29, %s8011_s20  ;;  %2746 = vmatpush.bf16.msra.mxu2 %v7561_v40  ;;  %v7575_v40 = vld [vmem:[%s10787_s3 + $0x78] sm:$0xff] }
 0x206   :  { %v8571_v39 = vpop.permute.xlu2 %1493  ;;  %2538 = vmatpush.bf16.msra.mxu1 %v7575_v40 }
 0x209   :  { %2747 = vmatpush.bf16.msra.mxu2 %v7560_v12 }
 0x20c   :  { %1729 = vrot.lane.b32.xlu0 %v1667_v57, %s8009_s26  ;;  %689 = vrot.lane.b32.xlu2 %v8578_v16, %s8009_s26 }
 0x20d   :  { %1057 = vrot.lane.b32.xlu1 %v995_v49, %s8012_s21 }
 0x20e   :  { %v8587_v9 = vpop.permute.xlu0 %1717  ;;  %v8591_v2 = vpop.permute.xlu2 %1271 }
 0x20f   :  { %v8589_v35 = vpop.permute.xlu1 %1269 }
 0x214   :  { %691 = vrot.lane.b32.xlu0 %v8598_v53, %s8009_s26  ;;  %551 = vrot.lane.b32.xlu2 %v8600_v22, %s8008_s12 }
 0x215   :  { %1505 = vrot.lane.b32.xlu1 %v1443_v42, %s8013_s23 }
 0x216   :  { %v8610_v0 = vpop.permute.xlu0 %1941  ;;  %v8614_v55 = vpop.permute.xlu2 %1721 }
 0x217   :  { %v8612_v4 = vpop.permute.xlu1 %1719 }
 0x21c   :  { %553 = vrot.lane.b32.xlu0 %v8619_v15, %s8008_s12  ;;  %1953 = vrot.lane.b32.xlu2 %v1891_v30, %s8011_s20  ;;  %v1892_v30 = vld [vmem:[#allocation2 + $0x3d] sm:$0xff] }
 0x21d   :  { %1283 = vrot.lane.b32.xlu1 %v1220_v20, %s8010_s19  ;;  %v1668_v20 = vld [vmem:[#allocation2 + $0x3c] sm:$0xff] }
 0x21e   :  { %v680_v29 = vpop.permute.xlu0 %679  ;;  %v684_v49 = vpop.permute.xlu2 %683 }
 0x21f   :  { %v8625_v32 = vpop.permute.xlu1 %1943  ;;  %v774_v57 = vmax.f32 %v8402_v21, %v680_v29  ;;  %v776_v5 = vmax.f32 %v8452_v62, %v684_v49  ;;  %v996_v62 = vld [vmem:[#allocation2 + $0x39] sm:$0xff] }
 0x221   :  { %v837_v42 = vadd.f32 %v8325_v25, %v774_v57  ;;  %v839_v8 = vadd.f32 %v8325_v25, %v776_v5  ;;  %v7559_v57 = vld [vmem:[%s10787_s3] sm:$0xff] }
 0x222   :  { %2748 = vmatpush.bf16.msra.mxu2 %v7559_v57 }
 0x223   :  { %v893_v21 = vsel %vm815_vm0, %v837_v42, 0.0  ;;  %v895_v29 = vsel %vm815_vm0, %v839_v8, 0.0  ;;  %v7574_v8 = vld [vmem:[%s10787_s3 + $0x70] sm:$0xff] }
 0x224   :  { %949 = vst [vmem:[#allocation2 + $0x88] sm:$0xff] %v893_v21  ;;  %1955 = vrot.lane.b32.xlu0 %v1892_v30, %s8011_s20  ;;  %1059 = vrot.lane.b32.xlu2 %v996_v62, %s8012_s21  ;;  %v8664_v21 = vmax.f32 %v8274_v7, %v8475_v17  ;;  %v997_v30 = vld [vmem:[#allocation2 + $0x41] sm:$0xff]  ;;  %v1157_v62 = vadd.f32 %v8562_v26, %v8352_v36 }
 0x225   :  { %1731 = vrot.lane.b32.xlu1 %v1668_v20, %s8009_s26  ;;  %951 = vst [vmem:[#allocation2 + $0x98] sm:$0xff] %v895_v29  ;;  %2539 = vmatpush.bf16.msra.mxu1 %v7574_v8  ;;  %v7573_v29 = vld [vmem:[%s10787_s3 + $0x68] sm:$0xff]  ;;  %v8686_v8 = vpop.f32.mrf.mxu0 }
 0x226   :  { %v8653_v45 = vpop.permute.xlu0 %541  ;;  %v8656_v42 = vpop.permute.xlu2 %545  ;;  %v1381_v57 = vadd.f32 %v8589_v35, %v1157_v62 }
 0x227   :  { %v682_v49 = vpop.permute.xlu1 %681 }
 0x228   :  { %v775_v5 = vmax.f32 %v8423_v37, %v682_v49  ;;  %v1444_v37 = vld [vmem:[#allocation2 + $0x3b] sm:$0xff]  ;;  %v1605_v36 = vadd.f32 %v8571_v39, %v1381_v57  ;;  %v7570_v39 = vld [vmem:[%s10787_s3 + $0x50] sm:$0xff] }
 0x229   :  { %2540 = vmatpush.bf16.msra.mxu1 %v7573_v29 }
 0x22a   :  { %v838_v12 = vadd.f32 %v8325_v25, %v775_v5  ;;  %v7572_v5 = vld [vmem:[%s10787_s3 + $0x60] sm:$0xff] }
 0x22c   :  { %v894_v20 = vsel %vm815_vm0, %v838_v12, 0.0  ;;  %1061 = vrot.lane.b32.xlu0 %v997_v30, %s8012_s21  ;;  %1507 = vrot.lane.b32.xlu2 %v1444_v37, %s8013_s23  ;;  %v1445_v12 = vld [vmem:[#allocation2 + $0x43] sm:$0xff]  ;;  %v7571_v30 = vld [vmem:[%s10787_s3 + $0x58] sm:$0xff] }
 0x22d   :  { %950 = vst [vmem:[#allocation2 + $0x90] sm:$0xff] %v894_v20  ;;  %693 = vrot.lane.b32.xlu1 %v8664_v21, %s8009_s26  ;;  %v1221_v20 = vld [vmem:[#allocation2 + $0x42] sm:$0xff]  ;;  %2541 = vmatpush.bf16.msra.mxu1 %v7572_v5 }
 0x22e   :  { %v1048_v7 = vpop.permute.xlu0 %1047  ;;  %v8679_v40 = vpop.permute.xlu2 %1275  ;;  %v1893_v5 = vld [vmem:[#allocation2 + $0x45] sm:$0xff] }
 0x22f   :  { %v8675_v17 = vpop.permute.xlu1 %543  ;;  %v1158_v49 = vadd.f32 %v1048_v7, %v8366_v44  ;;  %v1829_v7 = vadd.f32 %v8587_v9, %v1605_v36  ;;  %v7569_v9 = vld [vmem:[%s10787_s3 + $0x48] sm:$0xff] }
 0x231   :  { %v1382_v26 = vadd.f32 %v8591_v2, %v1158_v49  ;;  %2542 = vmatpush.bf16.msra.mxu1 %v7571_v30  ;;  %v2053_v2 = vadd.f32 %v8610_v0, %v1829_v7  ;;  %v1222_v49 = vld [vmem:[#allocation2 + $0x4a] sm:$0xff] }
 0x232   :  { %v998_v30 = vld [vmem:[#allocation2 + $0x49] sm:$0xff] }
 0x234   :  { %1509 = vrot.lane.b32.xlu0 %v1445_v12, %s8013_s23  ;;  %1285 = vrot.lane.b32.xlu2 %v1221_v20, %s8010_s19  ;;  %v1669_v12 = vld [vmem:[#allocation2 + $0x44] sm:$0xff] }
 0x235   :  { %555 = vrot.lane.b32.xlu1 %v8686_v8, %s8008_s12  ;;  %2543 = vmatpush.bf16.msra.mxu1 %v7570_v39  ;;  %v7611_v39 = vld [vmem:[%s10787_s3 + $0xb8] sm:$0xff] }
 0x236   :  { %v1496_v44 = vpop.permute.xlu0 %1495  ;;  %v1500_v29 = vpop.permute.xlu2 %1499  ;;  %3179 = vmatpush.bf16.msra.mxu3 %v7611_v39 }
 0x237   :  { %v1274_v35 = vpop.permute.xlu1 %1273  ;;  %v1606_v37 = vadd.f32 %v1496_v44, %v1382_v26  ;;  %v8715_v26 = vmax.f32 %v8283_v10, %v8473_v50  ;;  %v1670_v44 = vld [vmem:[#allocation2 + $0x4c] sm:$0xff] }
 0x239   :  { %v1830_v62 = vadd.f32 %v8612_v4, %v1606_v37  ;;  %2544 = vmatpush.bf16.msra.mxu1 %v7569_v9 }
 0x23b   :  { %v2054_v57 = vadd.f32 %v8625_v32, %v1830_v62  ;;  %v7568_v32 = vld [vmem:[%s10787_s3 + $0x40] sm:$0xff] }
 0x23c   :  { %1287 = vrot.lane.b32.xlu0 %v1222_v49, %s8010_s19  ;;  %1733 = vrot.lane.b32.xlu2 %v1669_v12, %s8009_s26  ;;  %v8734_v49 = vmax.f32 %v8294_v14, %v8523_v18  ;;  %v1446_v12 = vld [vmem:[#allocation2 + $0x4b] sm:$0xff] }
 0x23d   :  { %1957 = vrot.lane.b32.xlu1 %v1893_v5, %s8011_s20  ;;  %v7764_v20 = vpack.c.bf16 %v2054_v57, %v2053_v2  ;;  %2545 = vmatpush.bf16.msra.mxu1 %v7568_v32  ;;  %v7519_v2 = vld [vmem:[%s10784_s0 + $0xc0] sm:$0xff]  ;;  %v8730_v57 = vpop.f32.mrf.mxu0  ;;  %v7610_v5 = vld [vmem:[%s10787_s3 + $0xb0] sm:$0xff]  ;;  %v7609_v14 = vld [vmem:[%s10787_s3 + $0xa8] sm:$0xff] }
 0x23e   :  { %v1050_v4 = vpop.permute.xlu0 %1049  ;;  %v1948_v0 = vpop.permute.xlu2 %1947  ;;  %456 = vmatmul.bf16.gmra.mxu0 %v7519_v2  ;;  %3180 = vmatpush.bf16.msra.mxu3 %v7610_v5  ;;  %v1894_v2 = vld [vmem:[#allocation2 + $0x4d] sm:$0xff] }
 0x23f   :  { %v1498_v36 = vpop.permute.xlu1 %1497  ;;  %7765 = vst [vmem:[#allocation3] sm:$0xff] %v7764_v20   ;;  %v1159_v10 = vadd.f32 %v1050_v4, %v8337_v31 }
 0x241   :  { %v1383_v31 = vadd.f32 %v1274_v35, %v1159_v10 }
 0x242   :  { %3181 = vmatpush.bf16.msra.mxu3 %v7609_v14 }
 0x243   :  { %v1607_v9 = vadd.f32 %v1498_v36, %v1383_v31 }
 0x244   :  { %1735 = vrot.lane.b32.xlu0 %v1670_v44, %s8009_s26  ;;  %695 = vrot.lane.b32.xlu2 %v8715_v26, %s8009_s26 }
 0x245   :  { %1063 = vrot.lane.b32.xlu1 %v998_v30, %s8012_s21  ;;  %v1831_v39 = vadd.f32 %v8614_v55, %v1607_v9  ;;  %v8757_v10 = vpop.f32.mrf.mxu0  ;;  %v7607_v55 = vld [vmem:[%s10787_s3 + $0x98] sm:$0xff] }
 0x246   :  { %v1724_v37 = vpop.permute.xlu0 %1723  ;;  %v7531_v62 = vld [vmem:[#allocation3] sm:$0xff]  ;;  %v8725_v50 = vpop.permute.xlu2 %1053  ;;  %v1671_v9 = vld [vmem:[#allocation2 + $0x54] sm:$0xff] }
 0x247   :  { %v1946_v7 = vpop.permute.xlu1 %1945  ;;  %2749 = vmatmul.bf16.vlgmr.msra.gmra.mxu2 %v7531_v62  ;;  %v7608_v62 = vld [vmem:[%s10787_s3 + $0xa0] sm:$0xff] }
 0x248   :  { %3182 = vmatpush.bf16.msra.mxu3 %v7608_v62  ;;  %v8786_v62 = vmax.f32 %v8306_v19, %v8533_v52 }
 0x24c   :  { %697 = vrot.lane.b32.xlu0 %v8734_v49, %s8009_s26  ;;  %557 = vrot.lane.b32.xlu2 %v8730_v57, %s8008_s12 }
 0x24d   :  { %1511 = vrot.lane.b32.xlu1 %v1446_v12, %s8013_s23  ;;  %3183 = vmatpush.bf16.msra.mxu3 %v7607_v55  ;;  %v7521_v55 = vld [vmem:[%s10784_s0 + $0xd0] sm:$0xff] }
 0x24e   :  { %v686_v18 = vpop.permute.xlu0 %685  ;;  %v8749_v32 = vpop.permute.xlu2 %1501 }
 0x24f   :  { %v1052_v20 = vpop.permute.xlu1 %1051  ;;  %v777_v4 = vmax.f32 %v8490_v41, %v686_v18  ;;  %v7520_v18 = vld [vmem:[%s10784_s0 + $0xc8] sm:$0xff] }
 0x250   :  { %v1160_v35 = vadd.f32 %v1052_v20, %v8396_v13  ;;  %v1223_v13 = vld [vmem:[#allocation2 + $0x52] sm:$0xff]  ;;  %461 = vmatmul.bf16.gmra.mxu0 %v7520_v18 }
 0x251   :  { %v840_v44 = vadd.f32 %v8325_v25, %v777_v4  ;;  %v1895_v4 = vld [vmem:[#allocation2 + $0x55] sm:$0xff] }
 0x252   :  { %v1384_v30 = vadd.f32 %v8679_v40, %v1160_v35  ;;  %v999_v35 = vld [vmem:[#allocation2 + $0x51] sm:$0xff] }
 0x253   :  { %v896_v41 = vsel %vm815_vm0, %v840_v44, 0.0 }
 0x254   :  { %v1608_v36 = vadd.f32 %v1500_v29, %v1384_v30  ;;  %952 = vst [vmem:[#allocation2 + $0xa0] sm:$0xff] %v896_v41  ;;  %559 = vrot.lane.b32.xlu0 %v8757_v10, %s8008_s12  ;;  %1959 = vrot.lane.b32.xlu2 %v1894_v2, %s8011_s20  ;;  %v2055_v29 = vadd.f32 %v1946_v7, %v1831_v39  ;;  %v7604_v41 = vld [vmem:[%s10787_s3 + $0x80] sm:$0xff] }
 0x255   :  { %1289 = vrot.lane.b32.xlu1 %v1223_v13, %s8010_s19  ;;  %v1447_v13 = vld [vmem:[#allocation2 + $0x53] sm:$0xff] }
 0x256   :  { %v1832_v40 = vadd.f32 %v1724_v37, %v1608_v36  ;;  %v8768_v31 = vpop.permute.xlu0 %547  ;;  %v1280_v14 = vpop.permute.xlu2 %1279  ;;  %v7606_v37 = vld [vmem:[%s10787_s3 + $0x90] sm:$0xff]  ;;  %v1000_v36 = vld [vmem:[#allocation2 + $0x59] sm:$0xff] }
 0x257   :  { %v1278_v5 = vpop.permute.xlu1 %1277  ;;  %3184 = vmatpush.bf16.msra.mxu3 %v7606_v37  ;;  %v8807_v37 = vpop.f32.mrf.mxu0 }
 0x258   :  { %v2056_v12 = vadd.f32 %v1948_v0, %v1832_v40  ;;  %v7605_v0 = vld [vmem:[%s10787_s3 + $0x88] sm:$0xff] }
 0x25a   :  { %v7769_v20 = vpack.c.bf16 %v2056_v12, %v2055_v29  ;;  %v7647_v12 = vld [vmem:[%s10787_s3 + $0xf8] sm:$0xff] }
 0x25b   :  { %3185 = vmatpush.bf16.msra.mxu3 %v7605_v0  ;;  %3673 = vmatpush.bf16.msrb.mxu0 %v7647_v12  ;;  %v1224_v0 = vld [vmem:[#allocation2 + $0x5a] sm:$0xff] }
 0x25c   :  { %7901 = vst [vmem:[#allocation3 + $0x8] sm:$0xff] %v7769_v20   ;;  %1961 = vrot.lane.b32.xlu0 %v1895_v4, %s8011_s20  ;;  %1065 = vrot.lane.b32.xlu2 %v999_v35, %s8012_s21  ;;  %v1448_v4 = vld [vmem:[#allocation2 + $0x5b] sm:$0xff] }
 0x25d   :  { %1737 = vrot.lane.b32.xlu1 %v1671_v9, %s8009_s26 }
 0x25e   :  { %v8782_v44 = vpop.permute.xlu0 %1949  ;;  %v1728_v30 = vpop.permute.xlu2 %1727 }
 0x25f   :  { %v1726_v7 = vpop.permute.xlu1 %1725  ;;  %3186 = vmatpush.bf16.msra.mxu3 %v7604_v41 }
 0x260   :  { %466 = vmatmul.bf16.gmra.mxu0 %v7521_v55  ;;  %v1896_v55 = vld [vmem:[#allocation2 + $0x5d] sm:$0xff] }
 0x263   :  { %v7532_v39 = vld [vmem:[#allocation3 + $0x8] sm:$0xff]  ;;  %7928 = vmatpush.bf16.msrb.mxu3 %v7647_v12 }
 0x264   :  { %1067 = vrot.lane.b32.xlu0 %v1000_v36, %s8012_s21  ;;  %1513 = vrot.lane.b32.xlu2 %v1447_v13, %s8013_s23  ;;  %v7645_v13 = vld [vmem:[%s10787_s3 + $0xe8] sm:$0xff] }
 0x265   :  { %699 = vrot.lane.b32.xlu1 %v8786_v62, %s8009_s26  ;;  %2546 = vmatmul.bf16.vlgmr.msra.gmra.mxu1 %v7532_v39 }
 0x266   :  { %2754 = vmatmul.bf16.gmra.mxu2 %v7532_v39  ;;  %v1056_v40 = vpop.permute.xlu0 %1055  ;;  %v690_v52 = vpop.permute.xlu2 %689 }
 0x267   :  { %v688_v2 = vpop.permute.xlu1 %687  ;;  %v779_v29 = vmax.f32 %v8578_v16, %v690_v52  ;;  %v1162_v16 = vadd.f32 %v1056_v40, %v8434_v43  ;;  %v1225_v52 = vld [vmem:[#allocation2 + $0x62] sm:$0xff] }
 0x268   :  { %v778_v19 = vmax.f32 %v8540_v23, %v688_v2  ;;  %v1161_v23 = vadd.f32 %v8725_v50, %v8417_v48  ;;  %v7646_v48 = vld [vmem:[%s10787_s3 + $0xf0] sm:$0xff] }
 0x269   :  { %v842_v20 = vadd.f32 %v8325_v25, %v779_v29  ;;  %3674 = vmatpush.bf16.msrb.mxu0 %v7646_v48  ;;  %7929 = vmatpush.bf16.msrb.mxu3 %v7646_v48  ;;  %v1386_v41 = vadd.f32 %v1280_v14, %v1162_v16  ;;  %v1672_v29 = vld [vmem:[#allocation2 + $0x5c] sm:$0xff] }
 0x26a   :  { %v841_v18 = vadd.f32 %v8325_v25, %v778_v19  ;;  %v1385_v50 = vadd.f32 %v1278_v5, %v1161_v23  ;;  %v7644_v5 = vld [vmem:[%s10787_s3 + $0xe0] sm:$0xff] }
 0x26b   :  { %v898_v35 = vsel %vm815_vm0, %v842_v20, 0.0 }
 0x26c   :  { %v897_v9 = vsel %vm815_vm0, %v841_v18, 0.0  ;;  %1515 = vrot.lane.b32.xlu0 %v1448_v4, %s8013_s23  ;;  %954 = vst [vmem:[#allocation2 + $0xb0] sm:$0xff] %v898_v35  ;;  %1291 = vrot.lane.b32.xlu2 %v1224_v0, %s8010_s19  ;;  %v1609_v2 = vadd.f32 %v8749_v32, %v1385_v50  ;;  %v1001_v4 = vld [vmem:[#allocation2 + $0x61] sm:$0xff]  ;;  %v7642_v35 = vld [vmem:[%s10787_s3 + $0xd0] sm:$0xff]  ;;  %v8860_v50 = vmax.f32 %v8344_v33, %v8567_v34 }
 0x26d   :  { %953 = vst [vmem:[#allocation2 + $0xa8] sm:$0xff] %v897_v9  ;;  %561 = vrot.lane.b32.xlu1 %v8807_v37, %s8008_s12  ;;  %3675 = vmatpush.bf16.msrb.mxu0 %v7645_v13  ;;  %v7643_v9 = vld [vmem:[%s10787_s3 + $0xd8] sm:$0xff] }
 0x26e   :  { %v1504_v43 = vpop.permute.xlu0 %1503  ;;  %v8823_v36 = vpop.permute.xlu2 %551  ;;  %7930 = vmatpush.bf16.msrb.mxu3 %v7645_v13  ;;  %v1833_v19 = vadd.f32 %v1726_v7, %v1609_v2  ;;  %v7522_v7 = vld [vmem:[%s10784_s0 + $0xd8] sm:$0xff]  ;;  %v1449_v2 = vld [vmem:[#allocation2 + $0x63] sm:$0xff] }
 0x26f   :  { %v8821_v39 = vpop.permute.xlu1 %549  ;;  %v1610_v40 = vadd.f32 %v1504_v43, %v1386_v41  ;;  %v8862_v13 = vpop.f32.mrf.mxu0 }
 0x270   :  { %v2057_v18 = vadd.f32 %v8782_v44, %v1833_v19  ;;  %471 = vmatmul.bf16.gmra.mxu0 %v7522_v7  ;;  %v1673_v44 = vld [vmem:[#allocation2 + $0x64] sm:$0xff] }
 0x271   :  { %v1834_v14 = vadd.f32 %v1728_v30, %v1610_v40  ;;  %3676 = vmatpush.bf16.msrb.mxu0 %v7644_v5  ;;  %v8846_v30 = vmax.f32 %v8327_v27, %v8517_v61  ;;  %v7641_v61 = vld [vmem:[%s10787_s3 + $0xc8] sm:$0xff]  ;;  %v7640_v40 = vld [vmem:[%s10787_s3 + $0xc0] sm:$0xff] }
 0x272   :  { %7931 = vmatpush.bf16.msrb.mxu3 %v7644_v5 }
 0x274   :  { %1293 = vrot.lane.b32.xlu0 %v1225_v52, %s8010_s19  ;;  %1739 = vrot.lane.b32.xlu2 %v1672_v29, %s8009_s26 }
 0x275   :  { %1963 = vrot.lane.b32.xlu1 %v1896_v55, %s8011_s20  ;;  %3677 = vmatpush.bf16.msrb.mxu0 %v7643_v9 }
 0x276   :  { %v1282_v12 = vpop.permute.xlu0 %1281  ;;  %v8836_v23 = vpop.permute.xlu2 %1953  ;;  %7932 = vmatpush.bf16.msrb.mxu3 %v7643_v9 }
 0x277   :  { %v1952_v32 = vpop.permute.xlu1 %1951  ;;  %v8875_v29 = vpop.f32.mrf.mxu0 }
 0x278   :  { %v2058_v20 = vadd.f32 %v1952_v32, %v1834_v14  ;;  %v1226_v32 = vld [vmem:[#allocation2 + $0x6a] sm:$0xff] }
 0x279   :  { %3678 = vmatpush.bf16.msrb.mxu0 %v7642_v35 }
 0x27a   :  { %v7774_v16 = vpack.c.bf16 %v2058_v20, %v2057_v18  ;;  %7933 = vmatpush.bf16.msrb.mxu3 %v7642_v35  ;;  %v1897_v18 = vld [vmem:[#allocation2 + $0x65] sm:$0xff] }
 0x27b   :  { %v1002_v35 = vld [vmem:[#allocation2 + $0x69] sm:$0xff] }
 0x27c   :  { %7902 = vst [vmem:[#allocation3 + $0x10] sm:$0xff] %v7774_v16   ;;  %1741 = vrot.lane.b32.xlu0 %v1673_v44, %s8009_s26  ;;  %701 = vrot.lane.b32.xlu2 %v8846_v30, %s8009_s26  ;;  %v1674_v44 = vld [vmem:[#allocation2 + $0x6c] sm:$0xff] }
 0x27d   :  { %1069 = vrot.lane.b32.xlu1 %v1001_v4, %s8012_s21  ;;  %3679 = vmatpush.bf16.msrb.mxu0 %v7641_v61  ;;  %v1898_v4 = vld [vmem:[#allocation2 + $0x6d] sm:$0xff] }
 0x27e   :  { %v1730_v0 = vpop.permute.xlu0 %1729  ;;  %v1060_v27 = vpop.permute.xlu2 %1059  ;;  %7934 = vmatpush.bf16.msrb.mxu3 %v7641_v61 }
 0x27f   :  { %v1058_v48 = vpop.permute.xlu1 %1057 }
 0x280   :  { %v1163_v55 = vadd.f32 %v1058_v48, %v8384_v3 }
 0x281   :  { %3680 = vmatpush.bf16.msrb.mxu0 %v7640_v40 }
 0x282   :  { %7935 = vmatpush.bf16.msrb.mxu3 %v7640_v40  ;;  %v1387_v3 = vadd.f32 %v1282_v12, %v1163_v55  ;;  %v8896_v40 = vmax.f32 %v8355_v38, %v8569_v6  ;;  %v8907_v38 = vld [vmem:[%s10786_s2] ss:$0 sm:$0xff] }
 0x283   :  { %v7533_v43 = vld [vmem:[#allocation3 + $0x10] sm:$0xff] }
 0x284   :  { %v7576_v41 = vld [vmem:[#allocation3 + $0x10] sm:$0xff]  ;;  %703 = vrot.lane.b32.xlu0 %v8860_v50, %s8009_s26  ;;  %563 = vrot.lane.b32.xlu2 %v8862_v13, %s8008_s12 }
 0x285   :  { %1517 = vrot.lane.b32.xlu1 %v1449_v2, %s8013_s23  ;;  %2551 = vmatmul.bf16.gmra.mxu1 %v7533_v43 }
 0x286   :  { %2759 = vmatmul.bf16.gmra.mxu2 %v7533_v43  ;;  %3187 = vmatmul.bf16.vlgmr.msra.gmra.mxu3 %v7576_v41  ;;  %v692_v33 = vpop.permute.xlu0 %691  ;;  %v1508_v19 = vpop.permute.xlu2 %1507 }
 0x287   :  { %v1506_v34 = vpop.permute.xlu1 %1505  ;;  %v780_v5 = vmax.f32 %v8598_v53, %v692_v33 }
 0x288   :  { %v1611_v9 = vadd.f32 %v1506_v34, %v1387_v3  ;;  %v1003_v34 = vld [vmem:[#allocation2 + $0x71] sm:$0xff] }
 0x289   :  { %v843_v52 = vadd.f32 %v8325_v25, %v780_v5  ;;  %v1164_v25 = vadd.f32 %v1060_v27, %v8407_v28 }
 0x28a   :  { %v1835_v48 = vadd.f32 %v1730_v0, %v1611_v9  ;;  %v1450_v0 = vld [vmem:[#allocation2 + $0x6b] sm:$0xff] }
 0x28b   :  { %v899_v14 = vsel %vm815_vm0, %v843_v52, 0.0 }
 0x28c   :  { %955 = vst [vmem:[#allocation2 + $0xb8] sm:$0xff] %v899_v14  ;;  %565 = vrot.lane.b32.xlu0 %v8875_v29, %s8008_s12  ;;  %1965 = vrot.lane.b32.xlu2 %v1897_v18, %s8011_s20  ;;  %v2059_v12 = vadd.f32 %v8836_v23, %v1835_v48  ;;  %v1899_v48 = vld [vmem:[#allocation2 + $0x75] sm:$0xff] }
 0x28d   :  { %1295 = vrot.lane.b32.xlu1 %v1226_v32, %s8010_s19  ;;  %v8911_v32 = vpop.f32.mrf.mxu0 }
 0x28e   :  { %v8883_v20 = vpop.permute.xlu0 %553  ;;  %v8886_v7 = vpop.permute.xlu2 %1285 }
 0x28f   :  { %v1284_v53 = vpop.permute.xlu1 %1283 }
 0x290   :  { %v1388_v16 = vadd.f32 %v1284_v53, %v1164_v25  ;;  %v1227_v53 = vld [vmem:[#allocation2 + $0x72] sm:$0xff] }
 0x291   :  { %v1451_v25 = vld [vmem:[#allocation2 + $0x73] sm:$0xff] }
 0x292   :  { %v1612_v61 = vadd.f32 %v1508_v19, %v1388_v16 }
 0x294   :  { %1967 = vrot.lane.b32.xlu0 %v1898_v4, %s8011_s20  ;;  %1071 = vrot.lane.b32.xlu2 %v1002_v35, %s8012_s21  ;;  %v1228_v35 = vld [vmem:[#allocation2 + $0x7a] sm:$0xff] }
 0x295   :  { %1743 = vrot.lane.b32.xlu1 %v1674_v44, %s8009_s26 }
 0x296   :  { %v1956_v41 = vpop.permute.xlu0 %1955  ;;  %v8891_v28 = vpop.permute.xlu2 %1733 }
 0x297   :  { %v1732_v43 = vpop.permute.xlu1 %1731 }
 0x298   :  { %v1836_v2 = vadd.f32 %v1732_v43, %v1612_v61  ;;  %v1675_v61 = vld [vmem:[#allocation2 + $0x74] sm:$0xff] }
 0x29a   :  { %v2060_v27 = vadd.f32 %v1956_v41, %v1836_v2 }
 0x29c   :  { %v7779_v33 = vpack.c.bf16 %v2060_v27, %v2059_v12  ;;  %1073 = vrot.lane.b32.xlu0 %v1003_v34, %s8012_s21  ;;  %1519 = vrot.lane.b32.xlu2 %v1450_v0, %s8013_s23  ;;  %v8930_v12 = vmax.f32 %v8373_v51, %v8550_v63  ;;  %v1676_v27 = vld [vmem:[#allocation2 + $0x7c] sm:$0xff]  ;;  %v8942_v51 = vmax.f32 %v8420_v54, %v8653_v45  ;;  %v8944_v63 = vpop.f32.mrf.mxu0 }
 0x29d   :  { %705 = vrot.lane.b32.xlu1 %v8896_v40, %s8009_s26 }
 0x29e   :  { %7903 = vst [vmem:[#allocation3 + $0x18] sm:$0xff] %v7779_v33   ;;  %v1062_v19 = vpop.permute.xlu0 %1061  ;;  %v696_v52 = vpop.permute.xlu2 %695  ;;  %v1004_v33 = vld [vmem:[#allocation2 + $0x79] sm:$0xff] }
 0x29f   :  { %v694_v5 = vpop.permute.xlu1 %693  ;;  %v782_v55 = vmax.f32 %v8715_v26, %v696_v52 }
 0x2a0   :  { %v781_v23 = vmax.f32 %v8664_v21, %v694_v5  ;;  %v1165_v5 = vadd.f32 %v1062_v19, %v8447_v56 }
 0x2a1   :  { %v845_v14 = vadd.f32 %v8907_v38, %v782_v55 }
 0x2a2   :  { %v844_v6 = vadd.f32 %v8907_v38, %v781_v23  ;;  %v1389_v55 = vadd.f32 %v8886_v7, %v1165_v5 }
 0x2a3   :  { %v901_v21 = vsel %vm815_vm0, %v845_v14, 0.0 }
 0x2a4   :  { %v900_v18 = vsel %vm815_vm0, %v844_v6, 0.0  ;;  %1521 = vrot.lane.b32.xlu0 %v1451_v25, %s8013_s23  ;;  %957 = vst [vmem:[#allocation2 + $0xc8] sm:$0xff] %v901_v21  ;;  %1297 = vrot.lane.b32.xlu2 %v1227_v53, %s8010_s19  ;;  %v1452_v6 = vld [vmem:[#allocation2 + $0x7b] sm:$0xff] }
 0x2a5   :  { %956 = vst [vmem:[#allocation2 + $0xc0] sm:$0xff] %v900_v18  ;;  %567 = vrot.lane.b32.xlu1 %v8911_v32, %s8008_s12  ;;  %v7534_v26 = vld [vmem:[#allocation3 + $0x18] sm:$0xff] }
 0x2a6   :  { %v7577_v3 = vld [vmem:[#allocation3 + $0x18] sm:$0xff]  ;;  %v1510_v16 = vpop.permute.xlu0 %1509  ;;  %2556 = vmatmul.bf16.gmra.mxu1 %v7534_v26  ;;  %2764 = vmatmul.bf16.gmra.mxu2 %v7534_v26  ;;  %v8923_v4 = vpop.permute.xlu2 %557 }
 0x2a7   :  { %v7612_v9 = vld [vmem:[#allocation3 + $0x18] sm:$0xff]  ;;  %v8921_v44 = vpop.permute.xlu1 %555  ;;  %3192 = vmatmul.bf16.gmra.mxu3 %v7577_v3  ;;  %v1613_v14 = vadd.f32 %v1510_v16, %v1389_v55 }
 0x2a8   :  { %3681 = vmatmul.bf16.vlgmr.msrb.gmra.mxu0 %v7612_v9  ;;  %v1901_v9 = vld [vmem:[#allocation2 + $0x85] sm:$0xff] }
 0x2a9   :  { %v1837_v7 = vadd.f32 %v8891_v28, %v1613_v14  ;;  %v1229_v16 = vld [vmem:[#allocation2 + $0x82] sm:$0xff]  ;;  %v1454_v14 = vld [vmem:[#allocation2 + $0x8b] sm:$0xff] }
 0x2ac   :  { %1299 = vrot.lane.b32.xlu0 %v1228_v35, %s8010_s19  ;;  %1745 = vrot.lane.b32.xlu2 %v1675_v61, %s8009_s26 }
 0x2ad   :  { %1969 = vrot.lane.b32.xlu1 %v1899_v48, %s8011_s20 }
 0x2ae   :  { %v1288_v43 = vpop.permute.xlu0 %1287  ;;  %v1960_v2 = vpop.permute.xlu2 %1959 }
 0x2af   :  { %v1958_v41 = vpop.permute.xlu1 %1957 }
 0x2b0   :  { %v2061_v21 = vadd.f32 %v1958_v41, %v1837_v7  ;;  %v1677_v41 = vld [vmem:[#allocation2 + $0x84] sm:$0xff] }
 0x2b4   :  { %1747 = vrot.lane.b32.xlu0 %v1676_v27, %s8009_s26  ;;  %707 = vrot.lane.b32.xlu2 %v8930_v12, %s8009_s26  ;;  %v8964_v27 = vpop.f32.mrf.mxu0 }
 0x2b5   :  { %1075 = vrot.lane.b32.xlu1 %v1004_v33, %s8012_s21 }
 0x2b6   :  { %v1736_v34 = vpop.permute.xlu0 %1735  ;;  %v8937_v23 = vpop.permute.xlu2 %1065 }
 0x2b7   :  { %v1064_v0 = vpop.permute.xlu1 %1063 }
 0x2b8   :  { %v1166_v52 = vadd.f32 %v1064_v0, %v8484_v1 }
 0x2ba   :  { %v1390_v56 = vadd.f32 %v1288_v43, %v1166_v52  ;;  %v1006_v43 = vld [vmem:[#allocation2 + $0x89] sm:$0xff] }
 0x2bc   :  { %709 = vrot.lane.b32.xlu0 %v8942_v51, %s8009_s26  ;;  %569 = vrot.lane.b32.xlu2 %v8944_v63, %s8008_s12 }
 0x2bd   :  { %1523 = vrot.lane.b32.xlu1 %v1452_v6, %s8013_s23  ;;  %v8971_v6 = vmax.f32 %v8438_v47, %v8675_v17 }
 0x2be   :  { %v698_v1 = vpop.permute.xlu0 %697  ;;  %v8953_v18 = vpop.permute.xlu2 %1513 }
 0x2bf   :  { %v1512_v19 = vpop.permute.xlu1 %1511  ;;  %v783_v54 = vmax.f32 %v8734_v49, %v698_v1  ;;  %v1900_v49 = vld [vmem:[#allocation2 + $0x7d] sm:$0xff] }
 0x2c0   :  { %v1614_v45 = vadd.f32 %v1512_v19, %v1390_v56  ;;  %v8973_v56 = vpop.f32.mrf.mxu0  ;;  %v1453_v1 = vld [vmem:[#allocation2 + $0x83] sm:$0xff] }
 0x2c1   :  { %v846_v53 = vadd.f32 %v8907_v38, %v783_v54 }
 0x2c2   :  { %v1838_v25 = vadd.f32 %v1736_v34, %v1614_v45 }
 0x2c3   :  { %v902_v26 = vsel %vm815_vm0, %v846_v53, 0.0 }
 0x2c4   :  { %v2062_v3 = vadd.f32 %v1960_v2, %v1838_v25  ;;  %958 = vst [vmem:[#allocation2 + $0xd0] sm:$0xff] %v902_v26  ;;  %1973 = vrot.lane.b32.xlu0 %v1901_v9, %s8011_s20  ;;  %1971 = vrot.lane.b32.xlu2 %v1900_v49, %s8011_s20  ;;  %v1005_v2 = vld [vmem:[#allocation2 + $0x81] sm:$0xff]  ;;  %v1167_v25 = vadd.f32 %v8937_v23, %v8502_v58  ;;  %v1902_v9 = vld [vmem:[#allocation2 + $0x8d] sm:$0xff] }
 0x2c5   :  { %1301 = vrot.lane.b32.xlu1 %v1229_v16, %s8010_s19 }
 0x2c6   :  { %v7784_v35 = vpack.c.bf16 %v2062_v3, %v2061_v21  ;;  %v8962_v48 = vpop.permute.xlu0 %559  ;;  %v1292_v61 = vpop.permute.xlu2 %1291  ;;  %v1231_v3 = vld [vmem:[#allocation2 + $0x92] sm:$0xff] }
 0x2c7   :  { %v1290_v28 = vpop.permute.xlu1 %1289 }
 0x2c8   :  { %7904 = vst [vmem:[#allocation3 + $0x20] sm:$0xff] %v7784_v35   ;;  %v1391_v16 = vadd.f32 %v1290_v28, %v1167_v25  ;;  %v8993_v58 = vpop.f32.mrf.mxu0  ;;  %v1679_v28 = vld [vmem:[#allocation2 + $0x94] sm:$0xff] }
 0x2c9   :  { %v1455_v25 = vld [vmem:[#allocation2 + $0x93] sm:$0xff] }
 0x2cc   :  { %1079 = vrot.lane.b32.xlu0 %v1006_v43, %s8012_s21  ;;  %1077 = vrot.lane.b32.xlu2 %v1005_v2, %s8012_s21  ;;  %v1615_v43 = vadd.f32 %v8953_v18, %v1391_v16  ;;  %v2750_v2 = vpop.f32.mrf.mxu2 }
 0x2cd   :  { %1749 = vrot.lane.b32.xlu1 %v1677_v41, %s8009_s26 }
 0x2ce   :  { %v1962_v34 = vpop.permute.xlu0 %1961  ;;  %v1740_v55 = vpop.permute.xlu2 %1739 }
 0x2cf   :  { %v1738_v33 = vpop.permute.xlu1 %1737  ;;  %v7535_v0 = vld [vmem:[#allocation3 + $0x20] sm:$0xff] }
 0x2d0   :  { %v7578_v5 = vld [vmem:[#allocation3 + $0x20] sm:$0xff]  ;;  %2561 = vmatmul.bf16.gmra.mxu1 %v7535_v0  ;;  %2769 = vmatmul.bf16.gmra.mxu2 %v7535_v0 }
 0x2d1   :  { %v7613_v52 = vld [vmem:[#allocation3 + $0x20] sm:$0xff]  ;;  %3197 = vmatmul.bf16.gmra.mxu3 %v7578_v5  ;;  %v1839_v5 = vadd.f32 %v1738_v33, %v1615_v43 }
 0x2d2   :  { %3686 = vmatmul.bf16.gmra.mxu0 %v7613_v52 }
 0x2d4   :  { %1527 = vrot.lane.b32.xlu0 %v1454_v14, %s8013_s23  ;;  %1525 = vrot.lane.b32.xlu2 %v1453_v1, %s8013_s23  ;;  %v1007_v14 = vld [vmem:[#allocation2 + $0x91] sm:$0xff]  ;;  %v9029_v43 = vpop.f32.mrf.mxu2 }
 0x2d5   :  { %711 = vrot.lane.b32.xlu1 %v8971_v6, %s8009_s26  ;;  %v1678_v1 = vld [vmem:[#allocation2 + $0x8c] sm:$0xff] }
 0x2d6   :  { %v1068_v54 = vpop.permute.xlu0 %1067  ;;  %v702_v7 = vpop.permute.xlu2 %701 }
 0x2d7   :  { %v700_v19 = vpop.permute.xlu1 %699  ;;  %v785_v53 = vmax.f32 %v8846_v30, %v702_v7  ;;  %v1168_v26 = vadd.f32 %v1068_v54, %v8511_v60  ;;  %v1230_v30 = vld [vmem:[#allocation2 + $0x8a] sm:$0xff] }
 0x2d8   :  { %v784_v45 = vmax.f32 %v8786_v62, %v700_v19 }
 0x2d9   :  { %v848_v17 = vadd.f32 %v8907_v38, %v785_v53  ;;  %v1392_v60 = vadd.f32 %v1292_v61, %v1168_v26  ;;  %v9007_v53 = vpop.f32.mrf.mxu0 }
 0x2da   :  { %v847_v47 = vadd.f32 %v8907_v38, %v784_v45  ;;  %v2063_v45 = vadd.f32 %v1962_v34, %v1839_v5 }
 0x2db   :  { %v904_v62 = vsel %vm815_vm0, %v848_v17, 0.0  ;;  %v9015_v17 = vmax.f32 %v8467_v46, %v8656_v42  ;;  %v1232_v46 = vld [vmem:[#allocation2 + $0x9a] sm:$0xff] }
 0x2dc   :  { %v903_v21 = vsel %vm815_vm0, %v847_v47, 0.0  ;;  %1305 = vrot.lane.b32.xlu0 %v1231_v3, %s8010_s19  ;;  %960 = vst [vmem:[#allocation2 + $0xe0] sm:$0xff] %v904_v62  ;;  %1303 = vrot.lane.b32.xlu2 %v1230_v30, %s8010_s19  ;;  %v9011_v47 = vmax.f32 %v8507_v59, %v8768_v31  ;;  %v1904_v3 = vld [vmem:[#allocation2 + $0x9d] sm:$0xff] }
 0x2dd   :  { %959 = vst [vmem:[#allocation2 + $0xd8] sm:$0xff] %v903_v21  ;;  %1975 = vrot.lane.b32.xlu1 %v1902_v9, %s8011_s20  ;;  %v1903_v9 = vld [vmem:[#allocation2 + $0x95] sm:$0xff] }
 0x2de   :  { %v1516_v23 = vpop.permute.xlu0 %1515  ;;  %v8997_v35 = vpop.permute.xlu2 %563 }
 0x2df   :  { %v8995_v49 = vpop.permute.xlu1 %561  ;;  %v1616_v41 = vadd.f32 %v1516_v23, %v1392_v60 }
 0x2e1   :  { %v1840_v61 = vadd.f32 %v1740_v55, %v1616_v41  ;;  %v9022_v26 = vpop.f32.mrf.mxu0 }
 0x2e2   :  { %v2547_v0 = vpop.f32.mrf.mxu1 }
 0x2e3   :  { %v9000_v52 = vadd.f32 %v2750_v2, %v2547_v0  ;;  %v7951_v2 = vld [vmem:[#allocation2 + $0x60] sm:$0xff] }
 0x2e4   :  { %1753 = vrot.lane.b32.xlu0 %v1679_v28, %s8009_s26  ;;  %1751 = vrot.lane.b32.xlu2 %v1678_v1, %s8009_s26  ;;  %v1009_v28 = vld [vmem:[#allocation2 + $0xa1] sm:$0xff] }
 0x2e5   :  { %1081 = vrot.lane.b32.xlu1 %v1007_v14, %s8012_s21  ;;  %v1680_v14 = vld [vmem:[#allocation2 + $0x9c] sm:$0xff] }
 0x2e6   :  { %v1294_v19 = vpop.permute.xlu0 %1293  ;;  %v9005_v7 = vpop.permute.xlu2 %1965 }
 0x2e7   :  { %v1964_v54 = vpop.permute.xlu1 %1963 }
 0x2e8   :  { %v2064_v18 = vadd.f32 %v1964_v54, %v1840_v61 }
 0x2e9   :  { %v9035_v1 = vpop.f32.mrf.mxu0 }
 0x2ea   :  { %v7789_v33 = vpack.c.bf16 %v2064_v18, %v2063_v45  ;;  %v9031_v41 = vpop.f32.mrf.mxu1  ;;  %v7952_v45 = vld [vmem:[#allocation2 + $0x68] sm:$0xff] }
 0x2ec   :  { %7905 = vst [vmem:[#allocation3 + $0x28] sm:$0xff] %v7789_v33   ;;  %715 = vrot.lane.b32.xlu0 %v9011_v47, %s8009_s26  ;;  %713 = vrot.lane.b32.xlu2 %v9015_v17, %s8009_s26 }
 0x2ed   :  { %1529 = vrot.lane.b32.xlu1 %v1455_v25, %s8013_s23 }
 0x2ee   :  { %v1742_v34 = vpop.permute.xlu0 %1741  ;;  %v1072_v21 = vpop.permute.xlu2 %1071 }
 0x2ef   :  { %v1070_v55 = vpop.permute.xlu1 %1069  ;;  %v1170_v18 = vadd.f32 %v7952_v45, %v1072_v21  ;;  %v1456_v21 = vld [vmem:[#allocation2 + $0x9b] sm:$0xff] }
 0x2f0   :  { %v1169_v0 = vadd.f32 %v7951_v2, %v1070_v55 }
 0x2f2   :  { %v1393_v33 = vadd.f32 %v1294_v19, %v1169_v0 }
 0x2f3   :  { %v7536_v59 = vld [vmem:[#allocation3 + $0x28] sm:$0xff] }
 0x2f4   :  { %v7579_v31 = vld [vmem:[#allocation3 + $0x28] sm:$0xff]  ;;  %1979 = vrot.lane.b32.xlu0 %v1904_v3, %s8011_s20  ;;  %1977 = vrot.lane.b32.xlu2 %v1903_v9, %s8011_s20  ;;  %v2755_v3 = vpop.f32.mrf.mxu2  ;;  %v1457_v9 = vld [vmem:[#allocation2 + $0xa3] sm:$0xff] }
 0x2f5   :  { %v7614_v42 = vld [vmem:[#allocation3 + $0x28] sm:$0xff]  ;;  %1307 = vrot.lane.b32.xlu1 %v1232_v46, %s8010_s19  ;;  %2566 = vmatmul.bf16.gmra.mxu1 %v7536_v59 }
 0x2f6   :  { %2774 = vmatmul.bf16.gmra.mxu2 %v7536_v59  ;;  %3202 = vmatmul.bf16.gmra.mxu3 %v7579_v31  ;;  %v704_v62 = vpop.permute.xlu0 %703  ;;  %v1520_v23 = vpop.permute.xlu2 %1519  ;;  %v9046_v31 = vmax.f32 %v8554_v11, %v8821_v39 }
 0x2f7   :  { %v1518_v30 = vpop.permute.xlu1 %1517  ;;  %3691 = vmatmul.bf16.gmra.mxu0 %v7614_v42  ;;  %v786_v16 = vmax.f32 %v8860_v50, %v704_v62  ;;  %v1008_v50 = vld [vmem:[#allocation2 + $0x99] sm:$0xff] }
 0x2f8   :  { %v1617_v55 = vadd.f32 %v1518_v30, %v1393_v33  ;;  %v9054_v30 = vpop.f32.mrf.mxu0 }
 0x2f9   :  { %v849_v60 = vadd.f32 %v8907_v38, %v786_v16 }
 0x2fa   :  { %v1841_v19 = vadd.f32 %v1742_v34, %v1617_v55  ;;  %v1233_v34 = vld [vmem:[#allocation2 + $0xa2] sm:$0xff] }
 0x2fb   :  { %v905_v5 = vsel %vm815_vm0, %v849_v60, 0.0 }
 0x2fc   :  { %961 = vst [vmem:[#allocation2 + $0xe8] sm:$0xff] %v905_v5  ;;  %1085 = vrot.lane.b32.xlu0 %v1009_v28, %s8012_s21  ;;  %1083 = vrot.lane.b32.xlu2 %v1008_v50, %s8012_s21  ;;  %v2065_v2 = vadd.f32 %v9005_v7, %v1841_v19  ;;  %v1234_v50 = vld [vmem:[#allocation2 + $0xaa] sm:$0xff] }
 0x2fd   :  { %1755 = vrot.lane.b32.xlu1 %v1680_v14, %s8009_s26 }
 0x2fe   :  { %v9040_v54 = vpop.permute.xlu0 %565  ;;  %v9042_v25 = vpop.permute.xlu2 %1297 }
 0x2ff   :  { %v1296_v61 = vpop.permute.xlu1 %1295 }
 0x300   :  { %v1394_v59 = vadd.f32 %v1296_v61, %v1170_v18  ;;  %v1905_v61 = vld [vmem:[#allocation2 + $0xa5] sm:$0xff]  ;;  %v9065_v55 = vpop.f32.mrf.mxu0 }
 0x302   :  { %v2552_v46 = vpop.f32.mrf.mxu1  ;;  %v1618_v62 = vadd.f32 %v1520_v23, %v1394_v59 }
 0x303   :  { %v9048_v42 = vadd.f32 %v2755_v3, %v2552_v46  ;;  %v1682_v46 = vld [vmem:[#allocation2 + $0xac] sm:$0xff] }
 0x304   :  { %1533 = vrot.lane.b32.xlu0 %v1457_v9, %s8013_s23  ;;  %1531 = vrot.lane.b32.xlu2 %v1456_v21, %s8013_s23  ;;  %v1010_v9 = vld [vmem:[#allocation2 + $0xa9] sm:$0xff] }
 0x305   :  { %717 = vrot.lane.b32.xlu1 %v9046_v31, %s8009_s26  ;;  %v1681_v21 = vld [vmem:[#allocation2 + $0xa4] sm:$0xff] }
 0x306   :  { %v1968_v11 = vpop.permute.xlu0 %1967  ;;  %v9056_v60 = vpop.permute.xlu2 %1745 }
 0x307   :  { %v1744_v16 = vpop.permute.xlu1 %1743 }
 0x308   :  { %v1842_v39 = vadd.f32 %v1744_v16, %v1618_v62 }
 0x309   :  { %v3188_v5 = vpop.f32.mrf.mxu3 }
 0x30a   :  { %v2066_v0 = vadd.f32 %v1968_v11, %v1842_v39  ;;  %v3328_v28 = vadd.f32 %v3188_v5, %v9000_v52  ;;  %v9088_v5 = vmax.f32 %v8600_v22, %v8823_v36 }
 0x30c   :  { %v7794_v14 = vpack.c.bf16 %v2066_v0, %v2065_v2  ;;  %1311 = vrot.lane.b32.xlu0 %v1234_v50, %s8010_s19  ;;  %1309 = vrot.lane.b32.xlu2 %v1233_v34, %s8010_s19  ;;  %v9082_v2 = vmax.f32 %v8619_v15, %v8883_v20  ;;  %v9084_v0 = vpop.f32.mrf.mxu0  ;;  %v9092_v50 = vpop.f32.mrf.mxu1 }
 0x30d   :  { %1981 = vrot.lane.b32.xlu1 %v1905_v61, %s8011_s20  ;;  %v1458_v61 = vld [vmem:[#allocation2 + $0xab] sm:$0xff] }
 0x30e   :  { %7906 = vst [vmem:[#allocation3 + $0x30] sm:$0xff] %v7794_v14   ;;  %v1074_v45 = vpop.permute.xlu0 %1073  ;;  %v708_v7 = vpop.permute.xlu2 %707 }
 0x30f   :  { %v706_v23 = vpop.permute.xlu1 %705  ;;  %v788_v33 = vmax.f32 %v8930_v12, %v708_v7  ;;  %v9090_v14 = vpop.f32.mrf.mxu2  ;;  %v1235_v7 = vld [vmem:[#allocation2 + $0xb2] sm:$0xff] }
 0x310   :  { %v787_v18 = vmax.f32 %v8896_v40, %v706_v23 }
 0x311   :  { %v851_v59 = vadd.f32 %v8907_v38, %v788_v33  ;;  %v9099_v23 = vpop.f32.mrf.mxu3 }
 0x312   :  { %v850_v52 = vadd.f32 %v8907_v38, %v787_v18  ;;  %v1907_v18 = vld [vmem:[#allocation2 + $0xb5] sm:$0xff] }
 0x313   :  { %v907_v19 = vsel %vm815_vm0, %v851_v59, 0.0 }
 0x314   :  { %v906_v3 = vsel %vm815_vm0, %v850_v52, 0.0  ;;  %1759 = vrot.lane.b32.xlu0 %v1682_v46, %s8009_s26  ;;  %963 = vst [vmem:[#allocation2 + $0xf8] sm:$0xff] %v907_v19  ;;  %1757 = vrot.lane.b32.xlu2 %v1681_v21, %s8009_s26  ;;  %v1906_v52 = vld [vmem:[#allocation2 + $0xad] sm:$0xff] }
 0x315   :  { %962 = vst [vmem:[#allocation2 + $0xf0] sm:$0xff] %v906_v3  ;;  %1087 = vrot.lane.b32.xlu1 %v1010_v9, %s8012_s21  ;;  %v7537_v40 = vld [vmem:[#allocation3 + $0x30] sm:$0xff]  ;;  %v7953_v21 = vld [vmem:[#allocation2 + $0x70] sm:$0xff] }
 0x316   :  { %v7580_v12 = vld [vmem:[#allocation3 + $0x30] sm:$0xff]  ;;  %v1522_v16 = vpop.permute.xlu0 %1521  ;;  %2571 = vmatmul.bf16.gmra.mxu1 %v7537_v40  ;;  %2779 = vmatmul.bf16.gmra.mxu2 %v7537_v40  ;;  %v9078_v39 = vpop.permute.xlu2 %569  ;;  %v1171_v19 = vadd.f32 %v7953_v21, %v1074_v45 }
 0x317   :  { %v7615_v62 = vld [vmem:[#allocation3 + $0x30] sm:$0xff]  ;;  %v9076_v11 = vpop.permute.xlu1 %567  ;;  %3207 = vmatmul.bf16.gmra.mxu3 %v7580_v12  ;;  %v2760_v22 = vpop.f32.mrf.mxu2 }
 0x318   :  { %3696 = vmatmul.bf16.gmra.mxu0 %v7615_v62  ;;  %v7954_v12 = vld [vmem:[#allocation2 + $0x78] sm:$0xff] }
 0x31c   :  { %721 = vrot.lane.b32.xlu0 %v9082_v2, %s8009_s26  ;;  %719 = vrot.lane.b32.xlu2 %v9088_v5, %s8009_s26 }
 0x31d   :  { %1535 = vrot.lane.b32.xlu1 %v1458_v61, %s8013_s23 }
 0x31e   :  { %v1300_v15 = vpop.permute.xlu0 %1299  ;;  %v1972_v34 = vpop.permute.xlu2 %1971 }
 0x31f   :  { %v1970_v20 = vpop.permute.xlu1 %1969 }
 0x323   :  { %v2557_v36 = vpop.f32.mrf.mxu1 }
 0x324   :  { %v9101_v33 = vadd.f32 %v2760_v22, %v2557_v36  ;;  %1985 = vrot.lane.b32.xlu0 %v1907_v18, %s8011_s20  ;;  %1983 = vrot.lane.b32.xlu2 %v1906_v52, %s8011_s20  ;;  %v1395_v22 = vadd.f32 %v9042_v25, %v1171_v19  ;;  %v1012_v18 = vld [vmem:[#allocation2 + $0xb9] sm:$0xff] }
 0x325   :  { %1313 = vrot.lane.b32.xlu1 %v1235_v7, %s8010_s19  ;;  %v3682_v59 = vpop.f32.mrf.mxu0  ;;  %v1683_v7 = vld [vmem:[#allocation2 + $0xb4] sm:$0xff] }
 0x326   :  { %v9106_v3 = vadd.f32 %v3682_v59, %v3328_v28  ;;  %v1748_v46 = vpop.permute.xlu0 %1747  ;;  %v1078_v40 = vpop.permute.xlu2 %1077  ;;  %v1011_v28 = vld [vmem:[#allocation2 + $0xb1] sm:$0xff]  ;;  %v1619_v52 = vadd.f32 %v1522_v16, %v1395_v22 }
 0x327   :  { %v1076_v9 = vpop.permute.xlu1 %1075 }
 0x328   :  { %v1172_v62 = vadd.f32 %v7954_v12, %v1076_v9 }
 0x32a   :  { %v3193_v61 = vpop.f32.mrf.mxu3  ;;  %v1396_v45 = vadd.f32 %v1300_v15, %v1172_v62  ;;  %v1460_v62 = vld [vmem:[#allocation2 + $0xbb] sm:$0xff] }
 0x32b   :  { %v9110_v36 = vadd.f32 %v3193_v61, %v9048_v42  ;;  %v1843_v42 = vadd.f32 %v9056_v60, %v1619_v52 }
 0x32c   :  { %1091 = vrot.lane.b32.xlu0 %v1012_v18, %s8012_s21  ;;  %1089 = vrot.lane.b32.xlu2 %v1011_v28, %s8012_s21  ;;  %v9120_v18 = vmax.f32 %v8686_v8, %v8921_v44  ;;  %v1237_v44 = vld [vmem:[#allocation2 + $0xc2] sm:$0xff] }
 0x32d   :  { %1761 = vrot.lane.b32.xlu1 %v1683_v7, %s8009_s26  ;;  %v2067_v7 = vadd.f32 %v1970_v20, %v1843_v42  ;;  %v1908_v20 = vld [vmem:[#allocation2 + $0xbd] sm:$0xff] }
 0x32e   :  { %v710_v59 = vpop.permute.xlu0 %709  ;;  %v1526_v25 = vpop.permute.xlu2 %1525 }
 0x32f   :  { %v1524_v21 = vpop.permute.xlu1 %1523  ;;  %v789_v9 = vmax.f32 %v8942_v51, %v710_v59  ;;  %v1459_v51 = vld [vmem:[#allocation2 + $0xb3] sm:$0xff] }
 0x330   :  { %v1620_v12 = vadd.f32 %v1524_v21, %v1396_v45 }
 0x331   :  { %v852_v19 = vadd.f32 %v8907_v38, %v789_v9 }
 0x332   :  { %v1844_v61 = vadd.f32 %v1748_v46, %v1620_v12  ;;  %v7955_v12 = vld [vmem:[#allocation2 + $0x80] sm:$0xff] }
 0x333   :  { %v908_v16 = vsel %vm815_vm0, %v852_v19, 0.0  ;;  %v1173_v42 = vadd.f32 %v7955_v12, %v1078_v40  ;;  %v7956_v19 = vld [vmem:[#allocation2 + $0x88] sm:$0xff] }
 0x334   :  { %v2068_v15 = vadd.f32 %v1972_v34, %v1844_v61  ;;  %964 = vst [vmem:[#allocation2 + $0x100] sm:$0xff] %v908_v16  ;;  %1539 = vrot.lane.b32.xlu0 %v1460_v62, %s8013_s23  ;;  %1537 = vrot.lane.b32.xlu2 %v1459_v51, %s8013_s23  ;;  %v1236_v34 = vld [vmem:[#allocation2 + $0xba] sm:$0xff]  ;;  %v9133_v62 = vpop.f32.mrf.mxu2  ;;  %v9135_v51 = vpop.f32.mrf.mxu1 }
 0x335   :  { %723 = vrot.lane.b32.xlu1 %v9120_v18, %s8009_s26  ;;  %v1013_v16 = vld [vmem:[#allocation2 + $0xc1] sm:$0xff]  ;;  %10807 = vst [vmem:[#allocation8_spill] sm:$0xff] %v9133_v62 }
 0x336   :  { %v7799_v60 = vpack.c.bf16 %v2068_v15, %v2067_v7  ;;  %v1974_v46 = vpop.permute.xlu0 %1973  ;;  %v1304_v8 = vpop.permute.xlu2 %1303  ;;  %v1685_v7 = vld [vmem:[#allocation2 + $0xc4] sm:$0xff]  ;;  %v1684_v15 = vld [vmem:[#allocation2 + $0xbc] sm:$0xff] }
 0x337   :  { %v1302_v22 = vpop.permute.xlu1 %1301 }
 0x338   :  { %7907 = vst [vmem:[#allocation3 + $0x38] sm:$0xff] %v7799_v60   ;;  %v1397_v60 = vadd.f32 %v1302_v22, %v1173_v42  ;;  %v9146_v22 = vmax.f32 %v8730_v57, %v8923_v4 }
 0x33c   :  { %1317 = vrot.lane.b32.xlu0 %v1237_v44, %s8010_s19  ;;  %1315 = vrot.lane.b32.xlu2 %v1236_v34, %s8010_s19  ;;  %v9138_v34 = vpop.f32.mrf.mxu0  ;;  %v2765_v57 = vpop.f32.mrf.mxu2 }
 0x33d   :  { %1987 = vrot.lane.b32.xlu1 %v1908_v20, %s8011_s20 }
 0x33e   :  { %v1080_v28 = vpop.permute.xlu0 %1079  ;;  %v1752_v9 = vpop.permute.xlu2 %1751 }
 0x33f   :  { %v1750_v52 = vpop.permute.xlu1 %1749  ;;  %v7538_v45 = vld [vmem:[#allocation3 + $0x38] sm:$0xff]  ;;  %v1174_v61 = vadd.f32 %v7956_v19, %v1080_v28 }
 0x340   :  { %v7581_v59 = vld [vmem:[#allocation3 + $0x38] sm:$0xff]  ;;  %2576 = vmatmul.bf16.gmra.mxu1 %v7538_v45  ;;  %2784 = vmatmul.bf16.gmra.mxu2 %v7538_v45 }
 0x341   :  { %v7616_v21 = vld [vmem:[#allocation3 + $0x38] sm:$0xff]  ;;  %3212 = vmatmul.bf16.gmra.mxu3 %v7581_v59  ;;  %v1398_v40 = vadd.f32 %v1304_v8, %v1174_v61  ;;  %v1910_v8 = vld [vmem:[#allocation2 + $0xcd] sm:$0xff]  ;;  %v9152_v61 = vpop.f32.mrf.mxu3 }
 0x342   :  { %3701 = vmatmul.bf16.gmra.mxu0 %v7616_v21  ;;  %v1621_v21 = vadd.f32 %v1526_v25, %v1397_v60 }
 0x344   :  { %1765 = vrot.lane.b32.xlu0 %v1685_v7, %s8009_s26  ;;  %1763 = vrot.lane.b32.xlu2 %v1684_v15, %s8009_s26  ;;  %v1845_v42 = vadd.f32 %v1750_v52, %v1621_v21  ;;  %v1015_v21 = vld [vmem:[#allocation2 + $0xd1] sm:$0xff] }
 0x345   :  { %1093 = vrot.lane.b32.xlu1 %v1013_v16, %s8012_s21 }
 0x346   :  { %v1528_v44 = vpop.permute.xlu0 %1527  ;;  %v714_v45 = vpop.permute.xlu2 %713 }
 0x347   :  { %v712_v20 = vpop.permute.xlu1 %711  ;;  %v791_v59 = vmax.f32 %v9015_v17, %v714_v45  ;;  %v1622_v12 = vadd.f32 %v1528_v44, %v1398_v40  ;;  %v2069_v44 = vadd.f32 %v1974_v46, %v1845_v42 }
 0x348   :  { %v790_v28 = vmax.f32 %v8971_v6, %v712_v20  ;;  %v1461_v6 = vld [vmem:[#allocation2 + $0xc3] sm:$0xff] }
 0x349   :  { %v854_v7 = vadd.f32 %v8907_v38, %v791_v59  ;;  %v1846_v25 = vadd.f32 %v1752_v9, %v1622_v12  ;;  %v1909_v9 = vld [vmem:[#allocation2 + $0xc5] sm:$0xff] }
 0x34a   :  { %v853_v19 = vadd.f32 %v8907_v38, %v790_v28 }
 0x34b   :  { %v910_v17 = vsel %vm815_vm0, %v854_v7, 0.0 }
 0x34c   :  { %v9150_v16 = vsel %vm815_vm0, %v853_v19, 0.0  ;;  %1991 = vrot.lane.b32.xlu0 %v1910_v8, %s8011_s20  ;;  %966 = vst [vmem:[#allocation2 + $0x110] sm:$0xff] %v910_v17  ;;  %725 = vrot.lane.b32.xlu2 %v9146_v22, %s8009_s26  ;;  %v1238_v19 = vld [vmem:[#allocation2 + $0xca] sm:$0xff]  ;;  %v1463_v17 = vld [vmem:[#allocation2 + $0xd3] sm:$0xff] }
 0x34d   :  { %965 = vst [vmem:[#allocation2 + $0x108] sm:$0xff] %v9150_v16  ;;  %1541 = vrot.lane.b32.xlu1 %v1461_v6, %s8013_s23  ;;  %v2562_v4 = vpop.f32.mrf.mxu1 }
 0x34e   :  { %v9161_v52 = vadd.f32 %v2765_v57, %v2562_v4  ;;  %v1306_v15 = vpop.permute.xlu0 %1305  ;;  %v9163_v40 = vpop.permute.xlu2 %1977  ;;  %v1686_v57 = vld [vmem:[#allocation2 + $0xcc] sm:$0xff] }
 0x34f   :  { %v1976_v60 = vpop.permute.xlu1 %1975  ;;  %v3687_v28 = vpop.f32.mrf.mxu0 }
 0x350   :  { %v2070_v20 = vadd.f32 %v1976_v60, %v1846_v25  ;;  %v9166_v45 = vadd.f32 %v3687_v28, %v9110_v36  ;;  %v1014_v25 = vld [vmem:[#allocation2 + $0xc9] sm:$0xff] }
 0x352   :  { %v7804_v59 = vpack.c.bf16 %v2070_v20, %v2069_v44 }
 0x354   :  { %7908 = vst [vmem:[#allocation3 + $0x40] sm:$0xff] %v7804_v59   ;;  %v3198_v7 = vpop.f32.mrf.mxu3  ;;  %1097 = vrot.lane.b32.xlu0 %v1015_v21, %s8012_s21  ;;  %1989 = vrot.lane.b32.xlu2 %v1909_v9, %s8011_s20  ;;  %v7957_v59 = vld [vmem:[#allocation2 + $0x90] sm:$0xff] }
 0x355   :  { %1319 = vrot.lane.b32.xlu1 %v1238_v19, %s8010_s19  ;;  %v9171_v12 = vadd.f32 %v3198_v7, %v9101_v33  ;;  %v1240_v7 = vld [vmem:[#allocation2 + $0xda] sm:$0xff] }
 0x356   :  { %v1754_v46 = vpop.permute.xlu0 %1753  ;;  %v1084_v8 = vpop.permute.xlu2 %1083  ;;  %v1911_v9 = vld [vmem:[#allocation2 + $0xd5] sm:$0xff] }
 0x357   :  { %v1082_v42 = vpop.permute.xlu1 %1081 }
 0x358   :  { %v1175_v21 = vadd.f32 %v7957_v59, %v1082_v42  ;;  %v1688_v59 = vld [vmem:[#allocation2 + $0xdc] sm:$0xff] }
 0x35b   :  { %v7539_v36 = vld [vmem:[#allocation3 + $0x40] sm:$0xff] }
 0x35c   :  { %v7582_v6 = vld [vmem:[#allocation3 + $0x40] sm:$0xff]  ;;  %1545 = vrot.lane.b32.xlu0 %v1463_v17, %s8013_s23  ;;  %1095 = vrot.lane.b32.xlu2 %v1014_v25, %s8012_s21  ;;  %v7958_v17 = vld [vmem:[#allocation2 + $0x98] sm:$0xff] }
 0x35d   :  { %v7617_v4 = vld [vmem:[#allocation3 + $0x40] sm:$0xff]  ;;  %1767 = vrot.lane.b32.xlu1 %v1686_v57, %s8009_s26  ;;  %2581 = vmatmul.bf16.gmra.mxu1 %v7539_v36  ;;  %v1176_v57 = vadd.f32 %v7958_v17, %v1084_v8  ;;  %v9197_v17 = vpop.f32.mrf.mxu3 }
 0x35e   :  { %2789 = vmatmul.bf16.gmra.mxu2 %v7539_v36  ;;  %3217 = vmatmul.bf16.gmra.mxu3 %v7582_v6  ;;  %v716_v33 = vpop.permute.xlu0 %715  ;;  %v1532_v20 = vpop.permute.xlu2 %1531  ;;  %v1462_v36 = vld [vmem:[#allocation2 + $0xcb] sm:$0xff]  ;;  %10810 = vst [vmem:[#allocation11_spill] sm:$0xff] %v9197_v17 }
 0x35f   :  { %v1530_v60 = vpop.permute.xlu1 %1529  ;;  %3706 = vmatmul.bf16.gmra.mxu0 %v7617_v4  ;;  %v792_v44 = vmax.f32 %v9011_v47, %v716_v33  ;;  %v1399_v4 = vadd.f32 %v1306_v15, %v1175_v21 }
 0x361   :  { %v855_v28 = vadd.f32 %v8907_v38, %v792_v44  ;;  %v1623_v42 = vadd.f32 %v1530_v60, %v1399_v4  ;;  %v9186_v44 = vpop.f32.mrf.mxu2 }
 0x362   :  { %10808 = vst [vmem:[#allocation9_spill] sm:$0xff] %v9186_v44 }
 0x363   :  { %v911_v19 = vsel %vm815_vm0, %v855_v28, 0.0  ;;  %v9188_v28 = vpop.f32.mrf.mxu1 }
 0x364   :  { %967 = vst [vmem:[#allocation2 + $0x118] sm:$0xff] %v911_v19  ;;  %1323 = vrot.lane.b32.xlu0 %v1240_v7, %s8010_s19  ;;  %1543 = vrot.lane.b32.xlu2 %v1462_v36, %s8013_s23  ;;  %v1016_v19 = vld [vmem:[#allocation2 + $0xd9] sm:$0xff]  ;;  %v9190_v7 = vpop.f32.mrf.mxu0  ;;  %v1847_v36 = vadd.f32 %v1754_v46, %v1623_v42 }
 0x365   :  { %1993 = vrot.lane.b32.xlu1 %v1911_v9, %s8011_s20  ;;  %10809 = vst [vmem:[#allocation10_spill] sm:$0xff] %v9188_v28  ;;  %v1239_v9 = vld [vmem:[#allocation2 + $0xd2] sm:$0xff]  ;;  %v1464_v46 = vld [vmem:[#allocation2 + $0xdb] sm:$0xff] }
 0x366   :  { %v1980_v6 = vpop.permute.xlu0 %1979  ;;  %v9184_v25 = vpop.permute.xlu2 %1309 }
 0x367   :  { %v1308_v47 = vpop.permute.xlu1 %1307 }
 0x368   :  { %v1400_v33 = vadd.f32 %v1308_v47, %v1176_v57  ;;  %v2071_v57 = vadd.f32 %v9163_v40, %v1847_v36 }
 0x369   :  { %v2770_v44 = vpop.f32.mrf.mxu2 }
 0x36a   :  { %v1624_v15 = vadd.f32 %v1532_v20, %v1400_v33  ;;  %v1687_v20 = vld [vmem:[#allocation2 + $0xd4] sm:$0xff] }
 0x36c   :  { %1771 = vrot.lane.b32.xlu0 %v1688_v59, %s8009_s26  ;;  %1321 = vrot.lane.b32.xlu2 %v1239_v9, %s8010_s19 }
 0x36d   :  { %1099 = vrot.lane.b32.xlu1 %v1016_v19, %s8012_s21  ;;  %v1913_v19 = vld [vmem:[#allocation2 + $0xe5] sm:$0xff] }
 0x36e   :  { %v1086_v8 = vpop.permute.xlu0 %1085  ;;  %v9195_v47 = vpop.permute.xlu2 %1757 }
 0x36f   :  { %v1756_v60 = vpop.permute.xlu1 %1755 }
 0x370   :  { %v1848_v21 = vadd.f32 %v1756_v60, %v1624_v15 }
 0x372   :  { %v2072_v4 = vadd.f32 %v1980_v6, %v1848_v21  ;;  %v2567_v28 = vpop.f32.mrf.mxu1 }
 0x373   :  { %v9200_v62 = vadd.f32 %v2770_v44, %v2567_v28 }
 0x374   :  { %v7809_v59 = vpack.c.bf16 %v2072_v4, %v2071_v57  ;;  %v3692_v42 = vpop.f32.mrf.mxu0  ;;  %1997 = vrot.lane.b32.xlu0 %v1913_v19, %s8011_s20  ;;  %1769 = vrot.lane.b32.xlu2 %v1687_v20, %s8009_s26  ;;  %v1018_v57 = vld [vmem:[#allocation2 + $0xe9] sm:$0xff] }
 0x375   :  { %1547 = vrot.lane.b32.xlu1 %v1464_v46, %s8013_s23  ;;  %v9205_v33 = vadd.f32 %v3692_v42, %v9171_v12  ;;  %v1241_v4 = vld [vmem:[#allocation2 + $0xe2] sm:$0xff] }
 0x376   :  { %7909 = vst [vmem:[#allocation3 + $0x48] sm:$0xff] %v7809_v59   ;;  %v1534_v40 = vpop.permute.xlu0 %1533  ;;  %v720_v44 = vpop.permute.xlu2 %719  ;;  %v1912_v59 = vld [vmem:[#allocation2 + $0xdd] sm:$0xff] }
 0x377   :  { %v718_v6 = vpop.permute.xlu1 %717  ;;  %v794_v28 = vmax.f32 %v9088_v5, %v720_v44  ;;  %v1017_v44 = vld [vmem:[#allocation2 + $0xe1] sm:$0xff] }
 0x378   :  { %v793_v9 = vmax.f32 %v9046_v31, %v718_v6  ;;  %v1466_v6 = vld [vmem:[#allocation2 + $0xeb] sm:$0xff] }
 0x379   :  { %v3203_v15 = vpop.f32.mrf.mxu3  ;;  %v857_v60 = vadd.f32 %v8907_v38, %v794_v28 }
 0x37a   :  { %v856_v36 = vadd.f32 %v8907_v38, %v793_v9  ;;  %v9213_v21 = vadd.f32 %v3203_v15, %v9161_v52  ;;  %v1689_v9 = vld [vmem:[#allocation2 + $0xe4] sm:$0xff] }
 0x37b   :  { %v913_v31 = vsel %vm815_vm0, %v857_v60, 0.0  ;;  %v7959_v15 = vld [vmem:[#allocation2 + $0xa0] sm:$0xff] }
 0x37c   :  { %v912_v12 = vsel %vm815_vm0, %v856_v36, 0.0  ;;  %1103 = vrot.lane.b32.xlu0 %v1018_v57, %s8012_s21  ;;  %969 = vst [vmem:[#allocation2 + $0x128] sm:$0xff] %v913_v31  ;;  %1995 = vrot.lane.b32.xlu2 %v1912_v59, %s8011_s20  ;;  %v1177_v60 = vadd.f32 %v7959_v15, %v1086_v8  ;;  %v7960_v57 = vld [vmem:[#allocation2 + $0xa8] sm:$0xff]  ;;  %v9227_v59 = vpop.f32.mrf.mxu2 }
 0x37d   :  { %968 = vst [vmem:[#allocation2 + $0x120] sm:$0xff] %v912_v12  ;;  %1325 = vrot.lane.b32.xlu1 %v1241_v4, %s8010_s19  ;;  %v7540_v5 = vld [vmem:[#allocation3 + $0x48] sm:$0xff] }
 0x37e   :  { %v7583_v19 = vld [vmem:[#allocation3 + $0x48] sm:$0xff]  ;;  %v1312_v52 = vpop.permute.xlu0 %1311  ;;  %2586 = vmatmul.bf16.gmra.mxu1 %v7540_v5  ;;  %2794 = vmatmul.bf16.gmra.mxu2 %v7540_v5  ;;  %v1984_v20 = vpop.permute.xlu2 %1983  ;;  %10811 = vst [vmem:[#allocation12_spill] sm:$0xff] %v9227_v59  ;;  %v1401_v31 = vadd.f32 %v9184_v25, %v1177_v60 }
 0x37f   :  { %v7618_v46 = vld [vmem:[#allocation3 + $0x48] sm:$0xff]  ;;  %v1982_v42 = vpop.permute.xlu1 %1981  ;;  %3222 = vmatmul.bf16.gmra.mxu3 %v7583_v19  ;;  %v9230_v5 = vpop.f32.mrf.mxu1 }
 0x380   :  { %3711 = vmatmul.bf16.gmra.mxu0 %v7618_v46  ;;  %10812 = vst [vmem:[#allocation13_spill] sm:$0xff] %v9230_v5  ;;  %v1243_v19 = vld [vmem:[#allocation2 + $0xf2] sm:$0xff]  ;;  %v1625_v8 = vadd.f32 %v1534_v40, %v1401_v31 }
 0x381   :  { %v1914_v46 = vld [vmem:[#allocation2 + $0xed] sm:$0xff]  ;;  %v9240_v17 = vpop.f32.mrf.mxu3 }
 0x382   :  { %v1849_v59 = vadd.f32 %v9195_v47, %v1625_v8 }
 0x384   :  { %1551 = vrot.lane.b32.xlu0 %v1466_v6, %s8013_s23  ;;  %1101 = vrot.lane.b32.xlu2 %v1017_v44, %s8012_s21  ;;  %v9232_v6 = vpop.f32.mrf.mxu0 }
 0x385   :  { %1773 = vrot.lane.b32.xlu1 %v1689_v9, %s8009_s26  ;;  %10813 = vst [vmem:[#allocation14_spill] sm:$0xff] %v9232_v6  ;;  %v1465_v9 = vld [vmem:[#allocation2 + $0xe3] sm:$0xff] }
 0x386   :  { %v1760_v28 = vpop.permute.xlu0 %1759  ;;  %v9225_v12 = vpop.permute.xlu2 %1089 }
 0x387   :  { %v1088_v36 = vpop.permute.xlu1 %1087 }
 0x388   :  { %v1178_v4 = vadd.f32 %v7960_v57, %v1088_v36 }
 0x38a   :  { %v1402_v44 = vadd.f32 %v1312_v52, %v1178_v4  ;;  %v1691_v52 = vld [vmem:[#allocation2 + $0xf4] sm:$0xff] }
 0x38c   :  { %1329 = vrot.lane.b32.xlu0 %v1243_v19, %s8010_s19  ;;  %1549 = vrot.lane.b32.xlu2 %v1465_v9, %s8013_s23  ;;  %v2775_v19 = vpop.f32.mrf.mxu2  ;;  %v1019_v9 = vld [vmem:[#allocation2 + $0xf1] sm:$0xff] }
 0x38d   :  { %1999 = vrot.lane.b32.xlu1 %v1914_v46, %s8011_s20  ;;  %v2073_v46 = vadd.f32 %v1982_v42, %v1849_v59 }
 0x38e   :  { %v722_v36 = vpop.permute.xlu0 %721  ;;  %v1538_v60 = vpop.permute.xlu2 %1537 }
 0x38f   :  { %v1536_v15 = vpop.permute.xlu1 %1535  ;;  %v795_v57 = vmax.f32 %v9082_v2, %v722_v36  ;;  %v1467_v36 = vld [vmem:[#allocation2 + $0xf3] sm:$0xff] }
 0x390   :  { %v1626_v25 = vadd.f32 %v1536_v15, %v1402_v44  ;;  %v1916_v44 = vld [vmem:[#allocation2 + $0xfd] sm:$0xff]  ;;  %v1690_v15 = vld [vmem:[#allocation2 + $0xec] sm:$0xff] }
 0x391   :  { %v858_v5 = vadd.f32 %v8907_v38, %v795_v57  ;;  %v1242_v38 = vld [vmem:[#allocation2 + $0xea] sm:$0xff] }
 0x392   :  { %v1850_v6 = vadd.f32 %v1760_v28, %v1626_v25 }
 0x393   :  { %v914_v40 = vsel %vm815_vm0, %v858_v5, 0.0  ;;  %v2572_v4 = vpop.f32.mrf.mxu1 }
 0x394   :  { %v2074_v31 = vadd.f32 %v1984_v20, %v1850_v6  ;;  %970 = vst [vmem:[#allocation2 + $0x130] sm:$0xff] %v914_v40  ;;  %1777 = vrot.lane.b32.xlu0 %v1691_v52, %s8009_s26  ;;  %v9245_v2 = vadd.f32 %v2775_v19, %v2572_v4  ;;  %1327 = vrot.lane.b32.xlu2 %v1242_v38, %s8010_s19  ;;  %v7962_v52 = vld [vmem:[#allocation2 + $0xb8] sm:$0xff]  ;;  %v1021_v38 = vld [vmem:[#allocation2 + $0x101] sm:$0xff] }
 0x395   :  { %1105 = vrot.lane.b32.xlu1 %v1019_v9, %s8012_s21  ;;  %v3697_v47 = vpop.f32.mrf.mxu0  ;;  %v1244_v9 = vld [vmem:[#allocation2 + $0xfa] sm:$0xff] }
 0x396   :  { %v7814_v28 = vpack.c.bf16 %v2074_v31, %v2073_v46  ;;  %v9250_v42 = vadd.f32 %v3697_v47, %v9213_v21  ;;  %v1986_v59 = vpop.permute.xlu0 %1985  ;;  %v1316_v5 = vpop.permute.xlu2 %1315  ;;  %v1915_v47 = vld [vmem:[#allocation2 + $0xf5] sm:$0xff] }
 0x397   :  { %v1314_v20 = vpop.permute.xlu1 %1313 }
 0x398   :  { %7910 = vst [vmem:[#allocation3 + $0x50] sm:$0xff] %v7814_v28  }
 0x39a   :  { %v3208_v6 = vpop.f32.mrf.mxu3 }
 0x39b   :  { %v9253_v8 = vadd.f32 %v3208_v6, %v9200_v62  ;;  %v7961_v62 = vld [vmem:[#allocation2 + $0xb0] sm:$0xff] }
 0x39c   :  { %2003 = vrot.lane.b32.xlu0 %v1916_v44, %s8011_s20  ;;  %1775 = vrot.lane.b32.xlu2 %v1690_v15, %s8009_s26  ;;  %v1179_v31 = vadd.f32 %v7961_v62, %v9225_v12 }
 0x39d   :  { %1553 = vrot.lane.b32.xlu1 %v1467_v36, %s8013_s23 }
 0x39e   :  { %v1092_v57 = vpop.permute.xlu0 %1091  ;;  %v1764_v40 = vpop.permute.xlu2 %1763  ;;  %v1403_v28 = vadd.f32 %v1314_v20, %v1179_v31 }
 0x39f   :  { %v1762_v21 = vpop.permute.xlu1 %1761  ;;  %v7541_v25 = vld [vmem:[#allocation3 + $0x50] sm:$0xff]  ;;  %v1180_v4 = vadd.f32 %v7962_v52, %v1092_v57 }
 0x3a0   :  { %v7584_v19 = vld [vmem:[#allocation3 + $0x50] sm:$0xff]  ;;  %2591 = vmatmul.bf16.gmra.mxu1 %v7541_v25  ;;  %2799 = vmatmul.bf16.gmra.mxu2 %v7541_v25 }
 0x3a1   :  { %v7619_v46 = vld [vmem:[#allocation3 + $0x50] sm:$0xff]  ;;  %3227 = vmatmul.bf16.gmra.mxu3 %v7584_v19  ;;  %v1404_v36 = vadd.f32 %v1316_v5, %v1180_v4  ;;  %v1627_v19 = vadd.f32 %v1538_v60, %v1403_v28 }
 0x3a2   :  { %3716 = vmatmul.bf16.gmra.mxu0 %v7619_v46  ;;  %v9267_v46 = vld [vmem:[%s10786_s2] ss:$0 sm:$0xff] }
 0x3a3   :  { %v1851_v31 = vadd.f32 %v1762_v21, %v1627_v19  ;;  %v1692_v52 = vld [vmem:[#allocation2 + $0xfc] sm:$0xff]  ;;  %v9287_v19 = vpop.f32.mrf.mxu0 }
 0x3a4   :  { %1109 = vrot.lane.b32.xlu0 %v1021_v38, %s8012_s21  ;;  %2001 = vrot.lane.b32.xlu2 %v1915_v47, %s8011_s20  ;;  %v1020_v60 = vld [vmem:[#allocation2 + $0xf9] sm:$0xff] }
 0x3a5   :  { %1331 = vrot.lane.b32.xlu1 %v1244_v9, %s8010_s19  ;;  %v2075_v38 = vadd.f32 %v1986_v59, %v1851_v31  ;;  %v1694_v31 = vld [vmem:[#allocation2 + $0x10c] sm:$0xff] }
 0x3a6   :  { %v1540_v6 = vpop.permute.xlu0 %1539  ;;  %v726_v25 = vpop.permute.xlu2 %725 }
 0x3a7   :  { %v724_v44 = vpop.permute.xlu1 %723  ;;  %v797_v12 = vmax.f32 %v9146_v22, %v726_v25  ;;  %v1628_v57 = vadd.f32 %v1540_v6, %v1404_v36  ;;  %v1022_v36 = vld [vmem:[#allocation2 + $0x109] sm:$0xff]  ;;  %v9282_v25 = vpop.f32.mrf.mxu2 }
 0x3a8   :  { %v796_v15 = vmax.f32 %v9120_v18, %v724_v44  ;;  %v1469_v18 = vld [vmem:[#allocation2 + $0x103] sm:$0xff]  ;;  %10814 = vst [vmem:[#allocation15_spill] sm:$0xff] %v9282_v25 }
 0x3a9   :  { %v860_v20 = vadd.f32 %v9267_v46, %v797_v12  ;;  %v1852_v4 = vadd.f32 %v1764_v40, %v1628_v57  ;;  %v1246_v44 = vld [vmem:[#allocation2 + $0x10a] sm:$0xff]  ;;  %v9284_v12 = vpop.f32.mrf.mxu1 }
 0x3aa   :  { %v859_v62 = vadd.f32 %v9267_v46, %v796_v15  ;;  %v1468_v15 = vld [vmem:[#allocation2 + $0xfb] sm:$0xff]  ;;  %10815 = vst [vmem:[#allocation16_spill] sm:$0xff] %v9284_v12  ;;  %v1693_v25 = vld [vmem:[#allocation2 + $0x104] sm:$0xff] }
 0x3ab   :  { %v916_v22 = vsel %vm815_vm0, %v860_v20, 0.0  ;;  %v1024_v12 = vld [vmem:[#allocation2 + $0x119] sm:$0xff] }
 0x3ac   :  { %v915_v5 = vsel %vm815_vm0, %v859_v62, 0.0  ;;  %1557 = vrot.lane.b32.xlu0 %v1469_v18, %s8013_s23  ;;  %972 = vst [vmem:[#allocation2 + $0x140] sm:$0xff] %v916_v22  ;;  %1107 = vrot.lane.b32.xlu2 %v1020_v60, %s8012_s21  ;;  %v9289_v18 = vpop.f32.mrf.mxu3  ;;  %v1245_v22 = vld [vmem:[#allocation2 + $0x102] sm:$0xff] }
 0x3ad   :  { %971 = vst [vmem:[#allocation2 + $0x138] sm:$0xff] %v915_v5  ;;  %1779 = vrot.lane.b32.xlu1 %v1692_v52, %s8009_s26  ;;  %v1470_v5 = vld [vmem:[#allocation2 + $0x10b] sm:$0xff] }
 0x3ae   :  { %v1318_v9 = vpop.permute.xlu0 %1317  ;;  %v9278_v28 = vpop.permute.xlu2 %1989  ;;  %10816 = vst [vmem:[#allocation17_spill] sm:$0xff] %v9289_v18  ;;  %v1918_v18 = vld [vmem:[#allocation2 + $0x10d] sm:$0xff] }
 0x3af   :  { %v1988_v21 = vpop.permute.xlu1 %1987  ;;  %v2780_v60 = vpop.f32.mrf.mxu2 }
 0x3b0   :  { %v2076_v47 = vadd.f32 %v1988_v21, %v1852_v4 }
 0x3b2   :  { %v7819_v6 = vpack.c.bf16 %v2076_v47, %v2075_v38 }
 0x3b4   :  { %7911 = vst [vmem:[#allocation3 + $0x58] sm:$0xff] %v7819_v6   ;;  %1335 = vrot.lane.b32.xlu0 %v1246_v44, %s8010_s19  ;;  %1555 = vrot.lane.b32.xlu2 %v1468_v15, %s8013_s23  ;;  %v9301_v15 = vmax.f32 %v8757_v10, %v8962_v48 }
 0x3b5   :  { %1111 = vrot.lane.b32.xlu1 %v1022_v36, %s8012_s21 }
 0x3b6   :  { %v1766_v40 = vpop.permute.xlu0 %1765  ;;  %v1096_v57 = vpop.permute.xlu2 %1095 }
 0x3b7   :  { %v1094_v59 = vpop.permute.xlu1 %1093 }
 0x3bb   :  { %v7542_v62 = vld [vmem:[#allocation3 + $0x58] sm:$0xff] }
 0x3bc   :  { %v7585_v20 = vld [vmem:[#allocation3 + $0x58] sm:$0xff]  ;;  %1783 = vrot.lane.b32.xlu0 %v1694_v31, %s8009_s26  ;;  %1333 = vrot.lane.b32.xlu2 %v1245_v22, %s8010_s19 }
 0x3bd   :  { %v7620_v52 = vld [vmem:[#allocation3 + $0x58] sm:$0xff]  ;;  %1559 = vrot.lane.b32.xlu1 %v1470_v5, %s8013_s23  ;;  %2596 = vmatmul.bf16.gmra.mxu1 %v7542_v62  ;;  %v2577_v4 = vpop.f32.mrf.mxu1 }
 0x3be   :  { %2804 = vmatmul.bf16.gmra.mxu2 %v7542_v62  ;;  %3232 = vmatmul.bf16.gmra.mxu3 %v7585_v20  ;;  %v1992_v21 = vpop.permute.xlu0 %1991  ;;  %v9294_v47 = vadd.f32 %v2780_v60, %v2577_v4  ;;  %v1544_v6 = vpop.permute.xlu2 %1543  ;;  %v7964_v31 = vld [vmem:[#allocation2 + $0xc0] sm:$0xff]  ;;  %v7965_v60 = vld [vmem:[#allocation2 + $0xc8] sm:$0xff] }
 0x3bf   :  { %v1542_v38 = vpop.permute.xlu1 %1541  ;;  %3721 = vmatmul.bf16.gmra.mxu0 %v7620_v52  ;;  %v3702_v44 = vpop.f32.mrf.mxu0  ;;  %v1181_v5 = vadd.f32 %v7964_v31, %v1094_v59  ;;  %v1917_v22 = vld [vmem:[#allocation2 + $0x105] sm:$0xff]  ;;  %v1182_v4 = vadd.f32 %v7965_v60, %v1096_v57  ;;  %v9310_v31 = vmax.f32 %v8807_v37, %v8995_v49 }
 0x3c0   :  { %v9297_v36 = vadd.f32 %v3702_v44, %v9253_v8  ;;  %v9317_v37 = vpop.f32.mrf.mxu2 }
 0x3c1   :  { %v1405_v10 = vadd.f32 %v1318_v9, %v1181_v5  ;;  %10817 = vst [vmem:[#allocation18_spill] sm:$0xff] %v9317_v37 }
 0x3c3   :  { %v1629_v44 = vadd.f32 %v1542_v38, %v1405_v10 }
 0x3c4   :  { %v3213_v62 = vpop.f32.mrf.mxu3  ;;  %727 = vrot.lane.b32.xlu0 %v9301_v15, %s8009_s26  ;;  %1781 = vrot.lane.b32.xlu2 %v1693_v25, %s8009_s26 }
 0x3c5   :  { %2005 = vrot.lane.b32.xlu1 %v1917_v22, %s8011_s20  ;;  %v3338_v20 = vadd.f32 %v3213_v62, %v9245_v2  ;;  %v1853_v2 = vadd.f32 %v1766_v40, %v1629_v44  ;;  %v9319_v49 = vpop.f32.mrf.mxu1 }
 0x3c6   :  { %v1098_v8 = vpop.permute.xlu0 %1097  ;;  %v1322_v48 = vpop.permute.xlu2 %1321  ;;  %10818 = vst [vmem:[#allocation19_spill] sm:$0xff] %v9319_v49 }
 0x3c7   :  { %v1320_v52 = vpop.permute.xlu1 %1319  ;;  %v2077_v22 = vadd.f32 %v9278_v28, %v1853_v2  ;;  %v9321_v60 = vpop.f32.mrf.mxu0  ;;  %v1472_v2 = vld [vmem:[#allocation2 + $0x11b] sm:$0xff] }
 0x3c8   :  { %v1406_v59 = vadd.f32 %v1320_v52, %v1182_v4  ;;  %10819 = vst [vmem:[#allocation20_spill] sm:$0xff] %v9321_v60  ;;  %v1023_v4 = vld [vmem:[#allocation2 + $0x111] sm:$0xff] }
 0x3ca   :  { %v1630_v25 = vadd.f32 %v1544_v6, %v1406_v59  ;;  %v2785_v6 = vpop.f32.mrf.mxu2  ;;  %v1248_v59 = vld [vmem:[#allocation2 + $0x11a] sm:$0xff] }
 0x3cc   :  { %1115 = vrot.lane.b32.xlu0 %v1024_v12, %s8012_s21  ;;  %2007 = vrot.lane.b32.xlu2 %v1918_v18, %s8011_s20  ;;  %v1247_v12 = vld [vmem:[#allocation2 + $0x112] sm:$0xff] }
 0x3cd   :  { %729 = vrot.lane.b32.xlu1 %v9310_v31, %s8009_s26 }
 0x3ce   :  { %v1546_v57 = vpop.permute.xlu0 %1545  ;;  %v1770_v38 = vpop.permute.xlu2 %1769 }
 0x3cf   :  { %v1768_v9 = vpop.permute.xlu1 %1767 }
 0x3d0   :  { %v1854_v5 = vadd.f32 %v1768_v9, %v1630_v25 }
 0x3d2   :  { %v2078_v62 = vadd.f32 %v1992_v21, %v1854_v5  ;;  %v9327_v21 = vpop.f32.mrf.mxu3 }
 0x3d3   :  { %10820 = vst [vmem:[#allocation21_spill] sm:$0xff] %v9327_v21 }
 0x3d4   :  { %v7824_v52 = vpack.c.bf16 %v2078_v62, %v2077_v22  ;;  %571 = vrot.lane.b32.xlu0 %v8964_v27, %s8008_s12  ;;  %1113 = vrot.lane.b32.xlu2 %v1023_v4, %s8012_s21  ;;  %v7966_v4 = vld [vmem:[#allocation2 + $0xd0] sm:$0xff] }
 0x3d5   :  { %1337 = vrot.lane.b32.xlu1 %v1247_v12, %s8010_s19 }
 0x3d6   :  { %7912 = vst [vmem:[#allocation3 + $0x60] sm:$0xff] %v7824_v52   ;;  %v1324_v40 = vpop.permute.xlu0 %1323  ;;  %v1996_v18 = vpop.permute.xlu2 %1995 }
 0x3d7   :  { %v1994_v28 = vpop.permute.xlu1 %1993 }
 0x3da   :  { %v2582_v10 = vpop.f32.mrf.mxu1 }
 0x3db   :  { %v9329_v44 = vadd.f32 %v2785_v6, %v2582_v10  ;;  %v1183_v6 = vadd.f32 %v7966_v4, %v1098_v8 }
 0x3dc   :  { %v3707_v25 = vpop.f32.mrf.mxu0  ;;  %1563 = vrot.lane.b32.xlu0 %v1472_v2, %s8013_s23  ;;  %1339 = vrot.lane.b32.xlu2 %v1248_v59, %s8010_s19  ;;  %v7967_v2 = vld [vmem:[#allocation2 + $0xd8] sm:$0xff] }
 0x3dd   :  { %573 = vrot.lane.b32.xlu1 %v8973_v56, %s8008_s12  ;;  %v7543_v9 = vld [vmem:[#allocation3 + $0x60] sm:$0xff]  ;;  %v9334_v62 = vadd.f32 %v3707_v25, %v3338_v20  ;;  %v1407_v60 = vadd.f32 %v1322_v48, %v1183_v6  ;;  %v1919_v20 = vld [vmem:[#allocation2 + $0x115] sm:$0xff]  ;;  %v1920_v6 = vld [vmem:[#allocation2 + $0x11d] sm:$0xff] }
 0x3de   :  { %v7586_v5 = vld [vmem:[#allocation3 + $0x60] sm:$0xff]  ;;  %v1772_v52 = vpop.permute.xlu0 %1771  ;;  %2601 = vmatmul.bf16.gmra.mxu1 %v7543_v9  ;;  %2809 = vmatmul.bf16.gmra.mxu2 %v7543_v9  ;;  %v1102_v10 = vpop.permute.xlu2 %1101  ;;  %v1695_v25 = vld [vmem:[#allocation2 + $0x114] sm:$0xff] }
 0x3df   :  { %v7621_v22 = vld [vmem:[#allocation3 + $0x60] sm:$0xff]  ;;  %10821 = vst [vmem:[#allocation22_spill] sm:$0xff] %v9334_v62  ;;  %v1100_v12 = vpop.permute.xlu1 %1099  ;;  %3237 = vmatmul.bf16.gmra.mxu3 %v7586_v5  ;;  %v1471_v62 = vld [vmem:[#allocation2 + $0x113] sm:$0xff]  ;;  %v1631_v59 = vadd.f32 %v1546_v57, %v1407_v60 }
 0x3e0   :  { %3726 = vmatmul.bf16.gmra.mxu0 %v7621_v22  ;;  %v1184_v37 = vadd.f32 %v7967_v2, %v1100_v12 }
 0x3e1   :  { %v3218_v49 = vpop.f32.mrf.mxu3  ;;  %v1855_v4 = vadd.f32 %v1770_v38, %v1631_v59  ;;  %v1025_v59 = vld [vmem:[#allocation2 + $0x121] sm:$0xff] }
 0x3e2   :  { %v9338_v21 = vadd.f32 %v3218_v49, %v9294_v47  ;;  %v1408_v8 = vadd.f32 %v1324_v40, %v1184_v37  ;;  %v9345_v47 = vmax.f32 %v8875_v29, %v9040_v54  ;;  %v9353_v29 = vmax.f32 %v8862_v13, %v8997_v35  ;;  %v9355_v54 = vpop.f32.mrf.mxu2  ;;  %v7968_v40 = vld [vmem:[#allocation2 + $0xe0] sm:$0xff] }
 0x3e3   :  { %v2079_v48 = vadd.f32 %v1994_v28, %v1855_v4  ;;  %10822 = vst [vmem:[#allocation23_spill] sm:$0xff] %v9355_v54  ;;  %v1185_v28 = vadd.f32 %v7968_v40, %v1102_v10  ;;  %v1250_v40 = vld [vmem:[#allocation2 + $0x12a] sm:$0xff] }
 0x3e4   :  { %2009 = vrot.lane.b32.xlu0 %v1919_v20, %s8011_s20  ;;  %1561 = vrot.lane.b32.xlu2 %v1471_v62, %s8013_s23  ;;  %v1696_v20 = vld [vmem:[#allocation2 + $0x11c] sm:$0xff]  ;;  %v7969_v62 = vld [vmem:[#allocation2 + $0xe8] sm:$0xff] }
 0x3e5   :  { %1785 = vrot.lane.b32.xlu1 %v1695_v25, %s8009_s26  ;;  %v1249_v25 = vld [vmem:[#allocation2 + $0x122] sm:$0xff] }
 0x3e6   :  { %v1998_v9 = vpop.permute.xlu0 %1997  ;;  %v1550_v12 = vpop.permute.xlu2 %1549 }
 0x3e7   :  { %v1548_v5 = vpop.permute.xlu1 %1547 }
 0x3e8   :  { %v1632_v22 = vadd.f32 %v1548_v5, %v1408_v8  ;;  %v9359_v8 = vpop.f32.mrf.mxu0 }
 0x3ea   :  { %v1856_v2 = vadd.f32 %v1772_v52, %v1632_v22 }
 0x3ec   :  { %v2080_v49 = vadd.f32 %v1996_v18, %v1856_v2  ;;  %733 = vrot.lane.b32.xlu0 %v9345_v47, %s8009_s26  ;;  %1787 = vrot.lane.b32.xlu2 %v1696_v20, %s8009_s26  ;;  %v9357_v18 = vpop.f32.mrf.mxu1  ;;  %v9365_v20 = vpop.f32.mrf.mxu3 }
 0x3ed   :  { %2011 = vrot.lane.b32.xlu1 %v1920_v6, %s8011_s20 }
 0x3ee   :  { %v7829_v57 = vpack.c.bf16 %v2080_v49, %v2079_v48  ;;  %v1104_v37 = vpop.permute.xlu0 %1103  ;;  %v1328_v38 = vpop.permute.xlu2 %1327 }
 0x3ef   :  { %v1326_v60 = vpop.permute.xlu1 %1325  ;;  %v1186_v52 = vadd.f32 %v7969_v62, %v1104_v37  ;;  %v1026_v62 = vld [vmem:[#allocation2 + $0x129] sm:$0xff] }
 0x3f0   :  { %7913 = vst [vmem:[#allocation3 + $0x68] sm:$0xff] %v7829_v57   ;;  %v1409_v5 = vadd.f32 %v1326_v60, %v1185_v28  ;;  %v2790_v57 = vpop.f32.mrf.mxu2 }
 0x3f1   :  { %v1410_v2 = vadd.f32 %v1328_v38, %v1186_v52 }
 0x3f2   :  { %v1633_v6 = vadd.f32 %v1550_v12, %v1409_v5 }
 0x3f4   :  { %1341 = vrot.lane.b32.xlu0 %v1249_v25, %s8010_s19  ;;  %731 = vrot.lane.b32.xlu2 %v9353_v29, %s8009_s26 }
 0x3f5   :  { %1117 = vrot.lane.b32.xlu1 %v1025_v59, %s8012_s21 }
 0x3f6   :  { %v1552_v13 = vpop.permute.xlu0 %1551  ;;  %v1776_v48 = vpop.permute.xlu2 %1775 }
 0x3f7   :  { %v1774_v35 = vpop.permute.xlu1 %1773  ;;  %v7544_v22 = vld [vmem:[#allocation3 + $0x68] sm:$0xff]  ;;  %v1634_v49 = vadd.f32 %v1552_v13, %v1410_v2  ;;  %v1473_v2 = vld [vmem:[#allocation2 + $0x123] sm:$0xff] }
 0x3f8   :  { %v7587_v10 = vld [vmem:[#allocation3 + $0x68] sm:$0xff]  ;;  %2606 = vmatmul.bf16.gmra.mxu1 %v7544_v22  ;;  %2814 = vmatmul.bf16.gmra.mxu2 %v7544_v22  ;;  %v1857_v37 = vadd.f32 %v1774_v35, %v1633_v6  ;;  %v1697_v6 = vld [vmem:[#allocation2 + $0x124] sm:$0xff] }
 0x3f9   :  { %v7622_v4 = vld [vmem:[#allocation3 + $0x68] sm:$0xff]  ;;  %3242 = vmatmul.bf16.gmra.mxu3 %v7587_v10  ;;  %v1858_v52 = vadd.f32 %v1776_v48, %v1634_v49 }
 0x3fa   :  { %3731 = vmatmul.bf16.gmra.mxu0 %v7622_v4  ;;  %v2081_v5 = vadd.f32 %v1998_v9, %v1857_v37  ;;  %v1698_v37 = vld [vmem:[#allocation2 + $0x12c] sm:$0xff] }
 0x3fb   :  { %v2587_v60 = vpop.f32.mrf.mxu1 }
 0x3fc   :  { %v9367_v28 = vadd.f32 %v2790_v57, %v2587_v60  ;;  %577 = vrot.lane.b32.xlu0 %v9007_v53, %s8008_s12  ;;  %1119 = vrot.lane.b32.xlu2 %v1026_v62, %s8012_s21  ;;  %v1922_v60 = vld [vmem:[#allocation2 + $0x12d] sm:$0xff] }
 0x3fd   :  { %1343 = vrot.lane.b32.xlu1 %v1250_v40, %s8010_s19  ;;  %v3712_v38 = vpop.f32.mrf.mxu0 }
 0x3fe   :  { %v9374_v12 = vadd.f32 %v3712_v38, %v9338_v21  ;;  %v1330_v25 = vpop.permute.xlu0 %1329  ;;  %v9376_v35 = vpop.permute.xlu2 %2001 }
 0x3ff   :  { %v2000_v59 = vpop.permute.xlu1 %1999 }
 0x400   :  { %v2082_v13 = vadd.f32 %v2000_v59, %v1858_v52  ;;  %v9388_v59 = vmax.f32 %v8911_v32, %v9076_v11  ;;  %v7971_v32 = vld [vmem:[#allocation2 + $0xf8] sm:$0xff] }
 0x402   :  { %v7834_v22 = vpack.c.bf16 %v2082_v13, %v2081_v5  ;;  %v3223_v10 = vpop.f32.mrf.mxu3  ;;  %v7970_v5 = vld [vmem:[#allocation2 + $0xf0] sm:$0xff] }
 0x403   :  { %v3342_v4 = vadd.f32 %v3223_v10, %v9329_v44  ;;  %v1474_v44 = vld [vmem:[#allocation2 + $0x12b] sm:$0xff] }
 0x404   :  { %7914 = vst [vmem:[#allocation3 + $0x70] sm:$0xff] %v7834_v22   ;;  %1789 = vrot.lane.b32.xlu0 %v1697_v6, %s8009_s26  ;;  %575 = vrot.lane.b32.xlu2 %v8993_v58, %s8008_s12  ;;  %v1027_v22 = vld [vmem:[#allocation2 + $0x131] sm:$0xff]  ;;  %v1921_v10 = vld [vmem:[#allocation2 + $0x125] sm:$0xff]  ;;  %v9395_v6 = vpop.f32.mrf.mxu1 }
 0x405   :  { %1565 = vrot.lane.b32.xlu1 %v1473_v2, %s8013_s23  ;;  %v9393_v2 = vpop.f32.mrf.mxu2  ;;  %10824 = vst [vmem:[#allocation25_spill] sm:$0xff] %v9395_v6 }
 0x406   :  { %v1778_v21 = vpop.permute.xlu0 %1777  ;;  %v1108_v9 = vpop.permute.xlu2 %1107  ;;  %10823 = vst [vmem:[#allocation24_spill] sm:$0xff] %v9393_v2  ;;  %v1252_v2 = vld [vmem:[#allocation2 + $0x13a] sm:$0xff] }
 0x407   :  { %v1106_v48 = vpop.permute.xlu1 %1105  ;;  %v1188_v11 = vadd.f32 %v7971_v32, %v1108_v9 }
 0x408   :  { %v1187_v13 = vadd.f32 %v7970_v5, %v1106_v48  ;;  %v9402_v5 = vmax.f32 %v8944_v63, %v9078_v39 }
 0x40a   :  { %v1411_v48 = vadd.f32 %v1330_v25, %v1187_v13  ;;  %v9404_v54 = vpop.f32.mrf.mxu3 }
 0x40b   :  { %v7545_v49 = vld [vmem:[#allocation3 + $0x70] sm:$0xff]  ;;  %10825 = vst [vmem:[#allocation26_spill] sm:$0xff] %v9404_v54 }
 0x40c   :  { %v7588_v57 = vld [vmem:[#allocation3 + $0x70] sm:$0xff]  ;;  %2015 = vrot.lane.b32.xlu0 %v1922_v60, %s8011_s20  ;;  %1567 = vrot.lane.b32.xlu2 %v1474_v44, %s8013_s23 }
 0x40d   :  { %v7623_v40 = vld [vmem:[#allocation3 + $0x70] sm:$0xff]  ;;  %1791 = vrot.lane.b32.xlu1 %v1698_v37, %s8009_s26  ;;  %2611 = vmatmul.bf16.gmra.mxu1 %v7545_v49  ;;  %v9398_v37 = vpop.f32.mrf.mxu0 }
 0x40e   :  { %2819 = vmatmul.bf16.gmra.mxu2 %v7545_v49  ;;  %3247 = vmatmul.bf16.gmra.mxu3 %v7588_v57  ;;  %v2004_v62 = vpop.permute.xlu0 %2003  ;;  %v1556_v52 = vpop.permute.xlu2 %1555  ;;  %v1475_v54 = vld [vmem:[#allocation2 + $0x133] sm:$0xff] }
 0x40f   :  { %v1554_v38 = vpop.permute.xlu1 %1553  ;;  %3736 = vmatmul.bf16.gmra.mxu0 %v7623_v40 }
 0x410   :  { %v1635_v40 = vadd.f32 %v1554_v38, %v1411_v48 }
 0x412   :  { %v1859_v6 = vadd.f32 %v1778_v21, %v1635_v40  ;;  %v1251_v40 = vld [vmem:[#allocation2 + $0x132] sm:$0xff] }
 0x414   :  { %1121 = vrot.lane.b32.xlu0 %v1027_v22, %s8012_s21  ;;  %2013 = vrot.lane.b32.xlu2 %v1921_v10, %s8011_s20  ;;  %v1028_v22 = vld [vmem:[#allocation2 + $0x139] sm:$0xff]  ;;  %v2795_v10 = vpop.f32.mrf.mxu2  ;;  %v2083_v48 = vadd.f32 %v9376_v35, %v1859_v6 }
 0x415   :  { %735 = vrot.lane.b32.xlu1 %v9388_v59, %s8009_s26 }
 0x416   :  { %v1110_v49 = vpop.permute.xlu0 %1109  ;;  %v1334_v60 = vpop.permute.xlu2 %1333 }
 0x417   :  { %v1332_v57 = vpop.permute.xlu1 %1331 }
 0x418   :  { %v1412_v44 = vadd.f32 %v1332_v57, %v1188_v11 }
 0x41a   :  { %v1636_v25 = vadd.f32 %v1556_v52, %v1412_v44 }
 0x41c   :  { %1347 = vrot.lane.b32.xlu0 %v1252_v2, %s8010_s19  ;;  %737 = vrot.lane.b32.xlu2 %v9402_v5, %s8009_s26 }
 0x41d   :  { %1123 = vrot.lane.b32.xlu1 %v1028_v22, %s8012_s21  ;;  %v2592_v9 = vpop.f32.mrf.mxu1 }
 0x41e   :  { %v1558_v38 = vpop.permute.xlu0 %1557  ;;  %v9410_v57 = vadd.f32 %v2795_v10, %v2592_v9  ;;  %v1782_v39 = vpop.permute.xlu2 %1781  ;;  %v1476_v9 = vld [vmem:[#allocation2 + $0x13b] sm:$0xff] }
 0x41f   :  { %v1780_v13 = vpop.permute.xlu1 %1779  ;;  %v3717_v32 = vpop.f32.mrf.mxu0 }
 0x420   :  { %v1860_v63 = vadd.f32 %v1780_v13, %v1636_v25  ;;  %v9412_v11 = vadd.f32 %v3717_v32, %v3342_v4  ;;  %v1700_v25 = vld [vmem:[#allocation2 + $0x13c] sm:$0xff] }
 0x422   :  { %v2084_v22 = vadd.f32 %v2004_v62, %v1860_v63  ;;  %v7972_v62 = vld [vmem:[#allocation2 + $0x100] sm:$0xff] }
 0x423   :  { %v1189_v6 = vadd.f32 %v7972_v62, %v1110_v49  ;;  %v1923_v62 = vld [vmem:[#allocation2 + $0x135] sm:$0xff] }
 0x424   :  { %v7839_v2 = vpack.c.bf16 %v2084_v22, %v2083_v48  ;;  %v3228_v21 = vpop.f32.mrf.mxu3  ;;  %1569 = vrot.lane.b32.xlu0 %v1475_v54, %s8013_s23  ;;  %1345 = vrot.lane.b32.xlu2 %v1251_v40, %s8010_s19 }
 0x425   :  { %579 = vrot.lane.b32.xlu1 %v9022_v26, %s8008_s12  ;;  %v3344_v52 = vadd.f32 %v3228_v21, %v9367_v28  ;;  %v9427_v21 = vpop.f32.mrf.mxu2  ;;  %v9429_v40 = vpop.f32.mrf.mxu1 }
 0x426   :  { %7915 = vst [vmem:[#allocation3 + $0x78] sm:$0xff] %v7839_v2   ;;  %v1336_v44 = vpop.permute.xlu0 %1335  ;;  %v2008_v10 = vpop.permute.xlu2 %2007 }
 0x427   :  { %v1112_v4 = vpop.permute.xlu1 %1111  ;;  %10826 = vst [vmem:[#allocation27_spill] sm:$0xff] %v9427_v21 }
 0x428   :  { %v1190_v35 = vadd.f32 %v1112_v4, %v9150_v16  ;;  %v1413_v16 = vadd.f32 %v1334_v60, %v1189_v6  ;;  %10827 = vst [vmem:[#allocation28_spill] sm:$0xff] %v9429_v40 }
 0x42a   :  { %v1414_v28 = vadd.f32 %v1336_v44, %v1190_v35  ;;  %v1637_v2 = vadd.f32 %v1558_v38, %v1413_v16  ;;  %v1699_v44 = vld [vmem:[#allocation2 + $0x134] sm:$0xff] }
 0x42c   :  { %1795 = vrot.lane.b32.xlu0 %v1700_v25, %s8009_s26  ;;  %581 = vrot.lane.b32.xlu2 %v9035_v1, %s8008_s12  ;;  %v9431_v25 = vpop.f32.mrf.mxu0  ;;  %v1861_v35 = vadd.f32 %v1782_v39, %v1637_v2 }
 0x42d   :  { %1571 = vrot.lane.b32.xlu1 %v1476_v9, %s8013_s23  ;;  %v7546_v54 = vld [vmem:[#allocation3 + $0x78] sm:$0xff] }
 0x42e   :  { %v7589_v13 = vld [vmem:[#allocation3 + $0x78] sm:$0xff]  ;;  %v1784_v32 = vpop.permute.xlu0 %1783  ;;  %2616 = vmatmul.bf16.gmra.mxu1 %v7546_v54  ;;  %2824 = vmatmul.bf16.gmra.mxu2 %v7546_v54  ;;  %v9425_v49 = vpop.permute.xlu2 %1113 }
 0x42f   :  { %v7624_v63 = vld [vmem:[#allocation3 + $0x78] sm:$0xff]  ;;  %v1560_v48 = vpop.permute.xlu1 %1559  ;;  %3252 = vmatmul.bf16.gmra.mxu3 %v7589_v13 }
 0x430   :  { %v1638_v22 = vadd.f32 %v1560_v48, %v1414_v28  ;;  %3741 = vmatmul.bf16.gmra.mxu0 %v7624_v63  ;;  %v9438_v63 = vpop.f32.mrf.mxu3  ;;  %v2800_v48 = vpop.f32.mrf.mxu2 }
 0x431   :  { %10828 = vst [vmem:[#allocation29_spill] sm:$0xff] %v9438_v63 }
 0x432   :  { %v1862_v4 = vadd.f32 %v1784_v32, %v1638_v22 }
 0x434   :  { %1793 = vrot.lane.b32.xlu2 %v1699_v44, %s8009_s26  ;;  %v2086_v38 = vadd.f32 %v2008_v10, %v1862_v4  ;;  %v1924_v10 = vld [vmem:[#allocation2 + $0x13d] sm:$0xff] }
 0x435   :  { %2017 = vrot.lane.b32.xlu1 %v1923_v62, %s8011_s20 }
 0x436   :  { %v728_v60 = vpop.permute.xlu0 %727  ;;  %v9436_v13 = vpop.permute.xlu2 %1339 }
 0x437   :  { %v2006_v6 = vpop.permute.xlu1 %2005  ;;  %v798_v9 = vmax.f32 %v9301_v15, %v728_v60 }
 0x438   :  { %v2085_v54 = vadd.f32 %v2006_v6, %v1861_v35 }
 0x439   :  { %v861_v28 = vadd.f32 %v9267_v46, %v798_v9 }
 0x43a   :  { %v7844_v32 = vpack.c.bf16 %v2086_v38, %v2085_v54  ;;  %v2597_v16 = vpop.f32.mrf.mxu1 }
 0x43b   :  { %v9443_v39 = vsel %vm815_vm0, %v861_v28, 0.0  ;;  %v9445_v22 = vadd.f32 %v2800_v48, %v2597_v16 }
 0x43c   :  { %7916 = vst [vmem:[#allocation3 + $0x80] sm:$0xff] %v7844_v32   ;;  %v3722_v15 = vpop.f32.mrf.mxu0  ;;  %2019 = vrot.lane.b32.xlu2 %v1924_v10, %s8011_s20  ;;  %v7683_v10 = vld [vmem:[%s10787_s3 + $0x138] sm:$0xff] }
 0x43d   :  { %973 = vst [vmem:[#allocation2 + $0x148] sm:$0xff] %v9443_v39  ;;  %v9448_v2 = vadd.f32 %v3722_v15, %v3344_v52  ;;  %4167 = vmatpush.bf16.msrb.mxu1 %v7683_v10  ;;  %v7974_v10 = vld [vmem:[#allocation2 + $0x118] sm:$0xff] }
 0x43e   :  { %v1116_v4 = vpop.permute.xlu0 %1115  ;;  %v1562_v35 = vpop.permute.xlu2 %1561 }
 0x43f   :  { %10829 = vst [vmem:[#allocation30_spill] sm:$0xff] %v9448_v2  ;;  %v730_v62 = vpop.permute.xlu1 %729 }
 0x440   :  { %v799_v44 = vmax.f32 %v9310_v31, %v730_v62  ;;  %v7719_v31 = vld [vmem:[%s10787_s3 + $0x178] sm:$0xff] }
 0x441   :  { %v3233_v6 = vpop.f32.mrf.mxu3  ;;  %4661 = vmatpush.bf16.msrb.mxu2 %v7719_v31  ;;  %v7973_v31 = vld [vmem:[#allocation2 + $0x110] sm:$0xff] }
 0x442   :  { %v862_v60 = vadd.f32 %v9267_v46, %v799_v44  ;;  %v3346_v9 = vadd.f32 %v3233_v6, %v9410_v57  ;;  %v9483_v21 = vpop.f32.mrf.mxu1 }
 0x443   :  { %v7547_v54 = vld [vmem:[#allocation3 + $0x80] sm:$0xff]  ;;  %10831 = vst [vmem:[#allocation32_spill] sm:$0xff] %v9483_v21 }
 0x444   :  { %v7590_v38 = vld [vmem:[#allocation3 + $0x80] sm:$0xff]  ;;  %v9456_v32 = vsel %vm815_vm0, %v862_v60, 0.0  ;;  %2621 = vmatmul.bf16.gmra.mxu1 %v7547_v54  ;;  %2829 = vmatmul.bf16.gmra.mxu2 %v7547_v54 }
 0x445   :  { %v7625_v28 = vld [vmem:[#allocation3 + $0x80] sm:$0xff]  ;;  %974 = vst [vmem:[#allocation2 + $0x150] sm:$0xff] %v9456_v32  ;;  %3257 = vmatmul.bf16.gmra.mxu3 %v7590_v38 }
 0x446   :  { %v1029_v52 = vld [vmem:[#allocation2 + $0x141] sm:$0xff]  ;;  %3746 = vmatmul.bf16.gmra.mxu0 %v7625_v28  ;;  %v572_v48 = vpop.permute.xlu0 %571  ;;  %v1788_v16 = vpop.permute.xlu2 %1787 }
 0x447   :  { %1125 = vrot.lane.b32.xlu2 %v1029_v52, %s8012_s21  ;;  %v1338_v57 = vpop.permute.xlu1 %1337  ;;  %v9464_v15 = vmax.f32 %v8964_v27, %v572_v48  ;;  %v9480_v52 = vpop.f32.mrf.mxu2  ;;  %v1191_v48 = vadd.f32 %v7973_v31, %v9425_v49 }
 0x448   :  { %10830 = vst [vmem:[#allocation31_spill] sm:$0xff] %v9480_v52 }
 0x449   :  { %739 = vrot.lane.b32.xlu0 %v9464_v15, %s8009_s26 }
 0x44c   :  { %v1254_v62 = vld [vmem:[#allocation2 + $0x14a] sm:$0xff] }
 0x44d   :  { %v1030_v38 = vld [vmem:[#allocation2 + $0x149] sm:$0xff] }
 0x44e   :  { %v1564_v44 = vpop.permute.xlu0 %1563  ;;  %v732_v6 = vpop.permute.xlu2 %731  ;;  %v1702_v40 = vld [vmem:[#allocation2 + $0x14c] sm:$0xff] }
 0x44f   :  { %1351 = vrot.lane.b32.xlu2 %v1254_v62, %s8010_s19  ;;  %v574_v60 = vpop.permute.xlu1 %573  ;;  %v800_v27 = vmax.f32 %v9353_v29, %v732_v6  ;;  %v1192_v62 = vadd.f32 %v7974_v10, %v1116_v4  ;;  %v1415_v6 = vadd.f32 %v1338_v57, %v1191_v48  ;;  %v1253_v4 = vld [vmem:[#allocation2 + $0x142] sm:$0xff]  ;;  %v2805_v57 = vpop.f32.mrf.mxu2 }
 0x450   :  { %v9473_v54 = vmax.f32 %v8973_v56, %v574_v60  ;;  %v9485_v56 = vpop.f32.mrf.mxu0  ;;  %v1477_v60 = vld [vmem:[#allocation2 + $0x143] sm:$0xff] }
 0x451   :  { %1127 = vrot.lane.b32.xlu0 %v1030_v38, %s8012_s21  ;;  %v863_v28 = vadd.f32 %v9267_v46, %v800_v27  ;;  %10832 = vst [vmem:[#allocation33_spill] sm:$0xff] %v9485_v56  ;;  %v1416_v49 = vadd.f32 %v9436_v13, %v1192_v62  ;;  %v1639_v52 = vadd.f32 %v1562_v35, %v1415_v6 }
 0x452   :  { %741 = vrot.lane.b32.xlu1 %v9473_v54, %s8009_s26 }
 0x453   :  { %v9489_v29 = vsel %vm815_vm0, %v863_v28, 0.0  ;;  %v1640_v10 = vadd.f32 %v1564_v44, %v1416_v49  ;;  %v9499_v28 = vpop.f32.mrf.mxu3 }
 0x454   :  { %975 = vst [vmem:[#allocation2 + $0x158] sm:$0xff] %v9489_v29 }
 0x455   :  { %10833 = vst [vmem:[#allocation34_spill] sm:$0xff] %v9499_v28  ;;  %v1864_v44 = vadd.f32 %v1788_v16, %v1640_v10  ;;  %v1478_v28 = vld [vmem:[#allocation2 + $0x14b] sm:$0xff] }
 0x456   :  { %v2010_v27 = vpop.permute.xlu0 %2009  ;;  %v9494_v31 = vpop.permute.xlu2 %1119  ;;  %v1925_v10 = vld [vmem:[#allocation2 + $0x145] sm:$0xff] }
 0x457   :  { %1573 = vrot.lane.b32.xlu2 %v1477_v60, %s8013_s23  ;;  %v1786_v38 = vpop.permute.xlu1 %1785 }
 0x458   :  { %v1863_v48 = vadd.f32 %v1786_v38, %v1639_v52 }
 0x459   :  { %583 = vrot.lane.b32.xlu0 %v9054_v30, %s8008_s12 }
 0x45a   :  { %1349 = vrot.lane.b32.xlu1 %v1253_v4, %s8010_s19  ;;  %v2087_v6 = vadd.f32 %v2010_v27, %v1863_v48 }
 0x45b   :  { %v2602_v21 = vpop.f32.mrf.mxu1 }
 0x45c   :  { %v9501_v60 = vadd.f32 %v2805_v57, %v2602_v21 }
 0x45d   :  { %v3727_v56 = vpop.f32.mrf.mxu0 }
 0x45e   :  { %v9504_v13 = vadd.f32 %v3727_v56, %v3346_v9  ;;  %v734_v35 = vpop.permute.xlu0 %733  ;;  %v576_v63 = vpop.permute.xlu2 %575 }
 0x45f   :  { %1799 = vrot.lane.b32.xlu2 %v1702_v40, %s8009_s26  ;;  %v2012_v62 = vpop.permute.xlu1 %2011  ;;  %v801_v49 = vmax.f32 %v9345_v47, %v734_v35  ;;  %v9516_v9 = vmax.f32 %v8993_v58, %v576_v63 }
 0x460   :  { %10834 = vst [vmem:[#allocation35_spill] sm:$0xff] %v9504_v13  ;;  %v2088_v4 = vadd.f32 %v2012_v62, %v1864_v44 }
 0x461   :  { %v864_v52 = vadd.f32 %v9267_v46, %v801_v49  ;;  %1575 = vrot.lane.b32.xlu0 %v1478_v28, %s8013_s23  ;;  %v1701_v28 = vld [vmem:[#allocation2 + $0x144] sm:$0xff] }
 0x462   :  { %v7849_v38 = vpack.c.bf16 %v2088_v4, %v2087_v6  ;;  %585 = vrot.lane.b32.xlu1 %v9065_v55, %s8008_s12  ;;  %v3238_v21 = vpop.f32.mrf.mxu3 }
 0x463   :  { %v9513_v40 = vsel %vm815_vm0, %v864_v52, 0.0  ;;  %v3348_v47 = vadd.f32 %v3238_v21, %v9445_v22  ;;  %v9524_v22 = vpop.f32.mrf.mxu2  ;;  %v9526_v44 = vpop.f32.mrf.mxu1  ;;  %v1926_v52 = vld [vmem:[#allocation2 + $0x14d] sm:$0xff] }
 0x464   :  { %7917 = vst [vmem:[#allocation3 + $0x88] sm:$0xff] %v7849_v38   ;;  %v7975_v38 = vld [vmem:[#allocation2 + $0x120] sm:$0xff] }
 0x465   :  { %976 = vst [vmem:[#allocation2 + $0x160] sm:$0xff] %v9513_v40  ;;  %v9529_v6 = vpop.f32.mrf.mxu0 }
 0x466   :  { %v1342_v16 = vpop.permute.xlu0 %1341  ;;  %v1568_v27 = vpop.permute.xlu2 %1567  ;;  %10835 = vst [vmem:[#allocation36_spill] sm:$0xff] %v9524_v22 }
 0x467   :  { %743 = vrot.lane.b32.xlu2 %v9516_v9, %s8009_s26  ;;  %v1118_v56 = vpop.permute.xlu1 %1117  ;;  %10836 = vst [vmem:[#allocation37_spill] sm:$0xff] %v9526_v44 }
 0x468   :  { %10837 = vst [vmem:[#allocation38_spill] sm:$0xff] %v9529_v6  ;;  %v1193_v21 = vadd.f32 %v7975_v38, %v1118_v56  ;;  %v1255_v38 = vld [vmem:[#allocation2 + $0x152] sm:$0xff] }
 0x469   :  { %2021 = vrot.lane.b32.xlu0 %v1925_v10, %s8011_s20 }
 0x46a   :  { %1797 = vrot.lane.b32.xlu1 %v1701_v28, %s8009_s26  ;;  %v9537_v10 = vpop.f32.mrf.mxu3  ;;  %v1417_v22 = vadd.f32 %v1342_v16, %v1193_v21 }
 0x46b   :  { %v7548_v57 = vld [vmem:[#allocation3 + $0x88] sm:$0xff]  ;;  %10838 = vst [vmem:[#allocation39_spill] sm:$0xff] %v9537_v10  ;;  %v2810_v28 = vpop.f32.mrf.mxu2 }
 0x46c   :  { %v7591_v48 = vld [vmem:[#allocation3 + $0x88] sm:$0xff]  ;;  %v1032_v63 = vld [vmem:[#allocation2 + $0x159] sm:$0xff]  ;;  %2626 = vmatmul.bf16.gmra.mxu1 %v7548_v57  ;;  %2834 = vmatmul.bf16.gmra.mxu2 %v7548_v57 }
 0x46d   :  { %v7626_v58 = vld [vmem:[#allocation3 + $0x88] sm:$0xff]  ;;  %3262 = vmatmul.bf16.gmra.mxu3 %v7591_v48 }
 0x46e   :  { %3751 = vmatmul.bf16.gmra.mxu0 %v7626_v58  ;;  %v578_v62 = vpop.permute.xlu0 %577  ;;  %v2014_v49 = vpop.permute.xlu2 %2013  ;;  %v1031_v10 = vld [vmem:[#allocation2 + $0x151] sm:$0xff] }
 0x46f   :  { %1131 = vrot.lane.b32.xlu2 %v1032_v63, %s8012_s21  ;;  %v1344_v35 = vpop.permute.xlu1 %1343  ;;  %v9532_v4 = vmax.f32 %v9007_v53, %v578_v62  ;;  %v7976_v63 = vld [vmem:[#allocation2 + $0x128] sm:$0xff] }
 0x470   :  { %v1194_v62 = vadd.f32 %v7976_v63, %v9494_v31  ;;  %v7718_v31 = vld [vmem:[%s10787_s3 + $0x170] sm:$0xff]  ;;  %v1256_v63 = vld [vmem:[#allocation2 + $0x15a] sm:$0xff] }
 0x471   :  { %745 = vrot.lane.b32.xlu0 %v9532_v4, %s8009_s26  ;;  %4662 = vmatpush.bf16.msrb.mxu2 %v7718_v31 }
 0x472   :  { %2023 = vrot.lane.b32.xlu1 %v1926_v52, %s8011_s20  ;;  %v1418_v13 = vadd.f32 %v1344_v35, %v1194_v62 }
 0x474   :  { %v1642_v35 = vadd.f32 %v1568_v27, %v1418_v13 }
 0x475   :  { %v2607_v57 = vpop.f32.mrf.mxu1 }
 0x476   :  { %v9541_v48 = vadd.f32 %v2810_v28, %v2607_v57  ;;  %v1790_v53 = vpop.permute.xlu0 %1789  ;;  %v738_v44 = vpop.permute.xlu2 %737 }
 0x477   :  { %587 = vrot.lane.b32.xlu2 %v9084_v0, %s8008_s12  ;;  %v1566_v58 = vpop.permute.xlu1 %1565  ;;  %v3732_v6 = vpop.f32.mrf.mxu0  ;;  %v803_v52 = vmax.f32 %v9402_v5, %v738_v44 }
 0x478   :  { %v9545_v56 = vadd.f32 %v3732_v6, %v3348_v47  ;;  %v1641_v2 = vadd.f32 %v1566_v58, %v1417_v22  ;;  %v1703_v47 = vld [vmem:[#allocation2 + $0x154] sm:$0xff] }
 0x479   :  { %1353 = vrot.lane.b32.xlu0 %v1255_v38, %s8010_s19  ;;  %v866_v28 = vadd.f32 %v9267_v46, %v803_v52  ;;  %v1479_v58 = vld [vmem:[#allocation2 + $0x153] sm:$0xff]  ;;  %v1928_v38 = vld [vmem:[#allocation2 + $0x15d] sm:$0xff] }
 0x47a   :  { %1129 = vrot.lane.b32.xlu1 %v1031_v10, %s8012_s21  ;;  %v1865_v22 = vadd.f32 %v1790_v53, %v1641_v2  ;;  %v7682_v2 = vld [vmem:[%s10787_s3 + $0x130] sm:$0xff] }
 0x47b   :  { %v9555_v16 = vsel %vm815_vm0, %v866_v28, 0.0  ;;  %4168 = vmatpush.bf16.msrb.mxu1 %v7682_v2 }
 0x47c   :  { %v3243_v5 = vpop.f32.mrf.mxu3  ;;  %978 = vst [vmem:[#allocation2 + $0x170] sm:$0xff] %v9555_v16  ;;  %v2089_v62 = vadd.f32 %v2014_v49, %v1865_v22  ;;  %v1480_v22 = vld [vmem:[#allocation2 + $0x15b] sm:$0xff] }
 0x47d   :  { %v3350_v44 = vadd.f32 %v3243_v5, %v9501_v60  ;;  %v9567_v60 = vpop.f32.mrf.mxu2  ;;  %v9569_v13 = vpop.f32.mrf.mxu1 }
 0x47e   :  { %v2016_v21 = vpop.permute.xlu0 %2015  ;;  %v9560_v57 = vpop.permute.xlu2 %1345  ;;  %10839 = vst [vmem:[#allocation40_spill] sm:$0xff] %v9567_v60 }
 0x47f   :  { %1801 = vrot.lane.b32.xlu2 %v1703_v47, %s8009_s26  ;;  %v1792_v6 = vpop.permute.xlu1 %1791  ;;  %10840 = vst [vmem:[#allocation41_spill] sm:$0xff] %v9569_v13  ;;  %v9571_v53 = vpop.f32.mrf.mxu0  ;;  %v1704_v47 = vld [vmem:[#allocation2 + $0x15c] sm:$0xff] }
 0x480   :  { %v1866_v10 = vadd.f32 %v1792_v6, %v1642_v35 }
 0x481   :  { %1577 = vrot.lane.b32.xlu0 %v1479_v58, %s8013_s23 }
 0x482   :  { %v2090_v52 = vadd.f32 %v2016_v21, %v1866_v10  ;;  %1355 = vrot.lane.b32.xlu1 %v1256_v63, %s8010_s19 }
 0x484   :  { %v7854_v27 = vpack.c.bf16 %v2090_v52, %v2089_v62  ;;  %v9575_v35 = vpop.f32.mrf.mxu3 }
 0x485   :  { %10841 = vst [vmem:[#allocation42_spill] sm:$0xff] %v9575_v35  ;;  %v2815_v21 = vpop.f32.mrf.mxu2 }
 0x486   :  { %7918 = vst [vmem:[#allocation3 + $0x90] sm:$0xff] %v7854_v27   ;;  %v1122_v28 = vpop.permute.xlu0 %1121  ;;  %v582_v5 = vpop.permute.xlu2 %581 }
 0x487   :  { %2027 = vrot.lane.b32.xlu2 %v1928_v38, %s8011_s20  ;;  %v736_v49 = vpop.permute.xlu1 %735 }
 0x488   :  { %v802_v31 = vmax.f32 %v9388_v59, %v736_v49 }
 0x489   :  { %1803 = vrot.lane.b32.xlu0 %v1704_v47, %s8009_s26 }
 0x48a   :  { %v865_v6 = vadd.f32 %v9267_v46, %v802_v31  ;;  %1579 = vrot.lane.b32.xlu1 %v1480_v22, %s8013_s23  ;;  %v2612_v10 = vpop.f32.mrf.mxu1  ;;  %v1927_v31 = vld [vmem:[#allocation2 + $0x155] sm:$0xff] }
 0x48b   :  { %v9584_v63 = vadd.f32 %v2815_v21, %v2612_v10 }
 0x48c   :  { %v9582_v58 = vsel %vm815_vm0, %v865_v6, 0.0  ;;  %v3737_v59 = vpop.f32.mrf.mxu0 }
 0x48d   :  { %977 = vst [vmem:[#allocation2 + $0x168] sm:$0xff] %v9582_v58  ;;  %v7549_v62 = vld [vmem:[#allocation3 + $0x90] sm:$0xff]  ;;  %v9587_v27 = vadd.f32 %v3737_v59, %v3350_v44  ;;  %v9593_v44 = vmax.f32 %v9035_v1, %v582_v5  ;;  %v9608_v35 = vpop.f32.mrf.mxu2 }
 0x48e   :  { %v7592_v52 = vld [vmem:[#allocation3 + $0x90] sm:$0xff]  ;;  %v1348_v38 = vpop.permute.xlu0 %1347  ;;  %2631 = vmatmul.bf16.gmra.mxu1 %v7549_v62  ;;  %2839 = vmatmul.bf16.gmra.mxu2 %v7549_v62  ;;  %v1794_v49 = vpop.permute.xlu2 %1793  ;;  %10843 = vst [vmem:[#allocation44_spill] sm:$0xff] %v9608_v35 }
 0x48f   :  { %v7627_v2 = vld [vmem:[#allocation3 + $0x90] sm:$0xff]  ;;  %10842 = vst [vmem:[#allocation43_spill] sm:$0xff] %v9587_v27  ;;  %v1124_v46 = vpop.permute.xlu1 %1123  ;;  %3267 = vmatmul.bf16.gmra.mxu3 %v7592_v52 }
 0x490   :  { %3756 = vmatmul.bf16.gmra.mxu0 %v7627_v2  ;;  %v7977_v52 = vld [vmem:[#allocation2 + $0x138] sm:$0xff] }
 0x491   :  { %v3248_v47 = vpop.f32.mrf.mxu3  ;;  %v1196_v2 = vadd.f32 %v7977_v52, %v1124_v46 }
 0x492   :  { %2025 = vrot.lane.b32.xlu1 %v1927_v31, %s8011_s20  ;;  %v3352_v22 = vadd.f32 %v3248_v47, %v9541_v48  ;;  %v7978_v48 = vld [vmem:[#allocation2 + $0x130] sm:$0xff] }
 0x493   :  { %v1195_v31 = vadd.f32 %v7978_v48, %v1122_v28  ;;  %v1420_v1 = vadd.f32 %v1348_v38, %v1196_v2  ;;  %v9610_v28 = vpop.f32.mrf.mxu1 }
 0x494   :  { %v1033_v6 = vld [vmem:[#allocation2 + $0x161] sm:$0xff]  ;;  %v1258_v47 = vld [vmem:[#allocation2 + $0x16a] sm:$0xff]  ;;  %10844 = vst [vmem:[#allocation45_spill] sm:$0xff] %v9610_v28  ;;  %v9612_v2 = vpop.f32.mrf.mxu0 }
 0x495   :  { %1133 = vrot.lane.b32.xlu2 %v1033_v6, %s8012_s21  ;;  %v1034_v60 = vld [vmem:[#allocation2 + $0x169] sm:$0xff]  ;;  %10845 = vst [vmem:[#allocation46_spill] sm:$0xff] %v9612_v2 }
 0x496   :  { %v2020_v59 = vpop.permute.xlu2 %2019  ;;  %v1570_v62 = vpop.permute.xlu0 %1569  ;;  %v1257_v46 = vld [vmem:[#allocation2 + $0x162] sm:$0xff]  ;;  %v1930_v35 = vld [vmem:[#allocation2 + $0x16d] sm:$0xff] }
 0x497   :  { %v580_v21 = vpop.permute.xlu1 %579  ;;  %v1705_v38 = vld [vmem:[#allocation2 + $0x164] sm:$0xff] }
 0x498   :  { %v9596_v10 = vmax.f32 %v9022_v26, %v580_v21  ;;  %v1419_v26 = vadd.f32 %v9560_v57, %v1195_v31 }
 0x49a   :  { %747 = vrot.lane.b32.xlu0 %v9596_v10, %s8009_s26  ;;  %749 = vrot.lane.b32.xlu1 %v9593_v44, %s8009_s26  ;;  %v1643_v52 = vadd.f32 %v1570_v62, %v1419_v26 }
 0x49c   :  { %v1867_v57 = vadd.f32 %v1794_v49, %v1643_v52 }
 0x49d   :  { %1359 = vrot.lane.b32.xlu2 %v1258_v47, %s8010_s19 }
 0x49e   :  { %v1796_v13 = vpop.permute.xlu0 %1795 }
 0x49f   :  { %v1572_v5 = vpop.permute.xlu1 %1571 }
 0x4a0   :  { %v1644_v6 = vadd.f32 %v1572_v5, %v1420_v1  ;;  %v1482_v5 = vld [vmem:[#allocation2 + $0x16b] sm:$0xff] }
 0x4a1   :  { %v9604_v21 = vpop.permute.xlu2 %1125 }
 0x4a2   :  { %1135 = vrot.lane.b32.xlu0 %v1034_v60, %s8012_s21  ;;  %1357 = vrot.lane.b32.xlu1 %v1257_v46, %s8010_s19  ;;  %v1868_v48 = vadd.f32 %v1796_v13, %v1644_v6  ;;  %v1481_v60 = vld [vmem:[#allocation2 + $0x163] sm:$0xff]  ;;  %v9619_v46 = vpop.f32.mrf.mxu3  ;;  %v2820_v13 = vpop.f32.mrf.mxu2 }
 0x4a3   :  { %10846 = vst [vmem:[#allocation47_spill] sm:$0xff] %v9619_v46 }
 0x4a4   :  { %v2092_v1 = vadd.f32 %v2020_v59, %v1868_v48  ;;  %v1706_v48 = vld [vmem:[#allocation2 + $0x16c] sm:$0xff] }
 0x4a5   :  { %1805 = vrot.lane.b32.xlu2 %v1705_v38, %s8009_s26 }
 0x4a7   :  { %v2018_v31 = vpop.permute.xlu1 %2017 }
 0x4a8   :  { %v2091_v47 = vadd.f32 %v2018_v31, %v1867_v57  ;;  %v1929_v57 = vld [vmem:[#allocation2 + $0x165] sm:$0xff] }
 0x4a9   :  { %v9615_v62 = vpop.permute.xlu2 %1351 }
 0x4aa   :  { %v7859_v26 = vpack.c.bf16 %v2092_v1, %v2091_v47  ;;  %1581 = vrot.lane.b32.xlu0 %v1481_v60, %s8013_s23  ;;  %1583 = vrot.lane.b32.xlu1 %v1482_v5, %s8013_s23 }
 0x4ab   :  { %v2617_v6 = vpop.f32.mrf.mxu1 }
 0x4ac   :  { %7919 = vst [vmem:[#allocation3 + $0x98] sm:$0xff] %v7859_v26   ;;  %v2821_v38 = vadd.f32 %v2820_v13, %v2617_v6  ;;  %v7681_v26 = vld [vmem:[%s10787_s3 + $0x128] sm:$0xff]  ;;  %v9637_v13 = vpop.f32.mrf.mxu2 }
 0x4ad   :  { %2031 = vrot.lane.b32.xlu2 %v1930_v35, %s8011_s20  ;;  %v3742_v49 = vpop.f32.mrf.mxu0  ;;  %v7717_v35 = vld [vmem:[%s10787_s3 + $0x168] sm:$0xff]  ;;  %10848 = vst [vmem:[#allocation49_spill] sm:$0xff] %v9637_v13  ;;  %4169 = vmatpush.bf16.msrb.mxu1 %v7681_v26 }
 0x4ae   :  { %v9622_v59 = vadd.f32 %v3742_v49, %v3352_v22  ;;  %4663 = vmatpush.bf16.msrb.mxu2 %v7717_v35 }
 0x4b0   :  { %10847 = vst [vmem:[#allocation48_spill] sm:$0xff] %v9622_v59 }
 0x4b1   :  { %v9624_v52 = vpop.permute.xlu2 %1573 }
 0x4b2   :  { %1807 = vrot.lane.b32.xlu0 %v1706_v48, %s8009_s26  ;;  %2029 = vrot.lane.b32.xlu1 %v1929_v57, %s8011_s20  ;;  %v3253_v31 = vpop.f32.mrf.mxu3  ;;  %v9647_v57 = vld [vmem:[%s10786_s2] ss:$0 sm:$0xff] }
 0x4b3   :  { %v7550_v47 = vld [vmem:[#allocation3 + $0x98] sm:$0xff]  ;;  %v3354_v5 = vadd.f32 %v3253_v31, %v9584_v63  ;;  %v9639_v6 = vpop.f32.mrf.mxu1 }
 0x4b4   :  { %v7593_v1 = vld [vmem:[#allocation3 + $0x98] sm:$0xff]  ;;  %2636 = vmatmul.bf16.gmra.mxu1 %v7550_v47  ;;  %2844 = vmatmul.bf16.gmra.mxu2 %v7550_v47  ;;  %10849 = vst [vmem:[#allocation50_spill] sm:$0xff] %v9639_v6  ;;  %v2825_v26 = vpop.f32.mrf.mxu2 }
 0x4b5   :  { %v7628_v60 = vld [vmem:[#allocation3 + $0x98] sm:$0xff]  ;;  %3272 = vmatmul.bf16.gmra.mxu3 %v7593_v1  ;;  %v9641_v63 = vpop.f32.mrf.mxu0 }
 0x4b6   :  { %3761 = vmatmul.bf16.gmra.mxu0 %v7628_v60  ;;  %10850 = vst [vmem:[#allocation51_spill] sm:$0xff] %v9641_v63 }
 0x4b9   :  { %v9632_v22 = vpop.permute.xlu2 %1799 }
 0x4ba   :  { %v9650_v1 = vpop.f32.mrf.mxu3 }
 0x4bb   :  { %v740_v49 = vpop.permute.xlu0 %739  ;;  %10851 = vst [vmem:[#allocation52_spill] sm:$0xff] %v9650_v1 }
 0x4bc   :  { %v804_v48 = vmax.f32 %v9464_v15, %v740_v49 }
 0x4be   :  { %v867_v31 = vadd.f32 %v9647_v57, %v804_v48 }
 0x4c0   :  { %v9654_v60 = vsel %vm815_vm0, %v867_v31, 0.0 }
 0x4c1   :  { %v744_v47 = vpop.permute.xlu2 %743  ;;  %979 = vst [vmem:[#allocation2 + $0x178] sm:$0xff] %v9654_v60  ;;  %v2622_v15 = vpop.f32.mrf.mxu1 }
 0x4c2   :  { %v806_v35 = vmax.f32 %v9516_v9, %v744_v47  ;;  %v9659_v13 = vadd.f32 %v2825_v26, %v2622_v15 }
 0x4c3   :  { %v3747_v6 = vpop.f32.mrf.mxu0  ;;  %v1128_v28 = vpop.permute.xlu0 %1127 }
 0x4c4   :  { %v869_v49 = vadd.f32 %v9647_v57, %v806_v35  ;;  %v9665_v1 = vadd.f32 %v3747_v6, %v3354_v5  ;;  %v742_v31 = vpop.permute.xlu1 %741 }
 0x4c5   :  { %v805_v9 = vmax.f32 %v9473_v54, %v742_v31 }
 0x4c6   :  { %v9663_v48 = vsel %vm815_vm0, %v869_v49, 0.0  ;;  %10852 = vst [vmem:[#allocation53_spill] sm:$0xff] %v9665_v1 }
 0x4c7   :  { %981 = vst [vmem:[#allocation2 + $0x188] sm:$0xff] %v9663_v48  ;;  %v868_v47 = vadd.f32 %v9647_v57, %v805_v9 }
 0x4c8   :  { %v3258_v63 = vpop.f32.mrf.mxu3  ;;  %v1035_v46 = vld [vmem:[#allocation2 + $0x171] sm:$0xff] }
 0x4c9   :  { %v9672_v35 = vsel %vm815_vm0, %v868_v47, 0.0  ;;  %v3356_v26 = vadd.f32 %v3258_v63, %v2821_v38  ;;  %1137 = vrot.lane.b32.xlu2 %v1035_v46, %s8012_s21  ;;  %v7980_v46 = vld [vmem:[#allocation2 + $0x140] sm:$0xff]  ;;  %v1198_v63 = vadd.f32 %v1128_v28, %v9443_v39  ;;  %v1707_v47 = vld [vmem:[#allocation2 + $0x174] sm:$0xff]  ;;  %v1132_v59 = vpop.permute.xlu2 %1131  ;;  %v9697_v39 = vpop.f32.mrf.mxu1 }
 0x4ca   :  { %980 = vst [vmem:[#allocation2 + $0x180] sm:$0xff] %v9672_v35 }
 0x4cb   :  { %v584_v5 = vpop.permute.xlu0 %583  ;;  %10854 = vst [vmem:[#allocation55_spill] sm:$0xff] %v9697_v39 }
 0x4cc   :  { %v1350_v6 = vpop.permute.xlu1 %1349  ;;  %v9677_v15 = vmax.f32 %v9054_v30, %v584_v5  ;;  %v1197_v30 = vadd.f32 %v7980_v46, %v9604_v21  ;;  %v9695_v21 = vpop.f32.mrf.mxu2 }
 0x4cd   :  { %10853 = vst [vmem:[#allocation54_spill] sm:$0xff] %v9695_v21  ;;  %v9700_v46 = vpop.f32.mrf.mxu0 }
 0x4ce   :  { %751 = vrot.lane.b32.xlu0 %v9677_v15, %s8009_s26  ;;  %v1421_v5 = vadd.f32 %v1350_v6, %v1197_v30 }
 0x4d0   :  { %v1645_v27 = vadd.f32 %v9624_v52, %v1421_v5 }
 0x4d1   :  { %v1260_v54 = vld [vmem:[#allocation2 + $0x17a] sm:$0xff] }
 0x4d2   :  { %1363 = vrot.lane.b32.xlu2 %v1260_v54, %s8010_s19  ;;  %v1036_v38 = vld [vmem:[#allocation2 + $0x179] sm:$0xff] }
 0x4d3   :  { %v1576_v49 = vpop.permute.xlu0 %1575  ;;  %v1932_v6 = vld [vmem:[#allocation2 + $0x17d] sm:$0xff] }
 0x4d4   :  { %v586_v31 = vpop.permute.xlu1 %585  ;;  %v1708_v5 = vld [vmem:[#allocation2 + $0x17c] sm:$0xff] }
 0x4d5   :  { %v9683_v9 = vmax.f32 %v9065_v55, %v586_v31  ;;  %v1422_v55 = vadd.f32 %v9615_v62, %v1198_v63  ;;  %v1483_v31 = vld [vmem:[#allocation2 + $0x173] sm:$0xff] }
 0x4d6   :  { %1139 = vrot.lane.b32.xlu0 %v1036_v38, %s8012_s21  ;;  %v1259_v38 = vld [vmem:[#allocation2 + $0x172] sm:$0xff] }
 0x4d7   :  { %753 = vrot.lane.b32.xlu1 %v9683_v9, %s8009_s26  ;;  %v1646_v2 = vadd.f32 %v1576_v49, %v1422_v55 }
 0x4d9   :  { %v1870_v30 = vadd.f32 %v9632_v22, %v1646_v2 }
 0x4da   :  { %1809 = vrot.lane.b32.xlu2 %v1707_v47, %s8009_s26 }
 0x4db   :  { %v2022_v54 = vpop.permute.xlu0 %2021 }
 0x4dc   :  { %v1798_v1 = vpop.permute.xlu1 %1797 }
 0x4dd   :  { %v1869_v28 = vadd.f32 %v1798_v1, %v1645_v27  ;;  %v2830_v1 = vpop.f32.mrf.mxu2 }
 0x4de   :  { %1585 = vrot.lane.b32.xlu0 %v1483_v31, %s8013_s23  ;;  %v1484_v31 = vld [vmem:[#allocation2 + $0x17b] sm:$0xff] }
 0x4df   :  { %1361 = vrot.lane.b32.xlu1 %v1259_v38, %s8010_s19  ;;  %v2093_v47 = vadd.f32 %v2022_v54, %v1869_v28  ;;  %v9707_v38 = vpop.f32.mrf.mxu3  ;;  %v7716_v54 = vld [vmem:[%s10787_s3 + $0x160] sm:$0xff] }
 0x4e0   :  { %10855 = vst [vmem:[#allocation56_spill] sm:$0xff] %v9707_v38  ;;  %4664 = vmatpush.bf16.msrb.mxu2 %v7716_v54 }
 0x4e2   :  { %2035 = vrot.lane.b32.xlu2 %v1932_v6, %s8011_s20 }
 0x4e3   :  { %v746_v62 = vpop.permute.xlu0 %745 }
 0x4e4   :  { %v807_v63 = vmax.f32 %v9532_v4, %v746_v62  ;;  %v2024_v49 = vpop.permute.xlu1 %2023  ;;  %v588_v4 = vpop.permute.xlu2 %587 }
 0x4e5   :  { %v2094_v52 = vadd.f32 %v2024_v49, %v1870_v30  ;;  %v9720_v62 = vmax.f32 %v9084_v0, %v588_v4 }
 0x4e6   :  { %v870_v55 = vadd.f32 %v9647_v57, %v807_v63  ;;  %1811 = vrot.lane.b32.xlu0 %v1708_v5, %s8009_s26 }
 0x4e7   :  { %v7864_v27 = vpack.c.bf16 %v2094_v52, %v2093_v47  ;;  %1587 = vrot.lane.b32.xlu1 %v1484_v31, %s8013_s23  ;;  %v1931_v47 = vld [vmem:[#allocation2 + $0x175] sm:$0xff] }
 0x4e8   :  { %v9711_v2 = vsel %vm815_vm0, %v870_v55, 0.0 }
 0x4e9   :  { %982 = vst [vmem:[#allocation2 + $0x190] sm:$0xff] %v9711_v2  ;;  %v2627_v22 = vpop.f32.mrf.mxu1 }
 0x4ea   :  { %7920 = vst [vmem:[#allocation3 + $0xa0] sm:$0xff] %v7864_v27   ;;  %v9717_v28 = vadd.f32 %v2830_v1, %v2627_v22  ;;  %v1261_v22 = vld [vmem:[#allocation2 + $0x182] sm:$0xff] }
 0x4eb   :  { %v3752_v6 = vpop.f32.mrf.mxu0  ;;  %v1354_v63 = vpop.permute.xlu0 %1353 }
 0x4ec   :  { %v9722_v30 = vadd.f32 %v3752_v6, %v3356_v26  ;;  %v1130_v49 = vpop.permute.xlu1 %1129  ;;  %v7680_v26 = vld [vmem:[%s10787_s3 + $0x120] sm:$0xff]  ;;  %v1802_v4 = vpop.permute.xlu2 %1801 }
 0x4ed   :  { %4170 = vmatpush.bf16.msrb.mxu1 %v7680_v26  ;;  %v1037_v6 = vld [vmem:[#allocation2 + $0x181] sm:$0xff] }
 0x4ee   :  { %10856 = vst [vmem:[#allocation57_spill] sm:$0xff] %v9722_v30  ;;  %755 = vrot.lane.b32.xlu0 %v9720_v62, %s8009_s26 }
 0x4ef   :  { %2033 = vrot.lane.b32.xlu1 %v1931_v47, %s8011_s20  ;;  %v1200_v47 = vadd.f32 %v1132_v59, %v9489_v29 }
 0x4f0   :  { %v3263_v52 = vpop.f32.mrf.mxu3  ;;  %v1038_v5 = vld [vmem:[#allocation2 + $0x189] sm:$0xff] }
 0x4f1   :  { %v3358_v55 = vadd.f32 %v3263_v52, %v9659_v13  ;;  %1143 = vrot.lane.b32.xlu2 %v1038_v5, %s8012_s21  ;;  %v7551_v31 = vld [vmem:[#allocation3 + $0xa0] sm:$0xff]  ;;  %v1199_v52 = vadd.f32 %v1130_v49, %v9456_v32  ;;  %v9740_v32 = vpop.f32.mrf.mxu2  ;;  %v9742_v29 = vpop.f32.mrf.mxu1 }
 0x4f2   :  { %v7594_v27 = vld [vmem:[#allocation3 + $0xa0] sm:$0xff]  ;;  %2641 = vmatmul.bf16.gmra.mxu1 %v7551_v31  ;;  %2849 = vmatmul.bf16.gmra.mxu2 %v7551_v31  ;;  %10857 = vst [vmem:[#allocation58_spill] sm:$0xff] %v9740_v32 }
 0x4f3   :  { %v7629_v0 = vld [vmem:[#allocation3 + $0xa0] sm:$0xff]  ;;  %3277 = vmatmul.bf16.gmra.mxu3 %v7594_v27  ;;  %v1578_v54 = vpop.permute.xlu0 %1577  ;;  %v1423_v27 = vadd.f32 %v1354_v63, %v1199_v52  ;;  %10858 = vst [vmem:[#allocation59_spill] sm:$0xff] %v9742_v29  ;;  %v9744_v63 = vpop.f32.mrf.mxu0 }
 0x4f4   :  { %3766 = vmatmul.bf16.gmra.mxu0 %v7629_v0  ;;  %v1356_v1 = vpop.permute.xlu1 %1355  ;;  %v1485_v13 = vld [vmem:[#allocation2 + $0x183] sm:$0xff]  ;;  %v1486_v21 = vld [vmem:[#allocation2 + $0x18b] sm:$0xff]  ;;  %v2028_v26 = vpop.permute.xlu2 %2027 }
 0x4f5   :  { %v1424_v5 = vadd.f32 %v1356_v1, %v1200_v47  ;;  %v1262_v39 = vld [vmem:[#allocation2 + $0x18a] sm:$0xff]  ;;  %v1647_v38 = vadd.f32 %v1578_v54, %v1423_v27 }
 0x4f6   :  { %1365 = vrot.lane.b32.xlu0 %v1261_v22, %s8010_s19  ;;  %v1709_v47 = vld [vmem:[#allocation2 + $0x184] sm:$0xff] }
 0x4f7   :  { %1141 = vrot.lane.b32.xlu1 %v1037_v6, %s8012_s21  ;;  %v1710_v6 = vld [vmem:[#allocation2 + $0x18c] sm:$0xff]  ;;  %v1871_v59 = vadd.f32 %v1802_v4, %v1647_v38 }
 0x4f9   :  { %1589 = vrot.lane.b32.xlu2 %v1485_v13, %s8013_s23  ;;  %v2835_v52 = vpop.f32.mrf.mxu2 }
 0x4fb   :  { %v1804_v22 = vpop.permute.xlu0 %1803 }
 0x4fc   :  { %v1580_v31 = vpop.permute.xlu1 %1579 }
 0x4fd   :  { %v1648_v0 = vadd.f32 %v1580_v31, %v1424_v5  ;;  %v9748_v5 = vpop.f32.mrf.mxu3 }
 0x4fe   :  { %1591 = vrot.lane.b32.xlu0 %v1486_v21, %s8013_s23  ;;  %v1933_v21 = vld [vmem:[#allocation2 + $0x185] sm:$0xff] }
 0x4ff   :  { %1367 = vrot.lane.b32.xlu1 %v1262_v39, %s8010_s19  ;;  %v1872_v30 = vadd.f32 %v1804_v22, %v1648_v0  ;;  %v1134_v39 = vpop.permute.xlu2 %1133 }
 0x501   :  { %1815 = vrot.lane.b32.xlu2 %v1710_v6, %s8009_s26  ;;  %v2096_v13 = vadd.f32 %v2028_v26, %v1872_v30 }
 0x504   :  { %v2026_v49 = vpop.permute.xlu1 %2025 }
 0x505   :  { %v2095_v1 = vadd.f32 %v2026_v49, %v1871_v59  ;;  %v1934_v59 = vld [vmem:[#allocation2 + $0x18d] sm:$0xff] }
 0x506   :  { %2037 = vrot.lane.b32.xlu0 %v1933_v21, %s8011_s20 }
 0x507   :  { %v7869_v54 = vpack.c.bf16 %v2096_v13, %v2095_v1  ;;  %1813 = vrot.lane.b32.xlu1 %v1709_v47, %s8009_s26  ;;  %v1360_v47 = vpop.permute.xlu2 %1359 }
 0x509   :  { %7921 = vst [vmem:[#allocation3 + $0xa8] sm:$0xff] %v7869_v54  }
 0x50b   :  { %v2632_v27 = vpop.f32.mrf.mxu1 }
 0x50c   :  { %v748_v31 = vpop.permute.xlu0 %747  ;;  %v750_v4 = vpop.permute.xlu1 %749  ;;  %v9751_v0 = vadd.f32 %v2835_v52, %v2632_v27 }
 0x50d   :  { %v808_v38 = vmax.f32 %v9596_v10, %v748_v31  ;;  %v3757_v30 = vpop.f32.mrf.mxu0  ;;  %v809_v26 = vmax.f32 %v9593_v44, %v750_v4 }
 0x50e   :  { %v9754_v22 = vadd.f32 %v3757_v30, %v3358_v55 }
 0x50f   :  { %v871_v6 = vadd.f32 %v9647_v57, %v808_v38  ;;  %v872_v49 = vadd.f32 %v9647_v57, %v809_v26  ;;  %2039 = vrot.lane.b32.xlu1 %v1934_v59, %s8011_s20  ;;  %v1806_v30 = vpop.permute.xlu2 %1805 }
 0x510   :  { %v7552_v10 = vld [vmem:[#allocation3 + $0xa8] sm:$0xff] }
 0x511   :  { %v9761_v1 = vsel %vm815_vm0, %v871_v6, 0.0  ;;  %v7595_v13 = vld [vmem:[#allocation3 + $0xa8] sm:$0xff]  ;;  %v9766_v44 = vsel %vm815_vm0, %v872_v49, 0.0  ;;  %2646 = vmatmul.bf16.gmra.mxu1 %v7552_v10  ;;  %2854 = vmatmul.bf16.gmra.mxu2 %v7552_v10  ;;  %v1201_v6 = vadd.f32 %v1134_v39, %v9513_v40 }
 0x512   :  { %v7630_v21 = vld [vmem:[#allocation3 + $0xa8] sm:$0xff]  ;;  %983 = vst [vmem:[#allocation2 + $0x198] sm:$0xff] %v9761_v1  ;;  %v3268_v55 = vpop.f32.mrf.mxu3  ;;  %3282 = vmatmul.bf16.gmra.mxu3 %v7595_v13 }
 0x513   :  { %984 = vst [vmem:[#allocation2 + $0x1a0] sm:$0xff] %v9766_v44  ;;  %v9770_v54 = vadd.f32 %v3268_v55, %v9717_v28  ;;  %3771 = vmatmul.bf16.gmra.mxu0 %v7630_v21 }
 0x514   :  { %v1136_v52 = vpop.permute.xlu0 %1135  ;;  %v1358_v31 = vpop.permute.xlu1 %1357 }
 0x515   :  { %v1202_v28 = vadd.f32 %v1136_v52, %v9582_v58  ;;  %v1425_v49 = vadd.f32 %v1358_v31, %v1201_v6  ;;  %v7679_v31 = vld [vmem:[%s10787_s3 + $0x118] sm:$0xff] }
 0x516   :  { %4171 = vmatpush.bf16.msrb.mxu1 %v7679_v31 }
 0x517   :  { %v1426_v13 = vadd.f32 %v1360_v47, %v1202_v28  ;;  %v2032_v39 = vpop.permute.xlu2 %2031  ;;  %v7715_v47 = vld [vmem:[%s10787_s3 + $0x158] sm:$0xff] }
 0x518   :  { %4665 = vmatpush.bf16.msrb.mxu2 %v7715_v47 }
 0x519   :  { %v1263_v27 = vld [vmem:[#allocation2 + $0x192] sm:$0xff] }
 0x51a   :  { %v1039_v38 = vld [vmem:[#allocation2 + $0x191] sm:$0xff]  ;;  %1369 = vrot.lane.b32.xlu1 %v1263_v27, %s8010_s19  ;;  %v1040_v4 = vld [vmem:[#allocation2 + $0x199] sm:$0xff] }
 0x51b   :  { %1145 = vrot.lane.b32.xlu2 %v1039_v38, %s8012_s21  ;;  %1147 = vrot.lane.b32.xlu0 %v1040_v4, %s8012_s21  ;;  %v1488_v21 = vld [vmem:[#allocation2 + $0x19b] sm:$0xff]  ;;  %v1487_v27 = vld [vmem:[#allocation2 + $0x193] sm:$0xff] }
 0x51c   :  { %v1582_v26 = vpop.permute.xlu0 %1581  ;;  %v1584_v59 = vpop.permute.xlu1 %1583  ;;  %v1264_v55 = vld [vmem:[#allocation2 + $0x19a] sm:$0xff] }
 0x51d   :  { %v1649_v10 = vadd.f32 %v1582_v26, %v1425_v49  ;;  %v1650_v38 = vadd.f32 %v1584_v59, %v1426_v13  ;;  %v1935_v6 = vld [vmem:[#allocation2 + $0x195] sm:$0xff]  ;;  %v9786_v59 = vpop.f32.mrf.mxu2  ;;  %v9788_v49 = vpop.f32.mrf.mxu1 }
 0x51e   :  { %v1711_v28 = vld [vmem:[#allocation2 + $0x194] sm:$0xff]  ;;  %10859 = vst [vmem:[#allocation60_spill] sm:$0xff] %v9786_v59 }
 0x51f   :  { %v1873_v40 = vadd.f32 %v1806_v30, %v1649_v10  ;;  %v1936_v30 = vld [vmem:[#allocation2 + $0x19d] sm:$0xff] }
 0x522   :  { %1595 = vrot.lane.b32.xlu1 %v1488_v21, %s8013_s23 }
 0x523   :  { %1371 = vrot.lane.b32.xlu2 %v1264_v55, %s8010_s19  ;;  %1593 = vrot.lane.b32.xlu0 %v1487_v27, %s8013_s23 }
 0x524   :  { %v1808_v4 = vpop.permute.xlu0 %1807  ;;  %v2030_v29 = vpop.permute.xlu1 %2029 }
 0x525   :  { %v1874_v32 = vadd.f32 %v1808_v4, %v1650_v38  ;;  %v2097_v52 = vadd.f32 %v2030_v29, %v1873_v40  ;;  %v9793_v29 = vpop.f32.mrf.mxu3  ;;  %v2840_v10 = vpop.f32.mrf.mxu2 }
 0x527   :  { %v2098_v58 = vadd.f32 %v2032_v39, %v1874_v32  ;;  %v1712_v32 = vld [vmem:[#allocation2 + $0x19c] sm:$0xff]  ;;  %v1138_v39 = vpop.permute.xlu2 %1137 }
 0x529   :  { %v7874_v26 = vpack.c.bf16 %v2098_v58, %v2097_v52 }
 0x52a   :  { %2041 = vrot.lane.b32.xlu1 %v1935_v6, %s8011_s20 }
 0x52b   :  { %1817 = vrot.lane.b32.xlu2 %v1711_v28, %s8009_s26  ;;  %7922 = vst [vmem:[#allocation3 + $0xb0] sm:$0xff] %v7874_v26   ;;  %1819 = vrot.lane.b32.xlu0 %v1712_v32, %s8009_s26 }
 0x52f   :  { %v1364_v26 = vpop.permute.xlu2 %1363 }
 0x531   :  { %v2637_v13 = vpop.f32.mrf.mxu1 }
 0x532   :  { %v7553_v21 = vld [vmem:[#allocation3 + $0xb0] sm:$0xff]  ;;  %v9796_v38 = vadd.f32 %v2840_v10, %v2637_v13 }
 0x533   :  { %2043 = vrot.lane.b32.xlu2 %v1936_v30, %s8011_s20  ;;  %v7596_v55 = vld [vmem:[#allocation3 + $0xb0] sm:$0xff]  ;;  %2651 = vmatmul.bf16.gmra.mxu1 %v7553_v21  ;;  %v8014_v30 = vmov 0.0  }
 0x534   :  { %v7631_v27 = vld [vmem:[#allocation3 + $0xb0] sm:$0xff]  ;;  %10860 = vst [vmem:[#allocation61_spill] sm:$0xff] %v9796_v38  ;;  %2859 = vmatmul.bf16.gmra.mxu2 %v7553_v21  ;;  %3287 = vmatmul.bf16.gmra.mxu3 %v7596_v55 }
 0x535   :  { %3776 = vmatmul.bf16.gmra.mxu0 %v7631_v27  ;;  %988 = vst [vmem:[#allocation2 + $0x1c0] sm:$0xff] %v8014_v30 }
 0x537   :  { %v1810_v27 = vpop.permute.xlu2 %1809 }
 0x538   :  { %v3273_v4 = vpop.f32.mrf.mxu3 }
 0x539   :  { %v9799_v40 = vadd.f32 %v3273_v4, %v9751_v0  ;;  %v1203_v4 = vadd.f32 %v1138_v39, %v9555_v16  ;;  %v7714_v16 = vld [vmem:[%s10787_s3 + $0x150] sm:$0xff] }
 0x53a   :  { %4666 = vmatpush.bf16.msrb.mxu2 %v7714_v16 }
 0x53f   :  { %v2036_v38 = vpop.permute.xlu2 %2035 }
 0x540   :  { %v752_v58 = vpop.permute.xlu0 %751 }
 0x541   :  { %v810_v52 = vmax.f32 %v9677_v15, %v752_v58 }
 0x543   :  { %v873_v47 = vadd.f32 %v9647_v57, %v810_v52 }
 0x545   :  { %v9805_v31 = vsel %vm815_vm0, %v873_v47, 0.0 }
 0x546   :  { %985 = vst [vmem:[#allocation2 + $0x1a8] sm:$0xff] %v9805_v31 }
 0x548   :  { %v1140_v6 = vpop.permute.xlu0 %1139 }
 0x549   :  { %v754_v28 = vpop.permute.xlu1 %753 }
 0x54a   :  { %v811_v32 = vmax.f32 %v9683_v9, %v754_v28  ;;  %v1204_v9 = vadd.f32 %v1140_v6, %v9654_v60  ;;  %v9819_v28 = vpop.f32.mrf.mxu0 }
 0x54c   :  { %v874_v0 = vadd.f32 %v9647_v57, %v811_v32 }
 0x54d   :  { %v1265_v10 = vld [vmem:[#allocation2 + $0x1a2] sm:$0xff] }
 0x54e   :  { %v1041_v13 = vld [vmem:[#allocation2 + $0x1a1] sm:$0xff]  ;;  %v9812_v15 = vsel %vm815_vm0, %v874_v0, 0.0  ;;  %1373 = vrot.lane.b32.xlu2 %v1265_v10, %s8010_s19  ;;  %v1428_v0 = vadd.f32 %v1364_v26, %v1204_v9 }
 0x54f   :  { %1149 = vrot.lane.b32.xlu0 %v1041_v13, %s8012_s21  ;;  %986 = vst [vmem:[#allocation2 + $0x1b0] sm:$0xff] %v9812_v15  ;;  %v1489_v6 = vld [vmem:[#allocation2 + $0x1a3] sm:$0xff] }
 0x550   :  { %v1586_v21 = vpop.permute.xlu0 %1585  ;;  %v1937_v59 = vld [vmem:[#allocation2 + $0x1a5] sm:$0xff] }
 0x551   :  { %v1362_v55 = vpop.permute.xlu1 %1361 }
 0x552   :  { %v1427_v32 = vadd.f32 %v1362_v55, %v1203_v4  ;;  %v1713_v55 = vld [vmem:[#allocation2 + $0x1a4] sm:$0xff] }
 0x554   :  { %v1651_v60 = vadd.f32 %v1586_v21, %v1427_v32  ;;  %v7678_v21 = vld [vmem:[%s10787_s3 + $0x110] sm:$0xff] }
 0x555   :  { %4172 = vmatpush.bf16.msrb.mxu1 %v7678_v21 }
 0x556   :  { %v1042_v58 = vld [vmem:[#allocation2 + $0x1a9] sm:$0xff]  ;;  %v1875_v26 = vadd.f32 %v1810_v27, %v1651_v60  ;;  %v9843_v60 = vpop.f32.mrf.mxu2 }
 0x557   :  { %v1490_v52 = vld [vmem:[#allocation2 + $0x1ab] sm:$0xff]  ;;  %1151 = vrot.lane.b32.xlu1 %v1042_v58, %s8012_s21  ;;  %v9827_v58 = vpop.f32.mrf.mxu0  ;;  %10861 = vst [vmem:[#allocation62_spill] sm:$0xff] %v9843_v60 }
 0x558   :  { %v1266_v47 = vld [vmem:[#allocation2 + $0x1aa] sm:$0xff]  ;;  %1599 = vrot.lane.b32.xlu2 %v1490_v52, %s8013_s23  ;;  %v1812_v30 = vpop.permute.xlu0 %1811 }
 0x559   :  { %1375 = vrot.lane.b32.xlu0 %v1266_v47, %s8010_s19  ;;  %v1588_v10 = vpop.permute.xlu1 %1587  ;;  %v1714_v27 = vld [vmem:[#allocation2 + $0x1ac] sm:$0xff] }
 0x55a   :  { %v1652_v13 = vadd.f32 %v1588_v10, %v1428_v0  ;;  %v1144_v0 = vpop.permute.xlu2 %1143 }
 0x55c   :  { %v1876_v39 = vadd.f32 %v1812_v30, %v1652_v13  ;;  %v1938_v13 = vld [vmem:[#allocation2 + $0x1ad] sm:$0xff] }
 0x55e   :  { %v2100_v32 = vadd.f32 %v2036_v38, %v1876_v39 }
 0x55f   :  { %1597 = vrot.lane.b32.xlu1 %v1489_v6, %s8013_s23 }
 0x560   :  { %2045 = vrot.lane.b32.xlu2 %v1937_v59, %s8011_s20  ;;  %v756_v9 = vpop.permute.xlu0 %755 }
 0x561   :  { %1821 = vrot.lane.b32.xlu0 %v1713_v55, %s8009_s26  ;;  %v2034_v4 = vpop.permute.xlu1 %2033  ;;  %v812_v52 = vmax.f32 %v9720_v62, %v756_v9  ;;  %v9845_v62 = vpop.f32.mrf.mxu1 }
 0x562   :  { %v2099_v47 = vadd.f32 %v2034_v4, %v1875_v26  ;;  %10862 = vst [vmem:[#allocation63_spill] sm:$0xff] %v9845_v62  ;;  %v1590_v55 = vpop.permute.xlu2 %1589  ;;  %v2845_v4 = vpop.f32.mrf.mxu2 }
 0x563   :  { %v875_v30 = vadd.f32 %v9647_v57, %v812_v52  ;;  %v9848_v57 = vpop.f32.mrf.mxu0 }
 0x564   :  { %v7879_v10 = vpack.c.bf16 %v2100_v32, %v2099_v47 }
 0x565   :  { %v9839_v59 = vsel %vm815_vm0, %v875_v30, 0.0 }
 0x566   :  { %7923 = vst [vmem:[#allocation3 + $0xb8] sm:$0xff] %v7879_v10  }
 0x567   :  { %987 = vst [vmem:[#allocation2 + $0x1b8] sm:$0xff] %v9839_v59  ;;  %1823 = vrot.lane.b32.xlu1 %v1714_v27, %s8009_s26 }
 0x568   :  { %v1366_v16 = vpop.permute.xlu0 %1365 }
 0x569   :  { %2047 = vrot.lane.b32.xlu0 %v1938_v13, %s8011_s20  ;;  %v1142_v38 = vpop.permute.xlu1 %1141  ;;  %v1206_v13 = vadd.f32 %v1144_v0, %v9663_v48 }
 0x56a   :  { %v1205_v27 = vadd.f32 %v1142_v38, %v9672_v35 }
 0x56d   :  { %v7554_v24 = vld [vmem:[#allocation3 + $0xb8] sm:$0xff] }
 0x56e   :  { %v7597_v39 = vld [vmem:[#allocation3 + $0xb8] sm:$0xff]  ;;  %v1267_v26 = vld [vmem:[#allocation2 + $0x1b2] sm:$0xff]  ;;  %2656 = vmatmul.bf16.gmra.mxu1 %v7554_v24  ;;  %2864 = vmatmul.bf16.gmra.mxu2 %v7554_v24  ;;  %v1816_v24 = vpop.permute.xlu2 %1815 }
 0x56f   :  { %v7632_v6 = vld [vmem:[#allocation3 + $0xb8] sm:$0xff]  ;;  %v1043_v21 = vld [vmem:[#allocation2 + $0x1b1] sm:$0xff]  ;;  %v2642_v52 = vpop.f32.mrf.mxu1  ;;  %3292 = vmatmul.bf16.gmra.mxu3 %v7597_v39  ;;  %v1429_v39 = vadd.f32 %v1366_v16, %v1205_v27 }
 0x570   :  { %v1044_v9 = vld [vmem:[#allocation2 + $0x1b9] sm:$0xff]  ;;  %1153 = vrot.lane.b32.xlu1 %v1043_v21, %s8012_s21  ;;  %v9853_v47 = vadd.f32 %v2845_v4, %v2642_v52  ;;  %3781 = vmatmul.bf16.gmra.mxu0 %v7632_v6  ;;  %v1592_v60 = vpop.permute.xlu0 %1591  ;;  %v9863_v52 = vpop.f32.mrf.mxu3 }
 0x571   :  { %1155 = vrot.lane.b32.xlu2 %v1044_v9, %s8012_s21  ;;  %1377 = vrot.lane.b32.xlu0 %v1267_v26, %s8010_s19  ;;  %v3767_v32 = vpop.f32.mrf.mxu0  ;;  %v1368_v30 = vpop.permute.xlu1 %1367  ;;  %v1491_v9 = vld [vmem:[#allocation2 + $0x1b3] sm:$0xff]  ;;  %v1492_v26 = vld [vmem:[#allocation2 + $0x1bb] sm:$0xff]  ;;  %10863 = vst [vmem:[#allocation64_spill] sm:$0xff] %v9863_v52  ;;  %v1653_v35 = vadd.f32 %v1590_v55, %v1429_v39 }
 0x572   :  { %v9856_v10 = vadd.f32 %v3767_v32, %v9799_v40  ;;  %v1268_v21 = vld [vmem:[#allocation2 + $0x1ba] sm:$0xff]  ;;  %v1430_v4 = vadd.f32 %v1368_v30, %v1206_v13  ;;  %v9870_v39 = vpop.f32.mrf.mxu2 }
 0x573   :  { %v1716_v48 = vld [vmem:[#allocation2 + $0x1bc] sm:$0xff]  ;;  %v1715_v0 = vld [vmem:[#allocation2 + $0x1b4] sm:$0xff]  ;;  %10865 = vst [vmem:[#allocation66_spill] sm:$0xff] %v9870_v39 }
 0x574   :  { %v1654_v6 = vadd.f32 %v1592_v60, %v1430_v4  ;;  %v1939_v32 = vld [vmem:[#allocation2 + $0x1b5] sm:$0xff]  ;;  %v1940_v55 = vld [vmem:[#allocation2 + $0x1bd] sm:$0xff] }
 0x576   :  { %v1878_v16 = vadd.f32 %v1816_v24, %v1654_v6 }
 0x577   :  { %v9872_v4 = vpop.f32.mrf.mxu1 }
 0x578   :  { %1379 = vrot.lane.b32.xlu1 %v1268_v21, %s8010_s19  ;;  %v2038_v30 = vpop.permute.xlu0 %2037  ;;  %10866 = vst [vmem:[#allocation67_spill] sm:$0xff] %v9872_v4 }
 0x579   :  { %1601 = vrot.lane.b32.xlu2 %v1491_v9, %s8013_s23  ;;  %1603 = vrot.lane.b32.xlu0 %v1492_v26, %s8013_s23  ;;  %v1814_v40 = vpop.permute.xlu1 %1813  ;;  %v1146_v9 = vpop.permute.xlu2 %1145 }
 0x57a   :  { %v1877_v38 = vadd.f32 %v1814_v40, %v1653_v35  ;;  %v9868_v26 = vpop.f32.mrf.mxu3 }
 0x57b   :  { %10864 = vst [vmem:[#allocation65_spill] sm:$0xff] %v9868_v26  ;;  %v9882_v26 = vpop.f32.mrf.mxu0 }
 0x57c   :  { %v2101_v13 = vadd.f32 %v2038_v30, %v1877_v38  ;;  %v2850_v38 = vpop.f32.mrf.mxu2  ;;  %10868 = vst [vmem:[#allocation69_spill] sm:$0xff] %v9882_v26 }
 0x580   :  { %1825 = vrot.lane.b32.xlu1 %v1715_v0, %s8009_s26 }
 0x581   :  { %1827 = vrot.lane.b32.xlu2 %v1716_v48, %s8009_s26  ;;  %2049 = vrot.lane.b32.xlu0 %v1939_v32, %s8011_s20  ;;  %v2040_v27 = vpop.permute.xlu1 %2039  ;;  %v1372_v40 = vpop.permute.xlu2 %1371 }
 0x582   :  { %v2102_v21 = vadd.f32 %v2040_v27, %v1878_v16  ;;  %v9875_v32 = vpop.f32.mrf.mxu3  ;;  %v7713_v27 = vld [vmem:[%s10787_s3 + $0x148] sm:$0xff] }
 0x583   :  { %10867 = vst [vmem:[#allocation68_spill] sm:$0xff] %v9875_v32  ;;  %4667 = vmatpush.bf16.msrb.mxu2 %v7713_v27 }
 0x584   :  { %v7884_v60 = vpack.c.bf16 %v2102_v21, %v2101_v13 }
 0x586   :  { %7924 = vst [vmem:[#allocation3 + $0xc0] sm:$0xff] %v7884_v60  }
 0x588   :  { %2051 = vrot.lane.b32.xlu1 %v1940_v55, %s8011_s20  ;;  %v1207_v55 = vadd.f32 %v1146_v9, %v9711_v2 }
 0x589   :  { %v1818_v21 = vpop.permute.xlu2 %1817 }
 0x58c   :  { %v1370_v35 = vpop.permute.xlu1 %1369 }
 0x58d   :  { %v1148_v48 = vpop.permute.xlu0 %1147  ;;  %v7555_v0 = vld [vmem:[#allocation3 + $0xc0] sm:$0xff]  ;;  %v1431_v39 = vadd.f32 %v1370_v35, %v1207_v55 }
 0x58e   :  { %v7598_v24 = vld [vmem:[#allocation3 + $0xc0] sm:$0xff]  ;;  %v2647_v16 = vpop.f32.mrf.mxu1  ;;  %2661 = vmatmul.bf16.gmra.mxu1 %v7555_v0  ;;  %2869 = vmatmul.bf16.gmra.mxu2 %v7555_v0  ;;  %v1208_v62 = vadd.f32 %v1148_v48, %v9761_v1 }
 0x58f   :  { %v7633_v6 = vld [vmem:[#allocation3 + $0xc0] sm:$0xff]  ;;  %v2851_v30 = vadd.f32 %v2850_v38, %v2647_v16  ;;  %3297 = vmatmul.bf16.gmra.mxu3 %v7598_v24 }
 0x590   :  { %3786 = vmatmul.bf16.gmra.mxu0 %v7633_v6  ;;  %v7677_v24 = vld [vmem:[%s10787_s3 + $0x108] sm:$0xff]  ;;  %v1432_v6 = vadd.f32 %v1372_v40, %v1208_v62  ;;  %v9888_v1 = vpop.f32.mrf.mxu0 }
 0x591   :  { %4173 = vmatpush.bf16.msrb.mxu1 %v7677_v24  ;;  %v2044_v9 = vpop.permute.xlu2 %2043  ;;  %10869 = vst [vmem:[#allocation70_spill] sm:$0xff] %v9888_v1 }
 0x594   :  { %v1596_v13 = vpop.permute.xlu1 %1595 }
 0x595   :  { %v1594_v60 = vpop.permute.xlu0 %1593  ;;  %v3283_v32 = vpop.f32.mrf.mxu3  ;;  %v1656_v16 = vadd.f32 %v1596_v13, %v1432_v6 }
 0x596   :  { %v3366_v0 = vadd.f32 %v3283_v32, %v9853_v47  ;;  %v1655_v38 = vadd.f32 %v1594_v60, %v1431_v39  ;;  %v9890_v47 = vpop.f32.mrf.mxu2  ;;  %v9892_v32 = vpop.f32.mrf.mxu1 }
 0x597   :  { %10870 = vst [vmem:[#allocation71_spill] sm:$0xff] %v9890_v47 }
 0x598   :  { %v1879_v52 = vadd.f32 %v1818_v21, %v1655_v38  ;;  %10871 = vst [vmem:[#allocation72_spill] sm:$0xff] %v9892_v32  ;;  %v9894_v55 = vpop.f32.mrf.mxu0 }
 0x599   :  { %10872 = vst [vmem:[#allocation73_spill] sm:$0xff] %v9894_v55 }
 0x59c   :  { %v2042_v4 = vpop.permute.xlu1 %2041 }
 0x59d   :  { %v1820_v27 = vpop.permute.xlu0 %1819  ;;  %v2103_v48 = vadd.f32 %v2042_v4, %v1879_v52  ;;  %v9896_v13 = vpop.f32.mrf.mxu3 }
 0x59e   :  { %v1880_v2 = vadd.f32 %v1820_v27, %v1656_v16  ;;  %10873 = vst [vmem:[#allocation74_spill] sm:$0xff] %v9896_v13  ;;  %v2855_v21 = vpop.f32.mrf.mxu2 }
 0x5a0   :  { %v2104_v26 = vadd.f32 %v2044_v9, %v1880_v2  ;;  %v7712_v9 = vld [vmem:[%s10787_s3 + $0x140] sm:$0xff] }
 0x5a1   :  { %4668 = vmatpush.bf16.msrb.mxu2 %v7712_v9 }
 0x5a2   :  { %v7889_v35 = vpack.c.bf16 %v2104_v26, %v2103_v48 }
 0x5a4   :  { %7925 = vst [vmem:[#allocation3 + $0xc8] sm:$0xff] %v7889_v35  }
 0x5a6   :  { %v9912_v1 = vpop.f32.mrf.mxu2 }
 0x5a8   :  { %v1374_v16 = vpop.permute.xlu2 %1373 }
 0x5ab   :  { %v7556_v62 = vld [vmem:[#allocation3 + $0xc8] sm:$0xff] }
 0x5ac   :  { %v7599_v39 = vld [vmem:[#allocation3 + $0xc8] sm:$0xff]  ;;  %2666 = vmatmul.bf16.gmra.mxu1 %v7556_v62  ;;  %2874 = vmatmul.bf16.gmra.mxu2 %v7556_v62 }
 0x5ad   :  { %v7634_v40 = vld [vmem:[#allocation3 + $0xc8] sm:$0xff]  ;;  %3302 = vmatmul.bf16.gmra.mxu3 %v7599_v39 }
 0x5ae   :  { %3791 = vmatmul.bf16.gmra.mxu0 %v7634_v40 }
 0x5b0   :  { %v2652_v52 = vpop.f32.mrf.mxu1 }
 0x5b1   :  { %v9898_v4 = vadd.f32 %v2855_v21, %v2652_v52 }
 0x5b2   :  { %v3777_v26 = vpop.f32.mrf.mxu0  ;;  %v1600_v62 = vpop.permute.xlu2 %1599 }
 0x5b3   :  { %v9900_v60 = vadd.f32 %v3777_v26, %v3366_v0  ;;  %v7676_v0 = vld [vmem:[%s10787_s3 + $0x100] sm:$0xff] }
 0x5b4   :  { %4174 = vmatpush.bf16.msrb.mxu1 %v7676_v0 }
 0x5b7   :  { %v3288_v24 = vpop.f32.mrf.mxu3 }
 0x5b8   :  { %v9902_v6 = vadd.f32 %v3288_v24, %v2851_v30  ;;  %v9914_v13 = vpop.f32.mrf.mxu1 }
 0x5ba   :  { %10874 = vst [vmem:[#allocation75_spill] sm:$0xff] %v9902_v6  ;;  %v2046_v6 = vpop.permute.xlu2 %2045 }
 0x5c1   :  { %v1150_v38 = vpop.permute.xlu0 %1149 }
 0x5c2   :  { %v1209_v48 = vadd.f32 %v1150_v38, %v9766_v44 }
 0x5c4   :  { %v1433_v39 = vadd.f32 %v1374_v16, %v1209_v48 }
 0x5c9   :  { %v1152_v27 = vpop.permute.xlu1 %1151 }
 0x5ca   :  { %v1210_v35 = vadd.f32 %v1152_v27, %v9805_v31 }
 0x5cb   :  { %v1376_v2 = vpop.permute.xlu0 %1375  ;;  %v1156_v55 = vpop.permute.xlu2 %1155 }
 0x5cc   :  { %v1434_v21 = vadd.f32 %v1376_v2, %v1210_v35 }
 0x5ce   :  { %v1658_v24 = vadd.f32 %v1600_v62, %v1434_v21 }
 0x5d1   :  { %v1598_v30 = vpop.permute.xlu1 %1597 }
 0x5d2   :  { %v1657_v52 = vadd.f32 %v1598_v30, %v1433_v39  ;;  %v1212_v39 = vadd.f32 %v1156_v55, %v9839_v59 }
 0x5d3   :  { %v1822_v40 = vpop.permute.xlu0 %1821  ;;  %v1602_v62 = vpop.permute.xlu2 %1601 }
 0x5d4   :  { %v1881_v26 = vadd.f32 %v1822_v40, %v1657_v52 }
 0x5d6   :  { %v2105_v38 = vadd.f32 %v2046_v6, %v1881_v26  ;;  %v9916_v6 = vpop.f32.mrf.mxu3 }
 0x5d7   :  { %10875 = vst [vmem:[#allocation76_spill] sm:$0xff] %v9916_v6 }
 0x5d9   :  { %v1824_v47 = vpop.permute.xlu1 %1823 }
 0x5da   :  { %v1882_v32 = vadd.f32 %v1824_v47, %v1658_v24  ;;  %v2860_v47 = vpop.f32.mrf.mxu2 }
 0x5db   :  { %v2048_v44 = vpop.permute.xlu0 %2047  ;;  %v1828_v59 = vpop.permute.xlu2 %1827 }
 0x5dc   :  { %v2106_v9 = vadd.f32 %v2048_v44, %v1882_v32  ;;  %v8015_v44 = vmov 0  }
 0x5dd   :  { %2221 = vst [vmem:[#allocation3 + $0xe0] sm:$0xf] %v8015_v44 }
 0x5de   :  { %v7894_v31 = vpack.c.bf16 %v2106_v9, %v2105_v38  ;;  %2222 = vst [vmem:[#allocation3 + $0xe4] sm:$0xf] %v8015_v44  ;;  %v9920_v38 = vpop.f32.mrf.mxu0 }
 0x5df   :  { %2223 = vst [vmem:[#allocation3 + $0xe8] sm:$0xf] %v8015_v44 }
 0x5e0   :  { %7926 = vst [vmem:[#allocation3 + $0xd0] sm:$0xff] %v7894_v31  }
 0x5e1   :  { %2224 = vst [vmem:[#allocation3 + $0xec] sm:$0xf] %v8015_v44 }
 0x5e2   :  { %v1154_v27 = vpop.permute.xlu1 %1153  ;;  %2225 = vst [vmem:[#allocation3 + $0xf0] sm:$0xf] %v8015_v44 }
 0x5e3   :  { %v1378_v16 = vpop.permute.xlu0 %1377  ;;  %v1211_v32 = vadd.f32 %v1154_v27, %v9812_v15  ;;  %2226 = vst [vmem:[#allocation3 + $0xf4] sm:$0xf] %v8015_v44 }
 0x5e4   :  { %2227 = vst [vmem:[#allocation3 + $0xf8] sm:$0xf] %v8015_v44 }
 0x5e5   :  { %v1435_v52 = vadd.f32 %v1378_v16, %v1211_v32  ;;  %2228 = vst [vmem:[#allocation3 + $0xfc] sm:$0xf] %v8015_v44 }
 0x5e6   :  { %2229 = vst [vmem:[#allocation3 + $0x100] sm:$0xf] %v8015_v44 }
 0x5e7   :  { %v7557_v48 = vld [vmem:[#allocation3 + $0xd0] sm:$0xff]  ;;  %v1659_v31 = vadd.f32 %v1602_v62, %v1435_v52  ;;  %2230 = vst [vmem:[#allocation3 + $0x104] sm:$0xf] %v8015_v44  ;;  %v9925_v62 = vpop.f32.mrf.mxu2 }
 0x5e8   :  { %v7600_v2 = vld [vmem:[#allocation3 + $0xd0] sm:$0xff]  ;;  %2671 = vmatmul.bf16.gmra.mxu1 %v7557_v48  ;;  %2879 = vmatmul.bf16.gmra.mxu2 %v7557_v48  ;;  %10877 = vst [vmem:[#allocation78_spill] sm:$0xff] %v9925_v62 }
 0x5e9   :  { %v7635_v35 = vld [vmem:[#allocation3 + $0xd0] sm:$0xff]  ;;  %3307 = vmatmul.bf16.gmra.mxu3 %v7600_v2 }
 0x5ea   :  { %v1380_v0 = vpop.permute.xlu1 %1379  ;;  %3796 = vmatmul.bf16.gmra.mxu0 %v7635_v35 }
 0x5eb   :  { %v2657_v30 = vpop.f32.mrf.mxu1  ;;  %v1604_v21 = vpop.permute.xlu0 %1603  ;;  %v1436_v26 = vadd.f32 %v1380_v0, %v1212_v39 }
 0x5ec   :  { %v2861_v40 = vadd.f32 %v2860_v47, %v2657_v30 }
 0x5ed   :  { %v1660_v9 = vadd.f32 %v1604_v21, %v1436_v26  ;;  %v9923_v47 = vpop.f32.mrf.mxu0 }
 0x5ee   :  { %10876 = vst [vmem:[#allocation77_spill] sm:$0xff] %v9923_v47 }
 0x5ef   :  { %v1884_v55 = vadd.f32 %v1828_v59, %v1660_v9  ;;  %v7567_v59 = vld [vmem:[#allocation3 + $0xe0] sm:$0xff] }
 0x5f2   :  { %v1826_v24 = vpop.permute.xlu1 %1825  ;;  %v3293_v48 = vpop.f32.mrf.mxu3 }
 0x5f3   :  { %v3370_v15 = vadd.f32 %v3293_v48, %v9898_v4  ;;  %v1883_v27 = vadd.f32 %v1826_v24, %v1659_v31  ;;  %v2050_v16 = vpop.permute.xlu0 %2049  ;;  %v9927_v4 = vpop.f32.mrf.mxu1 }
 0x5f4   :  { %10878 = vst [vmem:[#allocation79_spill] sm:$0xff] %v9927_v4  ;;  %v2865_v24 = vpop.f32.mrf.mxu2 }
 0x5f5   :  { %v2107_v35 = vadd.f32 %v2050_v16, %v1883_v27  ;;  %v9929_v30 = vpop.f32.mrf.mxu0  ;;  %v7602_v16 = vld [vmem:[#allocation3 + $0xe0] sm:$0xff] }
 0x5f6   :  { %10879 = vst [vmem:[#allocation80_spill] sm:$0xff] %v9929_v30 }
 0x5fa   :  { %v2052_v2 = vpop.permute.xlu1 %2051  ;;  %v9931_v26 = vpop.f32.mrf.mxu3 }
 0x5fb   :  { %v2108_v0 = vadd.f32 %v2052_v2, %v1884_v55  ;;  %v7637_v2 = vld [vmem:[#allocation3 + $0xe0] sm:$0xff] }
 0x5fd   :  { %v7899_v32 = vpack.c.bf16 %v2108_v0, %v2107_v35  ;;  %v7684_v35 = vld [vmem:[#allocation3 + $0x28] sm:$0xff]  ;;  %v9937_v0 = vpop.f32.mrf.mxu2 }
 0x5fe   :  { %10881 = vst [vmem:[#allocation82_spill] sm:$0xff] %v9937_v0  ;;  %v7650_v0 = vld [vmem:[#allocation3 + $0x30] sm:$0xff] }
 0x5ff   :  { %7927 = vst [vmem:[#allocation3 + $0xd8] sm:$0xff] %v7899_v32  }
 0x606   :  { %v7558_v39 = vld [vmem:[#allocation3 + $0xd8] sm:$0xff] }
 0x607   :  { %v7601_v21 = vld [vmem:[#allocation3 + $0xd8] sm:$0xff]  ;;  %2676 = vmatmul.bf16.gmra.mxu1 %v7558_v39  ;;  %2884 = vmatmul.bf16.gmra.mxu2 %v7558_v39  ;;  %v7603_v39 = vld [vmem:[#allocation3 + $0xe8] sm:$0xff] }
 0x608   :  { %v7636_v52 = vld [vmem:[#allocation3 + $0xd8] sm:$0xff]  ;;  %3312 = vmatmul.bf16.gmra.mxu3 %v7601_v21  ;;  %v7638_v21 = vld [vmem:[#allocation3 + $0xe8] sm:$0xff] }
 0x609   :  { %3801 = vmatmul.bf16.gmra.mxu0 %v7636_v52  ;;  %v7648_v52 = vld [vmem:[#allocation3 + $0x20] sm:$0xff] }
 0x60b   :  { %v2662_v44 = vpop.f32.mrf.mxu1 }
 0x60c   :  { %v2866_v9 = vadd.f32 %v2865_v24, %v2662_v44 }
 0x60d   :  { %v3787_v31 = vpop.f32.mrf.mxu0 }
 0x60e   :  { %v9933_v48 = vadd.f32 %v3787_v31, %v3370_v15  ;;  %v7685_v15 = vld [vmem:[#allocation3 + $0x30] sm:$0xff] }
 0x612   :  { %v3298_v27 = vpop.f32.mrf.mxu3 }
 0x613   :  { %v9935_v55 = vadd.f32 %v3298_v27, %v2861_v40  ;;  %v9939_v32 = vpop.f32.mrf.mxu1  ;;  %v2870_v40 = vpop.f32.mrf.mxu2 }
 0x614   :  { %10882 = vst [vmem:[#allocation83_spill] sm:$0xff] %v9939_v32  ;;  %v7687_v32 = vld [vmem:[#allocation3 + $0x40] sm:$0xff] }
 0x615   :  { %10880 = vst [vmem:[#allocation81_spill] sm:$0xff] %v9935_v55  ;;  %v7690_v55 = vld [vmem:[#allocation3 + $0x58] sm:$0xff] }
 0x617   :  { %2681 = vmatmul.bf16.gmra.mxu1 %v7567_v59  ;;  %4669 = vmatmul.bf16.vlgmr.msrb.gmra.mxu2 %v7684_v35  ;;  %v7686_v35 = vld [vmem:[#allocation3 + $0x38] sm:$0xff] }
 0x618   :  { %3317 = vmatmul.bf16.gmra.mxu3 %v7602_v16  ;;  %v7639_v16 = vld [vmem:[#allocation3 + $0xf0] sm:$0xff] }
 0x619   :  { %3806 = vmatmul.bf16.gmra.mxu0 %v7637_v2  ;;  %v7649_v2 = vld [vmem:[#allocation3 + $0x28] sm:$0xff] }
 0x61a   :  { %v9941_v24 = vpop.f32.mrf.mxu3 }
 0x61b   :  { %10883 = vst [vmem:[#allocation84_spill] sm:$0xff] %v9941_v24 }
 0x627   :  { %4175 = vmatmul.bf16.vlgmr.msrb.gmra.mxu1 %v7648_v52  ;;  %4674 = vmatmul.bf16.gmra.mxu2 %v7685_v15  ;;  %v9943_v52 = vpop.f32.mrf.mxu0 }
 0x628   :  { %3322 = vmatmul.bf16.gmra.mxu3 %v7603_v39  ;;  %v7651_v39 = vld [vmem:[#allocation3 + $0x38] sm:$0xff] }
 0x629   :  { %3811 = vmatmul.bf16.gmra.mxu0 %v7638_v21  ;;  %v2667_v44 = vpop.f32.mrf.mxu1  ;;  %v7688_v21 = vld [vmem:[#allocation3 + $0x48] sm:$0xff] }
 0x62a   :  { %v2871_v31 = vadd.f32 %v2870_v40, %v2667_v44  ;;  %v9947_v40 = vpop.f32.mrf.mxu2 }
 0x62b   :  { %10885 = vst [vmem:[#allocation86_spill] sm:$0xff] %v9947_v40 }
 0x62f   :  { %v9945_v15 = vpop.f32.mrf.mxu0 }
 0x630   :  { %v3303_v27 = vpop.f32.mrf.mxu3  ;;  %10884 = vst [vmem:[#allocation85_spill] sm:$0xff] %v9945_v15  ;;  %v7653_v15 = vld [vmem:[#allocation3 + $0x48] sm:$0xff] }
 0x631   :  { %v3374_v59 = vadd.f32 %v3303_v27, %v2866_v9  ;;  %v9949_v9 = vpop.f32.mrf.mxu1 }
 0x637   :  { %4180 = vmatmul.bf16.gmra.mxu1 %v7649_v2  ;;  %4679 = vmatmul.bf16.gmra.mxu2 %v7686_v35  ;;  %v9951_v44 = vpop.f32.mrf.mxu0  ;;  %v7689_v2 = vld [vmem:[#allocation3 + $0x50] sm:$0xff] }
 0x638   :  { %3816 = vmatmul.bf16.vlgmr.msrb.gmra.mxu3 %v7639_v16  ;;  %10886 = vst [vmem:[#allocation87_spill] sm:$0xff] %v9951_v44  ;;  %v9953_v27 = vpop.f32.mrf.mxu3  ;;  %v7652_v16 = vld [vmem:[#allocation3 + $0x40] sm:$0xff] }
 0x639   :  { %10887 = vst [vmem:[#allocation88_spill] sm:$0xff] %v9953_v27 }
 0x647   :  { %4185 = vmatmul.bf16.gmra.mxu1 %v7650_v0  ;;  %4684 = vmatmul.bf16.gmra.mxu2 %v7687_v32  ;;  %v2875_v0 = vpop.f32.mrf.mxu2 }
 0x64f   :  { %v9959_v4 = vpop.f32.mrf.mxu2 }
 0x650   :  { %10889 = vst [vmem:[#allocation90_spill] sm:$0xff] %v9959_v4 }
 0x657   :  { %4190 = vmatmul.bf16.gmra.mxu1 %v7651_v39  ;;  %4689 = vmatmul.bf16.gmra.mxu2 %v7688_v21 }
 0x665   :  { %v2672_v32 = vpop.f32.mrf.mxu1 }
 0x666   :  { %v2876_v35 = vadd.f32 %v2875_v0, %v2672_v32 }
 0x667   :  { %v3797_v24 = vpop.f32.mrf.mxu0  ;;  %4195 = vmatmul.bf16.gmra.mxu1 %v7652_v16  ;;  %4694 = vmatmul.bf16.gmra.mxu2 %v7689_v2  ;;  %v7691_v2 = vld [vmem:[#allocation3 + $0x60] sm:$0xff] }
 0x668   :  { %v9955_v62 = vadd.f32 %v3797_v24, %v3374_v59 }
 0x66b   :  { %v2880_v27 = vpop.f32.mrf.mxu2 }
 0x66c   :  { %v3308_v39 = vpop.f32.mrf.mxu3 }
 0x66d   :  { %v9957_v21 = vadd.f32 %v3308_v39, %v2871_v31  ;;  %v9961_v44 = vpop.f32.mrf.mxu1  ;;  %v7654_v31 = vld [vmem:[#allocation3 + $0x50] sm:$0xff] }
 0x66e   :  { %10890 = vst [vmem:[#allocation91_spill] sm:$0xff] %v9961_v44 }
 0x66f   :  { %10888 = vst [vmem:[#allocation89_spill] sm:$0xff] %v9957_v21  ;;  %v9963_v30 = vpop.f32.mrf.mxu0 }
 0x670   :  { %10891 = vst [vmem:[#allocation92_spill] sm:$0xff] %v9963_v30 }
 0x673   :  { %v2882_v0 = vpop.f32.mrf.mxu2 }
 0x674   :  { %v9965_v32 = vpop.f32.mrf.mxu3 }
 0x675   :  { %10892 = vst [vmem:[#allocation93_spill] sm:$0xff] %v9965_v32  ;;  %v7692_v32 = vld [vmem:[#allocation3 + $0x68] sm:$0xff] }
 0x677   :  { %4200 = vmatmul.bf16.gmra.mxu1 %v7653_v15  ;;  %4699 = vmatmul.bf16.gmra.mxu2 %v7690_v55 }
 0x684   :  { %v2677_v16 = vpop.f32.mrf.mxu1 }
 0x685   :  { %v2881_v24 = vadd.f32 %v2880_v27, %v2677_v16 }
 0x686   :  { %v9967_v59 = vpop.f32.mrf.mxu0 }
 0x687   :  { %10893 = vst [vmem:[#allocation94_spill] sm:$0xff] %v9967_v59  ;;  %4205 = vmatmul.bf16.gmra.mxu1 %v7654_v31  ;;  %4704 = vmatmul.bf16.gmra.mxu2 %v7691_v2  ;;  %v7655_v59 = vld [vmem:[#allocation3 + $0x58] sm:$0xff] }
 0x68a   :  { %v2885_v39 = vpop.f32.mrf.mxu2 }
 0x68b   :  { %v3313_v4 = vpop.f32.mrf.mxu3 }
 0x68c   :  { %v9969_v15 = vadd.f32 %v3313_v4, %v2876_v35  ;;  %v2679_v55 = vpop.f32.mrf.mxu1 }
 0x68d   :  { %v9971_v21 = vadd.f32 %v2882_v0, %v2679_v55 }
 0x68e   :  { %10894 = vst [vmem:[#allocation95_spill] sm:$0xff] %v9969_v15  ;;  %v9973_v44 = vpop.f32.mrf.mxu0 }
 0x68f   :  { %10895 = vst [vmem:[#allocation96_spill] sm:$0xff] %v9971_v21 }
 0x690   :  { %10896 = vst [vmem:[#allocation97_spill] sm:$0xff] %v9973_v44 }
 0x692   :  { %v2887_v30 = vpop.f32.mrf.mxu2 }
 0x693   :  { %v9975_v6 = vpop.f32.mrf.mxu3 }
 0x694   :  { %10897 = vst [vmem:[#allocation98_spill] sm:$0xff] %v9975_v6  ;;  %v2682_v47 = vpop.f32.mrf.mxu1 }
 0x695   :  { %v2886_v27 = vadd.f32 %v2885_v39, %v2682_v47  ;;  %v7656_v39 = vld [vmem:[#allocation3 + $0x60] sm:$0xff] }
 0x696   :  { %v9977_v16 = vpop.f32.mrf.mxu0 }
 0x697   :  { %10898 = vst [vmem:[#allocation99_spill] sm:$0xff] %v9977_v16  ;;  %4210 = vmatmul.bf16.gmra.mxu1 %v7655_v59  ;;  %4709 = vmatmul.bf16.gmra.mxu2 %v7692_v32  ;;  %v7693_v16 = vld [vmem:[#allocation3 + $0x70] sm:$0xff]  ;;  %v2753_v32 = vadd.f32 %v9029_v43, %v9031_v41 }
 0x69a   :  { %v4670_v31 = vpop.f32.mrf.mxu2 }
 0x69b   :  { %v3318_v2 = vpop.f32.mrf.mxu3 }
 0x69c   :  { %v3380_v4 = vadd.f32 %v3318_v2, %v2881_v24  ;;  %v2684_v35 = vpop.f32.mrf.mxu1 }
 0x69d   :  { %v9979_v15 = vadd.f32 %v2887_v30, %v2684_v35  ;;  %v3329_v30 = vadd.f32 %v9099_v23, %v2753_v32  ;;  %v7694_v23 = vld [vmem:[#allocation3 + $0x78] sm:$0xff] }
 0x69e   :  { %v9981_v0 = vpop.f32.mrf.mxu0 }
 0x69f   :  { %10899 = vst [vmem:[#allocation100_spill] sm:$0xff] %v9979_v15  ;;  %v3823_v2 = vadd.f32 %v9138_v34, %v3329_v30 }
 0x6a0   :  { %10900 = vst [vmem:[#allocation101_spill] sm:$0xff] %v9981_v0  ;;  %v7669_v0 = vld [vmem:[#allocation3 + $0xc8] sm:$0xff] }
 0x6a2   :  { %v4672_v55 = vpop.f32.mrf.mxu2 }
 0x6a3   :  { %v9983_v21 = vpop.f32.mrf.mxu3 }
 0x6a4   :  { %10901 = vst [vmem:[#allocation102_spill] sm:$0xff] %v9983_v21  ;;  %v4176_v6 = vpop.f32.mrf.mxu1  ;;  %v7706_v21 = vld [vmem:[#allocation3 + $0xd8] sm:$0xff] }
 0x6a5   :  { %v4316_v47 = vadd.f32 %v4176_v6, %v9106_v3 }
 0x6a6   :  { %v3812_v44 = vpop.f32.mrf.mxu0 }
 0x6a7   :  { %v9986_v40 = vadd.f32 %v3812_v44, %v3380_v4  ;;  %v9990_v24 = vadd.f32 %v4670_v31, %v4316_v47  ;;  %4215 = vmatmul.bf16.gmra.mxu1 %v7656_v39  ;;  %4714 = vmatmul.bf16.gmra.mxu2 %v7693_v16  ;;  %v7657_v31 = vld [vmem:[#allocation3 + $0x68] sm:$0xff]  ;;  %v2758_v47 = vadd.f32 %v9090_v14, %v9092_v50  ;;  %v7658_v50 = vld [vmem:[#allocation3 + $0x70] sm:$0xff] }
 0x6a9   :  { %4866 = vrot.lane.b32.xlu2 %v9990_v24, %s8008_s12  ;;  %v3331_v34 = vadd.f32 %v9152_v61, %v2758_v47 }
 0x6aa   :  { %v4675_v59 = vpop.f32.mrf.mxu2 }
 0x6ab   :  { %v3323_v3 = vpop.f32.mrf.mxu3 }
 0x6ac   :  { %v3382_v6 = vadd.f32 %v3323_v3, %v2886_v27  ;;  %v4178_v35 = vpop.f32.mrf.mxu1 }
 0x6ad   :  { %v4317_v44 = vadd.f32 %v4178_v35, %v3823_v2 }
 0x6af   :  { %v9996_v4 = vadd.f32 %v4672_v55, %v4317_v44  ;;  %v3825_v55 = vadd.f32 %v9190_v7, %v3331_v34  ;;  %v10905_v7 = vld [vmem:[#allocation11_spill] sm:$0xff] }
 0x6b2   :  { %v4677_v15 = vpop.f32.mrf.mxu2 }
 0x6b3   :  { %v9998_v43 = vpop.f32.mrf.mxu3 }
 0x6b4   :  { %10902 = vst [vmem:[#allocation103_spill] sm:$0xff] %v9998_v43  ;;  %v4181_v41 = vpop.f32.mrf.mxu1  ;;  %v7698_v43 = vld [vmem:[#allocation3 + $0x98] sm:$0xff] }
 0x6b5   :  { %v4318_v16 = vadd.f32 %v4181_v41, %v9166_v45  ;;  %v10904_v41 = vld [vmem:[#allocation8_spill] sm:$0xff] }
 0x6b7   :  { %v10003_v39 = vadd.f32 %v4675_v59, %v4318_v16  ;;  %4220 = vmatmul.bf16.gmra.mxu1 %v7657_v31  ;;  %4719 = vmatmul.bf16.gmra.mxu2 %v7694_v23  ;;  %v7695_v59 = vld [vmem:[#allocation3 + $0x80] sm:$0xff]  ;;  %v2763_v16 = vadd.f32 %v10904_v41, %v9135_v51 }
 0x6b8   :  { %v10906_v23 = vld [vmem:[#allocation14_spill] sm:$0xff] }
 0x6b9   :  { %v10907_v51 = vld [vmem:[#allocation10_spill] sm:$0xff] }
 0x6ba   :  { %v4680_v27 = vpop.f32.mrf.mxu2 }
 0x6bb   :  { %v3817_v32 = vpop.f32.mrf.mxu3 }
 0x6bc   :  { %v10007_v30 = vadd.f32 %v3817_v32, %v3382_v6  ;;  %v4183_v2 = vpop.f32.mrf.mxu1  ;;  %v3333_v6 = vadd.f32 %v10905_v7, %v2763_v16 }
 0x6bd   :  { %v4319_v3 = vadd.f32 %v4183_v2, %v3825_v55 }
 0x6be   :  { %10903 = vst [vmem:[#allocation104_spill] sm:$0xff] %v10007_v30  ;;  %v3827_v47 = vadd.f32 %v10906_v23, %v3333_v6  ;;  %v7705_v30 = vld [vmem:[#allocation3 + $0xd0] sm:$0xff] }
 0x6bf   :  { %v10009_v45 = vadd.f32 %v4677_v15, %v4319_v3  ;;  %v7659_v3 = vld [vmem:[#allocation3 + $0x78] sm:$0xff] }
 0x6c2   :  { %v4682_v35 = vpop.f32.mrf.mxu2 }
 0x6c4   :  { %v4186_v44 = vpop.f32.mrf.mxu1 }
 0x6c5   :  { %v4320_v14 = vadd.f32 %v4186_v44, %v9205_v33  ;;  %v7696_v44 = vld [vmem:[#allocation3 + $0x88] sm:$0xff] }
 0x6c7   :  { %v10014_v61 = vadd.f32 %v4680_v27, %v4320_v14  ;;  %4225 = vmatmul.bf16.gmra.mxu1 %v7658_v50  ;;  %4724 = vmatmul.bf16.gmra.mxu2 %v7695_v59  ;;  %v10908_v27 = vld [vmem:[#allocation9_spill] sm:$0xff] }
 0x6c8   :  { %v2768_v14 = vadd.f32 %v10908_v27, %v10907_v51  ;;  %v10913_v51 = vld [vmem:[#allocation20_spill] sm:$0xff] }
 0x6ca   :  { %v4685_v31 = vpop.f32.mrf.mxu2  ;;  %v3335_v59 = vadd.f32 %v9240_v17, %v2768_v14  ;;  %v10912_v17 = vld [vmem:[#allocation17_spill] sm:$0xff] }
 0x6cc   :  { %v4188_v15 = vpop.f32.mrf.mxu1  ;;  %v3829_v16 = vadd.f32 %v9287_v19, %v3335_v59 }
 0x6cd   :  { %v4321_v34 = vadd.f32 %v4188_v15, %v3827_v47  ;;  %v7660_v15 = vld [vmem:[#allocation3 + $0x80] sm:$0xff] }
 0x6cf   :  { %v10018_v55 = vadd.f32 %v4682_v35, %v4321_v34  ;;  %v7697_v34 = vld [vmem:[#allocation3 + $0x90] sm:$0xff] }
 0x6d2   :  { %v4687_v32 = vpop.f32.mrf.mxu2 }
 0x6d4   :  { %v4191_v33 = vpop.f32.mrf.mxu1 }
 0x6d5   :  { %v4322_v2 = vadd.f32 %v4191_v33, %v9250_v42  ;;  %v10910_v33 = vld [vmem:[#allocation13_spill] sm:$0xff] }
 0x6d7   :  { %v10023_v50 = vadd.f32 %v4685_v31, %v4322_v2  ;;  %4230 = vmatmul.bf16.gmra.mxu1 %v7659_v3  ;;  %4729 = vmatmul.bf16.gmra.mxu2 %v7696_v44  ;;  %v10911_v31 = vld [vmem:[#allocation12_spill] sm:$0xff] }
 0x6d8   :  { %v2773_v2 = vadd.f32 %v10911_v31, %v10910_v33  ;;  %v10915_v33 = vld [vmem:[#allocation16_spill] sm:$0xff] }
 0x6d9   :  { %10909 = vst [vmem:[#allocation8_spill] sm:$0xff] %v10023_v50  ;;  %v7703_v50 = vld [vmem:[#allocation3 + $0xc0] sm:$0xff] }
 0x6da   :  { %v4690_v41 = vpop.f32.mrf.mxu2  ;;  %v3337_v44 = vadd.f32 %v10912_v17, %v2773_v2 }
 0x6dc   :  { %v4193_v35 = vpop.f32.mrf.mxu1  ;;  %v3831_v27 = vadd.f32 %v10913_v51, %v3337_v44 }
 0x6dd   :  { %v4323_v7 = vadd.f32 %v4193_v35, %v3829_v16  ;;  %v10914_v35 = vld [vmem:[#allocation22_spill] sm:$0xff] }
 0x6df   :  { %v10027_v6 = vadd.f32 %v4687_v32, %v4323_v7 }
 0x6e2   :  { %v4692_v23 = vpop.f32.mrf.mxu2 }
 0x6e4   :  { %v4196_v42 = vpop.f32.mrf.mxu1 }
 0x6e5   :  { %v4324_v47 = vadd.f32 %v4196_v42, %v9297_v36  ;;  %v7661_v42 = vld [vmem:[#allocation3 + $0x88] sm:$0xff] }
 0x6e7   :  { %v10032_v3 = vadd.f32 %v4690_v41, %v4324_v47  ;;  %4235 = vmatmul.bf16.gmra.mxu1 %v7660_v15  ;;  %4734 = vmatmul.bf16.gmra.mxu2 %v7697_v34  ;;  %v10916_v41 = vld [vmem:[#allocation15_spill] sm:$0xff]  ;;  %v10917_v34 = vld [vmem:[#allocation21_spill] sm:$0xff] }
 0x6e8   :  { %v2778_v47 = vadd.f32 %v10916_v41, %v10915_v33 }
 0x6ea   :  { %v4695_v19 = vpop.f32.mrf.mxu2  ;;  %v3339_v31 = vadd.f32 %v10917_v34, %v2778_v47 }
 0x6ec   :  { %v4198_v32 = vpop.f32.mrf.mxu1  ;;  %v3833_v17 = vadd.f32 %v9359_v8, %v3339_v31 }
 0x6ed   :  { %v4325_v14 = vadd.f32 %v4198_v32, %v3831_v27 }
 0x6ef   :  { %v10036_v59 = vadd.f32 %v4692_v23, %v4325_v14 }
 0x6f2   :  { %v4697_v16 = vpop.f32.mrf.mxu2 }
 0x6f4   :  { %v4201_v36 = vpop.f32.mrf.mxu1 }
 0x6f5   :  { %v4326_v7 = vadd.f32 %v4201_v36, %v10914_v35  ;;  %v7662_v35 = vld [vmem:[#allocation3 + $0x90] sm:$0xff] }
 0x6f7   :  { %v10041_v15 = vadd.f32 %v4695_v19, %v4326_v7  ;;  %4240 = vmatmul.bf16.gmra.mxu1 %v7661_v42  ;;  %4739 = vmatmul.bf16.gmra.mxu2 %v7698_v43  ;;  %v7699_v7 = vld [vmem:[#allocation3 + $0xa0] sm:$0xff] }
 0x6f8   :  { %v10919_v43 = vld [vmem:[#allocation19_spill] sm:$0xff]  ;;  %v10920_v42 = vld [vmem:[#allocation18_spill] sm:$0xff] }
 0x6f9   :  { %v2783_v8 = vadd.f32 %v10920_v42, %v10919_v43 }
 0x6fa   :  { %v4700_v2 = vpop.f32.mrf.mxu2 }
 0x6fc   :  { %v4203_v23 = vpop.f32.mrf.mxu1 }
 0x6fd   :  { %v4327_v44 = vadd.f32 %v4203_v23, %v3833_v17 }
 0x6ff   :  { %v10045_v51 = vadd.f32 %v4697_v16, %v4327_v44  ;;  %v3341_v16 = vadd.f32 %v9365_v20, %v2783_v8  ;;  %v7663_v44 = vld [vmem:[#allocation3 + $0x98] sm:$0xff] }
 0x700   :  { %v10922_v20 = vld [vmem:[#allocation26_spill] sm:$0xff] }
 0x701   :  { %10918 = vst [vmem:[#allocation11_spill] sm:$0xff] %v10045_v51  ;;  %v7702_v51 = vld [vmem:[#allocation3 + $0xb8] sm:$0xff] }
 0x702   :  { %v4702_v27 = vpop.f32.mrf.mxu2 }
 0x703   :  { %v4867_v32 = vpop.permute.xlu2 %4866 }
 0x704   :  { %v10048_v14 = vmax.f32 %v9990_v24, %v4867_v32  ;;  %v4206_v36 = vpop.f32.mrf.mxu1  ;;  %v3835_v24 = vadd.f32 %v9398_v37, %v3341_v16  ;;  %v7700_v32 = vld [vmem:[#allocation3 + $0xa8] sm:$0xff]  ;;  %v10923_v16 = vld [vmem:[#allocation30_spill] sm:$0xff] }
 0x705   :  { %v4328_v19 = vadd.f32 %v4206_v36, %v9374_v12 }
 0x706   :  { %5034 = vrot.lane.b32.xlu1 %v10048_v14, %s8009_s26 }
 0x707   :  { %v10055_v33 = vadd.f32 %v4700_v2, %v4328_v19  ;;  %4245 = vmatmul.bf16.gmra.mxu1 %v7662_v35  ;;  %4744 = vmatmul.bf16.gmra.mxu2 %v7699_v7  ;;  %v10921_v2 = vld [vmem:[#allocation23_spill] sm:$0xff] }
 0x708   :  { %v2788_v36 = vadd.f32 %v10921_v2, %v9357_v18  ;;  %v10924_v18 = vld [vmem:[#allocation25_spill] sm:$0xff] }
 0x709   :  { %v10927_v2 = vld [vmem:[#allocation33_spill] sm:$0xff] }
 0x70a   :  { %v4705_v41 = vpop.f32.mrf.mxu2  ;;  %v3343_v35 = vadd.f32 %v10922_v20, %v2788_v36 }
 0x70c   :  { %v4208_v47 = vpop.f32.mrf.mxu1  ;;  %v3837_v7 = vadd.f32 %v9431_v25, %v3343_v35 }
 0x70d   :  { %v4329_v34 = vadd.f32 %v4208_v47, %v3835_v24  ;;  %v7664_v47 = vld [vmem:[#allocation3 + $0xa0] sm:$0xff] }
 0x70f   :  { %v10059_v12 = vadd.f32 %v4702_v27, %v4329_v34  ;;  %v7701_v34 = vld [vmem:[#allocation3 + $0xb0] sm:$0xff] }
 0x712   :  { %v4707_v31 = vpop.f32.mrf.mxu2 }
 0x714   :  { %v4211_v17 = vpop.f32.mrf.mxu1 }
 0x715   :  { %v4330_v23 = vadd.f32 %v4211_v17, %v9412_v11 }
 0x717   :  { %v10064_v19 = vadd.f32 %v4705_v41, %v4330_v23  ;;  %4250 = vmatmul.bf16.gmra.mxu1 %v7663_v44  ;;  %4749 = vmatmul.bf16.gmra.mxu2 %v7700_v32  ;;  %v10925_v41 = vld [vmem:[#allocation24_spill] sm:$0xff]  ;;  %v10926_v44 = vld [vmem:[#allocation29_spill] sm:$0xff] }
 0x718   :  { %v2793_v17 = vadd.f32 %v10925_v41, %v10924_v18  ;;  %v10929_v18 = vld [vmem:[#allocation28_spill] sm:$0xff] }
 0x71a   :  { %v4710_v37 = vpop.f32.mrf.mxu2  ;;  %v3345_v32 = vadd.f32 %v10926_v44, %v2793_v17  ;;  %v10933_v44 = vld [vmem:[#allocation38_spill] sm:$0xff] }
 0x71c   :  { %v4213_v27 = vpop.f32.mrf.mxu1  ;;  %v3839_v36 = vadd.f32 %v10927_v2, %v3345_v32 }
 0x71d   :  { %v4331_v43 = vadd.f32 %v4213_v27, %v3837_v7 }
 0x71f   :  { %v10068_v42 = vadd.f32 %v4707_v31, %v4331_v43  ;;  %v10928_v43 = vld [vmem:[#allocation35_spill] sm:$0xff] }
 0x722   :  { %v4712_v8 = vpop.f32.mrf.mxu2 }
 0x724   :  { %v4216_v11 = vpop.f32.mrf.mxu1 }
 0x725   :  { %v4332_v24 = vadd.f32 %v4216_v11, %v10923_v16  ;;  %v7665_v16 = vld [vmem:[#allocation3 + $0xa8] sm:$0xff] }
 0x727   :  { %v10073_v23 = vadd.f32 %v4710_v37, %v4332_v24  ;;  %4255 = vmatmul.bf16.gmra.mxu1 %v7664_v47  ;;  %4754 = vmatmul.bf16.gmra.mxu2 %v7701_v34  ;;  %v10930_v37 = vld [vmem:[#allocation27_spill] sm:$0xff]  ;;  %v10932_v34 = vld [vmem:[#allocation34_spill] sm:$0xff] }
 0x728   :  { %v2798_v24 = vadd.f32 %v10930_v37, %v10929_v18  ;;  %v10934_v18 = vld [vmem:[#allocation32_spill] sm:$0xff] }
 0x72a   :  { %v4715_v25 = vpop.f32.mrf.mxu2  ;;  %v3347_v41 = vadd.f32 %v10932_v34, %v2798_v24 }
 0x72c   :  { %v4218_v31 = vpop.f32.mrf.mxu1  ;;  %v3841_v32 = vadd.f32 %v10933_v44, %v3347_v41 }
 0x72d   :  { %v4333_v20 = vadd.f32 %v4218_v31, %v3839_v36 }
 0x72f   :  { %v10077_v35 = vadd.f32 %v4712_v8, %v4333_v20 }
 0x732   :  { %v4717_v7 = vpop.f32.mrf.mxu2 }
 0x734   :  { %v4221_v27 = vpop.f32.mrf.mxu1 }
 0x735   :  { %v4334_v11 = vadd.f32 %v4221_v27, %v10928_v43  ;;  %v7666_v43 = vld [vmem:[#allocation3 + $0xb0] sm:$0xff] }
 0x737   :  { %v10082_v47 = vadd.f32 %v4715_v25, %v4334_v11  ;;  %4260 = vmatmul.bf16.gmra.mxu1 %v7665_v16  ;;  %4759 = vmatmul.bf16.gmra.mxu2 %v7702_v51  ;;  %v10935_v25 = vld [vmem:[#allocation31_spill] sm:$0xff] }
 0x738   :  { %v2803_v11 = vadd.f32 %v10935_v25, %v10934_v18  ;;  %v10936_v51 = vld [vmem:[#allocation39_spill] sm:$0xff]  ;;  %v10939_v18 = vld [vmem:[#allocation37_spill] sm:$0xff] }
 0x739   :  { %10931 = vst [vmem:[#allocation14_spill] sm:$0xff] %v10082_v47  ;;  %v7704_v47 = vld [vmem:[#allocation3 + $0xc8] sm:$0xff] }
 0x73a   :  { %v4720_v17 = vpop.f32.mrf.mxu2  ;;  %v3349_v37 = vadd.f32 %v10936_v51, %v2803_v11  ;;  %v10942_v11 = vld [vmem:[#allocation46_spill] sm:$0xff] }
 0x73c   :  { %v4223_v8 = vpop.f32.mrf.mxu1  ;;  %v3843_v34 = vadd.f32 %v9571_v53, %v3349_v37 }
 0x73d   :  { %v4335_v2 = vadd.f32 %v4223_v8, %v3841_v32  ;;  %v10938_v8 = vld [vmem:[#allocation43_spill] sm:$0xff] }
 0x73f   :  { %v10086_v36 = vadd.f32 %v4717_v7, %v4335_v2 }
 0x742   :  { %v4722_v31 = vpop.f32.mrf.mxu2 }
 0x744   :  { %v4226_v20 = vpop.f32.mrf.mxu1 }
 0x745   :  { %v4336_v27 = vadd.f32 %v4226_v20, %v9545_v56  ;;  %v7667_v20 = vld [vmem:[#allocation3 + $0xb8] sm:$0xff] }
 0x747   :  { %v10091_v16 = vadd.f32 %v4720_v17, %v4336_v27  ;;  %4265 = vmatmul.bf16.gmra.mxu1 %v7666_v43  ;;  %4764 = vmatmul.bf16.gmra.mxu2 %v7703_v50  ;;  %v10940_v17 = vld [vmem:[#allocation36_spill] sm:$0xff]  ;;  %v10941_v50 = vld [vmem:[#allocation42_spill] sm:$0xff] }
 0x748   :  { %v2808_v27 = vadd.f32 %v10940_v17, %v10939_v18  ;;  %v10944_v18 = vld [vmem:[#allocation41_spill] sm:$0xff] }
 0x74a   :  { %v4725_v24 = vpop.f32.mrf.mxu2  ;;  %v3351_v25 = vadd.f32 %v10941_v50, %v2808_v27  ;;  %v10948_v50 = vld [vmem:[#allocation51_spill] sm:$0xff] }
 0x74c   :  { %v4228_v7 = vpop.f32.mrf.mxu1  ;;  %v3845_v51 = vadd.f32 %v10942_v11, %v3351_v25 }
 0x74d   :  { %v4337_v41 = vadd.f32 %v4228_v7, %v3843_v34 }
 0x74f   :  { %v10095_v44 = vadd.f32 %v4722_v31, %v4337_v41 }
 0x751   :  { %10937 = vst [vmem:[#allocation10_spill] sm:$0xff] %v10095_v44  ;;  %v7668_v44 = vld [vmem:[#allocation3 + $0xc0] sm:$0xff] }
 0x752   :  { %v4727_v32 = vpop.f32.mrf.mxu2 }
 0x754   :  { %v4231_v56 = vpop.f32.mrf.mxu1 }
 0x755   :  { %v4338_v2 = vadd.f32 %v4231_v56, %v10938_v8  ;;  %v10943_v56 = vld [vmem:[#allocation48_spill] sm:$0xff] }
 0x757   :  { %v10100_v43 = vadd.f32 %v4725_v24, %v4338_v2  ;;  %4270 = vmatmul.bf16.gmra.mxu1 %v7667_v20  ;;  %4769 = vmatmul.bf16.gmra.mxu2 %v7704_v47  ;;  %v10945_v24 = vld [vmem:[#allocation40_spill] sm:$0xff]  ;;  %v10947_v47 = vld [vmem:[#allocation47_spill] sm:$0xff] }
 0x758   :  { %v2813_v2 = vadd.f32 %v10945_v24, %v10944_v18  ;;  %v10950_v18 = vld [vmem:[#allocation45_spill] sm:$0xff]  ;;  %v10952_v24 = vld [vmem:[#allocation52_spill] sm:$0xff] }
 0x75a   :  { %v4730_v53 = vpop.f32.mrf.mxu2  ;;  %v3353_v17 = vadd.f32 %v10947_v47, %v2813_v2 }
 0x75c   :  { %v4233_v31 = vpop.f32.mrf.mxu1  ;;  %v3847_v25 = vadd.f32 %v10948_v50, %v3353_v17 }
 0x75d   :  { %v4339_v37 = vadd.f32 %v4233_v31, %v3845_v51 }
 0x75f   :  { %v10104_v34 = vadd.f32 %v4727_v32, %v4339_v37 }
 0x762   :  { %v4732_v7 = vpop.f32.mrf.mxu2 }
 0x764   :  { %v4236_v41 = vpop.f32.mrf.mxu1 }
 0x765   :  { %v4340_v8 = vadd.f32 %v4236_v41, %v10943_v56  ;;  %v10949_v41 = vld [vmem:[#allocation53_spill] sm:$0xff] }
 0x767   :  { %v10109_v20 = vadd.f32 %v4730_v53, %v4340_v8  ;;  %4275 = vmatmul.bf16.gmra.mxu1 %v7668_v44  ;;  %4774 = vmatmul.bf16.gmra.mxu2 %v7705_v30  ;;  %v10951_v53 = vld [vmem:[#allocation44_spill] sm:$0xff]  ;;  %v10123_v30 = vld [vmem:[%s10788_s4] ss:$0 sm:$0xff] }
 0x768   :  { %v2818_v8 = vadd.f32 %v10951_v53, %v10950_v18  ;;  %v7670_v18 = vld [vmem:[#allocation3 + $0xd0] sm:$0xff]  ;;  %v10955_v53 = vld [vmem:[#allocation50_spill] sm:$0xff] }
 0x769   :  { %10946 = vst [vmem:[#allocation9_spill] sm:$0xff] %v10109_v20 }
 0x76a   :  { %v4735_v27 = vpop.f32.mrf.mxu2  ;;  %v3355_v2 = vadd.f32 %v10952_v24, %v2818_v8  ;;  %v10956_v8 = vld [vmem:[#allocation49_spill] sm:$0xff] }
 0x76b   :  { %v2823_v24 = vadd.f32 %v10956_v8, %v10955_v53 }
 0x76c   :  { %v4238_v32 = vpop.f32.mrf.mxu1  ;;  %v3849_v50 = vadd.f32 %v9700_v46, %v3355_v2  ;;  %v10957_v46 = vld [vmem:[#allocation56_spill] sm:$0xff] }
 0x76d   :  { %v4341_v11 = vadd.f32 %v4238_v32, %v3847_v25 }
 0x76f   :  { %v10113_v51 = vadd.f32 %v4732_v7, %v4341_v11  ;;  %v7707_v11 = vld [vmem:[#allocation3 + $0xe0] sm:$0xff] }
 0x772   :  { %v4737_v31 = vpop.f32.mrf.mxu2 }
 0x774   :  { %v4241_v37 = vpop.f32.mrf.mxu1 }
 0x775   :  { %v4342_v56 = vadd.f32 %v4241_v37, %v10949_v41  ;;  %v10954_v41 = vld [vmem:[#allocation57_spill] sm:$0xff] }
 0x777   :  { %v10118_v44 = vadd.f32 %v4735_v27, %v4342_v56  ;;  %4280 = vmatmul.bf16.gmra.mxu1 %v7669_v0  ;;  %4779 = vmatmul.bf16.gmra.mxu2 %v7706_v21 }
 0x778   :  { %v5035_v7 = vpop.permute.xlu1 %5034 }
 0x779   :  { %v5146_v47 = vmax.f32 %v10048_v14, %v5035_v7  ;;  %v3357_v7 = vadd.f32 %v10957_v46, %v2823_v24 }
 0x77a   :  { %v4740_v17 = vpop.f32.mrf.mxu2 }
 0x77b   :  { %v5206_v25 = vadd.f32 %v10123_v30, %v5146_v47  ;;  %v3851_v2 = vadd.f32 %v9744_v63, %v3357_v7 }
 0x77c   :  { %v4243_v32 = vpop.f32.mrf.mxu1 }
 0x77d   :  { %5262 = vst [vmem:[#allocation4] sm:$0xff] %v5206_v25  ;;  %v4343_v27 = vadd.f32 %v4243_v32, %v3849_v50  ;;  %v7708_v32 = vld [vmem:[#allocation3 + $0xe8] sm:$0xff] }
 0x77f   :  { %v10129_v0 = vadd.f32 %v4737_v31, %v4343_v27 }
 0x781   :  { %10953 = vst [vmem:[#allocation13_spill] sm:$0xff] %v10129_v0 }
 0x782   :  { %v4742_v21 = vpop.f32.mrf.mxu2 }
 0x784   :  { %v4246_v37 = vpop.f32.mrf.mxu1 }
 0x785   :  { %v4344_v56 = vadd.f32 %v4246_v37, %v10954_v41  ;;  %v7671_v37 = vld [vmem:[#allocation3 + $0xd8] sm:$0xff]  ;;  %v10958_v41 = vld [vmem:[#allocation55_spill] sm:$0xff] }
 0x787   :  { %v10134_v14 = vadd.f32 %v4740_v17, %v4344_v56  ;;  %4285 = vmatmul.bf16.gmra.mxu1 %v7670_v18  ;;  %4784 = vmatmul.bf16.gmra.mxu2 %v7707_v11  ;;  %v10959_v56 = vld [vmem:[#allocation54_spill] sm:$0xff] }
 0x788   :  { %v2828_v18 = vadd.f32 %v10959_v56, %v10958_v41 }
 0x789   :  { %4922 = vrot.lane.b32.xlu0 %v10134_v14, %s8008_s12 }
 0x78a   :  { %v4745_v31 = vpop.f32.mrf.mxu2 }
 0x78c   :  { %v4248_v47 = vpop.f32.mrf.mxu1 }
 0x78d   :  { %v4345_v50 = vadd.f32 %v4248_v47, %v3851_v2  ;;  %v7672_v47 = vld [vmem:[#allocation3 + $0xe0] sm:$0xff] }
 0x78f   :  { %v10140_v25 = vadd.f32 %v4742_v21, %v4345_v50  ;;  %v3359_v21 = vadd.f32 %v9748_v5, %v2828_v18  ;;  %v7709_v50 = vld [vmem:[#allocation3 + $0xf0] sm:$0xff] }
 0x791   :  { %4868 = vrot.lane.b32.xlu0 %v9996_v4, %s8008_s12  ;;  %4924 = vrot.lane.b32.xlu1 %v10140_v25, %s8008_s12  ;;  %v3853_v8 = vadd.f32 %v9819_v28, %v3359_v21  ;;  %v7673_v21 = vld [vmem:[#allocation3 + $0xe8] sm:$0xff] }
 0x792   :  { %v4747_v17 = vpop.f32.mrf.mxu2 }
 0x794   :  { %v4251_v27 = vpop.f32.mrf.mxu1 }
 0x795   :  { %v4346_v11 = vadd.f32 %v4251_v27, %v9754_v22  ;;  %v3854_v22 = vadd.f32 %v9827_v58, %v9770_v54 }
 0x797   :  { %v10149_v63 = vadd.f32 %v4745_v31, %v4346_v11  ;;  %4290 = vmatmul.bf16.gmra.mxu1 %v7671_v37  ;;  %4789 = vmatmul.bf16.gmra.mxu2 %v7708_v32  ;;  %v10960_v11 = vld [vmem:[#allocation59_spill] sm:$0xff]  ;;  %v10961_v37 = vld [vmem:[#allocation58_spill] sm:$0xff] }
 0x798   :  { %v2833_v32 = vadd.f32 %v10961_v37, %v10960_v11 }
 0x79a   :  { %v4750_v53 = vpop.f32.mrf.mxu2  ;;  %v3361_v5 = vadd.f32 %v9793_v29, %v2833_v32 }
 0x79c   :  { %v4253_v24 = vpop.f32.mrf.mxu1 }
 0x79d   :  { %v4347_v46 = vadd.f32 %v4253_v24, %v3853_v8  ;;  %v7710_v8 = vld [vmem:[#allocation3 + $0xf8] sm:$0xff] }
 0x79f   :  { %v10153_v7 = vadd.f32 %v4747_v17, %v4347_v46  ;;  %v3855_v17 = vadd.f32 %v9848_v57, %v3361_v5  ;;  %v10962_v46 = vld [vmem:[#allocation60_spill] sm:$0xff]  ;;  %v7711_v5 = vld [vmem:[#allocation3 + $0x100] sm:$0xff] }
 0x7a2   :  { %v4752_v2 = vpop.f32.mrf.mxu2 }
 0x7a4   :  { %v4256_v27 = vpop.f32.mrf.mxu1 }
 0x7a5   :  { %v4348_v31 = vadd.f32 %v4256_v27, %v3854_v22  ;;  %v2838_v22 = vadd.f32 %v10962_v46, %v9788_v49  ;;  %v10965_v27 = vld [vmem:[#allocation69_spill] sm:$0xff] }
 0x7a7   :  { %v10159_v41 = vadd.f32 %v4750_v53, %v4348_v31  ;;  %4295 = vmatmul.bf16.gmra.mxu1 %v7672_v47  ;;  %4794 = vmatmul.bf16.gmra.mxu2 %v7709_v50  ;;  %v10964_v47 = vld [vmem:[#allocation64_spill] sm:$0xff] }
 0x7a8   :  { %v3363_v50 = vadd.f32 %v10964_v47, %v2838_v22  ;;  %v10968_v22 = vld [vmem:[#allocation74_spill] sm:$0xff] }
 0x7a9   :  { %4930 = vrot.lane.b32.xlu0 %v10159_v41, %s8008_s12 }
 0x7aa   :  { %v4755_v28 = vpop.f32.mrf.mxu2 }
 0x7ac   :  { %v4258_v54 = vpop.f32.mrf.mxu1 }
 0x7ad   :  { %v4349_v58 = vadd.f32 %v4258_v54, %v3855_v17 }
 0x7af   :  { %v10165_v56 = vadd.f32 %v4752_v2, %v4349_v58  ;;  %v3857_v2 = vadd.f32 %v10965_v27, %v3363_v50  ;;  %v7675_v58 = vld [vmem:[#allocation3 + $0xf8] sm:$0xff] }
 0x7b2   :  { %v4757_v18 = vpop.f32.mrf.mxu2 }
 0x7b4   :  { %v4261_v24 = vpop.f32.mrf.mxu1 }
 0x7b5   :  { %v4350_v53 = vadd.f32 %v4261_v24, %v9856_v10  ;;  %v7674_v10 = vld [vmem:[#allocation3 + $0xf0] sm:$0xff]  ;;  %v10966_v24 = vld [vmem:[#allocation67_spill] sm:$0xff] }
 0x7b7   :  { %v10170_v29 = vadd.f32 %v4755_v28, %v4350_v53  ;;  %4300 = vmatmul.bf16.gmra.mxu1 %v7673_v21  ;;  %4799 = vmatmul.bf16.gmra.mxu2 %v7710_v8  ;;  %v10967_v53 = vld [vmem:[#allocation66_spill] sm:$0xff] }
 0x7b8   :  { %v2848_v46 = vadd.f32 %v10967_v53, %v10966_v24  ;;  %v2858_v24 = vadd.f32 %v9912_v1, %v9914_v13 }
 0x7b9   :  { %10963 = vst [vmem:[#allocation12_spill] sm:$0xff] %v10170_v29 }
 0x7ba   :  { %v10173_v57 = vpop.f32.mrf.mxu2  ;;  %v3367_v47 = vadd.f32 %v10968_v22, %v2848_v46 }
 0x7bc   :  { %v4263_v31 = vpop.f32.mrf.mxu1  ;;  %v3861_v27 = vadd.f32 %v9920_v38, %v3367_v47  ;;  %v3371_v38 = vadd.f32 %v9931_v26, %v2858_v24 }
 0x7bd   :  { %v4351_v11 = vadd.f32 %v4263_v31, %v3857_v2 }
 0x7be   :  { %v3865_v46 = vadd.f32 %v9943_v52, %v3371_v38 }
 0x7bf   :  { %v10176_v37 = vadd.f32 %v4757_v18, %v4351_v11 }
 0x7c2   :  { %v10178_v32 = vpop.f32.mrf.mxu2 }
 0x7c4   :  { %v4266_v17 = vpop.f32.mrf.mxu1 }
 0x7c7   :  { %4305 = vmatmul.bf16.gmra.mxu1 %v7674_v10  ;;  %4804 = vmatmul.bf16.gmra.mxu2 %v7711_v5 }
 0x7ca   :  { %v4765_v49 = vpop.f32.mrf.mxu2 }
 0x7cc   :  { %v10180_v28 = vpop.f32.mrf.mxu1 }
 0x7d2   :  { %v4767_v54 = vpop.f32.mrf.mxu2 }
 0x7d4   :  { %v4271_v21 = vpop.f32.mrf.mxu1 }
 0x7d5   :  { %v4354_v8 = vadd.f32 %v4271_v21, %v9900_v60 }
 0x7d7   :  { %v10185_v18 = vadd.f32 %v4765_v49, %v4354_v8  ;;  %4310 = vmatmul.bf16.gmra.mxu1 %v7675_v58 }
 0x7da   :  { %v10188_v50 = vpop.f32.mrf.mxu2 }
 0x7dc   :  { %v4273_v2 = vpop.f32.mrf.mxu1 }
 0x7dd   :  { %v4355_v31 = vadd.f32 %v4273_v2, %v3861_v27 }
 0x7df   :  { %v10191_v11 = vadd.f32 %v4767_v54, %v4355_v31 }
 0x7e1   :  { %10969 = vst [vmem:[#allocation17_spill] sm:$0xff] %v10191_v11 }
 0x7e2   :  { %v10193_v10 = vpop.f32.mrf.mxu2 }
 0x7e4   :  { %v10195_v5 = vpop.f32.mrf.mxu1 }
 0x7ea   :  { %v4775_v60 = vpop.f32.mrf.mxu2 }
 0x7ec   :  { %v10197_v21 = vpop.f32.mrf.mxu1 }
 0x7f2   :  { %v4777_v49 = vpop.f32.mrf.mxu2 }
 0x7f4   :  { %v4281_v8 = vpop.f32.mrf.mxu1 }
 0x7f5   :  { %v4358_v58 = vadd.f32 %v4281_v8, %v9933_v48 }
 0x7f7   :  { %v10202_v53 = vadd.f32 %v4775_v60, %v4358_v58  ;;  %v10971_v58 = vld [vmem:[#allocation65_spill] sm:$0xff] }
 0x7fa   :  { %v10205_v54 = vpop.f32.mrf.mxu2 }
 0x7fb   :  { %v4923_v22 = vpop.permute.xlu0 %4922 }
 0x7fc   :  { %v5006_v47 = vmax.f32 %v10134_v14, %v4923_v22  ;;  %v4283_v27 = vpop.f32.mrf.mxu1  ;;  %v10972_v22 = vld [vmem:[#allocation70_spill] sm:$0xff] }
 0x7fd   :  { %v4359_v2 = vadd.f32 %v4283_v27, %v3865_v46 }
 0x7fe   :  { %5090 = vrot.lane.b32.xlu2 %v5006_v47, %s8009_s26 }
 0x7ff   :  { %v10210_v31 = vadd.f32 %v4777_v49, %v4359_v2 }
 0x802   :  { %v10212_v48 = vpop.f32.mrf.mxu2 }
 0x803   :  { %v4869_v1 = vpop.permute.xlu0 %4868  ;;  %v4925_v52 = vpop.permute.xlu1 %4924 }
 0x804   :  { %v10215_v13 = vmax.f32 %v9996_v4, %v4869_v1  ;;  %v10217_v26 = vpop.f32.mrf.mxu1  ;;  %v5007_v60 = vmax.f32 %v10140_v25, %v4925_v52  ;;  %v10970_v4 = vld [vmem:[#allocation61_spill] sm:$0xff] }
 0x805   :  { %v3364_v24 = vadd.f32 %v10971_v58, %v10970_v4 }
 0x806   :  { %4874 = vrot.lane.b32.xlu2 %v10014_v61, %s8008_s12  ;;  %5036 = vrot.lane.b32.xlu1 %v10215_v13, %s8009_s26 }
 0x807   :  { %v3858_v27 = vadd.f32 %v10972_v22, %v3364_v24  ;;  %v10976_v24 = vld [vmem:[#allocation97_spill] sm:$0xff] }
 0x809   :  { %v4352_v25 = vadd.f32 %v4266_v17, %v3858_v27 }
 0x80a   :  { %v4785_v14 = vpop.f32.mrf.mxu2 }
 0x80b   :  { %v4846_v52 = vadd.f32 %v10173_v57, %v4352_v25  ;;  %v10974_v57 = vld [vmem:[#allocation86_spill] sm:$0xff] }
 0x80c   :  { %v10224_v49 = vpop.f32.mrf.mxu1 }
 0x80e   :  { %5092 = vrot.lane.b32.xlu2 %v5007_v60, %s8009_s26 }
 0x812   :  { %v10227_v8 = vpop.f32.mrf.mxu2 }
 0x814   :  { %v4291_v38 = vpop.f32.mrf.mxu1 }
 0x815   :  { %v4362_v46 = vadd.f32 %v4291_v38, %v9955_v62 }
 0x816   :  { %4876 = vrot.lane.b32.xlu2 %v10018_v55, %s8008_s12 }
 0x817   :  { %v10235_v2 = vadd.f32 %v4785_v14, %v4362_v46  ;;  %v2873_v14 = vadd.f32 %v10974_v57, %v9949_v9  ;;  %v7721_v9 = vld [vmem:[%s10789_s5 + $0x8] sm:$0xff] }
 0x818   :  { %5349 = vmatpush.bf16.msra.mxu3 %v7721_v9 }
 0x819   :  { %10973 = vst [vmem:[#allocation20_spill] sm:$0xff] %v10235_v2 }
 0x81a   :  { %v10243_v4 = vpop.f32.mrf.mxu2 }
 0x81b   :  { %v4931_v1 = vpop.permute.xlu0 %4930 }
 0x81c   :  { %v10239_v11 = vmax.f32 %v10159_v41, %v4931_v1  ;;  %v10241_v29 = vpop.f32.mrf.mxu1  ;;  %v10975_v41 = vld [vmem:[#allocation93_spill] sm:$0xff] }
 0x81d   :  { %v3377_v58 = vadd.f32 %v10975_v41, %v2873_v14 }
 0x81e   :  { %5098 = vrot.lane.b32.xlu1 %v10239_v11, %s8009_s26  ;;  %4938 = vrot.lane.b32.xlu2 %v4846_v52, %s8008_s12 }
 0x81f   :  { %v3871_v38 = vadd.f32 %v10976_v24, %v3377_v58 }
 0x822   :  { %v4792_v17 = vpop.f32.mrf.mxu2 }
 0x824   :  { %v10248_v62 = vpop.f32.mrf.mxu1 }
 0x826   :  { %4882 = vrot.lane.b32.xlu1 %v10032_v3, %s8008_s12 }
 0x82a   :  { %v10258_v25 = vpop.f32.mrf.mxu2 }
 0x82c   :  { %v4298_v46 = vpop.f32.mrf.mxu1 }
 0x82d   :  { %v4365_v22 = vadd.f32 %v4298_v46, %v3871_v38 }
 0x82f   :  { %v10256_v27 = vadd.f32 %v4792_v17, %v4365_v22  ;;  %v7720_v17 = vld [vmem:[%s10789_s5] sm:$0xff] }
 0x830   :  { %5371 = vmatpush.bf16.msrb.mxu3 %v7720_v17 }
 0x831   :  { %10977 = vst [vmem:[#allocation22_spill] sm:$0xff] %v10256_v27 }
 0x832   :  { %v10262_v2 = vpop.f32.mrf.mxu2 }
 0x834   :  { %v10260_v1 = vpop.f32.mrf.mxu1 }
 0x83a   :  { %v4800_v14 = vpop.f32.mrf.mxu2 }
 0x83c   :  { %v10264_v0 = vpop.f32.mrf.mxu1 }
 0x844   :  { %v4306_v57 = vpop.f32.mrf.mxu1 }
 0x845   :  { %v4368_v41 = vadd.f32 %v4306_v57, %v9986_v40  ;;  %v5325_v40 = vld [vmem:[#allocation4 + $0x2] ss:$224 sm:$0x1] }
 0x847   :  { %v10270_v58 = vadd.f32 %v4800_v14, %v4368_v41  ;;  %v7722_v14 = vld [vmem:[%s10789_s5 + $0x10] sm:$0xff] }
 0x849   :  { %10978 = vst [vmem:[#allocation16_spill] sm:$0xff] %v10270_v58  ;;  %v10981_v58 = vld [vmem:[#allocation68_spill] sm:$0xff] }
 0x858   :  { %v5091_v24 = vpop.permute.xlu2 %5090 }
 0x859   :  { %v5174_v38 = vmax.f32 %v5006_v47, %v5091_v24 }
 0x85b   :  { %v5234_v46 = vadd.f32 %v10123_v30, %v5174_v38 }
 0x85d   :  { %5290 = vst [vmem:[#allocation4 + $0xe0] sm:$0xff] %v5234_v46 }
 0x860   :  { %v4875_v22 = vpop.permute.xlu2 %4874 }
 0x861   :  { %v10277_v27 = vmax.f32 %v10014_v61, %v4875_v22  ;;  %v5318_v22 = vld [vmem:[#allocation4] ss:$224 sm:$0x1] }
 0x863   :  { %5042 = vrot.lane.b32.xlu0 %v10277_v27, %s8009_s26 }
 0x864   :  { %v5326_v9 = vld [vmem:[#allocation4 + $0x2] ss:$224 sm:$0x2]  ;;  %v5319_v38 = vld [vmem:[#allocation4] ss:$224 sm:$0x2] }
 0x865   :  { %v5327_v57 = vor.u32 %v5326_v9, %v5325_v40  ;;  %v5320_v40 = vor.u32 %v5319_v38, %v5318_v22  ;;  %v5410_v22 = vld [vmem:[#allocation4 + $0x6] ss:$224 sm:$0x2] }
 0x867   :  { %v5328_v41 = vpack.c.bf16 %v5327_v57, %v5327_v57  ;;  %v5321_v9 = vpack.c.bf16 %v5320_v40, %v5320_v40 }
 0x868   :  { %v5093_v47 = vpop.permute.xlu2 %5092 }
 0x869   :  { %v5175_v17 = vmax.f32 %v5007_v60, %v5093_v47  ;;  %7264 = vmatmul.msk.bf16.vlgmr.msra.gmra.mxu3 %vm5338_vm1, %v5328_v41  ;;  %v7723_v60 = vld [vmem:[%s10789_s5 + $0x18] sm:$0xff] }
 0x86a   :  { %5401 = vmatpush.bf16.msra.mxu3 %v7722_v14 }
 0x86b   :  { %v5235_v61 = vadd.f32 %v10123_v30, %v5175_v17  ;;  %4932 = vrot.lane.b32.xlu0 %v10165_v56, %s8008_s12  ;;  %v5379_v17 = vld [vmem:[#allocation4 + $0x4] ss:$224 sm:$0x2] }
 0x86d   :  { %5291 = vst [vmem:[#allocation4 + $0xe8] sm:$0xff] %v5235_v61  ;;  %v5378_v61 = vld [vmem:[#allocation4 + $0x4] ss:$224 sm:$0x1] }
 0x870   :  { %v4877_v24 = vpop.permute.xlu2 %4876 }
 0x871   :  { %v10289_v46 = vmax.f32 %v10018_v55, %v4877_v24  ;;  %v5380_v24 = vor.u32 %v5379_v17, %v5378_v61 }
 0x873   :  { %5044 = vrot.lane.b32.xlu0 %v10289_v46, %s8009_s26 }
 0x878   :  { %v5037_v57 = vpop.permute.xlu1 %5036  ;;  %v4939_v14 = vpop.permute.xlu2 %4938 }
 0x879   :  { %v5147_v41 = vmax.f32 %v10215_v13, %v5037_v57  ;;  %v10297_v47 = vmax.f32 %v4846_v52, %v4939_v14  ;;  %7269 = vmatmul.msk.bf16.vlgmr.msrb.gmra.mxu3 %vm5338_vm1, %v5321_v9  ;;  %v7724_v13 = vld [vmem:[%s10789_s5 + $0x20] sm:$0xff]  ;;  %v5381_v52 = vpack.c.bf16 %v5380_v24, %v5380_v24  ;;  %v10979_v14 = vld [vmem:[#allocation63_spill] sm:$0xff] }
 0x87a   :  { %5432 = vmatpush.bf16.msrb.mxu3 %v7723_v60  ;;  %v5409_v60 = vld [vmem:[#allocation4 + $0x6] ss:$224 sm:$0x1] }
 0x87b   :  { %v5207_v55 = vadd.f32 %v10123_v30, %v5147_v41  ;;  %5106 = vrot.lane.b32.xlu0 %v10297_v47, %s8009_s26  ;;  %v5411_v57 = vor.u32 %v5410_v22, %v5409_v60  ;;  %v10980_v41 = vld [vmem:[#allocation62_spill] sm:$0xff] }
 0x87d   :  { %5263 = vst [vmem:[#allocation4 + $0x8] sm:$0xff] %v5207_v55  ;;  %v2843_v55 = vadd.f32 %v10980_v41, %v10979_v14  ;;  %v5412_v17 = vpack.c.bf16 %v5411_v57, %v5411_v57 }
 0x87f   :  { %v3365_v20 = vadd.f32 %v10981_v58, %v2843_v55 }
 0x883   :  { %4890 = vrot.lane.b32.xlu0 %v10055_v33, %s8008_s12 }
 0x889   :  { %7276 = vmatmul.msk.bf16.vlgmr.msra.gmra.mxu3 %vm5338_vm1, %v5381_v52 }
 0x88a   :  { %5463 = vmatpush.bf16.msra.mxu3 %v7724_v13  ;;  %v10982_v13 = vld [vmem:[#allocation73_spill] sm:$0xff] }
 0x88b   :  { %v3859_v52 = vadd.f32 %v10982_v13, %v3365_v20  ;;  %v7726_v20 = vld [vmem:[%s10789_s5 + $0x30] sm:$0xff]  ;;  %v10341_v13 = vpop.f32.mrf.mxu3 }
 0x890   :  { %v5099_v38 = vpop.permute.xlu1 %5098 }
 0x891   :  { %v5178_v40 = vmax.f32 %v10239_v11, %v5099_v38  ;;  %v4353_v11 = vadd.f32 %v10180_v28, %v3859_v52  ;;  %v5440_v38 = vld [vmem:[#allocation4 + $0x8] ss:$224 sm:$0x1] }
 0x893   :  { %v5238_v9 = vadd.f32 %v10123_v30, %v5178_v40  ;;  %v10320_v22 = vadd.f32 %v10178_v32, %v4353_v11  ;;  %v5441_v40 = vld [vmem:[#allocation4 + $0x8] ss:$224 sm:$0x2] }
 0x894   :  { %v5442_v60 = vor.u32 %v5441_v40, %v5440_v38  ;;  %v10984_v38 = vld [vmem:[#allocation77_spill] sm:$0xff] }
 0x895   :  { %5294 = vst [vmem:[#allocation4 + $0x100] sm:$0xff] %v5238_v9 }
 0x896   :  { %v5443_v58 = vpack.c.bf16 %v5442_v60, %v5442_v60 }
 0x898   :  { %v4883_v61 = vpop.permute.xlu1 %4882 }
 0x899   :  { %v4986_v24 = vmax.f32 %v10032_v3, %v4883_v61  ;;  %7283 = vmatmul.msk.bf16.vlgmr.msrb.gmra.mxu3 %vm5338_vm1, %v5412_v17  ;;  %v7725_v3 = vld [vmem:[%s10789_s5 + $0x28] sm:$0xff]  ;;  %v7727_v61 = vld [vmem:[%s10789_s5 + $0x38] sm:$0xff] }
 0x89a   :  { %5494 = vmatpush.bf16.msrb.mxu3 %v7725_v3 }
 0x89b   :  { %5050 = vrot.lane.b32.xlu2 %v4986_v24, %s8009_s26 }
 0x89c   :  { %v5472_v55 = vld [vmem:[#allocation4 + $0x20] ss:$224 sm:$0x2] }
 0x8a3   :  { %4940 = vrot.lane.b32.xlu2 %v10320_v22, %s8008_s12 }
 0x8a9   :  { %7290 = vmatmul.msk.bf16.vlgmr.msra.gmra.mxu3 %vm5338_vm1, %v5443_v58 }
 0x8aa   :  { %5525 = vmatpush.bf16.msra.mxu3 %v7726_v20 }
 0x8d5   :  { %v5043_v32 = vpop.permute.xlu0 %5042 }
 0x8d6   :  { %v5150_v28 = vmax.f32 %v10277_v27, %v5043_v32 }
 0x8d8   :  { %v5210_v9 = vadd.f32 %v10123_v30, %v5150_v28 }
 0x8da   :  { %5266 = vst [vmem:[#allocation4 + $0x20] sm:$0xff] %v5210_v9  ;;  %v5503_v9 = vld [vmem:[#allocation4 + $0x22] ss:$224 sm:$0x2] }
 0x8dd   :  { %v4933_v57 = vpop.permute.xlu0 %4932 }
 0x8de   :  { %v10334_v14 = vmax.f32 %v10165_v56, %v4933_v57  ;;  %v10983_v56 = vld [vmem:[#allocation75_spill] sm:$0xff] }
 0x8df   :  { %v3862_v40 = vadd.f32 %v10984_v38, %v10983_v56 }
 0x8e0   :  { %5100 = vrot.lane.b32.xlu1 %v10334_v14, %s8009_s26 }
 0x8e1   :  { %v5471_v41 = vld [vmem:[#allocation4 + $0x20] ss:$224 sm:$0x1]  ;;  %v4356_v58 = vadd.f32 %v10195_v5, %v3862_v40  ;;  %v5502_v32 = vld [vmem:[#allocation4 + $0x22] ss:$224 sm:$0x1] }
 0x8e2   :  { %v5473_v17 = vor.u32 %v5472_v55, %v5471_v41  ;;  %v5504_v41 = vor.u32 %v5503_v9, %v5502_v32  ;;  %v7728_v5 = vld [vmem:[%s10789_s5 + $0x40] sm:$0xff]  ;;  %v10985_v55 = vld [vmem:[#allocation72_spill] sm:$0xff] }
 0x8e3   :  { %v10352_v28 = vadd.f32 %v10188_v50, %v4356_v58 }
 0x8e4   :  { %v5474_v27 = vpack.c.bf16 %v5473_v17, %v5473_v17  ;;  %v10986_v17 = vld [vmem:[#allocation71_spill] sm:$0xff]  ;;  %v5505_v50 = vpack.c.bf16 %v5504_v41, %v5504_v41  ;;  %v5533_v41 = vld [vmem:[#allocation4 + $0x24] ss:$224 sm:$0x1] }
 0x8e5   :  { %v5045_v52 = vpop.permute.xlu0 %5044 }
 0x8e6   :  { %v5151_v11 = vmax.f32 %v10289_v46, %v5045_v52  ;;  %7297 = vmatmul.msk.bf16.vlgmr.msrb.gmra.mxu3 %vm5338_vm1, %v5474_v27 }
 0x8e7   :  { %5556 = vmatpush.bf16.msrb.mxu3 %v7727_v61  ;;  %v2853_v61 = vadd.f32 %v10986_v17, %v10985_v55 }
 0x8e8   :  { %v5211_v60 = vadd.f32 %v10123_v30, %v5151_v11  ;;  %4884 = vrot.lane.b32.xlu1 %v10036_v59, %s8008_s12 }
 0x8ea   :  { %5267 = vst [vmem:[#allocation4 + $0x28] sm:$0xff] %v5211_v60  ;;  %v10988_v60 = vld [vmem:[#allocation80_spill] sm:$0xff] }
 0x8ec   :  { %v5351_v3 = vpop.f32.mrf.mxu3 }
 0x8ed   :  { %v5107_v20 = vpop.permute.xlu0 %5106 }
 0x8ee   :  { %v5182_v46 = vmax.f32 %v10297_v47, %v5107_v20  ;;  %v10987_v47 = vld [vmem:[#allocation76_spill] sm:$0xff] }
 0x8ef   :  { %v3369_v56 = vadd.f32 %v10987_v47, %v2853_v61  ;;  %v10990_v61 = vld [vmem:[#allocation85_spill] sm:$0xff]  ;;  %v5565_v47 = vld [vmem:[#allocation4 + $0x26] ss:$224 sm:$0x2] }
 0x8f0   :  { %v5242_v57 = vadd.f32 %v10123_v30, %v5182_v46  ;;  %4946 = vrot.lane.b32.xlu1 %v10352_v28, %s8008_s12 }
 0x8f1   :  { %v3863_v58 = vadd.f32 %v10988_v60, %v3369_v56 }
 0x8f2   :  { %5298 = vst [vmem:[#allocation4 + $0x120] sm:$0xff] %v5242_v57 }
 0x8f3   :  { %v4357_v32 = vadd.f32 %v10197_v21, %v3863_v58 }
 0x8f4   :  { %v5353_v27 = vpop.f32.mrf.mxu3 }
 0x8f5   :  { %v4891_v52 = vpop.permute.xlu0 %4890  ;;  %v5051_v11 = vpop.permute.xlu2 %5050 }
 0x8f6   :  { %v10365_v38 = vmax.f32 %v10055_v33, %v4891_v52  ;;  %v5154_v40 = vmax.f32 %v4986_v24, %v5051_v11  ;;  %7304 = vmatmul.msk.bf16.vlgmr.msra.gmra.mxu3 %vm5338_vm1, %v5505_v50  ;;  %v10374_v33 = vadd.f32 %v10193_v10, %v4357_v32  ;;  %v5564_v52 = vld [vmem:[#allocation4 + $0x26] ss:$224 sm:$0x1] }
 0x8f7   :  { %5587 = vmatpush.bf16.msra.mxu3 %v7728_v5  ;;  %v5534_v5 = vld [vmem:[#allocation4 + $0x24] ss:$224 sm:$0x2]  ;;  %v5566_v56 = vor.u32 %v5565_v47, %v5564_v52 }
 0x8f8   :  { %v5214_v20 = vadd.f32 %v10123_v30, %v5154_v40  ;;  %5058 = vrot.lane.b32.xlu1 %v10365_v38, %s8009_s26  ;;  %v5535_v55 = vor.u32 %v5534_v5, %v5533_v41 }
 0x8f9   :  { %v5567_v60 = vpack.c.bf16 %v5566_v56, %v5566_v56 }
 0x8fa   :  { %5270 = vst [vmem:[#allocation4 + $0x40] sm:$0xff] %v5214_v20  ;;  %v5536_v17 = vpack.c.bf16 %v5535_v55, %v5535_v55 }
 0x8fc   :  { %v5373_v46 = vpop.f32.mrf.mxu3 }
 0x8fd   :  { %v5374_v9 = vadd.f32 %v5373_v46, %v5351_v3  ;;  %v4941_v57 = vpop.permute.xlu2 %4940  ;;  %v10989_v3 = vld [vmem:[#allocation81_spill] sm:$0xff] }
 0x8fe   :  { %v10377_v24 = vmax.f32 %v10320_v22, %v4941_v57  ;;  %v3866_v27 = vadd.f32 %v10990_v61, %v10989_v3  ;;  %v5595_v3 = vld [vmem:[#allocation4 + $0x28] ss:$224 sm:$0x1] }
 0x900   :  { %5108 = vrot.lane.b32.xlu0 %v10377_v24, %s8009_s26  ;;  %4948 = vrot.lane.b32.xlu1 %v10374_v33, %s8008_s12  ;;  %v4360_v10 = vadd.f32 %v10217_v26, %v3866_v27 }
 0x901   :  { %v5626_v56 = vld [vmem:[#allocation4 + $0x40] ss:$224 sm:$0x1] }
 0x902   :  { %v10390_v11 = vadd.f32 %v10205_v54, %v4360_v10  ;;  %v7729_v54 = vld [vmem:[%s10789_s5 + $0x48] sm:$0xff]  ;;  %v7731_v10 = vld [vmem:[%s10789_s5 + $0x58] sm:$0xff] }
 0x904   :  { %v5375_v21 = vpop.f32.mrf.mxu3 }
 0x906   :  { %7311 = vmatmul.msk.bf16.vlgmr.msrb.gmra.mxu3 %vm5338_vm1, %v5536_v17 }
 0x907   :  { %5618 = vmatpush.bf16.msrb.mxu3 %v7729_v54 }
 0x908   :  { %4892 = vrot.lane.b32.xlu0 %v10059_v12, %s8008_s12 }
 0x90c   :  { %v5403_v22 = vpop.f32.mrf.mxu3 }
 0x90d   :  { %v5407_v50 = vadd.f32 %v5403_v22, %v5374_v9  ;;  %v7730_v9 = vld [vmem:[%s10789_s5 + $0x50] sm:$0xff] }
 0x910   :  { %4954 = vrot.lane.b32.xlu0 %v10390_v11, %s8008_s12 }
 0x914   :  { %v5405_v40 = vpop.f32.mrf.mxu3 }
 0x916   :  { %7318 = vmatmul.msk.bf16.vlgmr.msra.gmra.mxu3 %vm5338_vm1, %v5567_v60  ;;  %v5627_v60 = vld [vmem:[#allocation4 + $0x40] ss:$224 sm:$0x2] }
 0x917   :  { %5649 = vmatpush.bf16.msra.mxu3 %v7730_v9 }
 0x91c   :  { %v5434_v58 = vpop.f32.mrf.mxu3 }
 0x91d   :  { %v5438_v20 = vadd.f32 %v5434_v58, %v5407_v50 }
 0x924   :  { %v5436_v32 = vpop.f32.mrf.mxu3 }
 0x92c   :  { %v5465_v46 = vpop.f32.mrf.mxu3 }
 0x92d   :  { %v5469_v26 = vadd.f32 %v5465_v46, %v5438_v20  ;;  %v7732_v20 = vld [vmem:[%s10789_s5 + $0x60] sm:$0xff] }
 0x934   :  { %v5467_v57 = vpop.f32.mrf.mxu3 }
 0x952   :  { %v5101_v41 = vpop.permute.xlu1 %5100 }
 0x953   :  { %v5179_v5 = vmax.f32 %v10334_v14, %v5101_v41 }
 0x955   :  { %v5239_v55 = vadd.f32 %v10123_v30, %v5179_v5 }
 0x957   :  { %5295 = vst [vmem:[#allocation4 + $0x108] sm:$0xff] %v5239_v55 }
 0x95a   :  { %v4885_v21 = vpop.permute.xlu1 %4884 }
 0x95b   :  { %v10404_v17 = vmax.f32 %v10036_v59, %v4885_v21  ;;  %v5657_v21 = vld [vmem:[#allocation4 + $0x42] ss:$224 sm:$0x1] }
 0x95d   :  { %5052 = vrot.lane.b32.xlu2 %v10404_v17, %s8009_s26 }
 0x95e   :  { %v5596_v61 = vld [vmem:[#allocation4 + $0x28] ss:$224 sm:$0x2] }
 0x95f   :  { %v5597_v27 = vor.u32 %v5596_v61, %v5595_v3  ;;  %v7733_v61 = vld [vmem:[%s10789_s5 + $0x68] sm:$0xff] }
 0x961   :  { %v5598_v22 = vpack.c.bf16 %v5597_v27, %v5597_v27 }
 0x962   :  { %v4947_v50 = vpop.permute.xlu1 %4946 }
 0x963   :  { %v10412_v14 = vmax.f32 %v10352_v28, %v4947_v50  ;;  %7325 = vmatmul.msk.bf16.vlgmr.msrb.gmra.mxu3 %vm5338_vm1, %v5598_v22  ;;  %v5628_v28 = vor.u32 %v5627_v60, %v5626_v56 }
 0x964   :  { %5680 = vmatpush.bf16.msrb.mxu3 %v7731_v10 }
 0x965   :  { %5114 = vrot.lane.b32.xlu2 %v10412_v14, %s8009_s26  ;;  %v5629_v46 = vpack.c.bf16 %v5628_v28, %v5628_v28 }
 0x969   :  { %v5496_v59 = vpop.f32.mrf.mxu3 }
 0x96a   :  { %v5500_v52 = vadd.f32 %v5496_v59, %v5469_v26  ;;  %v5059_v47 = vpop.permute.xlu1 %5058 }
 0x96b   :  { %v5158_v40 = vmax.f32 %v10365_v38, %v5059_v47  ;;  %v5689_v47 = vld [vmem:[#allocation4 + $0x44] ss:$224 sm:$0x2] }
 0x96d   :  { %v5218_v58 = vadd.f32 %v10123_v30, %v5158_v40  ;;  %4898 = vrot.lane.b32.xlu2 %v10073_v23, %s8008_s12 }
 0x96f   :  { %5274 = vst [vmem:[#allocation4 + $0x60] sm:$0xff] %v5218_v58 }
 0x971   :  { %v5498_v32 = vpop.f32.mrf.mxu3 }
 0x972   :  { %v5109_v57 = vpop.permute.xlu0 %5108  ;;  %v4949_v26 = vpop.permute.xlu1 %4948 }
 0x973   :  { %v5183_v54 = vmax.f32 %v10377_v24, %v5109_v57  ;;  %v10426_v38 = vmax.f32 %v10374_v33, %v4949_v26  ;;  %7332 = vmatmul.msk.bf16.vlgmr.msra.gmra.mxu3 %vm5338_vm1, %v5629_v46  ;;  %v5658_v24 = vld [vmem:[#allocation4 + $0x42] ss:$224 sm:$0x2] }
 0x974   :  { %5711 = vmatpush.bf16.msra.mxu3 %v7732_v20  ;;  %v5659_v33 = vor.u32 %v5658_v24, %v5657_v21  ;;  %v5719_v20 = vld [vmem:[#allocation4 + $0x46] ss:$224 sm:$0x1] }
 0x975   :  { %v5243_v9 = vadd.f32 %v10123_v30, %v5183_v54  ;;  %5116 = vrot.lane.b32.xlu2 %v10426_v38, %s8009_s26  ;;  %v7734_v26 = vld [vmem:[%s10789_s5 + $0x70] sm:$0xff]  ;;  %v7735_v54 = vld [vmem:[%s10789_s5 + $0x78] sm:$0xff] }
 0x976   :  { %v5660_v10 = vpack.c.bf16 %v5659_v33, %v5659_v33 }
 0x977   :  { %5299 = vst [vmem:[#allocation4 + $0x128] sm:$0xff] %v5243_v9 }
 0x979   :  { %v5527_v41 = vpop.f32.mrf.mxu3 }
 0x97a   :  { %v5531_v5 = vadd.f32 %v5527_v41, %v5500_v52  ;;  %v4893_v55 = vpop.permute.xlu0 %4892  ;;  %v5688_v52 = vld [vmem:[#allocation4 + $0x44] ss:$224 sm:$0x1] }
 0x97b   :  { %v10433_v3 = vmax.f32 %v10059_v12, %v4893_v55  ;;  %v5690_v56 = vor.u32 %v5689_v47, %v5688_v52  ;;  %v10993_v47 = vld [vmem:[#allocation84_spill] sm:$0xff] }
 0x97d   :  { %5060 = vrot.lane.b32.xlu1 %v10433_v3, %s8009_s26  ;;  %4900 = vrot.lane.b32.xlu2 %v10077_v35, %s8008_s12  ;;  %v5691_v60 = vpack.c.bf16 %v5690_v56, %v5690_v56 }
 0x981   :  { %v5529_v27 = vpop.f32.mrf.mxu3 }
 0x982   :  { %v4955_v22 = vpop.permute.xlu0 %4954 }
 0x983   :  { %v10443_v50 = vmax.f32 %v10390_v11, %v4955_v22  ;;  %7339 = vmatmul.msk.bf16.vlgmr.msrb.gmra.mxu3 %vm5338_vm1, %v5660_v10  ;;  %v5720_v11 = vld [vmem:[#allocation4 + $0x46] ss:$224 sm:$0x2]  ;;  %v7736_v10 = vld [vmem:[%s10789_s5 + $0x80] sm:$0xff]  ;;  %v10991_v22 = vld [vmem:[#allocation79_spill] sm:$0xff] }
 0x984   :  { %5742 = vmatpush.bf16.msrb.mxu3 %v7733_v61  ;;  %v5721_v32 = vor.u32 %v5720_v11, %v5719_v20  ;;  %v5751_v61 = vld [vmem:[#allocation4 + $0x48] ss:$224 sm:$0x2] }
 0x985   :  { %5122 = vrot.lane.b32.xlu1 %v10443_v50, %s8009_s26 }
 0x986   :  { %v5722_v57 = vpack.c.bf16 %v5721_v32, %v5721_v32 }
 0x989   :  { %v5558_v12 = vpop.f32.mrf.mxu3 }
 0x98a   :  { %v5562_v59 = vadd.f32 %v5558_v12, %v5531_v5  ;;  %v10992_v12 = vld [vmem:[#allocation78_spill] sm:$0xff] }
 0x991   :  { %v5560_v40 = vpop.f32.mrf.mxu3 }
 0x993   :  { %7346 = vmatmul.msk.bf16.vlgmr.msra.gmra.mxu3 %vm5338_vm1, %v5691_v60 }
 0x994   :  { %5773 = vmatpush.bf16.msra.mxu3 %v7734_v26 }
 0x999   :  { %v5589_v58 = vpop.f32.mrf.mxu3 }
 0x99a   :  { %v5593_v28 = vadd.f32 %v5589_v58, %v5562_v59  ;;  %v2863_v59 = vadd.f32 %v10992_v12, %v10991_v22  ;;  %v5843_v22 = vld [vmem:[#allocation4 + $0x64] ss:$224 sm:$0x1] }
 0x99c   :  { %v3373_v56 = vadd.f32 %v10993_v47, %v2863_v59  ;;  %v7739_v59 = vld [vmem:[%s10789_s5 + $0x98] sm:$0xff] }
 0x9a1   :  { %v5591_v46 = vpop.f32.mrf.mxu3 }
 0x9a3   :  { %7353 = vmatmul.msk.bf16.vlgmr.msrb.gmra.mxu3 %vm5338_vm1, %v5722_v57  ;;  %v5781_v57 = vld [vmem:[#allocation4 + $0x60] ss:$224 sm:$0x1] }
 0x9a4   :  { %5804 = vmatpush.bf16.msrb.mxu3 %v7735_v54  ;;  %v7737_v54 = vld [vmem:[%s10789_s5 + $0x88] sm:$0xff] }
 0x9b7   :  { %v5053_v9 = vpop.permute.xlu2 %5052 }
 0x9b8   :  { %v5155_v41 = vmax.f32 %v10404_v17, %v5053_v9 }
 0x9ba   :  { %v5215_v5 = vadd.f32 %v10123_v30, %v5155_v41 }
 0x9bc   :  { %5271 = vst [vmem:[#allocation4 + $0x48] sm:$0xff] %v5215_v5 }
 0x9bf   :  { %v5115_v55 = vpop.permute.xlu2 %5114 }
 0x9c0   :  { %v5186_v21 = vmax.f32 %v10412_v14, %v5115_v55  ;;  %v10994_v14 = vld [vmem:[#allocation87_spill] sm:$0xff] }
 0x9c1   :  { %v3867_v60 = vadd.f32 %v10994_v14, %v3373_v56  ;;  %v7760_v14 = vld [vmem:[%s10793_s9 + $0x38] sm:$0xff] }
 0x9c2   :  { %v5246_v24 = vadd.f32 %v10123_v30, %v5186_v21  ;;  %6248 = vmatpush.bf16.msra.mxu0 %v7760_v14  ;;  %v11004_v14 = vld [vmem:[#allocation90_spill] sm:$0xff] }
 0x9c3   :  { %v5750_v33 = vld [vmem:[#allocation4 + $0x48] ss:$224 sm:$0x1]  ;;  %v4361_v58 = vadd.f32 %v10224_v49, %v3867_v60 }
 0x9c4   :  { %5302 = vst [vmem:[#allocation4 + $0x140] sm:$0xff] %v5246_v24  ;;  %v5752_v27 = vor.u32 %v5751_v61, %v5750_v33 }
 0x9c5   :  { %v10475_v32 = vadd.f32 %v10212_v48, %v4361_v58 }
 0x9c6   :  { %v5753_v17 = vpack.c.bf16 %v5752_v27, %v5752_v27 }
 0x9c7   :  { %v4899_v52 = vpop.permute.xlu2 %4898 }
 0x9c8   :  { %v10467_v40 = vmax.f32 %v10073_v23, %v4899_v52  ;;  %7360 = vmatmul.msk.bf16.vlgmr.msra.gmra.mxu3 %vm5338_vm1, %v5753_v17 }
 0x9c9   :  { %5835 = vmatpush.bf16.msra.mxu3 %v7736_v10 }
 0x9ca   :  { %5066 = vrot.lane.b32.xlu0 %v10467_v40, %s8009_s26 }
 0x9cb   :  { %v5782_v11 = vld [vmem:[#allocation4 + $0x60] ss:$224 sm:$0x2]  ;;  %v5813_v48 = vld [vmem:[#allocation4 + $0x62] ss:$224 sm:$0x2] }
 0x9cc   :  { %v5783_v26 = vor.u32 %v5782_v11, %v5781_v57  ;;  %v5844_v27 = vld [vmem:[#allocation4 + $0x64] ss:$224 sm:$0x2] }
 0x9ce   :  { %v5784_v49 = vpack.c.bf16 %v5783_v26, %v5783_v26 }
 0x9cf   :  { %v5117_v20 = vpop.permute.xlu2 %5116 }
 0x9d0   :  { %v5187_v46 = vmax.f32 %v10426_v38, %v5117_v20  ;;  %v5812_v38 = vld [vmem:[#allocation4 + $0x62] ss:$224 sm:$0x1]  ;;  %v5875_v20 = vld [vmem:[#allocation4 + $0x66] ss:$224 sm:$0x2] }
 0x9d1   :  { %v5814_v5 = vor.u32 %v5813_v48, %v5812_v38  ;;  %v10996_v48 = vld [vmem:[#allocation82_spill] sm:$0xff] }
 0x9d2   :  { %v5247_v23 = vadd.f32 %v10123_v30, %v5187_v46  ;;  %4956 = vrot.lane.b32.xlu0 %v10475_v32, %s8008_s12 }
 0x9d3   :  { %v5815_v21 = vpack.c.bf16 %v5814_v5, %v5814_v5 }
 0x9d4   :  { %5303 = vst [vmem:[#allocation4 + $0x148] sm:$0xff] %v5247_v23 }
 0x9d7   :  { %v4901_v9 = vpop.permute.xlu2 %4900 }
 0x9d8   :  { %v10485_v41 = vmax.f32 %v10077_v35, %v4901_v9  ;;  %7367 = vmatmul.msk.bf16.vlgmr.msrb.gmra.mxu3 %vm5338_vm1, %v5784_v49  ;;  %v7738_v35 = vld [vmem:[%s10789_s5 + $0x90] sm:$0xff] }
 0x9d9   :  { %5866 = vmatpush.bf16.msrb.mxu3 %v7737_v54  ;;  %v10995_v9 = vld [vmem:[#allocation83_spill] sm:$0xff] }
 0x9da   :  { %5068 = vrot.lane.b32.xlu1 %v10485_v41, %s8009_s26  ;;  %4870 = vrot.lane.b32.xlu0 %v10003_v39, %s8008_s12  ;;  %v2868_v38 = vadd.f32 %v10996_v48, %v10995_v9  ;;  %v4802_v48 = vpop.f32.mrf.mxu2 }
 0x9db   :  { %v5906_v54 = vld [vmem:[#allocation4 + $0x68] ss:$224 sm:$0x2] }
 0x9e2   :  { %4872 = vrot.lane.b32.xlu1 %v10009_v45, %s8008_s12  ;;  %4880 = vrot.lane.b32.xlu0 %v10027_v6, %s8008_s12 }
 0x9e6   :  { %v5620_v55 = vpop.f32.mrf.mxu3 }
 0x9e7   :  { %v5624_v24 = vadd.f32 %v5620_v55, %v5593_v28  ;;  %v5845_v28 = vor.u32 %v5844_v27, %v5843_v22 }
 0x9e8   :  { %7374 = vmatmul.msk.bf16.vlgmr.msra.gmra.mxu3 %vm5338_vm1, %v5815_v21  ;;  %v10997_v21 = vld [vmem:[#allocation88_spill] sm:$0xff] }
 0x9e9   :  { %5897 = vmatpush.bf16.msra.mxu3 %v7738_v35  ;;  %v5846_v52 = vpack.c.bf16 %v5845_v28, %v5845_v28  ;;  %v11000_v28 = vld [vmem:[#allocation94_spill] sm:$0xff] }
 0x9ea   :  { %4886 = vrot.lane.b32.xlu1 %v10041_v15, %s8008_s12  ;;  %4894 = vrot.lane.b32.xlu0 %v10064_v19, %s8008_s12 }
 0x9ee   :  { %v5622_v33 = vpop.f32.mrf.mxu3 }
 0x9ef   :  { %v5061_v61 = vpop.permute.xlu1 %5060  ;;  %v10998_v33 = vld [vmem:[#allocation92_spill] sm:$0xff] }
 0x9f0   :  { %v5159_v10 = vmax.f32 %v10433_v3, %v5061_v61 }
 0x9f2   :  { %v5219_v12 = vadd.f32 %v10123_v30, %v5159_v10  ;;  %4896 = vrot.lane.b32.xlu1 %v10068_v42, %s8008_s12  ;;  %4904 = vrot.lane.b32.xlu0 %v10086_v36, %s8008_s12 }
 0x9f4   :  { %5275 = vst [vmem:[#allocation4 + $0x68] sm:$0xff] %v5219_v12  ;;  %v10999_v12 = vld [vmem:[#allocation89_spill] sm:$0xff] }
 0x9f6   :  { %v5651_v17 = vpop.f32.mrf.mxu3 }
 0x9f7   :  { %v5655_v47 = vadd.f32 %v5651_v17, %v5624_v24  ;;  %v5123_v56 = vpop.permute.xlu1 %5122  ;;  %v3375_v24 = vadd.f32 %v10997_v21, %v2868_v38  ;;  %v11001_v17 = vld [vmem:[#allocation95_spill] sm:$0xff] }
 0x9f8   :  { %v5190_v3 = vmax.f32 %v10443_v50, %v5123_v56  ;;  %7381 = vmatmul.msk.bf16.vlgmr.msrb.gmra.mxu3 %vm5338_vm1, %v5846_v52  ;;  %v5874_v50 = vld [vmem:[#allocation4 + $0x66] ss:$224 sm:$0x1]  ;;  %v11002_v52 = vld [vmem:[#allocation99_spill] sm:$0xff] }
 0x9f9   :  { %5928 = vmatpush.bf16.msrb.mxu3 %v7739_v59  ;;  %v5876_v11 = vor.u32 %v5875_v20, %v5874_v50  ;;  %v3869_v61 = vadd.f32 %v10998_v33, %v3375_v24  ;;  %v3870_v59 = vadd.f32 %v11000_v28, %v10999_v12  ;;  %v4308_v20 = vpop.f32.mrf.mxu1  ;;  %v7759_v21 = vld [vmem:[%s10793_s9 + $0x30] sm:$0xff]  ;;  %v4805_v33 = vpop.f32.mrf.mxu2  ;;  %v10603_v12 = vld [vmem:[%s10788_s4] ss:$0 sm:$0xff] }
 0x9fa   :  { %v5250_v60 = vadd.f32 %v10123_v30, %v5190_v3  ;;  %4906 = vrot.lane.b32.xlu1 %v10091_v16, %s8008_s12  ;;  %4910 = vrot.lane.b32.xlu0 %v10100_v43, %s8008_s12  ;;  %v11003_v3 = vld [vmem:[#allocation91_spill] sm:$0xff] }
 0x9fb   :  { %v5877_v30 = vpack.c.bf16 %v5876_v11, %v5876_v11  ;;  %v5905_v26 = vld [vmem:[#allocation4 + $0x68] ss:$224 sm:$0x1]  ;;  %v4363_v27 = vadd.f32 %v10241_v29, %v3869_v61  ;;  %v4364_v56 = vadd.f32 %v10248_v62, %v3870_v59  ;;  %v7740_v11 = vld [vmem:[%s10789_s5 + $0xa0] sm:$0xff]  ;;  %6249 = vmatpush.bf16.msra.mxu0 %v7759_v21 }
 0x9fc   :  { %5306 = vst [vmem:[#allocation4 + $0x160] sm:$0xff] %v5250_v60  ;;  %v5907_v49 = vor.u32 %v5906_v54, %v5905_v26  ;;  %v11008_v54 = vld [vmem:[#allocation101_spill] sm:$0xff] }
 0x9fd   :  { %v10547_v22 = vadd.f32 %v10227_v8, %v4363_v27  ;;  %v2878_v8 = vadd.f32 %v11004_v14, %v11003_v3  ;;  %v10568_v62 = vadd.f32 %v10243_v4, %v4364_v56 }
 0x9fe   :  { %v5653_v58 = vpop.f32.mrf.mxu3  ;;  %v5908_v35 = vpack.c.bf16 %v5907_v49, %v5907_v49 }
 0x9ff   :  { %v3814_v58 = vpop.f32.mrf.mxu0 }
 0xa02   :  { %4912 = vrot.lane.b32.xlu1 %v10104_v34, %s8008_s12  ;;  %4916 = vrot.lane.b32.xlu0 %v10113_v51, %s8008_s12 }
 0xa06   :  { %v5682_v46 = vpop.f32.mrf.mxu3 }
 0xa07   :  { %v5686_v57 = vadd.f32 %v5682_v46, %v5655_v47  ;;  %v3872_v47 = vadd.f32 %v11002_v52, %v11001_v17  ;;  %v11005_v46 = vld [vmem:[#allocation98_spill] sm:$0xff] }
 0xa08   :  { %7388 = vmatmul.msk.bf16.vlgmr.msra.gmra.mxu3 %vm5338_vm1, %v5877_v30  ;;  %v3379_v30 = vadd.f32 %v11005_v46, %v2878_v8 }
 0xa09   :  { %v4366_v29 = vadd.f32 %v10260_v1, %v3872_v47  ;;  %5959 = vmatpush.bf16.msra.mxu3 %v7740_v11  ;;  %v5937_v47 = vld [vmem:[#allocation4 + $0x80] ss:$224 sm:$0x2]  ;;  %v11010_v11 = vld [vmem:[#allocation8_spill] sm:$0xff] }
 0xa0a   :  { %4918 = vrot.lane.b32.xlu1 %v10118_v44, %s8008_s12  ;;  %4926 = vrot.lane.b32.xlu0 %v10149_v63, %s8008_s12  ;;  %v3873_v49 = vadd.f32 %v11008_v54, %v3379_v30 }
 0xa0b   :  { %v10571_v1 = vadd.f32 %v10258_v25, %v4366_v29 }
 0xa0c   :  { %v4367_v38 = vadd.f32 %v10264_v0, %v3873_v49  ;;  %v11009_v0 = vld [vmem:[#allocation104_spill] sm:$0xff] }
 0xa0d   :  { %v7743_v49 = vld [vmem:[%s10789_s5 + $0xb8] sm:$0xff] }
 0xa0e   :  { %v5684_v23 = vpop.f32.mrf.mxu3  ;;  %v10580_v4 = vadd.f32 %v10262_v2, %v4367_v38  ;;  %v7741_v2 = vld [vmem:[%s10789_s5 + $0xa8] sm:$0xff] }
 0xa0f   :  { %v11007_v23 = vld [vmem:[#allocation102_spill] sm:$0xff] }
 0xa12   :  { %4928 = vrot.lane.b32.xlu1 %v10153_v7, %s8008_s12  ;;  %4936 = vrot.lane.b32.xlu0 %v10176_v37, %s8008_s12 }
 0xa16   :  { %v5713_v5 = vpop.f32.mrf.mxu3 }
 0xa17   :  { %v5717_v55 = vadd.f32 %v5713_v5, %v5686_v57  ;;  %v11006_v57 = vld [vmem:[#allocation96_spill] sm:$0xff] }
 0xa18   :  { %7395 = vmatmul.msk.bf16.vlgmr.msrb.gmra.mxu3 %vm5338_vm1, %v5908_v35  ;;  %v3381_v26 = vadd.f32 %v11007_v23, %v11006_v57 }
 0xa19   :  { %5990 = vmatpush.bf16.msrb.mxu3 %v7741_v2 }
 0xa1a   :  { %4942 = vrot.lane.b32.xlu1 %v10185_v18, %s8008_s12  ;;  %4950 = vrot.lane.b32.xlu0 %v10202_v53, %s8008_s12  ;;  %v3875_v9 = vadd.f32 %v3814_v58, %v3381_v26  ;;  %v11011_v26 = vld [vmem:[#allocation11_spill] sm:$0xff] }
 0xa1c   :  { %v4369_v5 = vadd.f32 %v4308_v20, %v3875_v9 }
 0xa1e   :  { %v5715_v10 = vpop.f32.mrf.mxu3  ;;  %v10582_v25 = vadd.f32 %v4802_v48, %v4369_v5 }
 0xa22   :  { %4952 = vrot.lane.b32.xlu1 %v10210_v31, %s8008_s12  ;;  %4960 = vrot.lane.b32.xlu0 %v10547_v22, %s8008_s12 }
 0xa26   :  { %v5744_v60 = vpop.f32.mrf.mxu3 }
 0xa27   :  { %v5748_v50 = vadd.f32 %v5744_v60, %v5717_v55  ;;  %v4311_v55 = vpop.f32.mrf.mxu1 }
 0xa28   :  { %v4370_v24 = vadd.f32 %v4311_v55, %v11009_v0  ;;  %v11012_v55 = vld [vmem:[#allocation14_spill] sm:$0xff] }
 0xa29   :  { %v7758_v0 = vld [vmem:[%s10793_s9 + $0x28] sm:$0xff] }
 0xa2a   :  { %4962 = vrot.lane.b32.xlu1 %v10568_v62, %s8008_s12  ;;  %4966 = vrot.lane.b32.xlu0 %v10571_v1, %s8008_s12  ;;  %v10592_v61 = vadd.f32 %v4805_v33, %v4370_v24 }
 0xa2b   :  { %6250 = vmatpush.bf16.msra.mxu0 %v7758_v0 }
 0xa2e   :  { %v5746_v35 = vpop.f32.mrf.mxu3 }
 0xa32   :  { %4968 = vrot.lane.b32.xlu1 %v10580_v4, %s8008_s12  ;;  %4972 = vrot.lane.b32.xlu0 %v10582_v25, %s8008_s12 }
 0xa3a   :  { %4974 = vrot.lane.b32.xlu1 %v10592_v61, %s8008_s12 }
 0xa3c   :  { %v5067_v27 = vpop.permute.xlu0 %5066 }
 0xa3d   :  { %v5162_v10 = vmax.f32 %v10467_v40, %v5067_v27  ;;  %v7742_v40 = vld [vmem:[%s10789_s5 + $0xb0] sm:$0xff] }
 0xa3e   :  { %v5999_v27 = vld [vmem:[#allocation4 + $0x84] ss:$224 sm:$0x2] }
 0xa3f   :  { %v5222_v28 = vadd.f32 %v10603_v12, %v5162_v10  ;;  %v11013_v10 = vld [vmem:[#allocation10_spill] sm:$0xff] }
 0xa41   :  { %5278 = vst [vmem:[#allocation4 + $0x80] sm:$0xff] %v5222_v28 }
 0xa44   :  { %v4957_v59 = vpop.permute.xlu0 %4956 }
 0xa45   :  { %v10607_v17 = vmax.f32 %v10475_v32, %v4957_v59 }
 0xa47   :  { %5124 = vrot.lane.b32.xlu2 %v10607_v17, %s8009_s26 }
 0xa48   :  { %v5936_v52 = vld [vmem:[#allocation4 + $0x80] ss:$224 sm:$0x1]  ;;  %v5967_v57 = vld [vmem:[#allocation4 + $0x82] ss:$224 sm:$0x1] }
 0xa49   :  { %v5938_v56 = vor.u32 %v5937_v47, %v5936_v52 }
 0xa4b   :  { %v5775_v29 = vpop.f32.mrf.mxu3  ;;  %v5939_v3 = vpack.c.bf16 %v5938_v56, %v5938_v56 }
 0xa4c   :  { %v5779_v14 = vadd.f32 %v5775_v29, %v5748_v50  ;;  %v5069_v8 = vpop.permute.xlu1 %5068  ;;  %v4871_v60 = vpop.permute.xlu0 %4870 }
 0xa4d   :  { %v5163_v58 = vmax.f32 %v10485_v41, %v5069_v8  ;;  %v4980_v32 = vmax.f32 %v10003_v39, %v4871_v60  ;;  %7402 = vmatmul.msk.bf16.vlgmr.msra.gmra.mxu3 %vm5338_vm1, %v5939_v3  ;;  %v5968_v39 = vld [vmem:[#allocation4 + $0x82] ss:$224 sm:$0x2]  ;;  %v6029_v60 = vld [vmem:[#allocation4 + $0x86] ss:$224 sm:$0x1] }
 0xa4e   :  { %6021 = vmatpush.bf16.msra.mxu3 %v7742_v40  ;;  %v5969_v54 = vor.u32 %v5968_v39, %v5967_v57 }
 0xa4f   :  { %v5223_v20 = vadd.f32 %v10603_v12, %v5163_v58  ;;  %4878 = vrot.lane.b32.xlu2 %v11010_v11, %s8008_s12  ;;  %5038 = vrot.lane.b32.xlu0 %v4980_v32, %s8009_s26 }
 0xa50   :  { %v5970_v48 = vpack.c.bf16 %v5969_v54, %v5969_v54 }
 0xa51   :  { %5279 = vst [vmem:[#allocation4 + $0x88] sm:$0xff] %v5223_v20 }
 0xa53   :  { %v5777_v46 = vpop.f32.mrf.mxu3 }
 0xa54   :  { %v4873_v30 = vpop.permute.xlu1 %4872  ;;  %v4881_v50 = vpop.permute.xlu0 %4880 }
 0xa55   :  { %v4981_v23 = vmax.f32 %v10009_v45, %v4873_v30  ;;  %v4985_v41 = vmax.f32 %v10027_v6, %v4881_v50 }
 0xa57   :  { %4888 = vrot.lane.b32.xlu2 %v11011_v26, %s8008_s12  ;;  %5040 = vrot.lane.b32.xlu1 %v4981_v23, %s8009_s26 }
 0xa58   :  { %5048 = vrot.lane.b32.xlu0 %v4985_v41, %s8009_s26 }
 0xa5b   :  { %v5806_v9 = vpop.f32.mrf.mxu3 }
 0xa5c   :  { %v5810_v38 = vadd.f32 %v5806_v9, %v5779_v14  ;;  %v4887_v5 = vpop.permute.xlu1 %4886  ;;  %v4895_v45 = vpop.permute.xlu0 %4894 }
 0xa5d   :  { %v4988_v6 = vmax.f32 %v10041_v15, %v4887_v5  ;;  %v4992_v35 = vmax.f32 %v10064_v19, %v4895_v45  ;;  %7409 = vmatmul.msk.bf16.vlgmr.msrb.gmra.mxu3 %vm5338_vm1, %v5970_v48  ;;  %v5998_v15 = vld [vmem:[#allocation4 + $0x84] ss:$224 sm:$0x1] }
 0xa5e   :  { %6052 = vmatpush.bf16.msrb.mxu3 %v7743_v49  ;;  %v6000_v28 = vor.u32 %v5999_v27, %v5998_v15 }
 0xa5f   :  { %4902 = vrot.lane.b32.xlu2 %v11012_v55, %s8008_s12  ;;  %5054 = vrot.lane.b32.xlu1 %v4988_v6, %s8009_s26 }
 0xa60   :  { %5062 = vrot.lane.b32.xlu0 %v4992_v35, %s8009_s26  ;;  %v6001_v52 = vpack.c.bf16 %v6000_v28, %v6000_v28  ;;  %v11018_v35 = vld [vmem:[#allocation20_spill] sm:$0xff] }
 0xa63   :  { %v5808_v21 = vpop.f32.mrf.mxu3 }
 0xa64   :  { %v4897_v24 = vpop.permute.xlu1 %4896  ;;  %v4905_v33 = vpop.permute.xlu0 %4904 }
 0xa65   :  { %v4993_v19 = vmax.f32 %v10068_v42, %v4897_v24  ;;  %v4997_v2 = vmax.f32 %v10086_v36, %v4905_v33  ;;  %v11014_v36 = vld [vmem:[#allocation9_spill] sm:$0xff] }
 0xa67   :  { %4908 = vrot.lane.b32.xlu2 %v11013_v10, %s8008_s12  ;;  %5064 = vrot.lane.b32.xlu1 %v4993_v19, %s8009_s26  ;;  %v11019_v19 = vld [vmem:[#allocation22_spill] sm:$0xff] }
 0xa68   :  { %5072 = vrot.lane.b32.xlu0 %v4997_v2, %s8009_s26 }
 0xa6b   :  { %v5837_v59 = vpop.f32.mrf.mxu3 }
 0xa6c   :  { %v5841_v47 = vadd.f32 %v5837_v59, %v5810_v38  ;;  %v4907_v56 = vpop.permute.xlu1 %4906  ;;  %v4911_v40 = vpop.permute.xlu0 %4910  ;;  %v11020_v59 = vld [vmem:[#allocation100_spill] sm:$0xff] }
 0xa6d   :  { %v4998_v29 = vmax.f32 %v10091_v16, %v4907_v56  ;;  %v5000_v42 = vmax.f32 %v10100_v43, %v4911_v40  ;;  %7416 = vmatmul.msk.bf16.vlgmr.msra.gmra.mxu3 %vm5338_vm1, %v6001_v52  ;;  %v6030_v16 = vld [vmem:[#allocation4 + $0x86] ss:$224 sm:$0x2]  ;;  %v11015_v43 = vld [vmem:[#allocation13_spill] sm:$0xff]  ;;  %v4313_v56 = vpop.f32.mrf.mxu1 }
 0xa6e   :  { %v6031_v20 = vor.u32 %v6030_v16, %v6029_v60 }
 0xa6f   :  { %4914 = vrot.lane.b32.xlu2 %v11014_v36, %s8008_s12  ;;  %5074 = vrot.lane.b32.xlu1 %v4998_v29, %s8009_s26  ;;  %v11022_v29 = vld [vmem:[#allocation16_spill] sm:$0xff] }
 0xa70   :  { %5078 = vrot.lane.b32.xlu0 %v5000_v42, %s8009_s26  ;;  %v6032_v30 = vpack.c.bf16 %v6031_v20, %v6031_v20 }
 0xa73   :  { %v5839_v3 = vpop.f32.mrf.mxu3 }
 0xa74   :  { %v4913_v14 = vpop.permute.xlu1 %4912  ;;  %v4917_v8 = vpop.permute.xlu0 %4916 }
 0xa75   :  { %v5001_v58 = vmax.f32 %v10104_v34, %v4913_v14  ;;  %v5003_v32 = vmax.f32 %v10113_v51, %v4917_v8  ;;  %v11016_v51 = vld [vmem:[#allocation12_spill] sm:$0xff]  ;;  %v4807_v14 = vpop.f32.mrf.mxu2 }
 0xa77   :  { %4920 = vrot.lane.b32.xlu2 %v11015_v43, %s8008_s12  ;;  %5080 = vrot.lane.b32.xlu1 %v5001_v58, %s8009_s26 }
 0xa78   :  { %5084 = vrot.lane.b32.xlu0 %v5003_v32, %s8009_s26 }
 0xa7b   :  { %v5868_v46 = vpop.f32.mrf.mxu3 }
 0xa7c   :  { %v5872_v50 = vadd.f32 %v5868_v46, %v5841_v47  ;;  %v4919_v57 = vpop.permute.xlu1 %4918  ;;  %v4927_v23 = vpop.permute.xlu0 %4926 }
 0xa7d   :  { %v5004_v41 = vmax.f32 %v10118_v44, %v4919_v57  ;;  %v5008_v34 = vmax.f32 %v10149_v63, %v4927_v23  ;;  %7423 = vmatmul.msk.bf16.vlgmr.msrb.gmra.mxu3 %vm5338_vm1, %v6032_v30  ;;  %v7744_v44 = vld [vmem:[%s10789_s5 + $0xc0] sm:$0xff]  ;;  %v6060_v30 = vld [vmem:[#allocation4 + $0x88] ss:$224 sm:$0x1] }
 0xa7e   :  { %v11017_v63 = vld [vmem:[#allocation17_spill] sm:$0xff]  ;;  %6083 = vmatpush.bf16.msra.mxu3 %v7744_v44 }
 0xa7f   :  { %4934 = vrot.lane.b32.xlu2 %v11016_v51, %s8008_s12  ;;  %5086 = vrot.lane.b32.xlu1 %v5004_v41, %s8009_s26 }
 0xa80   :  { %5094 = vrot.lane.b32.xlu0 %v5008_v34, %s8009_s26 }
 0xa83   :  { %v5870_v39 = vpop.f32.mrf.mxu3 }
 0xa84   :  { %v4929_v54 = vpop.permute.xlu1 %4928  ;;  %v4937_v49 = vpop.permute.xlu0 %4936 }
 0xa85   :  { %v5009_v9 = vmax.f32 %v10153_v7, %v4929_v54  ;;  %v5013_v48 = vmax.f32 %v10176_v37, %v4937_v49 }
 0xa87   :  { %4944 = vrot.lane.b32.xlu2 %v11017_v63, %s8008_s12  ;;  %5096 = vrot.lane.b32.xlu1 %v5009_v9, %s8009_s26 }
 0xa88   :  { %5104 = vrot.lane.b32.xlu0 %v5013_v48, %s8009_s26 }
 0xa8b   :  { %v5899_v38 = vpop.f32.mrf.mxu3 }
 0xa8c   :  { %v5903_v5 = vadd.f32 %v5899_v38, %v5872_v50  ;;  %v4943_v45 = vpop.permute.xlu1 %4942  ;;  %v4951_v6 = vpop.permute.xlu0 %4950 }
 0xa8d   :  { %v5016_v7 = vmax.f32 %v10185_v18, %v4943_v45  ;;  %v5020_v37 = vmax.f32 %v10202_v53, %v4951_v6  ;;  %v7757_v18 = vld [vmem:[%s10793_s9 + $0x20] sm:$0xff] }
 0xa8e   :  { %6251 = vmatpush.bf16.msra.mxu0 %v7757_v18 }
 0xa8f   :  { %4958 = vrot.lane.b32.xlu2 %v11018_v35, %s8008_s12  ;;  %5110 = vrot.lane.b32.xlu1 %v5016_v7, %s8009_s26 }
 0xa90   :  { %5118 = vrot.lane.b32.xlu0 %v5020_v37, %s8009_s26 }
 0xa93   :  { %v5901_v21 = vpop.f32.mrf.mxu3 }
 0xa94   :  { %v4953_v0 = vpop.permute.xlu1 %4952  ;;  %v4961_v24 = vpop.permute.xlu0 %4960 }
 0xa95   :  { %v5021_v33 = vmax.f32 %v10210_v31, %v4953_v0  ;;  %v5025_v15 = vmax.f32 %v10547_v22, %v4961_v24  ;;  %v11021_v31 = vld [vmem:[#allocation103_spill] sm:$0xff] }
 0xa96   :  { %v3383_v52 = vadd.f32 %v11021_v31, %v11020_v59 }
 0xa97   :  { %4964 = vrot.lane.b32.xlu2 %v11019_v19, %s8008_s12  ;;  %5120 = vrot.lane.b32.xlu1 %v5021_v33, %s8009_s26 }
 0xa98   :  { %5128 = vrot.lane.b32.xlu0 %v5025_v15, %s8009_s26  ;;  %v3877_v40 = vadd.f32 %v10341_v13, %v3383_v52 }
 0xa9a   :  { %v4371_v42 = vadd.f32 %v4313_v56, %v3877_v40 }
 0xa9b   :  { %v5930_v53 = vpop.f32.mrf.mxu3 }
 0xa9c   :  { %v5934_v2 = vadd.f32 %v5930_v53, %v5903_v5  ;;  %v4963_v27 = vpop.permute.xlu1 %4962  ;;  %v4967_v28 = vpop.permute.xlu0 %4966  ;;  %v10701_v32 = vadd.f32 %v4807_v14, %v4371_v42 }
 0xa9d   :  { %v5026_v22 = vmax.f32 %v10568_v62, %v4963_v27  ;;  %v5028_v47 = vmax.f32 %v10571_v1, %v4967_v28 }
 0xa9f   :  { %5130 = vrot.lane.b32.xlu1 %v5026_v22, %s8009_s26  ;;  %4970 = vrot.lane.b32.xlu2 %v11022_v29, %s8008_s12 }
 0xaa0   :  { %5134 = vrot.lane.b32.xlu0 %v5028_v47, %s8009_s26 }
 0xaa1   :  { %v5125_v3 = vpop.permute.xlu2 %5124 }
 0xaa2   :  { %v5191_v8 = vmax.f32 %v10607_v17, %v5125_v3 }
 0xaa3   :  { %v5932_v60 = vpop.f32.mrf.mxu3 }
 0xaa4   :  { %v5251_v62 = vadd.f32 %v10603_v12, %v5191_v8  ;;  %v4969_v58 = vpop.permute.xlu1 %4968  ;;  %v4973_v1 = vpop.permute.xlu0 %4972  ;;  %v7752_v8 = vld [vmem:[%s10791_s7 + $0x38] sm:$0xff] }
 0xaa5   :  { %v5029_v13 = vmax.f32 %v10580_v4, %v4969_v58  ;;  %v5031_v16 = vmax.f32 %v10582_v25, %v4973_v1  ;;  %6165 = vmatpush.bf16.msrb.mxu3 %v7752_v8  ;;  %v7751_v1 = vld [vmem:[%s10791_s7 + $0x30] sm:$0xff] }
 0xaa6   :  { %5307 = vst [vmem:[#allocation4 + $0x168] sm:$0xff] %v5251_v62 }
 0xaa7   :  { %5136 = vrot.lane.b32.xlu1 %v5029_v13, %s8009_s26  ;;  %4976 = vrot.lane.b32.xlu2 %v10701_v32, %s8008_s12  ;;  %v7750_v13 = vld [vmem:[%s10791_s7 + $0x28] sm:$0xff] }
 0xaa8   :  { %5140 = vrot.lane.b32.xlu0 %v5031_v16, %s8009_s26 }
 0xaa9   :  { %v4879_v17 = vpop.permute.xlu2 %4878  ;;  %6166 = vmatpush.bf16.msrb.mxu3 %v7751_v1 }
 0xaaa   :  { %v4984_v12 = vmax.f32 %v11010_v11, %v4879_v17 }
 0xaac   :  { %v4975_v20 = vpop.permute.xlu1 %4974 }
 0xaad   :  { %v5032_v46 = vmax.f32 %v10592_v61, %v4975_v20  ;;  %v6061_v50 = vld [vmem:[#allocation4 + $0x88] ss:$224 sm:$0x2]  ;;  %6167 = vmatpush.bf16.msrb.mxu3 %v7750_v13 }
 0xaae   :  { %v6062_v57 = vor.u32 %v6061_v50, %v6060_v30 }
 0xaaf   :  { %5142 = vrot.lane.b32.xlu1 %v5032_v46, %s8009_s26  ;;  %5046 = vrot.lane.b32.xlu2 %v4984_v12, %s8009_s26  ;;  %v7749_v12 = vld [vmem:[%s10791_s7 + $0x20] sm:$0xff]  ;;  %v7748_v46 = vld [vmem:[%s10791_s7 + $0x18] sm:$0xff] }
 0xab0   :  { %v6063_v4 = vpack.c.bf16 %v6062_v57, %v6062_v57 }
 0xab1   :  { %v4889_v25 = vpop.permute.xlu2 %4888  ;;  %6168 = vmatpush.bf16.msrb.mxu3 %v7749_v12 }
 0xab2   :  { %7430 = vmatmul.msk.bf16.vlgmr.msra.gmra.mxu3 %vm5338_vm1, %v6063_v4  ;;  %v4989_v23 = vmax.f32 %v11011_v26, %v4889_v25  ;;  %v7747_v4 = vld [vmem:[%s10791_s7 + $0x10] sm:$0xff] }
 0xab5   :  { %6169 = vmatpush.bf16.msrb.mxu3 %v7748_v46 }
 0xab7   :  { %5056 = vrot.lane.b32.xlu2 %v4989_v23, %s8009_s26 }
 0xab9   :  { %v4903_v41 = vpop.permute.xlu2 %4902  ;;  %6170 = vmatpush.bf16.msrb.mxu3 %v7747_v4 }
 0xaba   :  { %v4996_v11 = vmax.f32 %v11012_v55, %v4903_v41  ;;  %v7756_v55 = vld [vmem:[%s10793_s9 + $0x18] sm:$0xff]  ;;  %v7746_v41 = vld [vmem:[%s10791_s7 + $0x8] sm:$0xff] }
 0xabb   :  { %6252 = vmatpush.bf16.msra.mxu0 %v7756_v55 }
 0xabd   :  { %6171 = vmatpush.bf16.msrb.mxu3 %v7746_v41 }
 0xabf   :  { %5070 = vrot.lane.b32.xlu2 %v4996_v11, %s8009_s26 }
 0xac1   :  { %v4909_v61 = vpop.permute.xlu2 %4908  ;;  %v5039_v34 = vpop.permute.xlu0 %5038 }
 0xac2   :  { %v4999_v39 = vmax.f32 %v11013_v10, %v4909_v61  ;;  %v7745_v61 = vld [vmem:[%s10791_s7] sm:$0xff] }
 0xac3   :  { %6172 = vmatpush.bf16.msrb.mxu3 %v7745_v61 }
 0xac7   :  { %5076 = vrot.lane.b32.xlu2 %v4999_v39, %s8009_s26 }
 0xac9   :  { %v4915_v54 = vpop.permute.xlu2 %4914  ;;  %v5041_v49 = vpop.permute.xlu1 %5040 }
 0xaca   :  { %v5049_v9 = vpop.permute.xlu0 %5048  ;;  %v5002_v48 = vmax.f32 %v11014_v36, %v4915_v54 }
 0xacf   :  { %5082 = vrot.lane.b32.xlu2 %v5002_v48, %s8009_s26  ;;  %v7947_v48 = vld [vmem:[%s10790_s6] ss:$0 sm:$0xff] }
 0xad0   :  { %v5961_v26 = vpop.f32.mrf.mxu3 }
 0xad1   :  { %v5965_v44 = vadd.f32 %v5961_v26, %v5934_v2  ;;  %v4921_v38 = vpop.permute.xlu2 %4920  ;;  %v5055_v5 = vpop.permute.xlu1 %5054 }
 0xad2   :  { %v5063_v45 = vpop.permute.xlu0 %5062  ;;  %v5005_v10 = vmax.f32 %v11015_v43, %v4921_v38 }
 0xad7   :  { %5088 = vrot.lane.b32.xlu2 %v5005_v10, %s8009_s26 }
 0xad8   :  { %v5963_v6 = vpop.f32.mrf.mxu3 }
 0xad9   :  { %v4935_v7 = vpop.permute.xlu2 %4934  ;;  %v5065_v37 = vpop.permute.xlu1 %5064  ;;  %v7754_v6 = vld [vmem:[%s10793_s9 + $0x8] sm:$0xff] }
 0xada   :  { %v5073_v36 = vpop.permute.xlu0 %5072  ;;  %v5012_v21 = vmax.f32 %v11016_v51, %v4935_v7  ;;  %v7753_v37 = vld [vmem:[%s10793_s9] sm:$0xff] }
 0xadf   :  { %5102 = vrot.lane.b32.xlu2 %v5012_v21, %s8009_s26 }
 0xae0   :  { %v5992_v0 = vpop.f32.mrf.mxu3 }
 0xae1   :  { %v5996_v24 = vadd.f32 %v5992_v0, %v5965_v44  ;;  %v4945_v33 = vpop.permute.xlu2 %4944  ;;  %v5075_v15 = vpop.permute.xlu1 %5074 }
 0xae2   :  { %v5079_v18 = vpop.permute.xlu0 %5078  ;;  %v5017_v53 = vmax.f32 %v11017_v63, %v4945_v33  ;;  %v7948_v33 = vld [vmem:[%s10792_s8] ss:$0 sm:$0xff] }
 0xae7   :  { %5112 = vrot.lane.b32.xlu2 %v5017_v53, %s8009_s26 }
 0xae8   :  { %v5994_v43 = vpop.f32.mrf.mxu3 }
 0xae9   :  { %v4959_v2 = vpop.permute.xlu2 %4958  ;;  %v5081_v27 = vpop.permute.xlu1 %5080 }
 0xaea   :  { %v5085_v28 = vpop.permute.xlu0 %5084  ;;  %v5024_v59 = vmax.f32 %v11018_v35, %v4959_v2  ;;  %v7949_v27 = vld [vmem:[%s10794_s10] ss:$0 sm:$0xff] }
 0xaef   :  { %5126 = vrot.lane.b32.xlu2 %v5024_v59, %s8009_s26 }
 0xaf0   :  { %v6023_v51 = vpop.f32.mrf.mxu3 }
 0xaf1   :  { %v6027_v31 = vadd.f32 %v6023_v51, %v5996_v24  ;;  %v4965_v52 = vpop.permute.xlu2 %4964  ;;  %v5087_v22 = vpop.permute.xlu1 %5086 }
 0xaf2   :  { %v5095_v47 = vpop.permute.xlu0 %5094  ;;  %v5027_v56 = vmax.f32 %v11019_v19, %v4965_v52 }
 0xaf7   :  { %5132 = vrot.lane.b32.xlu2 %v5027_v56, %s8009_s26 }
 0xaf8   :  { %v6025_v63 = vpop.f32.mrf.mxu3 }
 0xaf9   :  { %v5097_v40 = vpop.permute.xlu1 %5096  ;;  %v4971_v42 = vpop.permute.xlu2 %4970 }
 0xafa   :  { %v5105_v3 = vpop.permute.xlu0 %5104  ;;  %v5030_v14 = vmax.f32 %v11022_v29, %v4971_v42  ;;  %v7755_v29 = vld [vmem:[%s10793_s9 + $0x10] sm:$0xff]  ;;  %s8016_s9 = smov [#allocation5]  }
 0xafb   :  { %6253 = vmatpush.bf16.msra.mxu0 %v7755_v29  ;;  %s6267_s16 = sshll.u32 %s8016_s9, 4  ;;  %s6268_s16 = int_to_ptr.vmem [resolvable:$true] %s6267_s16 }
 0xaff   :  { %5138 = vrot.lane.b32.xlu2 %v5030_v14, %s8009_s26  ;;  %6254 = vmatpush.bf16.msra.mxu0 %v7754_v6 }
 0xb00   :  { %v6054_v35 = vpop.f32.mrf.mxu3 }
 0xb01   :  { %v5111_v60 = vpop.permute.xlu1 %5110  ;;  %v4977_v62 = vpop.permute.xlu2 %4976  ;;  %v6058_v9 = vadd.f32 %v6054_v35, %v6027_v31 }
 0xb02   :  { %v5119_v58 = vpop.permute.xlu0 %5118  ;;  %v5033_v19 = vmax.f32 %v10701_v32, %v4977_v62 }
 0xb03   :  { %6255 = vmatpush.bf16.msra.mxu0 %v7753_v37 }
 0xb07   :  { %5144 = vrot.lane.b32.xlu2 %v5033_v19, %s8009_s26 }
 0xb08   :  { %v6056_v16 = vpop.f32.mrf.mxu3 }
 0xb09   :  { %v5121_v17 = vpop.permute.xlu1 %5120  ;;  %v5047_v20 = vpop.permute.xlu2 %5046 }
 0xb0a   :  { %v5129_v32 = vpop.permute.xlu0 %5128 }
 0xb11   :  { %v5131_v30 = vpop.permute.xlu1 %5130  ;;  %v5057_v50 = vpop.permute.xlu2 %5056 }
 0xb12   :  { %v5135_v57 = vpop.permute.xlu0 %5134 }
 0xb19   :  { %v5137_v25 = vpop.permute.xlu1 %5136  ;;  %v5071_v23 = vpop.permute.xlu2 %5070 }
 0xb1a   :  { %v5141_v11 = vpop.permute.xlu0 %5140 }
 0xb21   :  { %v5143_v34 = vpop.permute.xlu1 %5142  ;;  %v5077_v39 = vpop.permute.xlu2 %5076 }
 0xb29   :  { %v5083_v54 = vpop.permute.xlu2 %5082 }
 0xb31   :  { %v5089_v49 = vpop.permute.xlu2 %5088 }
 0xb35   :  { %v6085_v26 = vpop.f32.mrf.mxu3 }
 0xb36   :  { %v6089_v44 = vadd.f32 %v6085_v26, %v6058_v9 }
 0xb38   :  { %v6094_v38 = vadd.f32 %v7947_v48, %v6089_v44 }
 0xb39   :  { %v5103_v5 = vpop.permute.xlu2 %5102 }
 0xb3a   :  { %v6095_v55 = vmax.f32 %v6094_v38, 0.0 }
 0xb3c   :  { %v6096_v45 = vpack.c.bf16 %v6095_v55, %v6095_v55 }
 0xb3d   :  { %v6087_v10 = vpop.f32.mrf.mxu3 }
 0xb3e   :  { %6173 = vmatmul.bf16.vlgmr.msrb.gmra.mxu3 %v6096_v45 }
 0xb41   :  { %v5113_v7 = vpop.permute.xlu2 %5112 }
 0xb49   :  { %v5127_v36 = vpop.permute.xlu2 %5126 }
 0xb51   :  { %v5133_v21 = vpop.permute.xlu2 %5132 }
 0xb59   :  { %v5139_v0 = vpop.permute.xlu2 %5138 }
 0xb61   :  { %v5145_v24 = vpop.permute.xlu2 %5144 }
 0xbc1   :  { %v6174_v15 = vpop.f32.mrf.mxu3 }
 0xbc2   :  { %v6175_v18 = vadd.f32 %v7948_v33, %v6174_v15 }
 0xbc4   :  { %v6178_v53 = vmax.f32 %v6175_v18, 0.0 }
 0xbc6   :  { %v6179_v43 = vpack.c.bf16 %v6178_v53, %v6178_v53 }
 0xbc8   :  { %6256 = vmatmul.bf16.vlgmr.msra.gmra.mxu0 %v6179_v43 }
 0xbc9   :  { %v6176_v2 = vpop.f32.mrf.mxu3 }
 0xc45   :  { %v6257_v28 = vpop.f32.mrf.mxu0 }
 0xc46   :  { %v6258_v59 = vadd.f32 %v7949_v27, %v6257_v28 }
 0xc48   :  { %6261 = vst [vmem:[#allocation5] sm:$0x3] %v6258_v59 }
 0xc49   :  { %6272 = dma.vmem_to_hbm [thread:$0]  %s6268_s16, 32, %s6270_s17, [#allocation6]  }
 0xc4d   :  { %v6259_v51 = vpop.f32.mrf.mxu0 }
 0xc4e   :  { %8006 = dma.done.wait [#allocation6], 32  }
 0xc4f   :  { %8007 = vsyncadd [#allocation6], 4294967264 }
 0xc50   :  { %6277 = vsyncpa [#allocation6], 1 }

</bundles_post_ra>
